<compile_context>
chip_gen: v7x
topology: tpu7x:2x2x1
jax: 0.10.0
libtpu: 0.0.40
codegen_flags: <defaults>
</compile_context>

<pallas_src>
import jax
import jax.numpy as jnp
from jax import lax
from jax.experimental import pallas as pl
from jax.experimental.pallas import tpu as pltpu

HIDDEN = 256       # cnn.fc.out_features == LSTM hidden size
NUM_STEPS = 8      # CNNLSTMPolicy.num_steps
HEAD_PAD = 128     # lane-dense fused head width (mean cols + value col + zero pad)


# ---------------------------------------------------------------------------
# Kernel 1: tiled matmul + bias + relu (conv1 / conv2 im2col GEMMs)
# ---------------------------------------------------------------------------
def _matmul_bias_relu_kernel(x_ref, w_ref, b_ref, o_ref):
    y = jnp.dot(x_ref[...], w_ref[...], preferred_element_type=jnp.float32)
    o_ref[...] = jnp.maximum(y + b_ref[...], 0.0)


def _pick_tile_m(m, cap=4096):
    """Largest divisor of m that is a multiple of 8 and <= cap (fallback: m)."""
    if m <= cap:
        return m
    for t in range(cap, 7, -1):
        if m % t == 0 and t % 8 == 0:
            return t
    return m


def matmul_bias_relu(x, w, b):
    m, k = x.shape
    k2, n = w.shape
    assert k == k2
    tm = _pick_tile_m(m)
    cost = pl.CostEstimate(flops=2 * m * k * n, transcendentals=0,
                           bytes_accessed=4 * (m * k + k * n + n + m * n))
    return pl.pallas_call(
        _matmul_bias_relu_kernel,
        out_shape=jax.ShapeDtypeStruct((m, n), jnp.float32),
        grid=(m // tm,),
        in_specs=[
            pl.BlockSpec((tm, k), lambda i: (i, 0)),   # row tiles of the patches
            pl.BlockSpec((k, n), lambda i: (0, 0)),    # weight resident
            pl.BlockSpec((1, n), lambda i: (0, 0)),    # bias resident
        ],
        out_specs=pl.BlockSpec((tm, n), lambda i: (i, 0)),
        compiler_params=pltpu.CompilerParams(dimension_semantics=("parallel",)),
        cost_estimate=cost,
    )(x, w, b)


# ---------------------------------------------------------------------------
# Kernel 2: fused fc(3200->256)+relu, 8-step LSTM, packed mean/value head.
# x is sequence-major [n_seq, T, 3200]; grid is over sequence blocks.
# Output is lane-dense [n_seq, T, 128] (action in cols 0..A-1, value in col A).
# ---------------------------------------------------------------------------
def _fc_lstm_head_kernel(x_ref, wfc_ref, bfc_ref, wih_ref, whh_ref, blstm_ref,
                         whead_ref, bhead_ref, y_ref, hs_sc):
    seq_tile, t_steps, f_in = x_ref.shape
    h_dim = whh_ref.shape[0]

    # ---- hoisted non-recurrent GEMMs over all seq_tile*T rows --------------
    x2d = x_ref[...].reshape(seq_tile * t_steps, f_in)
    feat = jnp.maximum(
        jnp.dot(x2d, wfc_ref[...], preferred_element_type=jnp.float32)
        + bfc_ref[...], 0.0)                                  # [S*T, 256]
    gates_x = (jnp.dot(feat, wih_ref[...], preferred_element_type=jnp.float32)
               + blstm_ref[...]).reshape(seq_tile, t_steps, 4 * h_dim)

    # ---- 8-step recurrence, fully unrolled; only h @ W_hh inside -----------
    w_hh = whh_ref[...]
    h = jnp.zeros((seq_tile, h_dim), jnp.float32)
    c = jnp.zeros((seq_tile, h_dim), jnp.float32)
    for t in range(t_steps):                                  # static unroll
        gates = gates_x[:, t, :] + jnp.dot(
            h, w_hh, preferred_element_type=jnp.float32)      # [S, 4H]
        i_g = jax.nn.sigmoid(gates[:, 0 * h_dim:1 * h_dim])
        f_g = jax.nn.sigmoid(gates[:, 1 * h_dim:2 * h_dim])
        g_g = jnp.tanh(gates[:, 2 * h_dim:3 * h_dim])
        o_g = jax.nn.sigmoid(gates[:, 3 * h_dim:4 * h_dim])
        c = f_g * c + i_g * g_g
        h = o_g * jnp.tanh(c)
        hs_sc[:, t, :] = h

    # ---- hoisted packed head GEMM, single lane-dense store -----------------
    h_all = hs_sc[...].reshape(seq_tile * t_steps, h_dim)
    y = (jnp.dot(h_all, whead_ref[...], preferred_element_type=jnp.float32)
         + bhead_ref[...])                                    # [S*T, 128]
    y_ref[...] = y.reshape(seq_tile, t_steps, y.shape[-1])


# ---------------------------------------------------------------------------
# One-time parameter preprocessing (hoisted out of the per-call forward)
# ---------------------------------------------------------------------------
def prepare_params(params):
    a_dim = params["w_mean"].shape[1]
    assert a_dim + 1 <= HEAD_PAD, "packed head requires action_dim + 1 <= 128"
    w_head = jnp.zeros((HIDDEN, HEAD_PAD), jnp.float32)
    w_head = w_head.at[:, :a_dim].set(params["w_mean"])
    w_head = w_head.at[:, a_dim].set(params["w_val"][:, 0])
    b_head = jnp.zeros((1, HEAD_PAD), jnp.float32)
    b_head = b_head.at[0, :a_dim].set(params["b_mean"][0])
    b_head = b_head.at[0, a_dim].set(params["b_val"][0, 0])
    return {
        "w_conv1": params["w_conv1"].reshape(-1, params["w_conv1"].shape[-1]),
        "b_conv1": params["b_conv1"],
        "w_conv2": params["w_conv2"].reshape(-1, params["w_conv2"].shape[-1]),
        "b_conv2": params["b_conv2"],
        "w_fc": params["w_fc"],
        "b_fc": params["b_fc"],
        "w_ih": params["w_ih"],
        "w_hh": params["w_hh"],
        "b_lstm": params["b_ih"] + params["b_hh"],
        "w_head": w_head,
        "b_head": b_head,
        "a_dim": int(a_dim),
    }


# ---------------------------------------------------------------------------
# Wrapper
# ---------------------------------------------------------------------------
def _im2col(x_nhwc, ksize, stride):
    """im2col with (ky, kx, c) column ordering, matching HWIO weight reshape."""
    b, h, w, c = x_nhwc.shape
    oh = (h - ksize) // stride + 1
    ow = (w - ksize) // stride + 1
    cols = []
    for ky in range(ksize):
        for kx in range(ksize):
            cols.append(x_nhwc[:, ky:ky + stride * (oh - 1) + 1:stride,
                               kx:kx + stride * (ow - 1) + 1:stride, :])
    p = jnp.stack(cols, axis=3)                       # [B, OH, OW, K*K, C]
    return p.reshape(b * oh * ow, ksize * ksize * c), (oh, ow)


def cnn_lstm_policy_forward(x_nchw, prep, num_steps=NUM_STEPS):
    b = x_nchw.shape[0]
    assert b % num_steps == 0, "batch must be a multiple of num_steps"
    t_steps = num_steps
    n_seq = b // t_steps
    a_dim = prep["a_dim"]

    x = jnp.transpose(x_nchw, (0, 2, 3, 1)).astype(jnp.float32)       # NHWC

    # conv1 (3->16, k8, s4) as im2col + Pallas matmul
    p1, (oh1, ow1) = _im2col(x, 8, 4)
    h1 = matmul_bias_relu(p1, prep["w_conv1"], prep["b_conv1"])
    h1 = h1.reshape(b, oh1, ow1, 16)

    # conv2 (16->32, k4, s2)
    p2, (oh2, ow2) = _im2col(h1, 4, 2)
    h2 = matmul_bias_relu(p2, prep["w_conv2"], prep["b_conv2"])
    h2 = h2.reshape(b, oh2, ow2, 32)

    # PyTorch's h2.view(B, -1) flattens in NCHW order
    h2_flat = jnp.transpose(h2, (0, 3, 1, 2)).reshape(b, -1)          # [B, 3200]

    # batch_to_sequence -> sequence-major [n_seq, T, 3200] (no transpose needed)
    x_seq = h2_flat.reshape(n_seq, t_steps, -1)
    f_in = x_seq.shape[-1]

    # grid over independent sequences (2 steps when possible -> v7x 2 TCs)
    n_grid = 2 if (n_seq % 2 == 0 and n_seq >= 2) else 1
    seq_tile = n_seq // n_grid

    flops = 2 * b * (f_in * HIDDEN + 2 * HIDDEN * 4 * HIDDEN + HIDDEN * HEAD_PAD)
    transc = b * 5 * HIDDEN
    bytes_acc = 4 * int(x_seq.size + prep["w_fc"].size + prep["b_fc"].size
                        + prep["w_ih"].size + prep["w_hh"].size
                        + prep["b_lstm"].size + prep["w_head"].size
                        + prep["b_head"].size + b * HEAD_PAD)

    const = lambda s: (0, 0)
    y = pl.pallas_call(
        _fc_lstm_head_kernel,
        out_shape=jax.ShapeDtypeStruct((n_seq, t_steps, HEAD_PAD), jnp.float32),
        grid=(n_grid,),
        in_specs=[
            pl.BlockSpec((seq_tile, t_steps, f_in), lambda s: (s, 0, 0)),
            pl.BlockSpec((f_in, HIDDEN), const),           # w_fc   (resident)
            pl.BlockSpec((1, HIDDEN), const),              # b_fc
            pl.BlockSpec((HIDDEN, 4 * HIDDEN), const),     # w_ih
            pl.BlockSpec((HIDDEN, 4 * HIDDEN), const),     # w_hh
            pl.BlockSpec((1, 4 * HIDDEN), const),          # b_lstm
            pl.BlockSpec((HIDDEN, HEAD_PAD), const),       # w_head
            pl.BlockSpec((1, HEAD_PAD), const),            # b_head
        ],
        out_specs=pl.BlockSpec((seq_tile, t_steps, HEAD_PAD),
                               lambda s: (s, 0, 0)),
        scratch_shapes=[pltpu.VMEM((seq_tile, t_steps, HIDDEN), jnp.float32)],
        compiler_params=pltpu.CompilerParams(dimension_semantics=("parallel",)),
        cost_estimate=pl.CostEstimate(flops=flops, transcendentals=transc,
                                      bytes_accessed=bytes_acc),
    )(x_seq, prep["w_fc"], prep["b_fc"], prep["w_ih"], prep["w_hh"],
      prep["b_lstm"], prep["w_head"], prep["b_head"])

    # sequence_to_batch: [n_seq, T, 128] -> [B, 128], then split action / value
    y_flat = y.reshape(b, HEAD_PAD)
    action = y_flat[:, :a_dim]                 # eval mode: action = mean
    value = y_flat[:, a_dim:a_dim + 1]
    return action, value


# ---------------------------------------------------------------------------
# Deterministic parameter init (PyTorch-default-style uniform, stored [in, out])
# ---------------------------------------------------------------------------
def init_params(key, action_dim):
    ks = jax.random.split(key, 12)

    def u(k, shape, fan_in):
        bound = 1.0 / (fan_in ** 0.5)
        return jax.random.uniform(k, shape, jnp.float32, -bound, bound)

    return {
        # conv weights stored HWIO (kh, kw, in_ch, out_ch)
        "w_conv1": u(ks[0], (8, 8, 3, 16), 8 * 8 * 3),
        "b_conv1": u(ks[1], (1, 16), 8 * 8 * 3),
        "w_conv2": u(ks[2], (4, 4, 16, 32), 4 * 4 * 16),
        "b_conv2": u(ks[3], (1, 32), 4 * 4 * 16),
        # fc stored [in, out]
        "w_fc": u(ks[4], (3200, HIDDEN), 3200),
        "b_fc": u(ks[5], (1, HIDDEN), 3200),
        # LSTM weights stored [in, 4H] with PyTorch gate order (i, f, g, o)
        "w_ih": u(ks[6], (HIDDEN, 4 * HIDDEN), HIDDEN),
        "w_hh": u(ks[7], (HIDDEN, 4 * HIDDEN), HIDDEN),
        "b_ih": u(ks[8], (1, 4 * HIDDEN), HIDDEN),
        "b_hh": u(ks[9], (1, 4 * HIDDEN), HIDDEN),
        # heads stored [in, out]
        "w_mean": u(ks[10], (HIDDEN, action_dim), HIDDEN),
        "b_mean": jnp.zeros((1, action_dim), jnp.float32),
        "w_val": u(ks[11], (HIDDEN, 1), HIDDEN),
        "b_val": jnp.zeros((1, 1), jnp.float32),
        # log_std_head parameter (only used by the training-mode sampling path)
        "log_std": jnp.ones((1, action_dim), jnp.float32),
    }


# ---------------------------------------------------------------------------
# Pure-JAX reference for correctness checking
# ---------------------------------------------------------------------------
def _dot_hi(a, bmat):
    return jnp.dot(a, bmat, precision=lax.Precision.HIGHEST)


def reference_forward(x_nchw, params, num_steps=NUM_STEPS):
    b = x_nchw.shape[0]
    t_steps = num_steps
    n_seq = b // t_steps
    x = jnp.transpose(x_nchw, (0, 2, 3, 1))
    h1 = jax.nn.relu(lax.conv_general_dilated(
        x, params["w_conv1"], (4, 4), "VALID",
        dimension_numbers=("NHWC", "HWIO", "NHWC"),
        precision=lax.Precision.HIGHEST) + params["b_conv1"])
    h2 = jax.nn.relu(lax.conv_general_dilated(
        h1, params["w_conv2"], (2, 2), "VALID",
        dimension_numbers=("NHWC", "HWIO", "NHWC"),
        precision=lax.Precision.HIGHEST) + params["b_conv2"])
    h2_flat = jnp.transpose(h2, (0, 3, 1, 2)).reshape(b, -1)
    feat = jax.nn.relu(_dot_hi(h2_flat, params["w_fc"]) + params["b_fc"])
    seq = feat.reshape(n_seq, t_steps, -1)
    h = jnp.zeros((n_seq, HIDDEN), jnp.float32)
    c = jnp.zeros((n_seq, HIDDEN), jnp.float32)
    outs = []
    for t in range(t_steps):
        gates = (_dot_hi(seq[:, t, :], params["w_ih"]) + _dot_hi(h, params["w_hh"])
                 + params["b_ih"] + params["b_hh"])
        i_g = jax.nn.sigmoid(gates[:, :HIDDEN])
        f_g = jax.nn.sigmoid(gates[:, HIDDEN:2 * HIDDEN])
        g_g = jnp.tanh(gates[:, 2 * HIDDEN:3 * HIDDEN])
        o_g = jax.nn.sigmoid(gates[:, 3 * HIDDEN:])
        c = f_g * c + i_g * g_g
        h = o_g * jnp.tanh(c)
        outs.append(h)
    memory = jnp.stack(outs, axis=1).reshape(b, HIDDEN)
    mean = _dot_hi(memory, params["w_mean"]) + params["b_mean"]
    value = _dot_hi(memory, params["w_val"]) + params["b_val"]
    return mean, value


if __name__ == "__main__":
    key = jax.random.PRNGKey(0)
    k_x, k_p = jax.random.split(key)

    BATCH = 16          # multiple of num_steps=8 -> 2 sequences of length 8
    ACTION_DIM = 4      # output_shape[0]
    # fc expects 3200 = 32*10*10 features, which the conv stack gives for 92x92x3
    x = jax.random.normal(k_x, (BATCH, 3, 92, 92), jnp.float32)
    params = init_params(k_p, ACTION_DIM)
    prep = prepare_params(params)       # one-time preprocessing (cached)

    action, value = cnn_lstm_policy_forward(x, prep)
    action = jax.block_until_ready(action)
    value = jax.block_until_ready(value)

    ref_action, ref_value = reference_forward(x, params)
    assert action.shape == (BATCH, ACTION_DIM)
    assert value.shape == (BATCH, 1)
    assert jnp.allclose(action, ref_action, atol=5e-3, rtol=5e-3), (
        float(jnp.max(jnp.abs(action - ref_action))))
    assert jnp.allclose(value, ref_value, atol=5e-3, rtol=5e-3), (
        float(jnp.max(jnp.abs(value - ref_value))))

    print("KERNEL_OK")
</pallas_src>

<mosaic_0001>
module attributes {stable_mosaic.version = 11 : i64} {
  func.func @_matmul_bias_relu_kernel(%arg0: i32, %arg1: memref<3872x192xf32, #tpu.memory_space<vmem>>, %arg2: memref<192x16xf32, #tpu.memory_space<vmem>>, %arg3: memref<1x16xf32, #tpu.memory_space<vmem>>, %arg4: memref<3872x16xf32, #tpu.memory_space<vmem>>) attributes {dimension_semantics = [#tpu.dimension_semantics<parallel>], iteration_bounds = array<i64: 2>, scalar_prefetch = 0 : i64, scratch_operands = 0 : i64, tpu.core_type = #tpu.core_type<tc>, window_params = [{transform_indices = @transform_0, window_bounds = array<i64: 3872, 192>}, {pipeline_mode = #tpu.pipeline_mode<synchronous>, transform_indices = @transform_1, window_bounds = array<i64: 192, 16>}, {pipeline_mode = #tpu.pipeline_mode<synchronous>, transform_indices = @transform_2, window_bounds = array<i64: 1, 16>}, {transform_indices = @transform_3, window_bounds = array<i64: 3872, 16>}]} {
    %c0 = arith.constant 0 : index
    %c0_0 = arith.constant 0 : index
    %0 = vector.load %arg1[%c0, %c0_0] : memref<3872x192xf32, #tpu.memory_space<vmem>>, vector<3872x192xf32>
    %c0_1 = arith.constant 0 : index
    %c0_2 = arith.constant 0 : index
    %1 = vector.load %arg2[%c0_1, %c0_2] : memref<192x16xf32, #tpu.memory_space<vmem>>, vector<192x16xf32>
    %cst = arith.constant dense<0.000000e+00> : vector<3872x16xf32>
    %2 = tpu.matmul %0, %1, %cst {dimension_numbers = #tpu.dot_dimension_numbers<[1], [0], [0], [1], [0, 0, 1, 1], [], []>} : vector<3872x192xf32>, vector<192x16xf32>, vector<3872x16xf32> -> vector<3872x16xf32>
    %c0_3 = arith.constant 0 : index
    %c0_4 = arith.constant 0 : index
    %3 = vector.load %arg3[%c0_3, %c0_4] : memref<1x16xf32, #tpu.memory_space<vmem>>, vector<1x16xf32>
    %4 = vector.broadcast %3 : vector<1x16xf32> to vector<3872x16xf32>
    %5 = arith.addf %2, %4 : vector<3872x16xf32>
    %cst_5 = arith.constant 0.000000e+00 : f32
    %6 = vector.broadcast %cst_5 : f32 to vector<3872x16xf32>
    %7 = arith.maximumf %5, %6 : vector<3872x16xf32>
    %c0_6 = arith.constant 0 : index
    %c0_7 = arith.constant 0 : index
    %8 = vector.load %arg4[%c0_6, %c0_7] : memref<3872x16xf32, #tpu.memory_space<vmem>>, vector<3872x16xf32>
    tpu.vector_store %arg4[%c0_6, %c0_7], %7 {strides = array<i32>} : memref<3872x16xf32, #tpu.memory_space<vmem>>, vector<3872x16xf32>,
    return
  }
  func.func @transform_0(%arg0: i32) -> (i32, i32) {
    %c0_i32 = arith.constant 0 : i32
    %c0_i32_0 = arith.constant 0 : i32
    return %arg0, %c0_i32 : i32, i32
  }
  func.func @transform_1(%arg0: i32) -> (i32, i32) {
    %c0_i32 = arith.constant 0 : i32
    %c0_i32_0 = arith.constant 0 : i32
    %c0_i32_1 = arith.constant 0 : i32
    return %c0_i32, %c0_i32_0 : i32, i32
  }
  func.func @transform_2(%arg0: i32) -> (i32, i32) {
    %c0_i32 = arith.constant 0 : i32
    %c0_i32_0 = arith.constant 0 : i32
    %c0_i32_1 = arith.constant 0 : i32
    return %c0_i32, %c0_i32_0 : i32, i32
  }
  func.func @transform_3(%arg0: i32) -> (i32, i32) {
    %c0_i32 = arith.constant 0 : i32
    %c0_i32_0 = arith.constant 0 : i32
    return %arg0, %c0_i32 : i32, i32
  }
}

</mosaic_0001>

<bundles_post_ra>
// kernel: tpu_custom_call.1
= control target key start
LH: loop header
LB: loop body
LE: loop exit
PB: predicated region body
PF: predicated region fallthrough
CT: control target
= control target key end

     0   :  { %s6740_s12 = smov 0   ;;  %s9805_s0 = inlined_call_operand.vmem [shape: f32[7744,192], index: 0, kind: input, shape index: {}]   ;;  %s9806_s1 = inlined_call_operand.vmem [shape: f32[192,16], index: 1, kind: input, shape index: {}]   ;;  %s9807_s2 = inlined_call_operand.vmem [shape: f32[1,16], index: 2, kind: input, shape index: {}]   ;;  %s9808_s3 = inlined_call_operand.vmem [shape: f32[7744,16], index: 3, kind: output, shape index: {}]  }
   0x1 LB: > { %s6139_s13 = sadd.s32 4294967295, %s6717_s12   ;;  %p6143_p0 = scmp.ge.s32.totalorder %s6717_s12, 1  ;;  %s6717_s12 = sphi %s6740_s12, %s13_s12  }
   0x2   : > { %p139_p1 = scmp.lt.s32.totalorder %s6717_s12, 3 }
   0x4   : > { %p140_p2 = pnand %p6143_p0, %p139_p1 }
   0x5   : > { %v1145_v0 = vld [vmem:[%s9806_s1] sm:$0xff] (!%p140_p2)  ;;  %v1146_v1 = vld [vmem:[%s9806_s1 + $0x8] sm:$0xff] (!%p140_p2)  ;;  %v1147_v2 = vld [vmem:[%s9806_s1 + $0x10] sm:$0xff] (!%p140_p2)  ;;  %s164_s20 = smul.u32 (!%p140_p2), 484, %s6139_s13  ;;  %v6719_v3 = vmov (!%p140_p2), 0.0|0.0   ;;  %vm1176_vm0 = vcmask (!%p140_p2), 523264  }
   0x6   : > { %143 = sbr.rel (%p140_p2) target bundleno = 1236 (0x4d4), region = 32  ;;  %6635 = vmatprep.subr.bf16.mxu0 (!%p140_p2), %v6719_v3  ;;  %6671 = vmatprep.subr.bf16.mxu1 (!%p140_p2), %v6719_v3  ;;  %v6636_v4 = vpack.c.bf16 (!%p140_p2), %v1146_v1, %v1145_v0  ;;  %v1148_v5 = vld [vmem:[%s9806_s1 + $0x18] sm:$0xff] (!%p140_p2)  ;;  %v1149_v7 = vld [vmem:[%s9806_s1 + $0x20] sm:$0xff] (!%p140_p2)  ;;  %v1150_v8 = vld [vmem:[%s9806_s1 + $0x28] sm:$0xff] (!%p140_p2)  ;;  %vm5598_vm1 = vcmask (!%p140_p2), 130048  }
   0x7   : > { %p165_p3 = scmp.lt.s32.totalorder (!%p140_p2), %s164_s20, 967  ;;  %v6639_v6 = vpack.c.bf16 (!%p140_p2), %v1148_v5, %v1147_v2  ;;  %v6642_v9 = vpack.c.bf16 (!%p140_p2), %v1150_v8, %v1149_v7  ;;  %v1151_v10 = vld [vmem:[%s9806_s1 + $0x30] sm:$0xff] (!%p140_p2)  ;;  %v1152_v11 = vld [vmem:[%s9806_s1 + $0x38] sm:$0xff] (!%p140_p2)  ;;  %v1153_v15 = vld [vmem:[%s9806_s1 + $0x40] sm:$0xff] (!%p140_p2) }
   0x8   : > { %6637 = vmatpush1.bf16.msra.mxu0 (!%p140_p2), %v6636_v4  ;;  %6683 = vmatpush1.bf16.msra.mxu1 (!%p140_p2), %v6636_v4  ;;  %v6645_v14 = vpack.c.bf16 (!%p140_p2), %v1152_v11, %v1151_v10  ;;  %v1154_v16 = vld [vmem:[%s9806_s1 + $0x48] sm:$0xff] (!%p140_p2)  ;;  %v1155_v18 = vld [vmem:[%s9806_s1 + $0x50] sm:$0xff] (!%p140_p2)  ;;  %v1156_v19 = vld [vmem:[%s9806_s1 + $0x58] sm:$0xff] (!%p140_p2) }
   0x9   : > { %6638 = vmatprep.subr.bf16.mxu0 (!%p140_p2), %v6719_v3  ;;  %6672 = vmatprep.subr.bf16.mxu1 (!%p140_p2), %v6719_v3  ;;  %v6648_v17 = vpack.c.bf16 (!%p140_p2), %v1154_v16, %v1153_v15  ;;  %v6651_v20 = vpack.c.bf16 (!%p140_p2), %v1156_v19, %v1155_v18  ;;  %v1157_v21 = vld [vmem:[%s9806_s1 + $0x60] sm:$0xff] (!%p140_p2)  ;;  %v1158_v22 = vld [vmem:[%s9806_s1 + $0x68] sm:$0xff] (!%p140_p2)  ;;  %v1159_v24 = vld [vmem:[%s9806_s1 + $0x70] sm:$0xff] (!%p140_p2) }
   0xa   : > { %v6654_v23 = vpack.c.bf16 (!%p140_p2), %v1158_v22, %v1157_v21  ;;  %v1160_v25 = vld [vmem:[%s9806_s1 + $0x78] sm:$0xff] (!%p140_p2)  ;;  %v1161_v27 = vld [vmem:[%s9806_s1 + $0x80] sm:$0xff] (!%p140_p2)  ;;  %v1162_v28 = vld [vmem:[%s9806_s1 + $0x88] sm:$0xff] (!%p140_p2) }
   0xb   : > { %v6657_v26 = vpack.c.bf16 (!%p140_p2), %v1160_v25, %v1159_v24  ;;  %v6660_v29 = vpack.c.bf16 (!%p140_p2), %v1162_v28, %v1161_v27  ;;  %v1163_v30 = vld [vmem:[%s9806_s1 + $0x90] sm:$0xff] (!%p140_p2)  ;;  %v1164_v31 = vld [vmem:[%s9806_s1 + $0x98] sm:$0xff] (!%p140_p2)  ;;  %v1165_v33 = vld [vmem:[%s9806_s1 + $0xa0] sm:$0xff] (!%p140_p2) }
   0xc   : > { %6640 = vmatpush1.bf16.msra.mxu0 (!%p140_p2), %v6639_v6  ;;  %6684 = vmatpush1.bf16.msra.mxu1 (!%p140_p2), %v6639_v6  ;;  %v6663_v32 = vpack.c.bf16 (!%p140_p2), %v1164_v31, %v1163_v30  ;;  %v1166_v34 = vld [vmem:[%s9806_s1 + $0xa8] sm:$0xff] (!%p140_p2)  ;;  %v1167_v36 = vld [vmem:[%s9806_s1 + $0xb0] sm:$0xff] (!%p140_p2)  ;;  %v1168_v37 = vld [vmem:[%s9806_s1 + $0xb8] sm:$0xff] (!%p140_p2) }
   0xd   : > { %s9810_s20 = smov (!%p165_p3, %s164_s20), 967  ;;  %6641 = vmatprep.subr.bf16.mxu0 %v6719_v3  ;;  %6673 = vmatprep.subr.bf16.mxu1 %v6719_v3  ;;  %v6666_v35 = vpack.c.bf16 %v1166_v34, %v1165_v33  ;;  %v6669_v38 = vpack.c.bf16 %v1168_v37, %v1167_v36 }
   0xe   : > { %s6634_s27 = sshll.u32 %s9810_s20, 4  ;;  %s6146_s19 = sshll.u32 %s9810_s20, 3 }
   0xf   : > { %s6779_s5 = scalar_lea.vmem %s9805_s0, %s6634_s27  ;;  %s7189_s23 = scalar_lea.vmem %s9808_s3, %s6146_s19 }
  0x10   : > { %v178_v12 = vld [vmem:[%s6779_s5 + $0x8] sm:$0xff]  ;;  %6643 = vmatpush1.bf16.msra.mxu0 %v6642_v9  ;;  %6685 = vmatpush1.bf16.msra.mxu1 %v6642_v9  ;;  %v177_v39 = vld [vmem:[%s6779_s5] sm:$0xff]  ;;  %v180_v41 = vld [vmem:[%s6779_s5 + $0x18] sm:$0xff] }
  0x11   : > { %v662_v13 = vld [vmem:[%s6779_s5 + $0xf28] sm:$0xff]  ;;  %6148 = vmatprep.mubr.msk.f32.mxu0 %vm1176_vm0, %v178_v12  ;;  %6644 = vmatprep.subr.bf16.mxu0 %v6719_v3  ;;  %v661_v40 = vld [vmem:[%s6779_s5 + $0xf20] sm:$0xff]  ;;  %v664_v42 = vld [vmem:[%s6779_s5 + $0xf38] sm:$0xff] }
  0x12   : > { %6390 = vmatprep.mubr.msk.f32.mxu1 %vm1176_vm0, %v662_v13  ;;  %6674 = vmatprep.subr.bf16.mxu1 %v6719_v3  ;;  %v179_v43 = vld [vmem:[%s6779_s5 + $0x10] sm:$0xff]  ;;  %v182_v45 = vld [vmem:[%s6779_s5 + $0x28] sm:$0xff]  ;;  %v181_v47 = vld [vmem:[%s6779_s5 + $0x20] sm:$0xff] }
  0x13   : > { %v663_v44 = vld [vmem:[%s6779_s5 + $0xf30] sm:$0xff]  ;;  %v666_v46 = vld [vmem:[%s6779_s5 + $0xf48] sm:$0xff]  ;;  %v665_v48 = vld [vmem:[%s6779_s5 + $0xf40] sm:$0xff] }
  0x14   : > { %6646 = vmatpush1.bf16.msra.mxu0 %v6645_v14  ;;  %6686 = vmatpush1.bf16.msra.mxu1 %v6645_v14  ;;  %v184_v49 = vld [vmem:[%s6779_s5 + $0x38] sm:$0xff]  ;;  %v183_v51 = vld [vmem:[%s6779_s5 + $0x30] sm:$0xff]  ;;  %v186_v53 = vld [vmem:[%s6779_s5 + $0x48] sm:$0xff] }
  0x15   : > { %6647 = vmatprep.subr.bf16.mxu0 %v6719_v3  ;;  %6675 = vmatprep.subr.bf16.mxu1 %v6719_v3  ;;  %v668_v50 = vld [vmem:[%s6779_s5 + $0xf58] sm:$0xff]  ;;  %v667_v52 = vld [vmem:[%s6779_s5 + $0xf50] sm:$0xff]  ;;  %v670_v54 = vld [vmem:[%s6779_s5 + $0xf68] sm:$0xff] }
  0x16   : > { %v185_v55 = vld [vmem:[%s6779_s5 + $0x40] sm:$0xff]  ;;  %v188_v57 = vld [vmem:[%s6779_s5 + $0x58] sm:$0xff]  ;;  %v187_v59 = vld [vmem:[%s6779_s5 + $0x50] sm:$0xff] }
  0x17   : > { %v669_v56 = vld [vmem:[%s6779_s5 + $0xf60] sm:$0xff]  ;;  %v672_v58 = vld [vmem:[%s6779_s5 + $0xf78] sm:$0xff]  ;;  %v671_v60 = vld [vmem:[%s6779_s5 + $0xf70] sm:$0xff] }
  0x18   : > { %6649 = vmatpush1.bf16.msra.mxu0 %v6648_v17  ;;  %6687 = vmatpush1.bf16.msra.mxu1 %v6648_v17  ;;  %v190_v61 = vld [vmem:[%s6779_s5 + $0x68] sm:$0xff]  ;;  %v189_v63 = vld [vmem:[%s6779_s5 + $0x60] sm:$0xff]  ;;  %v192_v1 = vld [vmem:[%s6779_s5 + $0x78] sm:$0xff] }
  0x19   : > { %6650 = vmatprep.subr.bf16.mxu0 %v6719_v3  ;;  %6676 = vmatprep.subr.bf16.mxu1 %v6719_v3  ;;  %v674_v62 = vld [vmem:[%s6779_s5 + $0xf88] sm:$0xff]  ;;  %v673_v0 = vld [vmem:[%s6779_s5 + $0xf80] sm:$0xff]  ;;  %v676_v2 = vld [vmem:[%s6779_s5 + $0xf98] sm:$0xff] }
  0x1a   : > { %v675_v4 = vld [vmem:[%s6779_s5 + $0xf90] sm:$0xff]  ;;  %v194_v5 = vld [vmem:[%s6779_s5 + $0x88] sm:$0xff]  ;;  %v193_v7 = vld [vmem:[%s6779_s5 + $0x80] sm:$0xff] }
  0x1b   : > { %v678_v6 = vld [vmem:[%s6779_s5 + $0xfa8] sm:$0xff]  ;;  %v677_v8 = vld [vmem:[%s6779_s5 + $0xfa0] sm:$0xff]  ;;  %v196_v9 = vld [vmem:[%s6779_s5 + $0x98] sm:$0xff] }
  0x1c   : > { %6652 = vmatpush1.bf16.msra.mxu0 %v6651_v20  ;;  %6688 = vmatpush1.bf16.msra.mxu1 %v6651_v20  ;;  %v680_v10 = vld [vmem:[%s6779_s5 + $0xfb8] sm:$0xff]  ;;  %v195_v11 = vld [vmem:[%s6779_s5 + $0x90] sm:$0xff]  ;;  %v198_v13 = vld [vmem:[%s6779_s5 + $0xa8] sm:$0xff] }
  0x1d   : > { %6653 = vmatprep.subr.bf16.mxu0 %v6719_v3  ;;  %6677 = vmatprep.subr.bf16.mxu1 %v6719_v3  ;;  %v679_v12 = vld [vmem:[%s6779_s5 + $0xfb0] sm:$0xff]  ;;  %v682_v14 = vld [vmem:[%s6779_s5 + $0xfc8] sm:$0xff]  ;;  %v197_v15 = vld [vmem:[%s6779_s5 + $0xa0] sm:$0xff] }
  0x1e   : > { %v681_v16 = vld [vmem:[%s6779_s5 + $0xfc0] sm:$0xff]  ;;  %v200_v17 = vld [vmem:[%s6779_s5 + $0xb8] sm:$0xff]  ;;  %v199_v19 = vld [vmem:[%s6779_s5 + $0xb0] sm:$0xff] }
  0x1f   : > { %v684_v18 = vld [vmem:[%s6779_s5 + $0xfd8] sm:$0xff]  ;;  %v683_v20 = vld [vmem:[%s6779_s5 + $0xfd0] sm:$0xff]  ;;  %v202_v21 = vld [vmem:[%s6779_s5 + $0xc8] sm:$0xff] }
  0x20   : > { %6655 = vmatpush1.bf16.msra.mxu0 %v6654_v23  ;;  %6689 = vmatpush1.bf16.msra.mxu1 %v6654_v23  ;;  %v686_v22 = vld [vmem:[%s6779_s5 + $0xfe8] sm:$0xff]  ;;  %v201_v23 = vld [vmem:[%s6779_s5 + $0xc0] sm:$0xff]  ;;  %v204_v25 = vld [vmem:[%s6779_s5 + $0xd8] sm:$0xff] }
  0x21   : > { %6656 = vmatprep.subr.bf16.mxu0 %v6719_v3  ;;  %6678 = vmatprep.subr.bf16.mxu1 %v6719_v3  ;;  %v685_v24 = vld [vmem:[%s6779_s5 + $0xfe0] sm:$0xff]  ;;  %v203_v27 = vld [vmem:[%s6779_s5 + $0xd0] sm:$0xff]  ;;  %v690_v30 = vld [vmem:[%s6779_s5 + $0x1008] sm:$0xff] }
  0x22   : > { %v687_v28 = vld [vmem:[%s6779_s5 + $0xff0] sm:$0xff]  ;;  %v205_v31 = vld [vmem:[%s6779_s5 + $0xe0] sm:$0xff]  ;;  %v208_v33 = vld [vmem:[%s6779_s5 + $0xf8] sm:$0xff] }
  0x23   : > { %v692_v34 = vld [vmem:[%s6779_s5 + $0x1018] sm:$0xff]  ;;  %v691_v36 = vld [vmem:[%s6779_s5 + $0x1010] sm:$0xff]  ;;  %v210_v37 = vld [vmem:[%s6779_s5 + $0x108] sm:$0xff] }
  0x24   : > { %6658 = vmatpush1.bf16.msra.mxu0 %v6657_v26  ;;  %6690 = vmatpush1.bf16.msra.mxu1 %v6657_v26  ;;  %v688_v26 = vld [vmem:[%s6779_s5 + $0xff8] sm:$0xff] }
  0x25   : > { %6659 = vmatprep.subr.bf16.mxu0 %v6719_v3  ;;  %6679 = vmatprep.subr.bf16.mxu1 %v6719_v3 }
  0x28   : > { %6661 = vmatpush1.bf16.msra.mxu0 %v6660_v29  ;;  %6691 = vmatpush1.bf16.msra.mxu1 %v6660_v29  ;;  %v206_v29 = vld [vmem:[%s6779_s5 + $0xe8] sm:$0xff] }
  0x29   : > { %6662 = vmatprep.subr.bf16.mxu0 %v6719_v3  ;;  %6680 = vmatprep.subr.bf16.mxu1 %v6719_v3 }
  0x2c   : > { %6664 = vmatpush1.bf16.msra.mxu0 %v6663_v32  ;;  %6692 = vmatpush1.bf16.msra.mxu1 %v6663_v32  ;;  %v689_v32 = vld [vmem:[%s6779_s5 + $0x1000] sm:$0xff] }
  0x2d   : > { %6665 = vmatprep.subr.bf16.mxu0 %v6719_v3  ;;  %6681 = vmatprep.subr.bf16.mxu1 %v6719_v3 }
  0x30   : > { %6667 = vmatpush1.bf16.msra.mxu0 %v6666_v35  ;;  %6693 = vmatpush1.bf16.msra.mxu1 %v6666_v35  ;;  %v207_v35 = vld [vmem:[%s6779_s5 + $0xf0] sm:$0xff] }
  0x31   : > { %6668 = vmatprep.subr.bf16.mxu0 %v6719_v3  ;;  %6682 = vmatprep.subr.bf16.mxu1 %v6719_v3  ;;  %v191_v3 = vld [vmem:[%s6779_s5 + $0x70] sm:$0xff] }
  0x34   : > { %6670 = vmatpush1.bf16.msra.mxu0 %v6669_v38  ;;  %6694 = vmatpush1.bf16.msra.mxu1 %v6669_v38  ;;  %v694_v38 = vld [vmem:[%s6779_s5 + $0x1028] sm:$0xff] }
  0x37   : > { %2694 = vmatmul.mubr.f32.vlgmr.msra.gmra.mrb[0].mxu0 %v177_v39  ;;  %3904 = vmatmul.mubr.f32.vlgmr.msra.gmra.mrb[0].mxu1 %v661_v40  ;;  %v209_v39 = vld [vmem:[%s6779_s5 + $0x100] sm:$0xff] }
  0x38   : > { %6149 = vmatprep.mubr.msk.f32.mxu0 %vm1176_vm0, %v180_v41  ;;  %6391 = vmatprep.mubr.msk.f32.mxu1 %vm1176_vm0, %v664_v42  ;;  %v693_v40 = vld [vmem:[%s6779_s5 + $0x1020] sm:$0xff]  ;;  %v212_v41 = vld [vmem:[%s6779_s5 + $0x118] sm:$0xff] }
  0x39   : > { %v696_v42 = vld [vmem:[%s6779_s5 + $0x1038] sm:$0xff] }
  0x3b   : > { %2699 = vmatmul.mubr.f32.gmra.mrb[2].mxu0 %v179_v43  ;;  %3909 = vmatmul.mubr.f32.gmra.mrb[2].mxu1 %v663_v44  ;;  %v211_v43 = vld [vmem:[%s6779_s5 + $0x110] sm:$0xff] }
  0x3c   : > { %6150 = vmatprep.mubr.msk.f32.mxu0 %vm1176_vm0, %v182_v45  ;;  %6392 = vmatprep.mubr.msk.f32.mxu1 %vm1176_vm0, %v666_v46  ;;  %v695_v44 = vld [vmem:[%s6779_s5 + $0x1030] sm:$0xff]  ;;  %v214_v45 = vld [vmem:[%s6779_s5 + $0x128] sm:$0xff] }
  0x3d   : > { %v698_v46 = vld [vmem:[%s6779_s5 + $0x1048] sm:$0xff] }
  0x3f   : > { %2704 = vmatmul.mubr.f32.gmra.mrb[4].mxu0 %v181_v47  ;;  %3914 = vmatmul.mubr.f32.gmra.mrb[4].mxu1 %v665_v48  ;;  %v213_v47 = vld [vmem:[%s6779_s5 + $0x120] sm:$0xff] }
  0x40   : > { %6151 = vmatprep.mubr.msk.f32.mxu0 %vm1176_vm0, %v184_v49  ;;  %6393 = vmatprep.mubr.msk.f32.mxu1 %vm1176_vm0, %v668_v50  ;;  %v697_v48 = vld [vmem:[%s6779_s5 + $0x1040] sm:$0xff]  ;;  %v216_v49 = vld [vmem:[%s6779_s5 + $0x138] sm:$0xff] }
  0x41   : > { %v700_v50 = vld [vmem:[%s6779_s5 + $0x1058] sm:$0xff] }
  0x43   : > { %2709 = vmatmul.mubr.f32.gmra.mrb[6].mxu0 %v183_v51  ;;  %3919 = vmatmul.mubr.f32.gmra.mrb[6].mxu1 %v667_v52  ;;  %v215_v51 = vld [vmem:[%s6779_s5 + $0x130] sm:$0xff] }
  0x44   : > { %6152 = vmatprep.mubr.msk.f32.mxu0 %vm1176_vm0, %v186_v53  ;;  %6394 = vmatprep.mubr.msk.f32.mxu1 %vm1176_vm0, %v670_v54  ;;  %v699_v52 = vld [vmem:[%s6779_s5 + $0x1050] sm:$0xff]  ;;  %v218_v53 = vld [vmem:[%s6779_s5 + $0x148] sm:$0xff] }
  0x45   : > { %v702_v54 = vld [vmem:[%s6779_s5 + $0x1068] sm:$0xff] }
  0x47   : > { %2714 = vmatmul.mubr.f32.gmra.mrb[8].mxu0 %v185_v55  ;;  %3924 = vmatmul.mubr.f32.gmra.mrb[8].mxu1 %v669_v56  ;;  %v217_v55 = vld [vmem:[%s6779_s5 + $0x140] sm:$0xff] }
  0x48   : > { %6153 = vmatprep.mubr.msk.f32.mxu0 %vm1176_vm0, %v188_v57  ;;  %6395 = vmatprep.mubr.msk.f32.mxu1 %vm1176_vm0, %v672_v58  ;;  %v701_v56 = vld [vmem:[%s6779_s5 + $0x1060] sm:$0xff]  ;;  %v220_v57 = vld [vmem:[%s6779_s5 + $0x158] sm:$0xff] }
  0x49   : > { %v704_v58 = vld [vmem:[%s6779_s5 + $0x1078] sm:$0xff] }
  0x4b   : > { %2719 = vmatmul.mubr.f32.gmra.mrb[10].mxu0 %v187_v59  ;;  %3929 = vmatmul.mubr.f32.gmra.mrb[10].mxu1 %v671_v60  ;;  %v219_v59 = vld [vmem:[%s6779_s5 + $0x150] sm:$0xff] }
  0x4c   : > { %6154 = vmatprep.mubr.msk.f32.mxu0 %vm1176_vm0, %v190_v61  ;;  %6396 = vmatprep.mubr.msk.f32.mxu1 %vm1176_vm0, %v674_v62  ;;  %v703_v60 = vld [vmem:[%s6779_s5 + $0x1070] sm:$0xff]  ;;  %v222_v61 = vld [vmem:[%s6779_s5 + $0x168] sm:$0xff] }
  0x4d   : > { %v706_v62 = vld [vmem:[%s6779_s5 + $0x1088] sm:$0xff] }
  0x4f   : > { %2724 = vmatmul.mubr.f32.gmra.mrb[12].mxu0 %v189_v63  ;;  %3934 = vmatmul.mubr.f32.gmra.mrb[12].mxu1 %v673_v0  ;;  %v221_v63 = vld [vmem:[%s6779_s5 + $0x160] sm:$0xff] }
  0x50   : > { %6155 = vmatprep.mubr.msk.f32.mxu0 %vm1176_vm0, %v192_v1  ;;  %6397 = vmatprep.mubr.msk.f32.mxu1 %vm1176_vm0, %v676_v2  ;;  %v705_v0 = vld [vmem:[%s6779_s5 + $0x1080] sm:$0xff]  ;;  %v224_v1 = vld [vmem:[%s6779_s5 + $0x178] sm:$0xff] }
  0x51   : > { %v708_v2 = vld [vmem:[%s6779_s5 + $0x1098] sm:$0xff] }
  0x53   : > { %2729 = vmatmul.mubr.f32.gmra.mrb[14].mxu0 %v191_v3  ;;  %3939 = vmatmul.mubr.f32.gmra.mrb[14].mxu1 %v675_v4  ;;  %v223_v3 = vld [vmem:[%s6779_s5 + $0x170] sm:$0xff] }
  0x54   : > { %6156 = vmatprep.mubr.msk.f32.mxu0 %vm1176_vm0, %v194_v5  ;;  %6398 = vmatprep.mubr.msk.f32.mxu1 %vm1176_vm0, %v678_v6  ;;  %v707_v4 = vld [vmem:[%s6779_s5 + $0x1090] sm:$0xff]  ;;  %v226_v5 = vld [vmem:[%s6779_s5 + $0x188] sm:$0xff] }
  0x55   : > { %v710_v6 = vld [vmem:[%s6779_s5 + $0x10a8] sm:$0xff] }
  0x57   : > { %2734 = vmatmul.mubr.f32.gmra.mrb[16].mxu0 %v193_v7  ;;  %3944 = vmatmul.mubr.f32.gmra.mrb[16].mxu1 %v677_v8  ;;  %v225_v7 = vld [vmem:[%s6779_s5 + $0x180] sm:$0xff] }
  0x58   : > { %6157 = vmatprep.mubr.msk.f32.mxu0 %vm1176_vm0, %v196_v9  ;;  %6399 = vmatprep.mubr.msk.f32.mxu1 %vm1176_vm0, %v680_v10  ;;  %v709_v8 = vld [vmem:[%s6779_s5 + $0x10a0] sm:$0xff]  ;;  %v228_v9 = vld [vmem:[%s6779_s5 + $0x198] sm:$0xff] }
  0x59   : > { %v712_v10 = vld [vmem:[%s6779_s5 + $0x10b8] sm:$0xff] }
  0x5b   : > { %2739 = vmatmul.mubr.f32.gmra.mrb[18].mxu0 %v195_v11  ;;  %3949 = vmatmul.mubr.f32.gmra.mrb[18].mxu1 %v679_v12  ;;  %v227_v11 = vld [vmem:[%s6779_s5 + $0x190] sm:$0xff] }
  0x5c   : > { %6158 = vmatprep.mubr.msk.f32.mxu0 %vm1176_vm0, %v198_v13  ;;  %6400 = vmatprep.mubr.msk.f32.mxu1 %vm1176_vm0, %v682_v14  ;;  %v711_v12 = vld [vmem:[%s6779_s5 + $0x10b0] sm:$0xff]  ;;  %v230_v13 = vld [vmem:[%s6779_s5 + $0x1a8] sm:$0xff] }
  0x5d   : > { %v714_v14 = vld [vmem:[%s6779_s5 + $0x10c8] sm:$0xff] }
  0x5f   : > { %2744 = vmatmul.mubr.f32.gmra.mrb[20].mxu0 %v197_v15  ;;  %3954 = vmatmul.mubr.f32.gmra.mrb[20].mxu1 %v681_v16  ;;  %v229_v15 = vld [vmem:[%s6779_s5 + $0x1a0] sm:$0xff] }
  0x60   : > { %6159 = vmatprep.mubr.msk.f32.mxu0 %vm1176_vm0, %v200_v17  ;;  %6401 = vmatprep.mubr.msk.f32.mxu1 %vm1176_vm0, %v684_v18  ;;  %v713_v16 = vld [vmem:[%s6779_s5 + $0x10c0] sm:$0xff]  ;;  %v232_v17 = vld [vmem:[%s6779_s5 + $0x1b8] sm:$0xff] }
  0x61   : > { %v716_v18 = vld [vmem:[%s6779_s5 + $0x10d8] sm:$0xff] }
  0x63   : > { %2749 = vmatmul.mubr.f32.gmra.mrb[22].mxu0 %v199_v19  ;;  %3959 = vmatmul.mubr.f32.gmra.mrb[22].mxu1 %v683_v20  ;;  %v231_v19 = vld [vmem:[%s6779_s5 + $0x1b0] sm:$0xff] }
  0x64   : > { %6160 = vmatprep.mubr.msk.f32.mxu0 %vm1176_vm0, %v202_v21  ;;  %6402 = vmatprep.mubr.msk.f32.mxu1 %vm1176_vm0, %v686_v22  ;;  %v715_v20 = vld [vmem:[%s6779_s5 + $0x10d0] sm:$0xff]  ;;  %v234_v21 = vld [vmem:[%s6779_s5 + $0x1c8] sm:$0xff] }
  0x65   : > { %v718_v22 = vld [vmem:[%s6779_s5 + $0x10e8] sm:$0xff] }
  0x67   : > { %2754 = vmatmul.mubr.f32.gmra.mrb[24].mxu0 %v201_v23  ;;  %3964 = vmatmul.mubr.f32.gmra.mrb[24].mxu1 %v685_v24  ;;  %v233_v23 = vld [vmem:[%s6779_s5 + $0x1c0] sm:$0xff] }
  0x68   : > { %6161 = vmatprep.mubr.msk.f32.mxu0 %vm1176_vm0, %v204_v25  ;;  %6403 = vmatprep.mubr.msk.f32.mxu1 %vm1176_vm0, %v688_v26  ;;  %v717_v24 = vld [vmem:[%s6779_s5 + $0x10e0] sm:$0xff]  ;;  %v236_v25 = vld [vmem:[%s6779_s5 + $0x1d8] sm:$0xff] }
  0x69   : > { %v720_v26 = vld [vmem:[%s6779_s5 + $0x10f8] sm:$0xff] }
  0x6b   : > { %2759 = vmatmul.mubr.f32.gmra.mrb[26].mxu0 %v203_v27  ;;  %3969 = vmatmul.mubr.f32.gmra.mrb[26].mxu1 %v687_v28  ;;  %v235_v27 = vld [vmem:[%s6779_s5 + $0x1d0] sm:$0xff] }
  0x6c   : > { %6162 = vmatprep.mubr.msk.f32.mxu0 %vm1176_vm0, %v206_v29  ;;  %6404 = vmatprep.mubr.msk.f32.mxu1 %vm1176_vm0, %v690_v30  ;;  %v719_v28 = vld [vmem:[%s6779_s5 + $0x10f0] sm:$0xff]  ;;  %v238_v29 = vld [vmem:[%s6779_s5 + $0x1e8] sm:$0xff] }
  0x6d   : > { %v722_v30 = vld [vmem:[%s6779_s5 + $0x1108] sm:$0xff] }
  0x6f   : > { %2764 = vmatmul.mubr.f32.gmra.mrb[28].mxu0 %v205_v31  ;;  %3974 = vmatmul.mubr.f32.gmra.mrb[28].mxu1 %v689_v32  ;;  %v237_v31 = vld [vmem:[%s6779_s5 + $0x1e0] sm:$0xff] }
  0x70   : > { %6163 = vmatprep.mubr.msk.f32.mxu0 %vm1176_vm0, %v208_v33  ;;  %6405 = vmatprep.mubr.msk.f32.mxu1 %vm1176_vm0, %v692_v34  ;;  %v721_v32 = vld [vmem:[%s6779_s5 + $0x1100] sm:$0xff]  ;;  %v240_v33 = vld [vmem:[%s6779_s5 + $0x1f8] sm:$0xff] }
  0x71   : > { %v724_v34 = vld [vmem:[%s6779_s5 + $0x1118] sm:$0xff] }
  0x73   : > { %2769 = vmatmul.mubr.f32.gmra.mrb[30].mxu0 %v207_v35  ;;  %3979 = vmatmul.mubr.f32.gmra.mrb[30].mxu1 %v691_v36  ;;  %v239_v35 = vld [vmem:[%s6779_s5 + $0x1f0] sm:$0xff] }
  0x74   : > { %6164 = vmatprep.mubr.msk.f32.mxu0 %vm1176_vm0, %v210_v37  ;;  %6406 = vmatprep.mubr.msk.f32.mxu1 %vm1176_vm0, %v694_v38  ;;  %v723_v36 = vld [vmem:[%s6779_s5 + $0x1110] sm:$0xff]  ;;  %v242_v37 = vld [vmem:[%s6779_s5 + $0x208] sm:$0xff] }
  0x75   : > { %v726_v38 = vld [vmem:[%s6779_s5 + $0x1128] sm:$0xff] }
  0x77   : > { %2774 = vmatmul.mubr.f32.gmra.mrb[32].mxu0 %v209_v39  ;;  %3984 = vmatmul.mubr.f32.gmra.mrb[32].mxu1 %v693_v40  ;;  %v241_v39 = vld [vmem:[%s6779_s5 + $0x200] sm:$0xff] }
  0x78   : > { %6165 = vmatprep.mubr.msk.f32.mxu0 %vm1176_vm0, %v212_v41  ;;  %6407 = vmatprep.mubr.msk.f32.mxu1 %vm1176_vm0, %v696_v42  ;;  %v725_v40 = vld [vmem:[%s6779_s5 + $0x1120] sm:$0xff]  ;;  %v244_v41 = vld [vmem:[%s6779_s5 + $0x218] sm:$0xff] }
  0x79   : > { %v728_v42 = vld [vmem:[%s6779_s5 + $0x1138] sm:$0xff] }
  0x7b   : > { %2779 = vmatmul.mubr.f32.gmra.mrb[34].mxu0 %v211_v43  ;;  %3989 = vmatmul.mubr.f32.gmra.mrb[34].mxu1 %v695_v44  ;;  %v243_v43 = vld [vmem:[%s6779_s5 + $0x210] sm:$0xff] }
  0x7c   : > { %6166 = vmatprep.mubr.msk.f32.mxu0 %vm1176_vm0, %v214_v45  ;;  %6408 = vmatprep.mubr.msk.f32.mxu1 %vm1176_vm0, %v698_v46  ;;  %v727_v44 = vld [vmem:[%s6779_s5 + $0x1130] sm:$0xff]  ;;  %v246_v45 = vld [vmem:[%s6779_s5 + $0x228] sm:$0xff] }
  0x7d   : > { %v730_v46 = vld [vmem:[%s6779_s5 + $0x1148] sm:$0xff] }
  0x7f   : > { %2784 = vmatmul.mubr.f32.gmra.mrb[36].mxu0 %v213_v47  ;;  %3994 = vmatmul.mubr.f32.gmra.mrb[36].mxu1 %v697_v48  ;;  %v245_v47 = vld [vmem:[%s6779_s5 + $0x220] sm:$0xff] }
  0x80   : > { %6167 = vmatprep.mubr.msk.f32.mxu0 %vm1176_vm0, %v216_v49  ;;  %6409 = vmatprep.mubr.msk.f32.mxu1 %vm1176_vm0, %v700_v50  ;;  %v729_v48 = vld [vmem:[%s6779_s5 + $0x1140] sm:$0xff]  ;;  %v248_v49 = vld [vmem:[%s6779_s5 + $0x238] sm:$0xff] }
  0x81   : > { %v732_v50 = vld [vmem:[%s6779_s5 + $0x1158] sm:$0xff] }
  0x83   : > { %2789 = vmatmul.mubr.f32.gmra.mrb[38].mxu0 %v215_v51  ;;  %3999 = vmatmul.mubr.f32.gmra.mrb[38].mxu1 %v699_v52  ;;  %v247_v51 = vld [vmem:[%s6779_s5 + $0x230] sm:$0xff] }
  0x84   : > { %6168 = vmatprep.mubr.msk.f32.mxu0 %vm1176_vm0, %v218_v53  ;;  %6410 = vmatprep.mubr.msk.f32.mxu1 %vm1176_vm0, %v702_v54  ;;  %v731_v52 = vld [vmem:[%s6779_s5 + $0x1150] sm:$0xff]  ;;  %v250_v53 = vld [vmem:[%s6779_s5 + $0x248] sm:$0xff] }
  0x85   : > { %v734_v54 = vld [vmem:[%s6779_s5 + $0x1168] sm:$0xff] }
  0x87   : > { %2794 = vmatmul.mubr.f32.gmra.mrb[40].mxu0 %v217_v55  ;;  %4004 = vmatmul.mubr.f32.gmra.mrb[40].mxu1 %v701_v56  ;;  %v249_v55 = vld [vmem:[%s6779_s5 + $0x240] sm:$0xff] }
  0x88   : > { %6169 = vmatprep.mubr.msk.f32.mxu0 %vm1176_vm0, %v220_v57  ;;  %6411 = vmatprep.mubr.msk.f32.mxu1 %vm1176_vm0, %v704_v58  ;;  %v733_v56 = vld [vmem:[%s6779_s5 + $0x1160] sm:$0xff]  ;;  %v252_v57 = vld [vmem:[%s6779_s5 + $0x258] sm:$0xff] }
  0x89   : > { %v736_v58 = vld [vmem:[%s6779_s5 + $0x1178] sm:$0xff] }
  0x8b   : > { %2799 = vmatmul.mubr.f32.gmra.mrb[42].mxu0 %v219_v59  ;;  %4009 = vmatmul.mubr.f32.gmra.mrb[42].mxu1 %v703_v60  ;;  %v251_v59 = vld [vmem:[%s6779_s5 + $0x250] sm:$0xff] }
  0x8c   : > { %6170 = vmatprep.mubr.msk.f32.mxu0 %vm1176_vm0, %v222_v61  ;;  %6412 = vmatprep.mubr.msk.f32.mxu1 %vm1176_vm0, %v706_v62  ;;  %v735_v60 = vld [vmem:[%s6779_s5 + $0x1170] sm:$0xff]  ;;  %v254_v61 = vld [vmem:[%s6779_s5 + $0x268] sm:$0xff] }
  0x8d   : > { %v738_v62 = vld [vmem:[%s6779_s5 + $0x1188] sm:$0xff] }
  0x8f   : > { %2804 = vmatmul.mubr.f32.gmra.mrb[44].mxu0 %v221_v63  ;;  %4014 = vmatmul.mubr.f32.gmra.mrb[44].mxu1 %v705_v0  ;;  %v253_v63 = vld [vmem:[%s6779_s5 + $0x260] sm:$0xff] }
  0x90   : > { %6171 = vmatprep.mubr.msk.f32.mxu0 %vm1176_vm0, %v224_v1  ;;  %6413 = vmatprep.mubr.msk.f32.mxu1 %vm1176_vm0, %v708_v2  ;;  %v737_v0 = vld [vmem:[%s6779_s5 + $0x1180] sm:$0xff]  ;;  %v256_v1 = vld [vmem:[%s6779_s5 + $0x278] sm:$0xff] }
  0x91   : > { %v740_v2 = vld [vmem:[%s6779_s5 + $0x1198] sm:$0xff] }
  0x93   : > { %2809 = vmatmul.mubr.f32.gmra.mrb[46].mxu0 %v223_v3  ;;  %4019 = vmatmul.mubr.f32.gmra.mrb[46].mxu1 %v707_v4  ;;  %v255_v3 = vld [vmem:[%s6779_s5 + $0x270] sm:$0xff] }
  0x94   : > { %6172 = vmatprep.mubr.msk.f32.mxu0 %vm1176_vm0, %v226_v5  ;;  %6414 = vmatprep.mubr.msk.f32.mxu1 %vm1176_vm0, %v710_v6  ;;  %v739_v4 = vld [vmem:[%s6779_s5 + $0x1190] sm:$0xff]  ;;  %v258_v5 = vld [vmem:[%s6779_s5 + $0x288] sm:$0xff] }
  0x95   : > { %v742_v6 = vld [vmem:[%s6779_s5 + $0x11a8] sm:$0xff] }
  0x97   : > { %2814 = vmatmul.mubr.f32.gmra.mrb[48].mxu0 %v225_v7  ;;  %4024 = vmatmul.mubr.f32.gmra.mrb[48].mxu1 %v709_v8  ;;  %v257_v7 = vld [vmem:[%s6779_s5 + $0x280] sm:$0xff] }
  0x98   : > { %6173 = vmatprep.mubr.msk.f32.mxu0 %vm1176_vm0, %v228_v9  ;;  %6415 = vmatprep.mubr.msk.f32.mxu1 %vm1176_vm0, %v712_v10  ;;  %v741_v8 = vld [vmem:[%s6779_s5 + $0x11a0] sm:$0xff]  ;;  %v260_v9 = vld [vmem:[%s6779_s5 + $0x298] sm:$0xff] }
  0x99   : > { %v744_v10 = vld [vmem:[%s6779_s5 + $0x11b8] sm:$0xff] }
  0x9b   : > { %2819 = vmatmul.mubr.f32.gmra.mrb[50].mxu0 %v227_v11  ;;  %4029 = vmatmul.mubr.f32.gmra.mrb[50].mxu1 %v711_v12  ;;  %v259_v11 = vld [vmem:[%s6779_s5 + $0x290] sm:$0xff] }
  0x9c   : > { %6174 = vmatprep.mubr.msk.f32.mxu0 %vm1176_vm0, %v230_v13  ;;  %6416 = vmatprep.mubr.msk.f32.mxu1 %vm1176_vm0, %v714_v14  ;;  %v743_v12 = vld [vmem:[%s6779_s5 + $0x11b0] sm:$0xff]  ;;  %v262_v13 = vld [vmem:[%s6779_s5 + $0x2a8] sm:$0xff] }
  0x9d   : > { %v746_v14 = vld [vmem:[%s6779_s5 + $0x11c8] sm:$0xff] }
  0x9f   : > { %2824 = vmatmul.mubr.f32.gmra.mrb[52].mxu0 %v229_v15  ;;  %4034 = vmatmul.mubr.f32.gmra.mrb[52].mxu1 %v713_v16  ;;  %v261_v15 = vld [vmem:[%s6779_s5 + $0x2a0] sm:$0xff] }
  0xa0   : > { %6175 = vmatprep.mubr.msk.f32.mxu0 %vm1176_vm0, %v232_v17  ;;  %6417 = vmatprep.mubr.msk.f32.mxu1 %vm1176_vm0, %v716_v18  ;;  %v745_v16 = vld [vmem:[%s6779_s5 + $0x11c0] sm:$0xff]  ;;  %v264_v17 = vld [vmem:[%s6779_s5 + $0x2b8] sm:$0xff] }
  0xa1   : > { %v748_v18 = vld [vmem:[%s6779_s5 + $0x11d8] sm:$0xff] }
  0xa3   : > { %2829 = vmatmul.mubr.f32.gmra.mrb[54].mxu0 %v231_v19  ;;  %4039 = vmatmul.mubr.f32.gmra.mrb[54].mxu1 %v715_v20  ;;  %v263_v19 = vld [vmem:[%s6779_s5 + $0x2b0] sm:$0xff] }
  0xa4   : > { %6176 = vmatprep.mubr.msk.f32.mxu0 %vm1176_vm0, %v234_v21  ;;  %6418 = vmatprep.mubr.msk.f32.mxu1 %vm1176_vm0, %v718_v22  ;;  %v747_v20 = vld [vmem:[%s6779_s5 + $0x11d0] sm:$0xff]  ;;  %v266_v21 = vld [vmem:[%s6779_s5 + $0x2c8] sm:$0xff] }
  0xa5   : > { %v750_v22 = vld [vmem:[%s6779_s5 + $0x11e8] sm:$0xff] }
  0xa7   : > { %2834 = vmatmul.mubr.f32.gmra.mrb[56].mxu0 %v233_v23  ;;  %4044 = vmatmul.mubr.f32.gmra.mrb[56].mxu1 %v717_v24  ;;  %v265_v23 = vld [vmem:[%s6779_s5 + $0x2c0] sm:$0xff] }
  0xa8   : > { %6177 = vmatprep.mubr.msk.f32.mxu0 %vm1176_vm0, %v236_v25  ;;  %6419 = vmatprep.mubr.msk.f32.mxu1 %vm1176_vm0, %v720_v26  ;;  %v749_v24 = vld [vmem:[%s6779_s5 + $0x11e0] sm:$0xff]  ;;  %v268_v25 = vld [vmem:[%s6779_s5 + $0x2d8] sm:$0xff] }
  0xa9   : > { %v752_v26 = vld [vmem:[%s6779_s5 + $0x11f8] sm:$0xff] }
  0xab   : > { %2839 = vmatmul.mubr.f32.gmra.mrb[58].mxu0 %v235_v27  ;;  %4049 = vmatmul.mubr.f32.gmra.mrb[58].mxu1 %v719_v28  ;;  %v267_v27 = vld [vmem:[%s6779_s5 + $0x2d0] sm:$0xff] }
  0xac   : > { %6178 = vmatprep.mubr.msk.f32.mxu0 %vm1176_vm0, %v238_v29  ;;  %6420 = vmatprep.mubr.msk.f32.mxu1 %vm1176_vm0, %v722_v30  ;;  %v751_v28 = vld [vmem:[%s6779_s5 + $0x11f0] sm:$0xff]  ;;  %v270_v29 = vld [vmem:[%s6779_s5 + $0x2e8] sm:$0xff] }
  0xad   : > { %v754_v30 = vld [vmem:[%s6779_s5 + $0x1208] sm:$0xff] }
  0xaf   : > { %2844 = vmatmul.mubr.f32.gmra.mrb[60].mxu0 %v237_v31  ;;  %4054 = vmatmul.mubr.f32.gmra.mrb[60].mxu1 %v721_v32  ;;  %v269_v31 = vld [vmem:[%s6779_s5 + $0x2e0] sm:$0xff] }
  0xb0   : > { %6179 = vmatprep.mubr.msk.f32.mxu0 %vm1176_vm0, %v240_v33  ;;  %6421 = vmatprep.mubr.msk.f32.mxu1 %vm1176_vm0, %v724_v34  ;;  %v753_v32 = vld [vmem:[%s6779_s5 + $0x1200] sm:$0xff]  ;;  %v272_v33 = vld [vmem:[%s6779_s5 + $0x2f8] sm:$0xff] }
  0xb1   : > { %v756_v34 = vld [vmem:[%s6779_s5 + $0x1218] sm:$0xff] }
  0xb3   : > { %2849 = vmatmul.mubr.f32.gmra.mrb[62].mxu0 %v239_v35  ;;  %4059 = vmatmul.mubr.f32.gmra.mrb[62].mxu1 %v723_v36  ;;  %v271_v35 = vld [vmem:[%s6779_s5 + $0x2f0] sm:$0xff] }
  0xb4   : > { %6180 = vmatprep.mubr.msk.f32.mxu0 %vm1176_vm0, %v242_v37  ;;  %6422 = vmatprep.mubr.msk.f32.mxu1 %vm1176_vm0, %v726_v38  ;;  %v755_v36 = vld [vmem:[%s6779_s5 + $0x1210] sm:$0xff]  ;;  %v274_v37 = vld [vmem:[%s6779_s5 + $0x308] sm:$0xff] }
  0xb5   : > { %v758_v38 = vld [vmem:[%s6779_s5 + $0x1228] sm:$0xff] }
  0xb7   : > { %2854 = vmatmul.mubr.f32.gmra.mrb[64].mxu0 %v241_v39  ;;  %4064 = vmatmul.mubr.f32.gmra.mrb[64].mxu1 %v725_v40  ;;  %v273_v39 = vld [vmem:[%s6779_s5 + $0x300] sm:$0xff] }
  0xb8   : > { %6181 = vmatprep.mubr.msk.f32.mxu0 %vm1176_vm0, %v244_v41  ;;  %6423 = vmatprep.mubr.msk.f32.mxu1 %vm1176_vm0, %v728_v42  ;;  %v757_v40 = vld [vmem:[%s6779_s5 + $0x1220] sm:$0xff]  ;;  %v276_v41 = vld [vmem:[%s6779_s5 + $0x318] sm:$0xff] }
  0xb9   : > { %v760_v42 = vld [vmem:[%s6779_s5 + $0x1238] sm:$0xff] }
  0xbb   : > { %2859 = vmatmul.mubr.f32.gmra.mrb[66].mxu0 %v243_v43  ;;  %4069 = vmatmul.mubr.f32.gmra.mrb[66].mxu1 %v727_v44  ;;  %v275_v43 = vld [vmem:[%s6779_s5 + $0x310] sm:$0xff] }
  0xbc   : > { %6182 = vmatprep.mubr.msk.f32.mxu0 %vm1176_vm0, %v246_v45  ;;  %6424 = vmatprep.mubr.msk.f32.mxu1 %vm1176_vm0, %v730_v46  ;;  %v759_v44 = vld [vmem:[%s6779_s5 + $0x1230] sm:$0xff]  ;;  %v278_v45 = vld [vmem:[%s6779_s5 + $0x328] sm:$0xff] }
  0xbd   : > { %v762_v46 = vld [vmem:[%s6779_s5 + $0x1248] sm:$0xff] }
  0xbf   : > { %2864 = vmatmul.mubr.f32.gmra.mrb[68].mxu0 %v245_v47  ;;  %4074 = vmatmul.mubr.f32.gmra.mrb[68].mxu1 %v729_v48  ;;  %v277_v47 = vld [vmem:[%s6779_s5 + $0x320] sm:$0xff] }
  0xc0   : > { %6183 = vmatprep.mubr.msk.f32.mxu0 %vm1176_vm0, %v248_v49  ;;  %6425 = vmatprep.mubr.msk.f32.mxu1 %vm1176_vm0, %v732_v50  ;;  %v761_v48 = vld [vmem:[%s6779_s5 + $0x1240] sm:$0xff]  ;;  %v280_v49 = vld [vmem:[%s6779_s5 + $0x338] sm:$0xff] }
  0xc1   : > { %v764_v50 = vld [vmem:[%s6779_s5 + $0x1258] sm:$0xff] }
  0xc3   : > { %2869 = vmatmul.mubr.f32.gmra.mrb[70].mxu0 %v247_v51  ;;  %4079 = vmatmul.mubr.f32.gmra.mrb[70].mxu1 %v731_v52  ;;  %v279_v51 = vld [vmem:[%s6779_s5 + $0x330] sm:$0xff] }
  0xc4   : > { %6184 = vmatprep.mubr.msk.f32.mxu0 %vm1176_vm0, %v250_v53  ;;  %6426 = vmatprep.mubr.msk.f32.mxu1 %vm1176_vm0, %v734_v54  ;;  %v763_v52 = vld [vmem:[%s6779_s5 + $0x1250] sm:$0xff]  ;;  %v282_v53 = vld [vmem:[%s6779_s5 + $0x348] sm:$0xff] }
  0xc5   : > { %v766_v54 = vld [vmem:[%s6779_s5 + $0x1268] sm:$0xff] }
  0xc7   : > { %2874 = vmatmul.mubr.f32.gmra.mrb[72].mxu0 %v249_v55  ;;  %4084 = vmatmul.mubr.f32.gmra.mrb[72].mxu1 %v733_v56  ;;  %v281_v55 = vld [vmem:[%s6779_s5 + $0x340] sm:$0xff] }
  0xc8   : > { %6185 = vmatprep.mubr.msk.f32.mxu0 %vm1176_vm0, %v252_v57  ;;  %6427 = vmatprep.mubr.msk.f32.mxu1 %vm1176_vm0, %v736_v58  ;;  %v765_v56 = vld [vmem:[%s6779_s5 + $0x1260] sm:$0xff]  ;;  %v284_v57 = vld [vmem:[%s6779_s5 + $0x358] sm:$0xff] }
  0xc9   : > { %v768_v58 = vld [vmem:[%s6779_s5 + $0x1278] sm:$0xff] }
  0xcb   : > { %2879 = vmatmul.mubr.f32.gmra.mrb[74].mxu0 %v251_v59  ;;  %4089 = vmatmul.mubr.f32.gmra.mrb[74].mxu1 %v735_v60  ;;  %v7175_v59 = vld [vmem:[%s9807_s2] ss:$0 sm:$0xff]  ;;  %v283_v60 = vld [vmem:[%s6779_s5 + $0x350] sm:$0xff] }
  0xcc   : > { %6186 = vmatprep.mubr.msk.f32.mxu0 %vm1176_vm0, %v254_v61  ;;  %6428 = vmatprep.mubr.msk.f32.mxu1 %vm1176_vm0, %v738_v62  ;;  %v767_v61 = vld [vmem:[%s6779_s5 + $0x1270] sm:$0xff]  ;;  %v286_v62 = vld [vmem:[%s6779_s5 + $0x368] sm:$0xff] }
  0xcf   : > { %2884 = vmatmul.mubr.f32.gmra.mrb[76].mxu0 %v253_v63  ;;  %4094 = vmatmul.mubr.f32.gmra.mrb[76].mxu1 %v737_v0  ;;  %v770_v63 = vld [vmem:[%s6779_s5 + $0x1288] sm:$0xff] }
  0xd0   : > { %6187 = vmatprep.mubr.msk.f32.mxu0 %vm1176_vm0, %v256_v1  ;;  %6429 = vmatprep.mubr.msk.f32.mxu1 %vm1176_vm0, %v740_v2 }
  0xd3   : > { %2889 = vmatmul.mubr.f32.gmra.mrb[78].mxu0 %v255_v3  ;;  %4099 = vmatmul.mubr.f32.gmra.mrb[78].mxu1 %v739_v4 }
  0xd4   : > { %6188 = vmatprep.mubr.msk.f32.mxu0 %vm1176_vm0, %v258_v5  ;;  %6430 = vmatprep.mubr.msk.f32.mxu1 %vm1176_vm0, %v742_v6  ;;  %v285_v6 = vld [vmem:[%s6779_s5 + $0x360] sm:$0xff] }
  0xd7   : > { %2894 = vmatmul.mubr.f32.gmra.mrb[80].mxu0 %v257_v7  ;;  %4104 = vmatmul.mubr.f32.gmra.mrb[80].mxu1 %v741_v8  ;;  %v769_v7 = vld [vmem:[%s6779_s5 + $0x1280] sm:$0xff] }
  0xd8   : > { %6189 = vmatprep.mubr.msk.f32.mxu0 %vm1176_vm0, %v260_v9  ;;  %6431 = vmatprep.mubr.msk.f32.mxu1 %vm1176_vm0, %v744_v10  ;;  %v288_v10 = vld [vmem:[%s6779_s5 + $0x378] sm:$0xff] }
  0xdb   : > { %2899 = vmatmul.mubr.f32.gmra.mrb[82].mxu0 %v259_v11  ;;  %4109 = vmatmul.mubr.f32.gmra.mrb[82].mxu1 %v743_v12  ;;  %v772_v11 = vld [vmem:[%s6779_s5 + $0x1298] sm:$0xff] }
  0xdc   : > { %6190 = vmatprep.mubr.msk.f32.mxu0 %vm1176_vm0, %v262_v13  ;;  %6432 = vmatprep.mubr.msk.f32.mxu1 %vm1176_vm0, %v746_v14 }
  0xdf   : > { %2904 = vmatmul.mubr.f32.gmra.mrb[84].mxu0 %v261_v15  ;;  %4114 = vmatmul.mubr.f32.gmra.mrb[84].mxu1 %v745_v16 }
  0xe0   : > { %6191 = vmatprep.mubr.msk.f32.mxu0 %vm1176_vm0, %v264_v17  ;;  %6433 = vmatprep.mubr.msk.f32.mxu1 %vm1176_vm0, %v748_v18  ;;  %v287_v18 = vld [vmem:[%s6779_s5 + $0x370] sm:$0xff] }
  0xe3   : > { %2909 = vmatmul.mubr.f32.gmra.mrb[86].mxu0 %v263_v19  ;;  %4119 = vmatmul.mubr.f32.gmra.mrb[86].mxu1 %v747_v20  ;;  %v771_v19 = vld [vmem:[%s6779_s5 + $0x1290] sm:$0xff] }
  0xe4   : > { %6192 = vmatprep.mubr.msk.f32.mxu0 %vm1176_vm0, %v266_v21  ;;  %6434 = vmatprep.mubr.msk.f32.mxu1 %vm1176_vm0, %v750_v22  ;;  %v290_v22 = vld [vmem:[%s6779_s5 + $0x388] sm:$0xff] }
  0xe7   : > { %2914 = vmatmul.mubr.f32.gmra.mrb[88].mxu0 %v265_v23  ;;  %4124 = vmatmul.mubr.f32.gmra.mrb[88].mxu1 %v749_v24  ;;  %v774_v23 = vld [vmem:[%s6779_s5 + $0x12a8] sm:$0xff] }
  0xe8   : > { %6193 = vmatprep.mubr.msk.f32.mxu0 %vm1176_vm0, %v268_v25  ;;  %6435 = vmatprep.mubr.msk.f32.mxu1 %vm1176_vm0, %v752_v26 }
  0xeb   : > { %2919 = vmatmul.mubr.f32.gmra.mrb[90].mxu0 %v267_v27  ;;  %4129 = vmatmul.mubr.f32.gmra.mrb[90].mxu1 %v751_v28 }
  0xec   : > { %6194 = vmatprep.mubr.msk.f32.mxu0 %vm1176_vm0, %v270_v29  ;;  %6436 = vmatprep.mubr.msk.f32.mxu1 %vm1176_vm0, %v754_v30  ;;  %v289_v30 = vld [vmem:[%s6779_s5 + $0x380] sm:$0xff] }
  0xef   : > { %2924 = vmatmul.mubr.f32.gmra.mrb[92].mxu0 %v269_v31  ;;  %4134 = vmatmul.mubr.f32.gmra.mrb[92].mxu1 %v753_v32  ;;  %v773_v31 = vld [vmem:[%s6779_s5 + $0x12a0] sm:$0xff] }
  0xf0   : > { %6195 = vmatprep.mubr.msk.f32.mxu0 %vm1176_vm0, %v272_v33  ;;  %6437 = vmatprep.mubr.msk.f32.mxu1 %vm1176_vm0, %v756_v34  ;;  %v292_v34 = vld [vmem:[%s6779_s5 + $0x398] sm:$0xff] }
  0xf3   : > { %2929 = vmatmul.mubr.f32.gmra.mrb[94].mxu0 %v271_v35  ;;  %4139 = vmatmul.mubr.f32.gmra.mrb[94].mxu1 %v755_v36  ;;  %v776_v35 = vld [vmem:[%s6779_s5 + $0x12b8] sm:$0xff] }
  0xf4   : > { %6196 = vmatprep.mubr.msk.f32.mxu0 %vm1176_vm0, %v274_v37  ;;  %6438 = vmatprep.mubr.msk.f32.mxu1 %vm1176_vm0, %v758_v38 }
  0xf7   : > { %2934 = vmatmul.mubr.f32.gmra.mrb[96].mxu0 %v273_v39  ;;  %4144 = vmatmul.mubr.f32.gmra.mrb[96].mxu1 %v757_v40 }
  0xf8   : > { %6197 = vmatprep.mubr.msk.f32.mxu0 %vm1176_vm0, %v276_v41  ;;  %6439 = vmatprep.mubr.msk.f32.mxu1 %vm1176_vm0, %v760_v42  ;;  %v291_v42 = vld [vmem:[%s6779_s5 + $0x390] sm:$0xff] }
  0xfb   : > { %2939 = vmatmul.mubr.f32.gmra.mrb[98].mxu0 %v275_v43  ;;  %4149 = vmatmul.mubr.f32.gmra.mrb[98].mxu1 %v759_v44  ;;  %v775_v43 = vld [vmem:[%s6779_s5 + $0x12b0] sm:$0xff] }
  0xfc   : > { %6198 = vmatprep.mubr.msk.f32.mxu0 %vm1176_vm0, %v278_v45  ;;  %6440 = vmatprep.mubr.msk.f32.mxu1 %vm1176_vm0, %v762_v46  ;;  %v294_v46 = vld [vmem:[%s6779_s5 + $0x3a8] sm:$0xff] }
  0xff   : > { %2944 = vmatmul.mubr.f32.gmra.mrb[100].mxu0 %v277_v47  ;;  %4154 = vmatmul.mubr.f32.gmra.mrb[100].mxu1 %v761_v48  ;;  %v778_v47 = vld [vmem:[%s6779_s5 + $0x12c8] sm:$0xff] }
 0x100   : > { %6199 = vmatprep.mubr.msk.f32.mxu0 %vm1176_vm0, %v280_v49  ;;  %6441 = vmatprep.mubr.msk.f32.mxu1 %vm1176_vm0, %v764_v50 }
 0x103   : > { %2949 = vmatmul.mubr.f32.gmra.mrb[102].mxu0 %v279_v51  ;;  %4159 = vmatmul.mubr.f32.gmra.mrb[102].mxu1 %v763_v52 }
 0x104   : > { %6200 = vmatprep.mubr.msk.f32.mxu0 %vm1176_vm0, %v282_v53  ;;  %6442 = vmatprep.mubr.msk.f32.mxu1 %vm1176_vm0, %v766_v54  ;;  %v293_v54 = vld [vmem:[%s6779_s5 + $0x3a0] sm:$0xff] }
 0x107   : > { %2954 = vmatmul.mubr.f32.gmra.mrb[104].mxu0 %v281_v55  ;;  %4164 = vmatmul.mubr.f32.gmra.mrb[104].mxu1 %v765_v56  ;;  %v777_v55 = vld [vmem:[%s6779_s5 + $0x12c0] sm:$0xff] }
 0x108   : > { %6201 = vmatprep.mubr.msk.f32.mxu0 %vm1176_vm0, %v284_v57  ;;  %6443 = vmatprep.mubr.msk.f32.mxu1 %vm1176_vm0, %v768_v58  ;;  %v296_v58 = vld [vmem:[%s6779_s5 + $0x3b8] sm:$0xff] }
 0x10a   : > { %v2695_v0 = vpop.f32.mrb[0].mxu0  ;;  %v3905_v1 = vpop.f32.mrb[0].mxu1 }
 0x10b   : > { %v2696_v2 = vadd.f32 %v7175_v59, %v2695_v0  ;;  %v3906_v3 = vadd.f32 %v7175_v59, %v3905_v1  ;;  %v2697_v4 = vpop.f32.mrb[1].mxu0  ;;  %2959 = vmatmul.mubr.f32.gmra.mrb[106].mxu0 %v283_v60  ;;  %v3907_v5 = vpop.f32.mrb[1].mxu1  ;;  %4169 = vmatmul.mubr.f32.gmra.mrb[106].mxu1 %v767_v61  ;;  %v780_v60 = vld [vmem:[%s6779_s5 + $0x12d8] sm:$0xff] }
 0x10c   : > { %6202 = vmatprep.mubr.msk.f32.mxu0 %vm1176_vm0, %v286_v62  ;;  %6444 = vmatprep.mubr.msk.f32.mxu1 %vm1176_vm0, %v770_v63  ;;  %v779_v4 = vld [vmem:[%s6779_s5 + $0x12d0] sm:$0xff] }
 0x10d   : > { %v5114_v8 = vmax.f32 %v2696_v2, 0.0  ;;  %v5356_v9 = vmax.f32 %v3906_v3, 0.0  ;;  %v295_v3 = vld [vmem:[%s6779_s5 + $0x3b0] sm:$0xff] }
 0x10e   : > { %v2700_v12 = vpop.f32.mrb[2].mxu0  ;;  %v3910_v13 = vpop.f32.mrb[2].mxu1 }
 0x10f   : > { %5599 = vst.msk [vmem:[%s7189_s23] sm:$0xff] %vm5598_vm1, %v5114_v8  ;;  %5841 = vst.msk [vmem:[%s7189_s23 + $0x790] sm:$0xff] %vm5598_vm1, %v5356_v9  ;;  %v2701_v14 = vadd.f32 %v7175_v59, %v2700_v12  ;;  %v3911_v15 = vadd.f32 %v7175_v59, %v3910_v13  ;;  %v2702_v16 = vpop.f32.mrb[3].mxu0  ;;  %2964 = vmatmul.mubr.f32.gmra.mrb[108].mxu0 %v285_v6  ;;  %v3912_v17 = vpop.f32.mrb[3].mxu1  ;;  %4174 = vmatmul.mubr.f32.gmra.mrb[108].mxu1 %v769_v7  ;;  %v298_v7 = vld [vmem:[%s6779_s5 + $0x3c8] sm:$0xff] }
 0x110   : > { %6203 = vmatprep.mubr.msk.f32.mxu0 %vm1176_vm0, %v288_v10  ;;  %6445 = vmatprep.mubr.msk.f32.mxu1 %vm1176_vm0, %v772_v11  ;;  %v782_v8 = vld [vmem:[%s6779_s5 + $0x12e8] sm:$0xff]  ;;  %v781_v16 = vld [vmem:[%s6779_s5 + $0x12e0] sm:$0xff] }
 0x111   : > { %v5115_v20 = vmax.f32 %v2701_v14, 0.0  ;;  %v5357_v21 = vmax.f32 %v3911_v15, 0.0  ;;  %v297_v15 = vld [vmem:[%s6779_s5 + $0x3c0] sm:$0xff] }
 0x112   : > { %v2705_v24 = vpop.f32.mrb[4].mxu0  ;;  %v3915_v25 = vpop.f32.mrb[4].mxu1 }
 0x113   : > { %5600 = vst.msk [vmem:[%s7189_s23 + $0x8] sm:$0xff] %vm5598_vm1, %v5115_v20  ;;  %5842 = vst.msk [vmem:[%s7189_s23 + $0x798] sm:$0xff] %vm5598_vm1, %v5357_v21  ;;  %v2706_v26 = vadd.f32 %v7175_v59, %v2705_v24  ;;  %v3916_v27 = vadd.f32 %v7175_v59, %v3915_v25  ;;  %v2707_v28 = vpop.f32.mrb[5].mxu0  ;;  %2969 = vmatmul.mubr.f32.gmra.mrb[110].mxu0 %v287_v18  ;;  %v3917_v29 = vpop.f32.mrb[5].mxu1  ;;  %4179 = vmatmul.mubr.f32.gmra.mrb[110].mxu1 %v771_v19  ;;  %v300_v19 = vld [vmem:[%s6779_s5 + $0x3d8] sm:$0xff] }
 0x114   : > { %6204 = vmatprep.mubr.msk.f32.mxu0 %vm1176_vm0, %v290_v22  ;;  %6446 = vmatprep.mubr.msk.f32.mxu1 %vm1176_vm0, %v774_v23  ;;  %v784_v20 = vld [vmem:[%s6779_s5 + $0x12f8] sm:$0xff]  ;;  %v783_v28 = vld [vmem:[%s6779_s5 + $0x12f0] sm:$0xff] }
 0x115   : > { %v5116_v32 = vmax.f32 %v2706_v26, 0.0  ;;  %v5358_v33 = vmax.f32 %v3916_v27, 0.0  ;;  %v299_v27 = vld [vmem:[%s6779_s5 + $0x3d0] sm:$0xff] }
 0x116   : > { %v2710_v36 = vpop.f32.mrb[6].mxu0  ;;  %v3920_v37 = vpop.f32.mrb[6].mxu1 }
 0x117   : > { %5601 = vst.msk [vmem:[%s7189_s23 + $0x10] sm:$0xff] %vm5598_vm1, %v5116_v32  ;;  %5843 = vst.msk [vmem:[%s7189_s23 + $0x7a0] sm:$0xff] %vm5598_vm1, %v5358_v33  ;;  %v2711_v38 = vadd.f32 %v7175_v59, %v2710_v36  ;;  %v3921_v39 = vadd.f32 %v7175_v59, %v3920_v37  ;;  %v2712_v40 = vpop.f32.mrb[7].mxu0  ;;  %2974 = vmatmul.mubr.f32.gmra.mrb[112].mxu0 %v289_v30  ;;  %v3922_v41 = vpop.f32.mrb[7].mxu1  ;;  %4184 = vmatmul.mubr.f32.gmra.mrb[112].mxu1 %v773_v31  ;;  %v302_v31 = vld [vmem:[%s6779_s5 + $0x3e8] sm:$0xff] }
 0x118   : > { %6205 = vmatprep.mubr.msk.f32.mxu0 %vm1176_vm0, %v292_v34  ;;  %6447 = vmatprep.mubr.msk.f32.mxu1 %vm1176_vm0, %v776_v35  ;;  %v786_v32 = vld [vmem:[%s6779_s5 + $0x1308] sm:$0xff]  ;;  %v785_v40 = vld [vmem:[%s6779_s5 + $0x1300] sm:$0xff] }
 0x119   : > { %v5117_v44 = vmax.f32 %v2711_v38, 0.0  ;;  %v5359_v45 = vmax.f32 %v3921_v39, 0.0  ;;  %v301_v39 = vld [vmem:[%s6779_s5 + $0x3e0] sm:$0xff] }
 0x11a   : > { %v2715_v48 = vpop.f32.mrb[8].mxu0  ;;  %v3925_v49 = vpop.f32.mrb[8].mxu1 }
 0x11b   : > { %5602 = vst.msk [vmem:[%s7189_s23 + $0x18] sm:$0xff] %vm5598_vm1, %v5117_v44  ;;  %5844 = vst.msk [vmem:[%s7189_s23 + $0x7a8] sm:$0xff] %vm5598_vm1, %v5359_v45  ;;  %v2716_v50 = vadd.f32 %v7175_v59, %v2715_v48  ;;  %v3926_v51 = vadd.f32 %v7175_v59, %v3925_v49  ;;  %v2717_v52 = vpop.f32.mrb[9].mxu0  ;;  %2979 = vmatmul.mubr.f32.gmra.mrb[114].mxu0 %v291_v42  ;;  %v3927_v53 = vpop.f32.mrb[9].mxu1  ;;  %4189 = vmatmul.mubr.f32.gmra.mrb[114].mxu1 %v775_v43  ;;  %v304_v43 = vld [vmem:[%s6779_s5 + $0x3f8] sm:$0xff] }
 0x11c   : > { %6206 = vmatprep.mubr.msk.f32.mxu0 %vm1176_vm0, %v294_v46  ;;  %6448 = vmatprep.mubr.msk.f32.mxu1 %vm1176_vm0, %v778_v47  ;;  %v788_v44 = vld [vmem:[%s6779_s5 + $0x1318] sm:$0xff]  ;;  %v787_v52 = vld [vmem:[%s6779_s5 + $0x1310] sm:$0xff] }
 0x11d   : > { %v5118_v56 = vmax.f32 %v2716_v50, 0.0  ;;  %v5360_v57 = vmax.f32 %v3926_v51, 0.0  ;;  %v303_v51 = vld [vmem:[%s6779_s5 + $0x3f0] sm:$0xff] }
 0x11e   : > { %v2720_v61 = vpop.f32.mrb[10].mxu0  ;;  %v3930_v62 = vpop.f32.mrb[10].mxu1 }
 0x11f   : > { %5603 = vst.msk [vmem:[%s7189_s23 + $0x20] sm:$0xff] %vm5598_vm1, %v5118_v56  ;;  %5845 = vst.msk [vmem:[%s7189_s23 + $0x7b0] sm:$0xff] %vm5598_vm1, %v5360_v57  ;;  %v2721_v63 = vadd.f32 %v7175_v59, %v2720_v61  ;;  %v3931_v0 = vadd.f32 %v7175_v59, %v3930_v62  ;;  %v2722_v1 = vpop.f32.mrb[11].mxu0  ;;  %2984 = vmatmul.mubr.f32.gmra.mrb[116].mxu0 %v293_v54  ;;  %v3932_v2 = vpop.f32.mrb[11].mxu1  ;;  %4194 = vmatmul.mubr.f32.gmra.mrb[116].mxu1 %v777_v55  ;;  %v306_v55 = vld [vmem:[%s6779_s5 + $0x408] sm:$0xff] }
 0x120   : > { %6207 = vmatprep.mubr.msk.f32.mxu0 %vm1176_vm0, %v296_v58  ;;  %6449 = vmatprep.mubr.msk.f32.mxu1 %vm1176_vm0, %v780_v60  ;;  %v790_v56 = vld [vmem:[%s6779_s5 + $0x1328] sm:$0xff]  ;;  %v789_v1 = vld [vmem:[%s6779_s5 + $0x1320] sm:$0xff] }
 0x121   : > { %v5119_v5 = vmax.f32 %v2721_v63, 0.0  ;;  %v5361_v6 = vmax.f32 %v3931_v0, 0.0  ;;  %v305_v0 = vld [vmem:[%s6779_s5 + $0x400] sm:$0xff] }
 0x122   : > { %v2725_v9 = vpop.f32.mrb[12].mxu0  ;;  %v3935_v10 = vpop.f32.mrb[12].mxu1 }
 0x123   : > { %5604 = vst.msk [vmem:[%s7189_s23 + $0x28] sm:$0xff] %vm5598_vm1, %v5119_v5  ;;  %5846 = vst.msk [vmem:[%s7189_s23 + $0x7b8] sm:$0xff] %vm5598_vm1, %v5361_v6  ;;  %v2726_v11 = vadd.f32 %v7175_v59, %v2725_v9  ;;  %v3936_v12 = vadd.f32 %v7175_v59, %v3935_v10  ;;  %v2727_v13 = vpop.f32.mrb[13].mxu0  ;;  %2989 = vmatmul.mubr.f32.gmra.mrb[118].mxu0 %v295_v3  ;;  %v3937_v14 = vpop.f32.mrb[13].mxu1  ;;  %4199 = vmatmul.mubr.f32.gmra.mrb[118].mxu1 %v779_v4  ;;  %v308_v4 = vld [vmem:[%s6779_s5 + $0x418] sm:$0xff] }
 0x124   : > { %6208 = vmatprep.mubr.msk.f32.mxu0 %vm1176_vm0, %v298_v7  ;;  %6450 = vmatprep.mubr.msk.f32.mxu1 %vm1176_vm0, %v782_v8  ;;  %v792_v5 = vld [vmem:[%s6779_s5 + $0x1338] sm:$0xff]  ;;  %v791_v13 = vld [vmem:[%s6779_s5 + $0x1330] sm:$0xff] }
 0x125   : > { %v5120_v17 = vmax.f32 %v2726_v11, 0.0  ;;  %v5362_v18 = vmax.f32 %v3936_v12, 0.0  ;;  %v307_v12 = vld [vmem:[%s6779_s5 + $0x410] sm:$0xff] }
 0x126   : > { %v2730_v21 = vpop.f32.mrb[14].mxu0  ;;  %v3940_v22 = vpop.f32.mrb[14].mxu1 }
 0x127   : > { %5605 = vst.msk [vmem:[%s7189_s23 + $0x30] sm:$0xff] %vm5598_vm1, %v5120_v17  ;;  %5847 = vst.msk [vmem:[%s7189_s23 + $0x7c0] sm:$0xff] %vm5598_vm1, %v5362_v18  ;;  %v2731_v23 = vadd.f32 %v7175_v59, %v2730_v21  ;;  %v3941_v24 = vadd.f32 %v7175_v59, %v3940_v22  ;;  %v2732_v25 = vpop.f32.mrb[15].mxu0  ;;  %2994 = vmatmul.mubr.f32.gmra.mrb[120].mxu0 %v297_v15  ;;  %v3942_v26 = vpop.f32.mrb[15].mxu1  ;;  %4204 = vmatmul.mubr.f32.gmra.mrb[120].mxu1 %v781_v16  ;;  %v310_v16 = vld [vmem:[%s6779_s5 + $0x428] sm:$0xff] }
 0x128   : > { %6209 = vmatprep.mubr.msk.f32.mxu0 %vm1176_vm0, %v300_v19  ;;  %6451 = vmatprep.mubr.msk.f32.mxu1 %vm1176_vm0, %v784_v20  ;;  %v794_v17 = vld [vmem:[%s6779_s5 + $0x1348] sm:$0xff]  ;;  %v793_v25 = vld [vmem:[%s6779_s5 + $0x1340] sm:$0xff] }
 0x129   : > { %v5121_v29 = vmax.f32 %v2731_v23, 0.0  ;;  %v5363_v30 = vmax.f32 %v3941_v24, 0.0  ;;  %v309_v24 = vld [vmem:[%s6779_s5 + $0x420] sm:$0xff] }
 0x12a   : > { %v2735_v33 = vpop.f32.mrb[16].mxu0  ;;  %v3945_v34 = vpop.f32.mrb[16].mxu1 }
 0x12b   : > { %5606 = vst.msk [vmem:[%s7189_s23 + $0x38] sm:$0xff] %vm5598_vm1, %v5121_v29  ;;  %5848 = vst.msk [vmem:[%s7189_s23 + $0x7c8] sm:$0xff] %vm5598_vm1, %v5363_v30  ;;  %v2736_v35 = vadd.f32 %v7175_v59, %v2735_v33  ;;  %v3946_v36 = vadd.f32 %v7175_v59, %v3945_v34  ;;  %v2737_v37 = vpop.f32.mrb[17].mxu0  ;;  %2999 = vmatmul.mubr.f32.gmra.mrb[122].mxu0 %v299_v27  ;;  %v3947_v38 = vpop.f32.mrb[17].mxu1  ;;  %4209 = vmatmul.mubr.f32.gmra.mrb[122].mxu1 %v783_v28  ;;  %v312_v28 = vld [vmem:[%s6779_s5 + $0x438] sm:$0xff] }
 0x12c   : > { %6210 = vmatprep.mubr.msk.f32.mxu0 %vm1176_vm0, %v302_v31  ;;  %6452 = vmatprep.mubr.msk.f32.mxu1 %vm1176_vm0, %v786_v32  ;;  %v796_v29 = vld [vmem:[%s6779_s5 + $0x1358] sm:$0xff]  ;;  %v795_v37 = vld [vmem:[%s6779_s5 + $0x1350] sm:$0xff] }
 0x12d   : > { %v5122_v41 = vmax.f32 %v2736_v35, 0.0  ;;  %v5364_v42 = vmax.f32 %v3946_v36, 0.0  ;;  %v311_v36 = vld [vmem:[%s6779_s5 + $0x430] sm:$0xff] }
 0x12e   : > { %v2740_v45 = vpop.f32.mrb[18].mxu0  ;;  %v3950_v46 = vpop.f32.mrb[18].mxu1 }
 0x12f   : > { %5607 = vst.msk [vmem:[%s7189_s23 + $0x40] sm:$0xff] %vm5598_vm1, %v5122_v41  ;;  %5849 = vst.msk [vmem:[%s7189_s23 + $0x7d0] sm:$0xff] %vm5598_vm1, %v5364_v42  ;;  %v2741_v47 = vadd.f32 %v7175_v59, %v2740_v45  ;;  %v3951_v48 = vadd.f32 %v7175_v59, %v3950_v46  ;;  %v2742_v49 = vpop.f32.mrb[19].mxu0  ;;  %3004 = vmatmul.mubr.f32.gmra.mrb[124].mxu0 %v301_v39  ;;  %v3952_v50 = vpop.f32.mrb[19].mxu1  ;;  %4214 = vmatmul.mubr.f32.gmra.mrb[124].mxu1 %v785_v40  ;;  %v314_v40 = vld [vmem:[%s6779_s5 + $0x448] sm:$0xff] }
 0x130   : > { %6211 = vmatprep.mubr.msk.f32.mxu0 %vm1176_vm0, %v304_v43  ;;  %6453 = vmatprep.mubr.msk.f32.mxu1 %vm1176_vm0, %v788_v44  ;;  %v798_v41 = vld [vmem:[%s6779_s5 + $0x1368] sm:$0xff]  ;;  %v797_v49 = vld [vmem:[%s6779_s5 + $0x1360] sm:$0xff] }
 0x131   : > { %v5123_v53 = vmax.f32 %v2741_v47, 0.0  ;;  %v5365_v54 = vmax.f32 %v3951_v48, 0.0  ;;  %v313_v48 = vld [vmem:[%s6779_s5 + $0x440] sm:$0xff] }
 0x132   : > { %v2745_v57 = vpop.f32.mrb[20].mxu0  ;;  %v3955_v58 = vpop.f32.mrb[20].mxu1 }
 0x133   : > { %5608 = vst.msk [vmem:[%s7189_s23 + $0x48] sm:$0xff] %vm5598_vm1, %v5123_v53  ;;  %5850 = vst.msk [vmem:[%s7189_s23 + $0x7d8] sm:$0xff] %vm5598_vm1, %v5365_v54  ;;  %v2746_v60 = vadd.f32 %v7175_v59, %v2745_v57  ;;  %v3956_v61 = vadd.f32 %v7175_v59, %v3955_v58  ;;  %v2747_v62 = vpop.f32.mrb[21].mxu0  ;;  %3009 = vmatmul.mubr.f32.gmra.mrb[126].mxu0 %v303_v51  ;;  %v3957_v63 = vpop.f32.mrb[21].mxu1  ;;  %4219 = vmatmul.mubr.f32.gmra.mrb[126].mxu1 %v787_v52  ;;  %v316_v52 = vld [vmem:[%s6779_s5 + $0x458] sm:$0xff] }
 0x134   : > { %6212 = vmatprep.mubr.msk.f32.mxu0 %vm1176_vm0, %v306_v55  ;;  %6454 = vmatprep.mubr.msk.f32.mxu1 %vm1176_vm0, %v790_v56  ;;  %v800_v53 = vld [vmem:[%s6779_s5 + $0x1378] sm:$0xff]  ;;  %v799_v62 = vld [vmem:[%s6779_s5 + $0x1370] sm:$0xff] }
 0x135   : > { %v5124_v2 = vmax.f32 %v2746_v60, 0.0  ;;  %v5366_v3 = vmax.f32 %v3956_v61, 0.0  ;;  %v315_v61 = vld [vmem:[%s6779_s5 + $0x450] sm:$0xff] }
 0x136   : > { %v2750_v6 = vpop.f32.mrb[22].mxu0  ;;  %v3960_v7 = vpop.f32.mrb[22].mxu1 }
 0x137   : > { %5609 = vst.msk [vmem:[%s7189_s23 + $0x50] sm:$0xff] %vm5598_vm1, %v5124_v2  ;;  %5851 = vst.msk [vmem:[%s7189_s23 + $0x7e0] sm:$0xff] %vm5598_vm1, %v5366_v3  ;;  %v2751_v8 = vadd.f32 %v7175_v59, %v2750_v6  ;;  %v3961_v9 = vadd.f32 %v7175_v59, %v3960_v7  ;;  %v2752_v10 = vpop.f32.mrb[23].mxu0  ;;  %3014 = vmatmul.mubr.f32.gmra.mrb[128].mxu0 %v305_v0  ;;  %v3962_v11 = vpop.f32.mrb[23].mxu1  ;;  %4224 = vmatmul.mubr.f32.gmra.mrb[128].mxu1 %v789_v1  ;;  %v318_v1 = vld [vmem:[%s6779_s5 + $0x468] sm:$0xff] }
 0x138   : > { %6213 = vmatprep.mubr.msk.f32.mxu0 %vm1176_vm0, %v308_v4  ;;  %6455 = vmatprep.mubr.msk.f32.mxu1 %vm1176_vm0, %v792_v5  ;;  %v802_v2 = vld [vmem:[%s6779_s5 + $0x1388] sm:$0xff]  ;;  %v801_v10 = vld [vmem:[%s6779_s5 + $0x1380] sm:$0xff] }
 0x139   : > { %v5125_v14 = vmax.f32 %v2751_v8, 0.0  ;;  %v5367_v15 = vmax.f32 %v3961_v9, 0.0  ;;  %v317_v9 = vld [vmem:[%s6779_s5 + $0x460] sm:$0xff] }
 0x13a   : > { %v2755_v18 = vpop.f32.mrb[24].mxu0  ;;  %v3965_v19 = vpop.f32.mrb[24].mxu1 }
 0x13b   : > { %5610 = vst.msk [vmem:[%s7189_s23 + $0x58] sm:$0xff] %vm5598_vm1, %v5125_v14  ;;  %5852 = vst.msk [vmem:[%s7189_s23 + $0x7e8] sm:$0xff] %vm5598_vm1, %v5367_v15  ;;  %v2756_v20 = vadd.f32 %v7175_v59, %v2755_v18  ;;  %v3966_v21 = vadd.f32 %v7175_v59, %v3965_v19  ;;  %v2757_v22 = vpop.f32.mrb[25].mxu0  ;;  %3019 = vmatmul.mubr.f32.gmra.mrb[130].mxu0 %v307_v12  ;;  %v3967_v23 = vpop.f32.mrb[25].mxu1  ;;  %4229 = vmatmul.mubr.f32.gmra.mrb[130].mxu1 %v791_v13  ;;  %v320_v13 = vld [vmem:[%s6779_s5 + $0x478] sm:$0xff] }
 0x13c   : > { %6214 = vmatprep.mubr.msk.f32.mxu0 %vm1176_vm0, %v310_v16  ;;  %6456 = vmatprep.mubr.msk.f32.mxu1 %vm1176_vm0, %v794_v17  ;;  %v804_v14 = vld [vmem:[%s6779_s5 + $0x1398] sm:$0xff]  ;;  %v803_v22 = vld [vmem:[%s6779_s5 + $0x1390] sm:$0xff] }
 0x13d   : > { %v5126_v26 = vmax.f32 %v2756_v20, 0.0  ;;  %v5368_v27 = vmax.f32 %v3966_v21, 0.0  ;;  %v319_v21 = vld [vmem:[%s6779_s5 + $0x470] sm:$0xff] }
 0x13e   : > { %v2760_v30 = vpop.f32.mrb[26].mxu0  ;;  %v3970_v31 = vpop.f32.mrb[26].mxu1 }
 0x13f   : > { %5611 = vst.msk [vmem:[%s7189_s23 + $0x60] sm:$0xff] %vm5598_vm1, %v5126_v26  ;;  %5853 = vst.msk [vmem:[%s7189_s23 + $0x7f0] sm:$0xff] %vm5598_vm1, %v5368_v27  ;;  %v2761_v32 = vadd.f32 %v7175_v59, %v2760_v30  ;;  %v3971_v33 = vadd.f32 %v7175_v59, %v3970_v31  ;;  %v2762_v34 = vpop.f32.mrb[27].mxu0  ;;  %3024 = vmatmul.mubr.f32.gmra.mrb[132].mxu0 %v309_v24  ;;  %v3972_v35 = vpop.f32.mrb[27].mxu1  ;;  %4234 = vmatmul.mubr.f32.gmra.mrb[132].mxu1 %v793_v25  ;;  %v322_v25 = vld [vmem:[%s6779_s5 + $0x488] sm:$0xff] }
 0x140   : > { %6215 = vmatprep.mubr.msk.f32.mxu0 %vm1176_vm0, %v312_v28  ;;  %6457 = vmatprep.mubr.msk.f32.mxu1 %vm1176_vm0, %v796_v29  ;;  %v806_v26 = vld [vmem:[%s6779_s5 + $0x13a8] sm:$0xff]  ;;  %v805_v34 = vld [vmem:[%s6779_s5 + $0x13a0] sm:$0xff] }
 0x141   : > { %v5127_v38 = vmax.f32 %v2761_v32, 0.0  ;;  %v5369_v39 = vmax.f32 %v3971_v33, 0.0  ;;  %v321_v33 = vld [vmem:[%s6779_s5 + $0x480] sm:$0xff] }
 0x142   : > { %v2765_v42 = vpop.f32.mrb[28].mxu0  ;;  %v3975_v43 = vpop.f32.mrb[28].mxu1 }
 0x143   : > { %5612 = vst.msk [vmem:[%s7189_s23 + $0x68] sm:$0xff] %vm5598_vm1, %v5127_v38  ;;  %5854 = vst.msk [vmem:[%s7189_s23 + $0x7f8] sm:$0xff] %vm5598_vm1, %v5369_v39  ;;  %v2766_v44 = vadd.f32 %v7175_v59, %v2765_v42  ;;  %v3976_v45 = vadd.f32 %v7175_v59, %v3975_v43  ;;  %v2767_v46 = vpop.f32.mrb[29].mxu0  ;;  %3029 = vmatmul.mubr.f32.gmra.mrb[134].mxu0 %v311_v36  ;;  %v3977_v47 = vpop.f32.mrb[29].mxu1  ;;  %4239 = vmatmul.mubr.f32.gmra.mrb[134].mxu1 %v795_v37  ;;  %v324_v37 = vld [vmem:[%s6779_s5 + $0x498] sm:$0xff] }
 0x144   : > { %6216 = vmatprep.mubr.msk.f32.mxu0 %vm1176_vm0, %v314_v40  ;;  %6458 = vmatprep.mubr.msk.f32.mxu1 %vm1176_vm0, %v798_v41  ;;  %v808_v38 = vld [vmem:[%s6779_s5 + $0x13b8] sm:$0xff]  ;;  %v807_v46 = vld [vmem:[%s6779_s5 + $0x13b0] sm:$0xff] }
 0x145   : > { %v5128_v50 = vmax.f32 %v2766_v44, 0.0  ;;  %v5370_v51 = vmax.f32 %v3976_v45, 0.0  ;;  %v323_v45 = vld [vmem:[%s6779_s5 + $0x490] sm:$0xff] }
 0x146   : > { %v2770_v54 = vpop.f32.mrb[30].mxu0  ;;  %v3980_v55 = vpop.f32.mrb[30].mxu1 }
 0x147   : > { %5613 = vst.msk [vmem:[%s7189_s23 + $0x70] sm:$0xff] %vm5598_vm1, %v5128_v50  ;;  %5855 = vst.msk [vmem:[%s7189_s23 + $0x800] sm:$0xff] %vm5598_vm1, %v5370_v51  ;;  %v2771_v56 = vadd.f32 %v7175_v59, %v2770_v54  ;;  %v3981_v57 = vadd.f32 %v7175_v59, %v3980_v55  ;;  %v2772_v58 = vpop.f32.mrb[31].mxu0  ;;  %3034 = vmatmul.mubr.f32.gmra.mrb[136].mxu0 %v313_v48  ;;  %v3982_v60 = vpop.f32.mrb[31].mxu1  ;;  %4244 = vmatmul.mubr.f32.gmra.mrb[136].mxu1 %v797_v49  ;;  %v326_v49 = vld [vmem:[%s6779_s5 + $0x4a8] sm:$0xff] }
 0x148   : > { %6217 = vmatprep.mubr.msk.f32.mxu0 %vm1176_vm0, %v316_v52  ;;  %6459 = vmatprep.mubr.msk.f32.mxu1 %vm1176_vm0, %v800_v53  ;;  %v810_v50 = vld [vmem:[%s6779_s5 + $0x13c8] sm:$0xff]  ;;  %v809_v58 = vld [vmem:[%s6779_s5 + $0x13c0] sm:$0xff] }
 0x149   : > { %v5129_v63 = vmax.f32 %v2771_v56, 0.0  ;;  %v5371_v0 = vmax.f32 %v3981_v57, 0.0  ;;  %v325_v57 = vld [vmem:[%s6779_s5 + $0x4a0] sm:$0xff] }
 0x14a   : > { %v2775_v3 = vpop.f32.mrb[32].mxu0  ;;  %v3985_v4 = vpop.f32.mrb[32].mxu1 }
 0x14b   : > { %5614 = vst.msk [vmem:[%s7189_s23 + $0x78] sm:$0xff] %vm5598_vm1, %v5129_v63  ;;  %5856 = vst.msk [vmem:[%s7189_s23 + $0x808] sm:$0xff] %vm5598_vm1, %v5371_v0  ;;  %v2776_v5 = vadd.f32 %v7175_v59, %v2775_v3  ;;  %v3986_v6 = vadd.f32 %v7175_v59, %v3985_v4  ;;  %v2777_v7 = vpop.f32.mrb[33].mxu0  ;;  %3039 = vmatmul.mubr.f32.gmra.mrb[138].mxu0 %v315_v61  ;;  %v3987_v8 = vpop.f32.mrb[33].mxu1  ;;  %4249 = vmatmul.mubr.f32.gmra.mrb[138].mxu1 %v799_v62  ;;  %v328_v62 = vld [vmem:[%s6779_s5 + $0x4b8] sm:$0xff] }
 0x14c   : > { %6218 = vmatprep.mubr.msk.f32.mxu0 %vm1176_vm0, %v318_v1  ;;  %6460 = vmatprep.mubr.msk.f32.mxu1 %vm1176_vm0, %v802_v2  ;;  %v812_v63 = vld [vmem:[%s6779_s5 + $0x13d8] sm:$0xff]  ;;  %v811_v7 = vld [vmem:[%s6779_s5 + $0x13d0] sm:$0xff] }
 0x14d   : > { %v5130_v11 = vmax.f32 %v2776_v5, 0.0  ;;  %v5372_v12 = vmax.f32 %v3986_v6, 0.0  ;;  %v327_v6 = vld [vmem:[%s6779_s5 + $0x4b0] sm:$0xff] }
 0x14e   : > { %v2780_v15 = vpop.f32.mrb[34].mxu0  ;;  %v3990_v16 = vpop.f32.mrb[34].mxu1 }
 0x14f   : > { %5615 = vst.msk [vmem:[%s7189_s23 + $0x80] sm:$0xff] %vm5598_vm1, %v5130_v11  ;;  %5857 = vst.msk [vmem:[%s7189_s23 + $0x810] sm:$0xff] %vm5598_vm1, %v5372_v12  ;;  %v2781_v17 = vadd.f32 %v7175_v59, %v2780_v15  ;;  %v3991_v18 = vadd.f32 %v7175_v59, %v3990_v16  ;;  %v2782_v19 = vpop.f32.mrb[35].mxu0  ;;  %3044 = vmatmul.mubr.f32.gmra.mrb[140].mxu0 %v317_v9  ;;  %v3992_v20 = vpop.f32.mrb[35].mxu1  ;;  %4254 = vmatmul.mubr.f32.gmra.mrb[140].mxu1 %v801_v10  ;;  %v330_v10 = vld [vmem:[%s6779_s5 + $0x4c8] sm:$0xff] }
 0x150   : > { %6219 = vmatprep.mubr.msk.f32.mxu0 %vm1176_vm0, %v320_v13  ;;  %6461 = vmatprep.mubr.msk.f32.mxu1 %vm1176_vm0, %v804_v14  ;;  %v814_v11 = vld [vmem:[%s6779_s5 + $0x13e8] sm:$0xff]  ;;  %v813_v19 = vld [vmem:[%s6779_s5 + $0x13e0] sm:$0xff] }
 0x151   : > { %v5131_v23 = vmax.f32 %v2781_v17, 0.0  ;;  %v5373_v24 = vmax.f32 %v3991_v18, 0.0  ;;  %v329_v18 = vld [vmem:[%s6779_s5 + $0x4c0] sm:$0xff] }
 0x152   : > { %v2785_v27 = vpop.f32.mrb[36].mxu0  ;;  %v3995_v28 = vpop.f32.mrb[36].mxu1 }
 0x153   : > { %5616 = vst.msk [vmem:[%s7189_s23 + $0x88] sm:$0xff] %vm5598_vm1, %v5131_v23  ;;  %5858 = vst.msk [vmem:[%s7189_s23 + $0x818] sm:$0xff] %vm5598_vm1, %v5373_v24  ;;  %v2786_v29 = vadd.f32 %v7175_v59, %v2785_v27  ;;  %v3996_v30 = vadd.f32 %v7175_v59, %v3995_v28  ;;  %v2787_v31 = vpop.f32.mrb[37].mxu0  ;;  %3049 = vmatmul.mubr.f32.gmra.mrb[142].mxu0 %v319_v21  ;;  %v3997_v32 = vpop.f32.mrb[37].mxu1  ;;  %4259 = vmatmul.mubr.f32.gmra.mrb[142].mxu1 %v803_v22  ;;  %v332_v22 = vld [vmem:[%s6779_s5 + $0x4d8] sm:$0xff] }
 0x154   : > { %6220 = vmatprep.mubr.msk.f32.mxu0 %vm1176_vm0, %v322_v25  ;;  %6462 = vmatprep.mubr.msk.f32.mxu1 %vm1176_vm0, %v806_v26  ;;  %v816_v23 = vld [vmem:[%s6779_s5 + $0x13f8] sm:$0xff]  ;;  %v815_v31 = vld [vmem:[%s6779_s5 + $0x13f0] sm:$0xff] }
 0x155   : > { %v5132_v35 = vmax.f32 %v2786_v29, 0.0  ;;  %v5374_v36 = vmax.f32 %v3996_v30, 0.0  ;;  %v331_v30 = vld [vmem:[%s6779_s5 + $0x4d0] sm:$0xff] }
 0x156   : > { %v2790_v39 = vpop.f32.mrb[38].mxu0  ;;  %v4000_v40 = vpop.f32.mrb[38].mxu1 }
 0x157   : > { %5617 = vst.msk [vmem:[%s7189_s23 + $0x90] sm:$0xff] %vm5598_vm1, %v5132_v35  ;;  %5859 = vst.msk [vmem:[%s7189_s23 + $0x820] sm:$0xff] %vm5598_vm1, %v5374_v36  ;;  %v2791_v41 = vadd.f32 %v7175_v59, %v2790_v39  ;;  %v4001_v42 = vadd.f32 %v7175_v59, %v4000_v40  ;;  %v2792_v43 = vpop.f32.mrb[39].mxu0  ;;  %3054 = vmatmul.mubr.f32.gmra.mrb[144].mxu0 %v321_v33  ;;  %v4002_v44 = vpop.f32.mrb[39].mxu1  ;;  %4264 = vmatmul.mubr.f32.gmra.mrb[144].mxu1 %v805_v34  ;;  %v334_v34 = vld [vmem:[%s6779_s5 + $0x4e8] sm:$0xff] }
 0x158   : > { %6221 = vmatprep.mubr.msk.f32.mxu0 %vm1176_vm0, %v324_v37  ;;  %6463 = vmatprep.mubr.msk.f32.mxu1 %vm1176_vm0, %v808_v38  ;;  %v818_v35 = vld [vmem:[%s6779_s5 + $0x1408] sm:$0xff]  ;;  %v817_v43 = vld [vmem:[%s6779_s5 + $0x1400] sm:$0xff] }
 0x159   : > { %v5133_v47 = vmax.f32 %v2791_v41, 0.0  ;;  %v5375_v48 = vmax.f32 %v4001_v42, 0.0  ;;  %v333_v42 = vld [vmem:[%s6779_s5 + $0x4e0] sm:$0xff] }
 0x15a   : > { %v2795_v51 = vpop.f32.mrb[40].mxu0  ;;  %v4005_v52 = vpop.f32.mrb[40].mxu1 }
 0x15b   : > { %5618 = vst.msk [vmem:[%s7189_s23 + $0x98] sm:$0xff] %vm5598_vm1, %v5133_v47  ;;  %5860 = vst.msk [vmem:[%s7189_s23 + $0x828] sm:$0xff] %vm5598_vm1, %v5375_v48  ;;  %v2796_v53 = vadd.f32 %v7175_v59, %v2795_v51  ;;  %v4006_v54 = vadd.f32 %v7175_v59, %v4005_v52  ;;  %v2797_v55 = vpop.f32.mrb[41].mxu0  ;;  %3059 = vmatmul.mubr.f32.gmra.mrb[146].mxu0 %v323_v45  ;;  %v4007_v56 = vpop.f32.mrb[41].mxu1  ;;  %4269 = vmatmul.mubr.f32.gmra.mrb[146].mxu1 %v807_v46  ;;  %v336_v46 = vld [vmem:[%s6779_s5 + $0x4f8] sm:$0xff] }
 0x15c   : > { %6222 = vmatprep.mubr.msk.f32.mxu0 %vm1176_vm0, %v326_v49  ;;  %6464 = vmatprep.mubr.msk.f32.mxu1 %vm1176_vm0, %v810_v50  ;;  %v820_v47 = vld [vmem:[%s6779_s5 + $0x1418] sm:$0xff]  ;;  %v819_v55 = vld [vmem:[%s6779_s5 + $0x1410] sm:$0xff] }
 0x15d   : > { %v5134_v60 = vmax.f32 %v2796_v53, 0.0  ;;  %v5376_v61 = vmax.f32 %v4006_v54, 0.0  ;;  %v335_v54 = vld [vmem:[%s6779_s5 + $0x4f0] sm:$0xff] }
 0x15e   : > { %v2800_v0 = vpop.f32.mrb[42].mxu0  ;;  %v4010_v1 = vpop.f32.mrb[42].mxu1 }
 0x15f   : > { %5619 = vst.msk [vmem:[%s7189_s23 + $0xa0] sm:$0xff] %vm5598_vm1, %v5134_v60  ;;  %5861 = vst.msk [vmem:[%s7189_s23 + $0x830] sm:$0xff] %vm5598_vm1, %v5376_v61  ;;  %v2801_v2 = vadd.f32 %v7175_v59, %v2800_v0  ;;  %v4011_v3 = vadd.f32 %v7175_v59, %v4010_v1  ;;  %v2802_v4 = vpop.f32.mrb[43].mxu0  ;;  %3064 = vmatmul.mubr.f32.gmra.mrb[148].mxu0 %v325_v57  ;;  %v4012_v5 = vpop.f32.mrb[43].mxu1  ;;  %4274 = vmatmul.mubr.f32.gmra.mrb[148].mxu1 %v809_v58  ;;  %v338_v58 = vld [vmem:[%s6779_s5 + $0x508] sm:$0xff] }
 0x160   : > { %6223 = vmatprep.mubr.msk.f32.mxu0 %vm1176_vm0, %v328_v62  ;;  %6465 = vmatprep.mubr.msk.f32.mxu1 %vm1176_vm0, %v812_v63  ;;  %v822_v60 = vld [vmem:[%s6779_s5 + $0x1428] sm:$0xff]  ;;  %v821_v4 = vld [vmem:[%s6779_s5 + $0x1420] sm:$0xff] }
 0x161   : > { %v5135_v8 = vmax.f32 %v2801_v2, 0.0  ;;  %v5377_v9 = vmax.f32 %v4011_v3, 0.0  ;;  %v337_v3 = vld [vmem:[%s6779_s5 + $0x500] sm:$0xff] }
 0x162   : > { %v2805_v12 = vpop.f32.mrb[44].mxu0  ;;  %v4015_v13 = vpop.f32.mrb[44].mxu1 }
 0x163   : > { %5620 = vst.msk [vmem:[%s7189_s23 + $0xa8] sm:$0xff] %vm5598_vm1, %v5135_v8  ;;  %5862 = vst.msk [vmem:[%s7189_s23 + $0x838] sm:$0xff] %vm5598_vm1, %v5377_v9  ;;  %v2806_v14 = vadd.f32 %v7175_v59, %v2805_v12  ;;  %v4016_v15 = vadd.f32 %v7175_v59, %v4015_v13  ;;  %v2807_v16 = vpop.f32.mrb[45].mxu0  ;;  %3069 = vmatmul.mubr.f32.gmra.mrb[150].mxu0 %v327_v6  ;;  %v4017_v17 = vpop.f32.mrb[45].mxu1  ;;  %4279 = vmatmul.mubr.f32.gmra.mrb[150].mxu1 %v811_v7  ;;  %v340_v7 = vld [vmem:[%s6779_s5 + $0x518] sm:$0xff] }
 0x164   : > { %6224 = vmatprep.mubr.msk.f32.mxu0 %vm1176_vm0, %v330_v10  ;;  %6466 = vmatprep.mubr.msk.f32.mxu1 %vm1176_vm0, %v814_v11  ;;  %v824_v8 = vld [vmem:[%s6779_s5 + $0x1438] sm:$0xff]  ;;  %v823_v16 = vld [vmem:[%s6779_s5 + $0x1430] sm:$0xff] }
 0x165   : > { %v5136_v20 = vmax.f32 %v2806_v14, 0.0  ;;  %v5378_v21 = vmax.f32 %v4016_v15, 0.0  ;;  %v339_v15 = vld [vmem:[%s6779_s5 + $0x510] sm:$0xff] }
 0x166   : > { %v2810_v24 = vpop.f32.mrb[46].mxu0  ;;  %v4020_v25 = vpop.f32.mrb[46].mxu1 }
 0x167   : > { %5621 = vst.msk [vmem:[%s7189_s23 + $0xb0] sm:$0xff] %vm5598_vm1, %v5136_v20  ;;  %5863 = vst.msk [vmem:[%s7189_s23 + $0x840] sm:$0xff] %vm5598_vm1, %v5378_v21  ;;  %v2811_v26 = vadd.f32 %v7175_v59, %v2810_v24  ;;  %v4021_v27 = vadd.f32 %v7175_v59, %v4020_v25  ;;  %v2812_v28 = vpop.f32.mrb[47].mxu0  ;;  %3074 = vmatmul.mubr.f32.gmra.mrb[152].mxu0 %v329_v18  ;;  %v4022_v29 = vpop.f32.mrb[47].mxu1  ;;  %4284 = vmatmul.mubr.f32.gmra.mrb[152].mxu1 %v813_v19  ;;  %v342_v19 = vld [vmem:[%s6779_s5 + $0x528] sm:$0xff] }
 0x168   : > { %6225 = vmatprep.mubr.msk.f32.mxu0 %vm1176_vm0, %v332_v22  ;;  %6467 = vmatprep.mubr.msk.f32.mxu1 %vm1176_vm0, %v816_v23  ;;  %v826_v20 = vld [vmem:[%s6779_s5 + $0x1448] sm:$0xff]  ;;  %v825_v28 = vld [vmem:[%s6779_s5 + $0x1440] sm:$0xff] }
 0x169   : > { %v5137_v32 = vmax.f32 %v2811_v26, 0.0  ;;  %v5379_v33 = vmax.f32 %v4021_v27, 0.0  ;;  %v341_v27 = vld [vmem:[%s6779_s5 + $0x520] sm:$0xff] }
 0x16a   : > { %v2815_v36 = vpop.f32.mrb[48].mxu0  ;;  %v4025_v37 = vpop.f32.mrb[48].mxu1 }
 0x16b   : > { %5622 = vst.msk [vmem:[%s7189_s23 + $0xb8] sm:$0xff] %vm5598_vm1, %v5137_v32  ;;  %5864 = vst.msk [vmem:[%s7189_s23 + $0x848] sm:$0xff] %vm5598_vm1, %v5379_v33  ;;  %v2816_v38 = vadd.f32 %v7175_v59, %v2815_v36  ;;  %v4026_v39 = vadd.f32 %v7175_v59, %v4025_v37  ;;  %v2817_v40 = vpop.f32.mrb[49].mxu0  ;;  %3079 = vmatmul.mubr.f32.gmra.mrb[154].mxu0 %v331_v30  ;;  %v4027_v41 = vpop.f32.mrb[49].mxu1  ;;  %4289 = vmatmul.mubr.f32.gmra.mrb[154].mxu1 %v815_v31  ;;  %v344_v31 = vld [vmem:[%s6779_s5 + $0x538] sm:$0xff] }
 0x16c   : > { %6226 = vmatprep.mubr.msk.f32.mxu0 %vm1176_vm0, %v334_v34  ;;  %6468 = vmatprep.mubr.msk.f32.mxu1 %vm1176_vm0, %v818_v35  ;;  %v828_v32 = vld [vmem:[%s6779_s5 + $0x1458] sm:$0xff]  ;;  %v827_v40 = vld [vmem:[%s6779_s5 + $0x1450] sm:$0xff] }
 0x16d   : > { %v5138_v44 = vmax.f32 %v2816_v38, 0.0  ;;  %v5380_v45 = vmax.f32 %v4026_v39, 0.0  ;;  %v343_v39 = vld [vmem:[%s6779_s5 + $0x530] sm:$0xff] }
 0x16e   : > { %v2820_v48 = vpop.f32.mrb[50].mxu0  ;;  %v4030_v49 = vpop.f32.mrb[50].mxu1 }
 0x16f   : > { %5623 = vst.msk [vmem:[%s7189_s23 + $0xc0] sm:$0xff] %vm5598_vm1, %v5138_v44  ;;  %5865 = vst.msk [vmem:[%s7189_s23 + $0x850] sm:$0xff] %vm5598_vm1, %v5380_v45  ;;  %v2821_v50 = vadd.f32 %v7175_v59, %v2820_v48  ;;  %v4031_v51 = vadd.f32 %v7175_v59, %v4030_v49  ;;  %v2822_v52 = vpop.f32.mrb[51].mxu0  ;;  %3084 = vmatmul.mubr.f32.gmra.mrb[156].mxu0 %v333_v42  ;;  %v4032_v53 = vpop.f32.mrb[51].mxu1  ;;  %4294 = vmatmul.mubr.f32.gmra.mrb[156].mxu1 %v817_v43  ;;  %v346_v43 = vld [vmem:[%s6779_s5 + $0x548] sm:$0xff] }
 0x170   : > { %6227 = vmatprep.mubr.msk.f32.mxu0 %vm1176_vm0, %v336_v46  ;;  %6469 = vmatprep.mubr.msk.f32.mxu1 %vm1176_vm0, %v820_v47  ;;  %v830_v44 = vld [vmem:[%s6779_s5 + $0x1468] sm:$0xff]  ;;  %v829_v52 = vld [vmem:[%s6779_s5 + $0x1460] sm:$0xff] }
 0x171   : > { %v5139_v56 = vmax.f32 %v2821_v50, 0.0  ;;  %v5381_v57 = vmax.f32 %v4031_v51, 0.0  ;;  %v345_v51 = vld [vmem:[%s6779_s5 + $0x540] sm:$0xff] }
 0x172   : > { %v2825_v61 = vpop.f32.mrb[52].mxu0  ;;  %v4035_v62 = vpop.f32.mrb[52].mxu1 }
 0x173   : > { %5624 = vst.msk [vmem:[%s7189_s23 + $0xc8] sm:$0xff] %vm5598_vm1, %v5139_v56  ;;  %5866 = vst.msk [vmem:[%s7189_s23 + $0x858] sm:$0xff] %vm5598_vm1, %v5381_v57  ;;  %v2826_v63 = vadd.f32 %v7175_v59, %v2825_v61  ;;  %v4036_v0 = vadd.f32 %v7175_v59, %v4035_v62  ;;  %v2827_v1 = vpop.f32.mrb[53].mxu0  ;;  %3089 = vmatmul.mubr.f32.gmra.mrb[158].mxu0 %v335_v54  ;;  %v4037_v2 = vpop.f32.mrb[53].mxu1  ;;  %4299 = vmatmul.mubr.f32.gmra.mrb[158].mxu1 %v819_v55  ;;  %v348_v55 = vld [vmem:[%s6779_s5 + $0x558] sm:$0xff] }
 0x174   : > { %6228 = vmatprep.mubr.msk.f32.mxu0 %vm1176_vm0, %v338_v58  ;;  %6470 = vmatprep.mubr.msk.f32.mxu1 %vm1176_vm0, %v822_v60  ;;  %v832_v56 = vld [vmem:[%s6779_s5 + $0x1478] sm:$0xff]  ;;  %v831_v1 = vld [vmem:[%s6779_s5 + $0x1470] sm:$0xff] }
 0x175   : > { %v5140_v5 = vmax.f32 %v2826_v63, 0.0  ;;  %v5382_v6 = vmax.f32 %v4036_v0, 0.0  ;;  %v347_v0 = vld [vmem:[%s6779_s5 + $0x550] sm:$0xff] }
 0x176   : > { %v2830_v9 = vpop.f32.mrb[54].mxu0  ;;  %v4040_v10 = vpop.f32.mrb[54].mxu1 }
 0x177   : > { %5625 = vst.msk [vmem:[%s7189_s23 + $0xd0] sm:$0xff] %vm5598_vm1, %v5140_v5  ;;  %5867 = vst.msk [vmem:[%s7189_s23 + $0x860] sm:$0xff] %vm5598_vm1, %v5382_v6  ;;  %v2831_v11 = vadd.f32 %v7175_v59, %v2830_v9  ;;  %v4041_v12 = vadd.f32 %v7175_v59, %v4040_v10  ;;  %v2832_v13 = vpop.f32.mrb[55].mxu0  ;;  %3094 = vmatmul.mubr.f32.gmra.mrb[160].mxu0 %v337_v3  ;;  %v4042_v14 = vpop.f32.mrb[55].mxu1  ;;  %4304 = vmatmul.mubr.f32.gmra.mrb[160].mxu1 %v821_v4  ;;  %v7528_v59 = vld [vmem:[%s9807_s2] ss:$0 sm:$0xff] }
 0x178   : > { %6229 = vmatprep.mubr.msk.f32.mxu0 %vm1176_vm0, %v340_v7  ;;  %6471 = vmatprep.mubr.msk.f32.mxu1 %vm1176_vm0, %v824_v8  ;;  %v350_v4 = vld [vmem:[%s6779_s5 + $0x568] sm:$0xff]  ;;  %v833_v13 = vld [vmem:[%s6779_s5 + $0x1480] sm:$0xff] }
 0x179   : > { %v5141_v17 = vmax.f32 %v2831_v11, 0.0  ;;  %v5383_v18 = vmax.f32 %v4041_v12, 0.0  ;;  %v834_v5 = vld [vmem:[%s6779_s5 + $0x1488] sm:$0xff]  ;;  %v349_v12 = vld [vmem:[%s6779_s5 + $0x560] sm:$0xff] }
 0x17a   : > { %v2835_v21 = vpop.f32.mrb[56].mxu0  ;;  %v4045_v22 = vpop.f32.mrb[56].mxu1 }
 0x17b   : > { %5626 = vst.msk [vmem:[%s7189_s23 + $0xd8] sm:$0xff] %vm5598_vm1, %v5141_v17  ;;  %5868 = vst.msk [vmem:[%s7189_s23 + $0x868] sm:$0xff] %vm5598_vm1, %v5383_v18  ;;  %v2836_v23 = vadd.f32 %v7528_v59, %v2835_v21  ;;  %v4046_v24 = vadd.f32 %v7528_v59, %v4045_v22  ;;  %v2837_v25 = vpop.f32.mrb[57].mxu0  ;;  %3099 = vmatmul.mubr.f32.gmra.mrb[162].mxu0 %v339_v15  ;;  %v4047_v26 = vpop.f32.mrb[57].mxu1  ;;  %4309 = vmatmul.mubr.f32.gmra.mrb[162].mxu1 %v823_v16  ;;  %v352_v16 = vld [vmem:[%s6779_s5 + $0x578] sm:$0xff] }
 0x17c   : > { %6230 = vmatprep.mubr.msk.f32.mxu0 %vm1176_vm0, %v342_v19  ;;  %6472 = vmatprep.mubr.msk.f32.mxu1 %vm1176_vm0, %v826_v20  ;;  %v836_v17 = vld [vmem:[%s6779_s5 + $0x1498] sm:$0xff]  ;;  %v835_v25 = vld [vmem:[%s6779_s5 + $0x1490] sm:$0xff] }
 0x17d   : > { %v5142_v29 = vmax.f32 %v2836_v23, 0.0  ;;  %v5384_v30 = vmax.f32 %v4046_v24, 0.0  ;;  %v351_v24 = vld [vmem:[%s6779_s5 + $0x570] sm:$0xff] }
 0x17e   : > { %v2840_v33 = vpop.f32.mrb[58].mxu0  ;;  %v4050_v34 = vpop.f32.mrb[58].mxu1 }
 0x17f   : > { %5627 = vst.msk [vmem:[%s7189_s23 + $0xe0] sm:$0xff] %vm5598_vm1, %v5142_v29  ;;  %5869 = vst.msk [vmem:[%s7189_s23 + $0x870] sm:$0xff] %vm5598_vm1, %v5384_v30  ;;  %v2841_v35 = vadd.f32 %v7528_v59, %v2840_v33  ;;  %v4051_v36 = vadd.f32 %v7528_v59, %v4050_v34  ;;  %v2842_v37 = vpop.f32.mrb[59].mxu0  ;;  %3104 = vmatmul.mubr.f32.gmra.mrb[164].mxu0 %v341_v27  ;;  %v4052_v38 = vpop.f32.mrb[59].mxu1  ;;  %4314 = vmatmul.mubr.f32.gmra.mrb[164].mxu1 %v825_v28  ;;  %v354_v28 = vld [vmem:[%s6779_s5 + $0x588] sm:$0xff] }
 0x180   : > { %6231 = vmatprep.mubr.msk.f32.mxu0 %vm1176_vm0, %v344_v31  ;;  %6473 = vmatprep.mubr.msk.f32.mxu1 %vm1176_vm0, %v828_v32  ;;  %v838_v29 = vld [vmem:[%s6779_s5 + $0x14a8] sm:$0xff]  ;;  %v837_v37 = vld [vmem:[%s6779_s5 + $0x14a0] sm:$0xff] }
 0x181   : > { %v5143_v41 = vmax.f32 %v2841_v35, 0.0  ;;  %v5385_v42 = vmax.f32 %v4051_v36, 0.0  ;;  %v353_v36 = vld [vmem:[%s6779_s5 + $0x580] sm:$0xff] }
 0x182   : > { %v2845_v45 = vpop.f32.mrb[60].mxu0  ;;  %v4055_v46 = vpop.f32.mrb[60].mxu1 }
 0x183   : > { %5628 = vst.msk [vmem:[%s7189_s23 + $0xe8] sm:$0xff] %vm5598_vm1, %v5143_v41  ;;  %5870 = vst.msk [vmem:[%s7189_s23 + $0x878] sm:$0xff] %vm5598_vm1, %v5385_v42  ;;  %v2846_v47 = vadd.f32 %v7528_v59, %v2845_v45  ;;  %v4056_v48 = vadd.f32 %v7528_v59, %v4055_v46  ;;  %v2847_v49 = vpop.f32.mrb[61].mxu0  ;;  %3109 = vmatmul.mubr.f32.gmra.mrb[166].mxu0 %v343_v39  ;;  %v4057_v50 = vpop.f32.mrb[61].mxu1  ;;  %4319 = vmatmul.mubr.f32.gmra.mrb[166].mxu1 %v827_v40  ;;  %v356_v40 = vld [vmem:[%s6779_s5 + $0x598] sm:$0xff] }
 0x184   : > { %6232 = vmatprep.mubr.msk.f32.mxu0 %vm1176_vm0, %v346_v43  ;;  %6474 = vmatprep.mubr.msk.f32.mxu1 %vm1176_vm0, %v830_v44  ;;  %v840_v41 = vld [vmem:[%s6779_s5 + $0x14b8] sm:$0xff]  ;;  %v839_v49 = vld [vmem:[%s6779_s5 + $0x14b0] sm:$0xff] }
 0x185   : > { %v5144_v53 = vmax.f32 %v2846_v47, 0.0  ;;  %v5386_v54 = vmax.f32 %v4056_v48, 0.0  ;;  %v355_v48 = vld [vmem:[%s6779_s5 + $0x590] sm:$0xff] }
 0x186   : > { %v2850_v57 = vpop.f32.mrb[62].mxu0  ;;  %v4060_v58 = vpop.f32.mrb[62].mxu1 }
 0x187   : > { %5629 = vst.msk [vmem:[%s7189_s23 + $0xf0] sm:$0xff] %vm5598_vm1, %v5144_v53  ;;  %5871 = vst.msk [vmem:[%s7189_s23 + $0x880] sm:$0xff] %vm5598_vm1, %v5386_v54  ;;  %v2851_v60 = vadd.f32 %v7528_v59, %v2850_v57  ;;  %v4061_v61 = vadd.f32 %v7528_v59, %v4060_v58  ;;  %v2852_v62 = vpop.f32.mrb[63].mxu0  ;;  %3114 = vmatmul.mubr.f32.gmra.mrb[168].mxu0 %v345_v51  ;;  %v4062_v63 = vpop.f32.mrb[63].mxu1  ;;  %4324 = vmatmul.mubr.f32.gmra.mrb[168].mxu1 %v829_v52  ;;  %v358_v52 = vld [vmem:[%s6779_s5 + $0x5a8] sm:$0xff] }
 0x188   : > { %6233 = vmatprep.mubr.msk.f32.mxu0 %vm1176_vm0, %v348_v55  ;;  %6475 = vmatprep.mubr.msk.f32.mxu1 %vm1176_vm0, %v832_v56  ;;  %v842_v53 = vld [vmem:[%s6779_s5 + $0x14c8] sm:$0xff]  ;;  %v841_v62 = vld [vmem:[%s6779_s5 + $0x14c0] sm:$0xff] }
 0x189   : > { %v5145_v2 = vmax.f32 %v2851_v60, 0.0  ;;  %v5387_v3 = vmax.f32 %v4061_v61, 0.0  ;;  %v357_v61 = vld [vmem:[%s6779_s5 + $0x5a0] sm:$0xff] }
 0x18a   : > { %v2855_v6 = vpop.f32.mrb[64].mxu0  ;;  %v4065_v7 = vpop.f32.mrb[64].mxu1 }
 0x18b   : > { %5630 = vst.msk [vmem:[%s7189_s23 + $0xf8] sm:$0xff] %vm5598_vm1, %v5145_v2  ;;  %5872 = vst.msk [vmem:[%s7189_s23 + $0x888] sm:$0xff] %vm5598_vm1, %v5387_v3  ;;  %v2856_v8 = vadd.f32 %v7528_v59, %v2855_v6  ;;  %v4066_v9 = vadd.f32 %v7528_v59, %v4065_v7  ;;  %v2857_v10 = vpop.f32.mrb[65].mxu0  ;;  %3119 = vmatmul.mubr.f32.gmra.mrb[170].mxu0 %v347_v0  ;;  %v4067_v11 = vpop.f32.mrb[65].mxu1  ;;  %4329 = vmatmul.mubr.f32.gmra.mrb[170].mxu1 %v831_v1  ;;  %v360_v1 = vld [vmem:[%s6779_s5 + $0x5b8] sm:$0xff] }
 0x18c   : > { %6234 = vmatprep.mubr.msk.f32.mxu0 %vm1176_vm0, %v350_v4  ;;  %6476 = vmatprep.mubr.msk.f32.mxu1 %vm1176_vm0, %v834_v5  ;;  %v844_v2 = vld [vmem:[%s6779_s5 + $0x14d8] sm:$0xff]  ;;  %v843_v10 = vld [vmem:[%s6779_s5 + $0x14d0] sm:$0xff] }
 0x18d   : > { %v5146_v14 = vmax.f32 %v2856_v8, 0.0  ;;  %v5388_v15 = vmax.f32 %v4066_v9, 0.0  ;;  %v359_v9 = vld [vmem:[%s6779_s5 + $0x5b0] sm:$0xff] }
 0x18e   : > { %v2860_v18 = vpop.f32.mrb[66].mxu0  ;;  %v4070_v19 = vpop.f32.mrb[66].mxu1 }
 0x18f   : > { %5631 = vst.msk [vmem:[%s7189_s23 + $0x100] sm:$0xff] %vm5598_vm1, %v5146_v14  ;;  %5873 = vst.msk [vmem:[%s7189_s23 + $0x890] sm:$0xff] %vm5598_vm1, %v5388_v15  ;;  %v2861_v20 = vadd.f32 %v7528_v59, %v2860_v18  ;;  %v4071_v21 = vadd.f32 %v7528_v59, %v4070_v19  ;;  %v2862_v22 = vpop.f32.mrb[67].mxu0  ;;  %3124 = vmatmul.mubr.f32.gmra.mrb[172].mxu0 %v349_v12  ;;  %v4072_v23 = vpop.f32.mrb[67].mxu1  ;;  %4334 = vmatmul.mubr.f32.gmra.mrb[172].mxu1 %v833_v13  ;;  %v362_v13 = vld [vmem:[%s6779_s5 + $0x5c8] sm:$0xff] }
 0x190   : > { %6235 = vmatprep.mubr.msk.f32.mxu0 %vm1176_vm0, %v352_v16  ;;  %6477 = vmatprep.mubr.msk.f32.mxu1 %vm1176_vm0, %v836_v17  ;;  %v846_v14 = vld [vmem:[%s6779_s5 + $0x14e8] sm:$0xff]  ;;  %v845_v22 = vld [vmem:[%s6779_s5 + $0x14e0] sm:$0xff] }
 0x191   : > { %v5147_v26 = vmax.f32 %v2861_v20, 0.0  ;;  %v5389_v27 = vmax.f32 %v4071_v21, 0.0  ;;  %v361_v21 = vld [vmem:[%s6779_s5 + $0x5c0] sm:$0xff] }
 0x192   : > { %v2865_v30 = vpop.f32.mrb[68].mxu0  ;;  %v4075_v31 = vpop.f32.mrb[68].mxu1 }
 0x193   : > { %5632 = vst.msk [vmem:[%s7189_s23 + $0x108] sm:$0xff] %vm5598_vm1, %v5147_v26  ;;  %5874 = vst.msk [vmem:[%s7189_s23 + $0x898] sm:$0xff] %vm5598_vm1, %v5389_v27  ;;  %v2866_v32 = vadd.f32 %v7528_v59, %v2865_v30  ;;  %v4076_v33 = vadd.f32 %v7528_v59, %v4075_v31  ;;  %v2867_v34 = vpop.f32.mrb[69].mxu0  ;;  %3129 = vmatmul.mubr.f32.gmra.mrb[174].mxu0 %v351_v24  ;;  %v4077_v35 = vpop.f32.mrb[69].mxu1  ;;  %4339 = vmatmul.mubr.f32.gmra.mrb[174].mxu1 %v835_v25  ;;  %v364_v25 = vld [vmem:[%s6779_s5 + $0x5d8] sm:$0xff] }
 0x194   : > { %6236 = vmatprep.mubr.msk.f32.mxu0 %vm1176_vm0, %v354_v28  ;;  %6478 = vmatprep.mubr.msk.f32.mxu1 %vm1176_vm0, %v838_v29  ;;  %v848_v26 = vld [vmem:[%s6779_s5 + $0x14f8] sm:$0xff]  ;;  %v847_v34 = vld [vmem:[%s6779_s5 + $0x14f0] sm:$0xff] }
 0x195   : > { %v5148_v38 = vmax.f32 %v2866_v32, 0.0  ;;  %v5390_v39 = vmax.f32 %v4076_v33, 0.0  ;;  %v363_v33 = vld [vmem:[%s6779_s5 + $0x5d0] sm:$0xff] }
 0x196   : > { %v2870_v42 = vpop.f32.mrb[70].mxu0  ;;  %v4080_v43 = vpop.f32.mrb[70].mxu1 }
 0x197   : > { %5633 = vst.msk [vmem:[%s7189_s23 + $0x110] sm:$0xff] %vm5598_vm1, %v5148_v38  ;;  %5875 = vst.msk [vmem:[%s7189_s23 + $0x8a0] sm:$0xff] %vm5598_vm1, %v5390_v39  ;;  %v2871_v44 = vadd.f32 %v7528_v59, %v2870_v42  ;;  %v4081_v45 = vadd.f32 %v7528_v59, %v4080_v43  ;;  %v2872_v46 = vpop.f32.mrb[71].mxu0  ;;  %3134 = vmatmul.mubr.f32.gmra.mrb[176].mxu0 %v353_v36  ;;  %v4082_v47 = vpop.f32.mrb[71].mxu1  ;;  %4344 = vmatmul.mubr.f32.gmra.mrb[176].mxu1 %v837_v37  ;;  %v366_v37 = vld [vmem:[%s6779_s5 + $0x5e8] sm:$0xff] }
 0x198   : > { %6237 = vmatprep.mubr.msk.f32.mxu0 %vm1176_vm0, %v356_v40  ;;  %6479 = vmatprep.mubr.msk.f32.mxu1 %vm1176_vm0, %v840_v41  ;;  %v850_v38 = vld [vmem:[%s6779_s5 + $0x1508] sm:$0xff]  ;;  %v849_v46 = vld [vmem:[%s6779_s5 + $0x1500] sm:$0xff] }
 0x199   : > { %v5149_v50 = vmax.f32 %v2871_v44, 0.0  ;;  %v5391_v51 = vmax.f32 %v4081_v45, 0.0  ;;  %v365_v45 = vld [vmem:[%s6779_s5 + $0x5e0] sm:$0xff] }
 0x19a   : > { %v2875_v54 = vpop.f32.mrb[72].mxu0  ;;  %v4085_v55 = vpop.f32.mrb[72].mxu1 }
 0x19b   : > { %5634 = vst.msk [vmem:[%s7189_s23 + $0x118] sm:$0xff] %vm5598_vm1, %v5149_v50  ;;  %5876 = vst.msk [vmem:[%s7189_s23 + $0x8a8] sm:$0xff] %vm5598_vm1, %v5391_v51  ;;  %v2876_v56 = vadd.f32 %v7528_v59, %v2875_v54  ;;  %v4086_v57 = vadd.f32 %v7528_v59, %v4085_v55  ;;  %v2877_v58 = vpop.f32.mrb[73].mxu0  ;;  %3139 = vmatmul.mubr.f32.gmra.mrb[178].mxu0 %v355_v48  ;;  %v4087_v60 = vpop.f32.mrb[73].mxu1  ;;  %4349 = vmatmul.mubr.f32.gmra.mrb[178].mxu1 %v839_v49  ;;  %v368_v49 = vld [vmem:[%s6779_s5 + $0x5f8] sm:$0xff] }
 0x19c   : > { %6238 = vmatprep.mubr.msk.f32.mxu0 %vm1176_vm0, %v358_v52  ;;  %6480 = vmatprep.mubr.msk.f32.mxu1 %vm1176_vm0, %v842_v53  ;;  %v852_v50 = vld [vmem:[%s6779_s5 + $0x1518] sm:$0xff]  ;;  %v851_v58 = vld [vmem:[%s6779_s5 + $0x1510] sm:$0xff] }
 0x19d   : > { %v5150_v63 = vmax.f32 %v2876_v56, 0.0  ;;  %v5392_v0 = vmax.f32 %v4086_v57, 0.0  ;;  %v367_v57 = vld [vmem:[%s6779_s5 + $0x5f0] sm:$0xff] }
 0x19e   : > { %v2880_v3 = vpop.f32.mrb[74].mxu0  ;;  %v4090_v4 = vpop.f32.mrb[74].mxu1 }
 0x19f   : > { %5635 = vst.msk [vmem:[%s7189_s23 + $0x120] sm:$0xff] %vm5598_vm1, %v5150_v63  ;;  %5877 = vst.msk [vmem:[%s7189_s23 + $0x8b0] sm:$0xff] %vm5598_vm1, %v5392_v0  ;;  %v2881_v5 = vadd.f32 %v7528_v59, %v2880_v3  ;;  %v4091_v6 = vadd.f32 %v7528_v59, %v4090_v4  ;;  %v2882_v7 = vpop.f32.mrb[75].mxu0  ;;  %3144 = vmatmul.mubr.f32.gmra.mrb[180].mxu0 %v357_v61  ;;  %v4092_v8 = vpop.f32.mrb[75].mxu1  ;;  %4354 = vmatmul.mubr.f32.gmra.mrb[180].mxu1 %v841_v62  ;;  %v370_v62 = vld [vmem:[%s6779_s5 + $0x608] sm:$0xff] }
 0x1a0   : > { %6239 = vmatprep.mubr.msk.f32.mxu0 %vm1176_vm0, %v360_v1  ;;  %6481 = vmatprep.mubr.msk.f32.mxu1 %vm1176_vm0, %v844_v2  ;;  %v854_v63 = vld [vmem:[%s6779_s5 + $0x1528] sm:$0xff]  ;;  %v853_v7 = vld [vmem:[%s6779_s5 + $0x1520] sm:$0xff] }
 0x1a1   : > { %v5151_v11 = vmax.f32 %v2881_v5, 0.0  ;;  %v5393_v12 = vmax.f32 %v4091_v6, 0.0  ;;  %v369_v6 = vld [vmem:[%s6779_s5 + $0x600] sm:$0xff] }
 0x1a2   : > { %v2885_v15 = vpop.f32.mrb[76].mxu0  ;;  %v4095_v16 = vpop.f32.mrb[76].mxu1 }
 0x1a3   : > { %5636 = vst.msk [vmem:[%s7189_s23 + $0x128] sm:$0xff] %vm5598_vm1, %v5151_v11  ;;  %5878 = vst.msk [vmem:[%s7189_s23 + $0x8b8] sm:$0xff] %vm5598_vm1, %v5393_v12  ;;  %v2886_v17 = vadd.f32 %v7528_v59, %v2885_v15  ;;  %v4096_v18 = vadd.f32 %v7528_v59, %v4095_v16  ;;  %v2887_v19 = vpop.f32.mrb[77].mxu0  ;;  %3149 = vmatmul.mubr.f32.gmra.mrb[182].mxu0 %v359_v9  ;;  %v4097_v20 = vpop.f32.mrb[77].mxu1  ;;  %4359 = vmatmul.mubr.f32.gmra.mrb[182].mxu1 %v843_v10  ;;  %v372_v10 = vld [vmem:[%s6779_s5 + $0x618] sm:$0xff] }
 0x1a4   : > { %6240 = vmatprep.mubr.msk.f32.mxu0 %vm1176_vm0, %v362_v13  ;;  %6482 = vmatprep.mubr.msk.f32.mxu1 %vm1176_vm0, %v846_v14  ;;  %v856_v11 = vld [vmem:[%s6779_s5 + $0x1538] sm:$0xff]  ;;  %v855_v19 = vld [vmem:[%s6779_s5 + $0x1530] sm:$0xff] }
 0x1a5   : > { %v5152_v23 = vmax.f32 %v2886_v17, 0.0  ;;  %v5394_v24 = vmax.f32 %v4096_v18, 0.0  ;;  %v371_v18 = vld [vmem:[%s6779_s5 + $0x610] sm:$0xff] }
 0x1a6   : > { %v2890_v27 = vpop.f32.mrb[78].mxu0  ;;  %v4100_v28 = vpop.f32.mrb[78].mxu1 }
 0x1a7   : > { %5637 = vst.msk [vmem:[%s7189_s23 + $0x130] sm:$0xff] %vm5598_vm1, %v5152_v23  ;;  %5879 = vst.msk [vmem:[%s7189_s23 + $0x8c0] sm:$0xff] %vm5598_vm1, %v5394_v24  ;;  %v2891_v29 = vadd.f32 %v7528_v59, %v2890_v27  ;;  %v4101_v30 = vadd.f32 %v7528_v59, %v4100_v28  ;;  %v2892_v31 = vpop.f32.mrb[79].mxu0  ;;  %3154 = vmatmul.mubr.f32.gmra.mrb[184].mxu0 %v361_v21  ;;  %v4102_v32 = vpop.f32.mrb[79].mxu1  ;;  %4364 = vmatmul.mubr.f32.gmra.mrb[184].mxu1 %v845_v22  ;;  %v374_v22 = vld [vmem:[%s6779_s5 + $0x628] sm:$0xff] }
 0x1a8   : > { %6241 = vmatprep.mubr.msk.f32.mxu0 %vm1176_vm0, %v364_v25  ;;  %6483 = vmatprep.mubr.msk.f32.mxu1 %vm1176_vm0, %v848_v26  ;;  %v858_v23 = vld [vmem:[%s6779_s5 + $0x1548] sm:$0xff]  ;;  %v857_v31 = vld [vmem:[%s6779_s5 + $0x1540] sm:$0xff] }
 0x1a9   : > { %v5153_v35 = vmax.f32 %v2891_v29, 0.0  ;;  %v5395_v36 = vmax.f32 %v4101_v30, 0.0  ;;  %v373_v30 = vld [vmem:[%s6779_s5 + $0x620] sm:$0xff] }
 0x1aa   : > { %v2895_v39 = vpop.f32.mrb[80].mxu0  ;;  %v4105_v40 = vpop.f32.mrb[80].mxu1 }
 0x1ab   : > { %5638 = vst.msk [vmem:[%s7189_s23 + $0x138] sm:$0xff] %vm5598_vm1, %v5153_v35  ;;  %5880 = vst.msk [vmem:[%s7189_s23 + $0x8c8] sm:$0xff] %vm5598_vm1, %v5395_v36  ;;  %v2896_v41 = vadd.f32 %v7528_v59, %v2895_v39  ;;  %v4106_v42 = vadd.f32 %v7528_v59, %v4105_v40  ;;  %v2897_v43 = vpop.f32.mrb[81].mxu0  ;;  %3159 = vmatmul.mubr.f32.gmra.mrb[186].mxu0 %v363_v33  ;;  %v4107_v44 = vpop.f32.mrb[81].mxu1  ;;  %4369 = vmatmul.mubr.f32.gmra.mrb[186].mxu1 %v847_v34  ;;  %v376_v34 = vld [vmem:[%s6779_s5 + $0x638] sm:$0xff] }
 0x1ac   : > { %6242 = vmatprep.mubr.msk.f32.mxu0 %vm1176_vm0, %v366_v37  ;;  %6484 = vmatprep.mubr.msk.f32.mxu1 %vm1176_vm0, %v850_v38  ;;  %v860_v35 = vld [vmem:[%s6779_s5 + $0x1558] sm:$0xff]  ;;  %v859_v43 = vld [vmem:[%s6779_s5 + $0x1550] sm:$0xff] }
 0x1ad   : > { %v5154_v47 = vmax.f32 %v2896_v41, 0.0  ;;  %v5396_v48 = vmax.f32 %v4106_v42, 0.0  ;;  %v375_v42 = vld [vmem:[%s6779_s5 + $0x630] sm:$0xff] }
 0x1ae   : > { %v2900_v51 = vpop.f32.mrb[82].mxu0  ;;  %v4110_v52 = vpop.f32.mrb[82].mxu1 }
 0x1af   : > { %5639 = vst.msk [vmem:[%s7189_s23 + $0x140] sm:$0xff] %vm5598_vm1, %v5154_v47  ;;  %5881 = vst.msk [vmem:[%s7189_s23 + $0x8d0] sm:$0xff] %vm5598_vm1, %v5396_v48  ;;  %v2901_v53 = vadd.f32 %v7528_v59, %v2900_v51  ;;  %v4111_v54 = vadd.f32 %v7528_v59, %v4110_v52  ;;  %v2902_v55 = vpop.f32.mrb[83].mxu0  ;;  %3164 = vmatmul.mubr.f32.gmra.mrb[188].mxu0 %v365_v45  ;;  %v4112_v56 = vpop.f32.mrb[83].mxu1  ;;  %4374 = vmatmul.mubr.f32.gmra.mrb[188].mxu1 %v849_v46  ;;  %v378_v46 = vld [vmem:[%s6779_s5 + $0x648] sm:$0xff] }
 0x1b0   : > { %6243 = vmatprep.mubr.msk.f32.mxu0 %vm1176_vm0, %v368_v49  ;;  %6485 = vmatprep.mubr.msk.f32.mxu1 %vm1176_vm0, %v852_v50  ;;  %v862_v47 = vld [vmem:[%s6779_s5 + $0x1568] sm:$0xff]  ;;  %v861_v55 = vld [vmem:[%s6779_s5 + $0x1560] sm:$0xff] }
 0x1b1   : > { %v5155_v60 = vmax.f32 %v2901_v53, 0.0  ;;  %v5397_v61 = vmax.f32 %v4111_v54, 0.0  ;;  %v377_v54 = vld [vmem:[%s6779_s5 + $0x640] sm:$0xff] }
 0x1b2   : > { %v2905_v0 = vpop.f32.mrb[84].mxu0  ;;  %v4115_v1 = vpop.f32.mrb[84].mxu1 }
 0x1b3   : > { %5640 = vst.msk [vmem:[%s7189_s23 + $0x148] sm:$0xff] %vm5598_vm1, %v5155_v60  ;;  %5882 = vst.msk [vmem:[%s7189_s23 + $0x8d8] sm:$0xff] %vm5598_vm1, %v5397_v61  ;;  %v2906_v2 = vadd.f32 %v7528_v59, %v2905_v0  ;;  %v4116_v3 = vadd.f32 %v7528_v59, %v4115_v1  ;;  %v2907_v4 = vpop.f32.mrb[85].mxu0  ;;  %3169 = vmatmul.mubr.f32.gmra.mrb[190].mxu0 %v367_v57  ;;  %v4117_v5 = vpop.f32.mrb[85].mxu1  ;;  %4379 = vmatmul.mubr.f32.gmra.mrb[190].mxu1 %v851_v58  ;;  %v380_v58 = vld [vmem:[%s6779_s5 + $0x658] sm:$0xff] }
 0x1b4   : > { %6244 = vmatprep.mubr.msk.f32.mxu0 %vm1176_vm0, %v370_v62  ;;  %6486 = vmatprep.mubr.msk.f32.mxu1 %vm1176_vm0, %v854_v63  ;;  %v864_v60 = vld [vmem:[%s6779_s5 + $0x1578] sm:$0xff]  ;;  %v863_v4 = vld [vmem:[%s6779_s5 + $0x1570] sm:$0xff] }
 0x1b5   : > { %v5156_v8 = vmax.f32 %v2906_v2, 0.0  ;;  %v5398_v9 = vmax.f32 %v4116_v3, 0.0  ;;  %v379_v3 = vld [vmem:[%s6779_s5 + $0x650] sm:$0xff] }
 0x1b6   : > { %v2910_v12 = vpop.f32.mrb[86].mxu0  ;;  %v4120_v13 = vpop.f32.mrb[86].mxu1 }
 0x1b7   : > { %5641 = vst.msk [vmem:[%s7189_s23 + $0x150] sm:$0xff] %vm5598_vm1, %v5156_v8  ;;  %5883 = vst.msk [vmem:[%s7189_s23 + $0x8e0] sm:$0xff] %vm5598_vm1, %v5398_v9  ;;  %v2911_v14 = vadd.f32 %v7528_v59, %v2910_v12  ;;  %v4121_v15 = vadd.f32 %v7528_v59, %v4120_v13  ;;  %v2912_v16 = vpop.f32.mrb[87].mxu0  ;;  %3174 = vmatmul.mubr.f32.gmra.mrb[192].mxu0 %v369_v6  ;;  %v4122_v17 = vpop.f32.mrb[87].mxu1  ;;  %4384 = vmatmul.mubr.f32.gmra.mrb[192].mxu1 %v853_v7  ;;  %v382_v7 = vld [vmem:[%s6779_s5 + $0x668] sm:$0xff] }
 0x1b8   : > { %6245 = vmatprep.mubr.msk.f32.mxu0 %vm1176_vm0, %v372_v10  ;;  %6487 = vmatprep.mubr.msk.f32.mxu1 %vm1176_vm0, %v856_v11  ;;  %v866_v8 = vld [vmem:[%s6779_s5 + $0x1588] sm:$0xff]  ;;  %v865_v16 = vld [vmem:[%s6779_s5 + $0x1580] sm:$0xff] }
 0x1b9   : > { %v5157_v20 = vmax.f32 %v2911_v14, 0.0  ;;  %v5399_v21 = vmax.f32 %v4121_v15, 0.0  ;;  %v381_v15 = vld [vmem:[%s6779_s5 + $0x660] sm:$0xff] }
 0x1ba   : > { %v2915_v24 = vpop.f32.mrb[88].mxu0  ;;  %v4125_v25 = vpop.f32.mrb[88].mxu1 }
 0x1bb   : > { %5642 = vst.msk [vmem:[%s7189_s23 + $0x158] sm:$0xff] %vm5598_vm1, %v5157_v20  ;;  %5884 = vst.msk [vmem:[%s7189_s23 + $0x8e8] sm:$0xff] %vm5598_vm1, %v5399_v21  ;;  %v2916_v26 = vadd.f32 %v7528_v59, %v2915_v24  ;;  %v4126_v27 = vadd.f32 %v7528_v59, %v4125_v25  ;;  %v2917_v28 = vpop.f32.mrb[89].mxu0  ;;  %3179 = vmatmul.mubr.f32.gmra.mrb[194].mxu0 %v371_v18  ;;  %v4127_v29 = vpop.f32.mrb[89].mxu1  ;;  %4389 = vmatmul.mubr.f32.gmra.mrb[194].mxu1 %v855_v19  ;;  %v384_v19 = vld [vmem:[%s6779_s5 + $0x678] sm:$0xff] }
 0x1bc   : > { %6246 = vmatprep.mubr.msk.f32.mxu0 %vm1176_vm0, %v374_v22  ;;  %6488 = vmatprep.mubr.msk.f32.mxu1 %vm1176_vm0, %v858_v23  ;;  %v868_v20 = vld [vmem:[%s6779_s5 + $0x1598] sm:$0xff]  ;;  %v867_v28 = vld [vmem:[%s6779_s5 + $0x1590] sm:$0xff] }
 0x1bd   : > { %v5158_v32 = vmax.f32 %v2916_v26, 0.0  ;;  %v5400_v33 = vmax.f32 %v4126_v27, 0.0  ;;  %v383_v27 = vld [vmem:[%s6779_s5 + $0x670] sm:$0xff] }
 0x1be   : > { %v2920_v36 = vpop.f32.mrb[90].mxu0  ;;  %v4130_v37 = vpop.f32.mrb[90].mxu1 }
 0x1bf   : > { %5643 = vst.msk [vmem:[%s7189_s23 + $0x160] sm:$0xff] %vm5598_vm1, %v5158_v32  ;;  %5885 = vst.msk [vmem:[%s7189_s23 + $0x8f0] sm:$0xff] %vm5598_vm1, %v5400_v33  ;;  %v2921_v38 = vadd.f32 %v7528_v59, %v2920_v36  ;;  %v4131_v39 = vadd.f32 %v7528_v59, %v4130_v37  ;;  %v2922_v40 = vpop.f32.mrb[91].mxu0  ;;  %3184 = vmatmul.mubr.f32.gmra.mrb[196].mxu0 %v373_v30  ;;  %v4132_v41 = vpop.f32.mrb[91].mxu1  ;;  %4394 = vmatmul.mubr.f32.gmra.mrb[196].mxu1 %v857_v31  ;;  %v386_v31 = vld [vmem:[%s6779_s5 + $0x688] sm:$0xff] }
 0x1c0   : > { %6247 = vmatprep.mubr.msk.f32.mxu0 %vm1176_vm0, %v376_v34  ;;  %6489 = vmatprep.mubr.msk.f32.mxu1 %vm1176_vm0, %v860_v35  ;;  %v870_v32 = vld [vmem:[%s6779_s5 + $0x15a8] sm:$0xff]  ;;  %v869_v40 = vld [vmem:[%s6779_s5 + $0x15a0] sm:$0xff] }
 0x1c1   : > { %v5159_v44 = vmax.f32 %v2921_v38, 0.0  ;;  %v5401_v45 = vmax.f32 %v4131_v39, 0.0  ;;  %v385_v39 = vld [vmem:[%s6779_s5 + $0x680] sm:$0xff] }
 0x1c2   : > { %v2925_v48 = vpop.f32.mrb[92].mxu0  ;;  %v4135_v49 = vpop.f32.mrb[92].mxu1 }
 0x1c3   : > { %5644 = vst.msk [vmem:[%s7189_s23 + $0x168] sm:$0xff] %vm5598_vm1, %v5159_v44  ;;  %5886 = vst.msk [vmem:[%s7189_s23 + $0x8f8] sm:$0xff] %vm5598_vm1, %v5401_v45  ;;  %v2926_v50 = vadd.f32 %v7528_v59, %v2925_v48  ;;  %v4136_v51 = vadd.f32 %v7528_v59, %v4135_v49  ;;  %v2927_v52 = vpop.f32.mrb[93].mxu0  ;;  %3189 = vmatmul.mubr.f32.gmra.mrb[198].mxu0 %v375_v42  ;;  %v4137_v53 = vpop.f32.mrb[93].mxu1  ;;  %4399 = vmatmul.mubr.f32.gmra.mrb[198].mxu1 %v859_v43  ;;  %v388_v43 = vld [vmem:[%s6779_s5 + $0x698] sm:$0xff] }
 0x1c4   : > { %6248 = vmatprep.mubr.msk.f32.mxu0 %vm1176_vm0, %v378_v46  ;;  %6490 = vmatprep.mubr.msk.f32.mxu1 %vm1176_vm0, %v862_v47  ;;  %v872_v44 = vld [vmem:[%s6779_s5 + $0x15b8] sm:$0xff]  ;;  %v871_v52 = vld [vmem:[%s6779_s5 + $0x15b0] sm:$0xff] }
 0x1c5   : > { %v5160_v56 = vmax.f32 %v2926_v50, 0.0  ;;  %v5402_v57 = vmax.f32 %v4136_v51, 0.0  ;;  %v387_v51 = vld [vmem:[%s6779_s5 + $0x690] sm:$0xff] }
 0x1c6   : > { %v2930_v61 = vpop.f32.mrb[94].mxu0  ;;  %v4140_v62 = vpop.f32.mrb[94].mxu1 }
 0x1c7   : > { %5645 = vst.msk [vmem:[%s7189_s23 + $0x170] sm:$0xff] %vm5598_vm1, %v5160_v56  ;;  %5887 = vst.msk [vmem:[%s7189_s23 + $0x900] sm:$0xff] %vm5598_vm1, %v5402_v57  ;;  %v2931_v63 = vadd.f32 %v7528_v59, %v2930_v61  ;;  %v4141_v0 = vadd.f32 %v7528_v59, %v4140_v62  ;;  %v2932_v1 = vpop.f32.mrb[95].mxu0  ;;  %3194 = vmatmul.mubr.f32.gmra.mrb[200].mxu0 %v377_v54  ;;  %v4142_v2 = vpop.f32.mrb[95].mxu1  ;;  %4404 = vmatmul.mubr.f32.gmra.mrb[200].mxu1 %v861_v55  ;;  %v390_v55 = vld [vmem:[%s6779_s5 + $0x6a8] sm:$0xff] }
 0x1c8   : > { %6249 = vmatprep.mubr.msk.f32.mxu0 %vm1176_vm0, %v380_v58  ;;  %6491 = vmatprep.mubr.msk.f32.mxu1 %vm1176_vm0, %v864_v60  ;;  %v874_v56 = vld [vmem:[%s6779_s5 + $0x15c8] sm:$0xff]  ;;  %v873_v1 = vld [vmem:[%s6779_s5 + $0x15c0] sm:$0xff] }
 0x1c9   : > { %v5161_v5 = vmax.f32 %v2931_v63, 0.0  ;;  %v5403_v6 = vmax.f32 %v4141_v0, 0.0  ;;  %v389_v0 = vld [vmem:[%s6779_s5 + $0x6a0] sm:$0xff] }
 0x1ca   : > { %v2935_v9 = vpop.f32.mrb[96].mxu0  ;;  %v4145_v10 = vpop.f32.mrb[96].mxu1 }
 0x1cb   : > { %5646 = vst.msk [vmem:[%s7189_s23 + $0x178] sm:$0xff] %vm5598_vm1, %v5161_v5  ;;  %5888 = vst.msk [vmem:[%s7189_s23 + $0x908] sm:$0xff] %vm5598_vm1, %v5403_v6  ;;  %v2936_v11 = vadd.f32 %v7528_v59, %v2935_v9  ;;  %v4146_v12 = vadd.f32 %v7528_v59, %v4145_v10  ;;  %v2937_v13 = vpop.f32.mrb[97].mxu0  ;;  %3199 = vmatmul.mubr.f32.gmra.mrb[202].mxu0 %v379_v3  ;;  %v4147_v14 = vpop.f32.mrb[97].mxu1  ;;  %4409 = vmatmul.mubr.f32.gmra.mrb[202].mxu1 %v863_v4  ;;  %v392_v4 = vld [vmem:[%s6779_s5 + $0x6b8] sm:$0xff] }
 0x1cc   : > { %6250 = vmatprep.mubr.msk.f32.mxu0 %vm1176_vm0, %v382_v7  ;;  %6492 = vmatprep.mubr.msk.f32.mxu1 %vm1176_vm0, %v866_v8  ;;  %v876_v5 = vld [vmem:[%s6779_s5 + $0x15d8] sm:$0xff]  ;;  %v875_v13 = vld [vmem:[%s6779_s5 + $0x15d0] sm:$0xff] }
 0x1cd   : > { %v5162_v17 = vmax.f32 %v2936_v11, 0.0  ;;  %v5404_v18 = vmax.f32 %v4146_v12, 0.0  ;;  %v391_v12 = vld [vmem:[%s6779_s5 + $0x6b0] sm:$0xff] }
 0x1ce   : > { %v2940_v21 = vpop.f32.mrb[98].mxu0  ;;  %v4150_v22 = vpop.f32.mrb[98].mxu1 }
 0x1cf   : > { %5647 = vst.msk [vmem:[%s7189_s23 + $0x180] sm:$0xff] %vm5598_vm1, %v5162_v17  ;;  %5889 = vst.msk [vmem:[%s7189_s23 + $0x910] sm:$0xff] %vm5598_vm1, %v5404_v18  ;;  %v2941_v23 = vadd.f32 %v7528_v59, %v2940_v21  ;;  %v4151_v24 = vadd.f32 %v7528_v59, %v4150_v22  ;;  %v2942_v25 = vpop.f32.mrb[99].mxu0  ;;  %3204 = vmatmul.mubr.f32.gmra.mrb[204].mxu0 %v381_v15  ;;  %v4152_v26 = vpop.f32.mrb[99].mxu1  ;;  %4414 = vmatmul.mubr.f32.gmra.mrb[204].mxu1 %v865_v16  ;;  %v394_v16 = vld [vmem:[%s6779_s5 + $0x6c8] sm:$0xff] }
 0x1d0   : > { %6251 = vmatprep.mubr.msk.f32.mxu0 %vm1176_vm0, %v384_v19  ;;  %6493 = vmatprep.mubr.msk.f32.mxu1 %vm1176_vm0, %v868_v20  ;;  %v878_v17 = vld [vmem:[%s6779_s5 + $0x15e8] sm:$0xff]  ;;  %v877_v25 = vld [vmem:[%s6779_s5 + $0x15e0] sm:$0xff] }
 0x1d1   : > { %v5163_v29 = vmax.f32 %v2941_v23, 0.0  ;;  %v5405_v30 = vmax.f32 %v4151_v24, 0.0  ;;  %v393_v24 = vld [vmem:[%s6779_s5 + $0x6c0] sm:$0xff] }
 0x1d2   : > { %v2945_v33 = vpop.f32.mrb[100].mxu0  ;;  %v4155_v34 = vpop.f32.mrb[100].mxu1 }
 0x1d3   : > { %5648 = vst.msk [vmem:[%s7189_s23 + $0x188] sm:$0xff] %vm5598_vm1, %v5163_v29  ;;  %5890 = vst.msk [vmem:[%s7189_s23 + $0x918] sm:$0xff] %vm5598_vm1, %v5405_v30  ;;  %v2946_v35 = vadd.f32 %v7528_v59, %v2945_v33  ;;  %v4156_v36 = vadd.f32 %v7528_v59, %v4155_v34  ;;  %v2947_v37 = vpop.f32.mrb[101].mxu0  ;;  %3209 = vmatmul.mubr.f32.gmra.mrb[206].mxu0 %v383_v27  ;;  %v4157_v38 = vpop.f32.mrb[101].mxu1  ;;  %4419 = vmatmul.mubr.f32.gmra.mrb[206].mxu1 %v867_v28  ;;  %v396_v28 = vld [vmem:[%s6779_s5 + $0x6d8] sm:$0xff] }
 0x1d4   : > { %6252 = vmatprep.mubr.msk.f32.mxu0 %vm1176_vm0, %v386_v31  ;;  %6494 = vmatprep.mubr.msk.f32.mxu1 %vm1176_vm0, %v870_v32  ;;  %v880_v29 = vld [vmem:[%s6779_s5 + $0x15f8] sm:$0xff]  ;;  %v879_v37 = vld [vmem:[%s6779_s5 + $0x15f0] sm:$0xff] }
 0x1d5   : > { %v5164_v41 = vmax.f32 %v2946_v35, 0.0  ;;  %v5406_v42 = vmax.f32 %v4156_v36, 0.0  ;;  %v395_v36 = vld [vmem:[%s6779_s5 + $0x6d0] sm:$0xff] }
 0x1d6   : > { %v2950_v45 = vpop.f32.mrb[102].mxu0  ;;  %v4160_v46 = vpop.f32.mrb[102].mxu1 }
 0x1d7   : > { %5649 = vst.msk [vmem:[%s7189_s23 + $0x190] sm:$0xff] %vm5598_vm1, %v5164_v41  ;;  %5891 = vst.msk [vmem:[%s7189_s23 + $0x920] sm:$0xff] %vm5598_vm1, %v5406_v42  ;;  %v2951_v47 = vadd.f32 %v7528_v59, %v2950_v45  ;;  %v4161_v48 = vadd.f32 %v7528_v59, %v4160_v46  ;;  %v2952_v49 = vpop.f32.mrb[103].mxu0  ;;  %3214 = vmatmul.mubr.f32.gmra.mrb[208].mxu0 %v385_v39  ;;  %v4162_v50 = vpop.f32.mrb[103].mxu1  ;;  %4424 = vmatmul.mubr.f32.gmra.mrb[208].mxu1 %v869_v40  ;;  %v398_v40 = vld [vmem:[%s6779_s5 + $0x6e8] sm:$0xff] }
 0x1d8   : > { %6253 = vmatprep.mubr.msk.f32.mxu0 %vm1176_vm0, %v388_v43  ;;  %6495 = vmatprep.mubr.msk.f32.mxu1 %vm1176_vm0, %v872_v44  ;;  %v882_v41 = vld [vmem:[%s6779_s5 + $0x1608] sm:$0xff]  ;;  %v881_v49 = vld [vmem:[%s6779_s5 + $0x1600] sm:$0xff] }
 0x1d9   : > { %v5165_v53 = vmax.f32 %v2951_v47, 0.0  ;;  %v5407_v54 = vmax.f32 %v4161_v48, 0.0  ;;  %v397_v48 = vld [vmem:[%s6779_s5 + $0x6e0] sm:$0xff] }
 0x1da   : > { %v2955_v57 = vpop.f32.mrb[104].mxu0  ;;  %v4165_v58 = vpop.f32.mrb[104].mxu1 }
 0x1db   : > { %5650 = vst.msk [vmem:[%s7189_s23 + $0x198] sm:$0xff] %vm5598_vm1, %v5165_v53  ;;  %5892 = vst.msk [vmem:[%s7189_s23 + $0x928] sm:$0xff] %vm5598_vm1, %v5407_v54  ;;  %v2956_v60 = vadd.f32 %v7528_v59, %v2955_v57  ;;  %v4166_v61 = vadd.f32 %v7528_v59, %v4165_v58  ;;  %v2957_v62 = vpop.f32.mrb[105].mxu0  ;;  %3219 = vmatmul.mubr.f32.gmra.mrb[210].mxu0 %v387_v51  ;;  %v4167_v63 = vpop.f32.mrb[105].mxu1  ;;  %4429 = vmatmul.mubr.f32.gmra.mrb[210].mxu1 %v871_v52  ;;  %v400_v52 = vld [vmem:[%s6779_s5 + $0x6f8] sm:$0xff] }
 0x1dc   : > { %6254 = vmatprep.mubr.msk.f32.mxu0 %vm1176_vm0, %v390_v55  ;;  %6496 = vmatprep.mubr.msk.f32.mxu1 %vm1176_vm0, %v874_v56  ;;  %v884_v53 = vld [vmem:[%s6779_s5 + $0x1618] sm:$0xff]  ;;  %v883_v62 = vld [vmem:[%s6779_s5 + $0x1610] sm:$0xff] }
 0x1dd   : > { %v5166_v2 = vmax.f32 %v2956_v60, 0.0  ;;  %v5408_v3 = vmax.f32 %v4166_v61, 0.0  ;;  %v399_v61 = vld [vmem:[%s6779_s5 + $0x6f0] sm:$0xff] }
 0x1de   : > { %v2960_v6 = vpop.f32.mrb[106].mxu0  ;;  %v4170_v7 = vpop.f32.mrb[106].mxu1 }
 0x1df   : > { %5651 = vst.msk [vmem:[%s7189_s23 + $0x1a0] sm:$0xff] %vm5598_vm1, %v5166_v2  ;;  %5893 = vst.msk [vmem:[%s7189_s23 + $0x930] sm:$0xff] %vm5598_vm1, %v5408_v3  ;;  %v2961_v8 = vadd.f32 %v7528_v59, %v2960_v6  ;;  %v4171_v9 = vadd.f32 %v7528_v59, %v4170_v7  ;;  %v2962_v10 = vpop.f32.mrb[107].mxu0  ;;  %3224 = vmatmul.mubr.f32.gmra.mrb[212].mxu0 %v389_v0  ;;  %v4172_v11 = vpop.f32.mrb[107].mxu1  ;;  %4434 = vmatmul.mubr.f32.gmra.mrb[212].mxu1 %v873_v1  ;;  %v402_v1 = vld [vmem:[%s6779_s5 + $0x708] sm:$0xff] }
 0x1e0   : > { %6255 = vmatprep.mubr.msk.f32.mxu0 %vm1176_vm0, %v392_v4  ;;  %6497 = vmatprep.mubr.msk.f32.mxu1 %vm1176_vm0, %v876_v5  ;;  %v886_v2 = vld [vmem:[%s6779_s5 + $0x1628] sm:$0xff]  ;;  %v885_v10 = vld [vmem:[%s6779_s5 + $0x1620] sm:$0xff] }
 0x1e1   : > { %v5167_v14 = vmax.f32 %v2961_v8, 0.0  ;;  %v5409_v15 = vmax.f32 %v4171_v9, 0.0  ;;  %v401_v9 = vld [vmem:[%s6779_s5 + $0x700] sm:$0xff] }
 0x1e2   : > { %v2965_v18 = vpop.f32.mrb[108].mxu0  ;;  %v4175_v19 = vpop.f32.mrb[108].mxu1 }
 0x1e3   : > { %5652 = vst.msk [vmem:[%s7189_s23 + $0x1a8] sm:$0xff] %vm5598_vm1, %v5167_v14  ;;  %5894 = vst.msk [vmem:[%s7189_s23 + $0x938] sm:$0xff] %vm5598_vm1, %v5409_v15  ;;  %v2966_v20 = vadd.f32 %v7528_v59, %v2965_v18  ;;  %v4176_v21 = vadd.f32 %v7528_v59, %v4175_v19  ;;  %v2967_v22 = vpop.f32.mrb[109].mxu0  ;;  %3229 = vmatmul.mubr.f32.gmra.mrb[214].mxu0 %v391_v12  ;;  %v4177_v23 = vpop.f32.mrb[109].mxu1  ;;  %4439 = vmatmul.mubr.f32.gmra.mrb[214].mxu1 %v875_v13  ;;  %v404_v13 = vld [vmem:[%s6779_s5 + $0x718] sm:$0xff] }
 0x1e4   : > { %6256 = vmatprep.mubr.msk.f32.mxu0 %vm1176_vm0, %v394_v16  ;;  %6498 = vmatprep.mubr.msk.f32.mxu1 %vm1176_vm0, %v878_v17  ;;  %v888_v14 = vld [vmem:[%s6779_s5 + $0x1638] sm:$0xff]  ;;  %v887_v22 = vld [vmem:[%s6779_s5 + $0x1630] sm:$0xff] }
 0x1e5   : > { %v5168_v26 = vmax.f32 %v2966_v20, 0.0  ;;  %v5410_v27 = vmax.f32 %v4176_v21, 0.0  ;;  %v403_v21 = vld [vmem:[%s6779_s5 + $0x710] sm:$0xff] }
 0x1e6   : > { %v2970_v30 = vpop.f32.mrb[110].mxu0  ;;  %v4180_v31 = vpop.f32.mrb[110].mxu1 }
 0x1e7   : > { %5653 = vst.msk [vmem:[%s7189_s23 + $0x1b0] sm:$0xff] %vm5598_vm1, %v5168_v26  ;;  %5895 = vst.msk [vmem:[%s7189_s23 + $0x940] sm:$0xff] %vm5598_vm1, %v5410_v27  ;;  %v2971_v32 = vadd.f32 %v7528_v59, %v2970_v30  ;;  %v4181_v33 = vadd.f32 %v7528_v59, %v4180_v31  ;;  %v2972_v34 = vpop.f32.mrb[111].mxu0  ;;  %3234 = vmatmul.mubr.f32.gmra.mrb[216].mxu0 %v393_v24  ;;  %v4182_v35 = vpop.f32.mrb[111].mxu1  ;;  %4444 = vmatmul.mubr.f32.gmra.mrb[216].mxu1 %v877_v25  ;;  %v406_v25 = vld [vmem:[%s6779_s5 + $0x728] sm:$0xff] }
 0x1e8   : > { %6257 = vmatprep.mubr.msk.f32.mxu0 %vm1176_vm0, %v396_v28  ;;  %6499 = vmatprep.mubr.msk.f32.mxu1 %vm1176_vm0, %v880_v29  ;;  %v890_v26 = vld [vmem:[%s6779_s5 + $0x1648] sm:$0xff]  ;;  %v889_v34 = vld [vmem:[%s6779_s5 + $0x1640] sm:$0xff] }
 0x1e9   : > { %v5169_v38 = vmax.f32 %v2971_v32, 0.0  ;;  %v5411_v39 = vmax.f32 %v4181_v33, 0.0  ;;  %v405_v33 = vld [vmem:[%s6779_s5 + $0x720] sm:$0xff] }
 0x1ea   : > { %v2975_v42 = vpop.f32.mrb[112].mxu0  ;;  %v4185_v43 = vpop.f32.mrb[112].mxu1 }
 0x1eb   : > { %5654 = vst.msk [vmem:[%s7189_s23 + $0x1b8] sm:$0xff] %vm5598_vm1, %v5169_v38  ;;  %5896 = vst.msk [vmem:[%s7189_s23 + $0x948] sm:$0xff] %vm5598_vm1, %v5411_v39  ;;  %v2976_v44 = vadd.f32 %v7528_v59, %v2975_v42  ;;  %v4186_v45 = vadd.f32 %v7528_v59, %v4185_v43  ;;  %v2977_v46 = vpop.f32.mrb[113].mxu0  ;;  %3239 = vmatmul.mubr.f32.gmra.mrb[218].mxu0 %v395_v36  ;;  %v4187_v47 = vpop.f32.mrb[113].mxu1  ;;  %4449 = vmatmul.mubr.f32.gmra.mrb[218].mxu1 %v879_v37  ;;  %v7881_v59 = vld [vmem:[%s9807_s2] ss:$0 sm:$0xff] }
 0x1ec   : > { %6258 = vmatprep.mubr.msk.f32.mxu0 %vm1176_vm0, %v398_v40  ;;  %6500 = vmatprep.mubr.msk.f32.mxu1 %vm1176_vm0, %v882_v41  ;;  %v408_v37 = vld [vmem:[%s6779_s5 + $0x738] sm:$0xff]  ;;  %v891_v46 = vld [vmem:[%s6779_s5 + $0x1650] sm:$0xff] }
 0x1ed   : > { %v5170_v50 = vmax.f32 %v2976_v44, 0.0  ;;  %v5412_v51 = vmax.f32 %v4186_v45, 0.0  ;;  %v892_v38 = vld [vmem:[%s6779_s5 + $0x1658] sm:$0xff]  ;;  %v407_v45 = vld [vmem:[%s6779_s5 + $0x730] sm:$0xff] }
 0x1ee   : > { %v2980_v54 = vpop.f32.mrb[114].mxu0  ;;  %v4190_v55 = vpop.f32.mrb[114].mxu1 }
 0x1ef   : > { %5655 = vst.msk [vmem:[%s7189_s23 + $0x1c0] sm:$0xff] %vm5598_vm1, %v5170_v50  ;;  %5897 = vst.msk [vmem:[%s7189_s23 + $0x950] sm:$0xff] %vm5598_vm1, %v5412_v51  ;;  %v2981_v56 = vadd.f32 %v7881_v59, %v2980_v54  ;;  %v4191_v57 = vadd.f32 %v7881_v59, %v4190_v55  ;;  %v2982_v58 = vpop.f32.mrb[115].mxu0  ;;  %3244 = vmatmul.mubr.f32.gmra.mrb[220].mxu0 %v397_v48  ;;  %v4192_v60 = vpop.f32.mrb[115].mxu1  ;;  %4454 = vmatmul.mubr.f32.gmra.mrb[220].mxu1 %v881_v49  ;;  %v410_v49 = vld [vmem:[%s6779_s5 + $0x748] sm:$0xff] }
 0x1f0   : > { %6259 = vmatprep.mubr.msk.f32.mxu0 %vm1176_vm0, %v400_v52  ;;  %6501 = vmatprep.mubr.msk.f32.mxu1 %vm1176_vm0, %v884_v53  ;;  %v894_v50 = vld [vmem:[%s6779_s5 + $0x1668] sm:$0xff]  ;;  %v893_v58 = vld [vmem:[%s6779_s5 + $0x1660] sm:$0xff] }
 0x1f1   : > { %v5171_v63 = vmax.f32 %v2981_v56, 0.0  ;;  %v5413_v0 = vmax.f32 %v4191_v57, 0.0  ;;  %v409_v57 = vld [vmem:[%s6779_s5 + $0x740] sm:$0xff] }
 0x1f2   : > { %v2985_v3 = vpop.f32.mrb[116].mxu0  ;;  %v4195_v4 = vpop.f32.mrb[116].mxu1 }
 0x1f3   : > { %5656 = vst.msk [vmem:[%s7189_s23 + $0x1c8] sm:$0xff] %vm5598_vm1, %v5171_v63  ;;  %5898 = vst.msk [vmem:[%s7189_s23 + $0x958] sm:$0xff] %vm5598_vm1, %v5413_v0  ;;  %v2986_v5 = vadd.f32 %v7881_v59, %v2985_v3  ;;  %v4196_v6 = vadd.f32 %v7881_v59, %v4195_v4  ;;  %v2987_v7 = vpop.f32.mrb[117].mxu0  ;;  %3249 = vmatmul.mubr.f32.gmra.mrb[222].mxu0 %v399_v61  ;;  %v4197_v8 = vpop.f32.mrb[117].mxu1  ;;  %4459 = vmatmul.mubr.f32.gmra.mrb[222].mxu1 %v883_v62  ;;  %v412_v62 = vld [vmem:[%s6779_s5 + $0x758] sm:$0xff] }
 0x1f4   : > { %6260 = vmatprep.mubr.msk.f32.mxu0 %vm1176_vm0, %v402_v1  ;;  %6502 = vmatprep.mubr.msk.f32.mxu1 %vm1176_vm0, %v886_v2  ;;  %v896_v63 = vld [vmem:[%s6779_s5 + $0x1678] sm:$0xff]  ;;  %v895_v7 = vld [vmem:[%s6779_s5 + $0x1670] sm:$0xff] }
 0x1f5   : > { %v5172_v11 = vmax.f32 %v2986_v5, 0.0  ;;  %v5414_v12 = vmax.f32 %v4196_v6, 0.0  ;;  %v411_v6 = vld [vmem:[%s6779_s5 + $0x750] sm:$0xff] }
 0x1f6   : > { %v2990_v15 = vpop.f32.mrb[118].mxu0  ;;  %v4200_v16 = vpop.f32.mrb[118].mxu1 }
 0x1f7   : > { %5657 = vst.msk [vmem:[%s7189_s23 + $0x1d0] sm:$0xff] %vm5598_vm1, %v5172_v11  ;;  %5899 = vst.msk [vmem:[%s7189_s23 + $0x960] sm:$0xff] %vm5598_vm1, %v5414_v12  ;;  %v2991_v17 = vadd.f32 %v7881_v59, %v2990_v15  ;;  %v4201_v18 = vadd.f32 %v7881_v59, %v4200_v16  ;;  %v2992_v19 = vpop.f32.mrb[119].mxu0  ;;  %3254 = vmatmul.mubr.f32.gmra.mrb[224].mxu0 %v401_v9  ;;  %v4202_v20 = vpop.f32.mrb[119].mxu1  ;;  %4464 = vmatmul.mubr.f32.gmra.mrb[224].mxu1 %v885_v10  ;;  %v414_v10 = vld [vmem:[%s6779_s5 + $0x768] sm:$0xff] }
 0x1f8   : > { %6261 = vmatprep.mubr.msk.f32.mxu0 %vm1176_vm0, %v404_v13  ;;  %6503 = vmatprep.mubr.msk.f32.mxu1 %vm1176_vm0, %v888_v14  ;;  %v898_v11 = vld [vmem:[%s6779_s5 + $0x1688] sm:$0xff]  ;;  %v897_v19 = vld [vmem:[%s6779_s5 + $0x1680] sm:$0xff] }
 0x1f9   : > { %v5173_v23 = vmax.f32 %v2991_v17, 0.0  ;;  %v5415_v24 = vmax.f32 %v4201_v18, 0.0  ;;  %v413_v18 = vld [vmem:[%s6779_s5 + $0x760] sm:$0xff] }
 0x1fa   : > { %v2995_v27 = vpop.f32.mrb[120].mxu0  ;;  %v4205_v28 = vpop.f32.mrb[120].mxu1 }
 0x1fb   : > { %5658 = vst.msk [vmem:[%s7189_s23 + $0x1d8] sm:$0xff] %vm5598_vm1, %v5173_v23  ;;  %5900 = vst.msk [vmem:[%s7189_s23 + $0x968] sm:$0xff] %vm5598_vm1, %v5415_v24  ;;  %v2996_v29 = vadd.f32 %v7881_v59, %v2995_v27  ;;  %v4206_v30 = vadd.f32 %v7881_v59, %v4205_v28  ;;  %v2997_v31 = vpop.f32.mrb[121].mxu0  ;;  %3259 = vmatmul.mubr.f32.gmra.mrb[226].mxu0 %v403_v21  ;;  %v4207_v32 = vpop.f32.mrb[121].mxu1  ;;  %4469 = vmatmul.mubr.f32.gmra.mrb[226].mxu1 %v887_v22  ;;  %v416_v22 = vld [vmem:[%s6779_s5 + $0x778] sm:$0xff] }
 0x1fc   : > { %6262 = vmatprep.mubr.msk.f32.mxu0 %vm1176_vm0, %v406_v25  ;;  %6504 = vmatprep.mubr.msk.f32.mxu1 %vm1176_vm0, %v890_v26  ;;  %v900_v23 = vld [vmem:[%s6779_s5 + $0x1698] sm:$0xff]  ;;  %v899_v31 = vld [vmem:[%s6779_s5 + $0x1690] sm:$0xff] }
 0x1fd   : > { %v5174_v35 = vmax.f32 %v2996_v29, 0.0  ;;  %v5416_v36 = vmax.f32 %v4206_v30, 0.0  ;;  %v415_v30 = vld [vmem:[%s6779_s5 + $0x770] sm:$0xff] }
 0x1fe   : > { %v3000_v39 = vpop.f32.mrb[122].mxu0  ;;  %v4210_v40 = vpop.f32.mrb[122].mxu1 }
 0x1ff   : > { %5659 = vst.msk [vmem:[%s7189_s23 + $0x1e0] sm:$0xff] %vm5598_vm1, %v5174_v35  ;;  %5901 = vst.msk [vmem:[%s7189_s23 + $0x970] sm:$0xff] %vm5598_vm1, %v5416_v36  ;;  %v3001_v41 = vadd.f32 %v7881_v59, %v3000_v39  ;;  %v4211_v42 = vadd.f32 %v7881_v59, %v4210_v40  ;;  %v3002_v43 = vpop.f32.mrb[123].mxu0  ;;  %3264 = vmatmul.mubr.f32.gmra.mrb[228].mxu0 %v405_v33  ;;  %v4212_v44 = vpop.f32.mrb[123].mxu1  ;;  %4474 = vmatmul.mubr.f32.gmra.mrb[228].mxu1 %v889_v34  ;;  %v418_v34 = vld [vmem:[%s6779_s5 + $0x788] sm:$0xff] }
 0x200   : > { %6263 = vmatprep.mubr.msk.f32.mxu0 %vm1176_vm0, %v408_v37  ;;  %6505 = vmatprep.mubr.msk.f32.mxu1 %vm1176_vm0, %v892_v38  ;;  %v902_v35 = vld [vmem:[%s6779_s5 + $0x16a8] sm:$0xff]  ;;  %v901_v43 = vld [vmem:[%s6779_s5 + $0x16a0] sm:$0xff] }
 0x201   : > { %v5175_v47 = vmax.f32 %v3001_v41, 0.0  ;;  %v5417_v48 = vmax.f32 %v4211_v42, 0.0  ;;  %v417_v42 = vld [vmem:[%s6779_s5 + $0x780] sm:$0xff] }
 0x202   : > { %v3005_v51 = vpop.f32.mrb[124].mxu0  ;;  %v4215_v52 = vpop.f32.mrb[124].mxu1 }
 0x203   : > { %5660 = vst.msk [vmem:[%s7189_s23 + $0x1e8] sm:$0xff] %vm5598_vm1, %v5175_v47  ;;  %5902 = vst.msk [vmem:[%s7189_s23 + $0x978] sm:$0xff] %vm5598_vm1, %v5417_v48  ;;  %v3006_v53 = vadd.f32 %v7881_v59, %v3005_v51  ;;  %v4216_v54 = vadd.f32 %v7881_v59, %v4215_v52  ;;  %v3007_v55 = vpop.f32.mrb[125].mxu0  ;;  %3269 = vmatmul.mubr.f32.gmra.mrb[230].mxu0 %v407_v45  ;;  %v4217_v56 = vpop.f32.mrb[125].mxu1  ;;  %4479 = vmatmul.mubr.f32.gmra.mrb[230].mxu1 %v891_v46  ;;  %v420_v46 = vld [vmem:[%s6779_s5 + $0x798] sm:$0xff] }
 0x204   : > { %6264 = vmatprep.mubr.msk.f32.mxu0 %vm1176_vm0, %v410_v49  ;;  %6506 = vmatprep.mubr.msk.f32.mxu1 %vm1176_vm0, %v894_v50  ;;  %v904_v47 = vld [vmem:[%s6779_s5 + $0x16b8] sm:$0xff]  ;;  %v903_v55 = vld [vmem:[%s6779_s5 + $0x16b0] sm:$0xff] }
 0x205   : > { %v5176_v60 = vmax.f32 %v3006_v53, 0.0  ;;  %v5418_v61 = vmax.f32 %v4216_v54, 0.0  ;;  %v419_v54 = vld [vmem:[%s6779_s5 + $0x790] sm:$0xff] }
 0x206   : > { %v3010_v0 = vpop.f32.mrb[126].mxu0  ;;  %v4220_v1 = vpop.f32.mrb[126].mxu1 }
 0x207   : > { %5661 = vst.msk [vmem:[%s7189_s23 + $0x1f0] sm:$0xff] %vm5598_vm1, %v5176_v60  ;;  %5903 = vst.msk [vmem:[%s7189_s23 + $0x980] sm:$0xff] %vm5598_vm1, %v5418_v61  ;;  %v3011_v2 = vadd.f32 %v7881_v59, %v3010_v0  ;;  %v4221_v3 = vadd.f32 %v7881_v59, %v4220_v1  ;;  %v3012_v4 = vpop.f32.mrb[127].mxu0  ;;  %3274 = vmatmul.mubr.f32.gmra.mrb[232].mxu0 %v409_v57  ;;  %v4222_v5 = vpop.f32.mrb[127].mxu1  ;;  %4484 = vmatmul.mubr.f32.gmra.mrb[232].mxu1 %v893_v58  ;;  %v422_v58 = vld [vmem:[%s6779_s5 + $0x7a8] sm:$0xff] }
 0x208   : > { %6265 = vmatprep.mubr.msk.f32.mxu0 %vm1176_vm0, %v412_v62  ;;  %6507 = vmatprep.mubr.msk.f32.mxu1 %vm1176_vm0, %v896_v63  ;;  %v906_v60 = vld [vmem:[%s6779_s5 + $0x16c8] sm:$0xff]  ;;  %v905_v4 = vld [vmem:[%s6779_s5 + $0x16c0] sm:$0xff] }
 0x209   : > { %v5177_v8 = vmax.f32 %v3011_v2, 0.0  ;;  %v5419_v9 = vmax.f32 %v4221_v3, 0.0  ;;  %v421_v3 = vld [vmem:[%s6779_s5 + $0x7a0] sm:$0xff] }
 0x20a   : > { %v3015_v12 = vpop.f32.mrb[128].mxu0  ;;  %v4225_v13 = vpop.f32.mrb[128].mxu1 }
 0x20b   : > { %5662 = vst.msk [vmem:[%s7189_s23 + $0x1f8] sm:$0xff] %vm5598_vm1, %v5177_v8  ;;  %5904 = vst.msk [vmem:[%s7189_s23 + $0x988] sm:$0xff] %vm5598_vm1, %v5419_v9  ;;  %v3016_v14 = vadd.f32 %v7881_v59, %v3015_v12  ;;  %v4226_v15 = vadd.f32 %v7881_v59, %v4225_v13  ;;  %v3017_v16 = vpop.f32.mrb[129].mxu0  ;;  %3279 = vmatmul.mubr.f32.gmra.mrb[234].mxu0 %v411_v6  ;;  %v4227_v17 = vpop.f32.mrb[129].mxu1  ;;  %4489 = vmatmul.mubr.f32.gmra.mrb[234].mxu1 %v895_v7  ;;  %v424_v7 = vld [vmem:[%s6779_s5 + $0x7b8] sm:$0xff] }
 0x20c   : > { %6266 = vmatprep.mubr.msk.f32.mxu0 %vm1176_vm0, %v414_v10  ;;  %6508 = vmatprep.mubr.msk.f32.mxu1 %vm1176_vm0, %v898_v11  ;;  %v908_v8 = vld [vmem:[%s6779_s5 + $0x16d8] sm:$0xff]  ;;  %v907_v16 = vld [vmem:[%s6779_s5 + $0x16d0] sm:$0xff] }
 0x20d   : > { %v5178_v20 = vmax.f32 %v3016_v14, 0.0  ;;  %v5420_v21 = vmax.f32 %v4226_v15, 0.0  ;;  %v423_v15 = vld [vmem:[%s6779_s5 + $0x7b0] sm:$0xff] }
 0x20e   : > { %v3020_v24 = vpop.f32.mrb[130].mxu0  ;;  %v4230_v25 = vpop.f32.mrb[130].mxu1 }
 0x20f   : > { %5663 = vst.msk [vmem:[%s7189_s23 + $0x200] sm:$0xff] %vm5598_vm1, %v5178_v20  ;;  %5905 = vst.msk [vmem:[%s7189_s23 + $0x990] sm:$0xff] %vm5598_vm1, %v5420_v21  ;;  %v3021_v26 = vadd.f32 %v7881_v59, %v3020_v24  ;;  %v4231_v27 = vadd.f32 %v7881_v59, %v4230_v25  ;;  %v3022_v28 = vpop.f32.mrb[131].mxu0  ;;  %3284 = vmatmul.mubr.f32.gmra.mrb[236].mxu0 %v413_v18  ;;  %v4232_v29 = vpop.f32.mrb[131].mxu1  ;;  %4494 = vmatmul.mubr.f32.gmra.mrb[236].mxu1 %v897_v19  ;;  %v426_v19 = vld [vmem:[%s6779_s5 + $0x7c8] sm:$0xff] }
 0x210   : > { %6267 = vmatprep.mubr.msk.f32.mxu0 %vm1176_vm0, %v416_v22  ;;  %6509 = vmatprep.mubr.msk.f32.mxu1 %vm1176_vm0, %v900_v23  ;;  %v910_v20 = vld [vmem:[%s6779_s5 + $0x16e8] sm:$0xff]  ;;  %v909_v28 = vld [vmem:[%s6779_s5 + $0x16e0] sm:$0xff] }
 0x211   : > { %v5179_v32 = vmax.f32 %v3021_v26, 0.0  ;;  %v5421_v33 = vmax.f32 %v4231_v27, 0.0  ;;  %v425_v27 = vld [vmem:[%s6779_s5 + $0x7c0] sm:$0xff] }
 0x212   : > { %v3025_v36 = vpop.f32.mrb[132].mxu0  ;;  %v4235_v37 = vpop.f32.mrb[132].mxu1 }
 0x213   : > { %5664 = vst.msk [vmem:[%s7189_s23 + $0x208] sm:$0xff] %vm5598_vm1, %v5179_v32  ;;  %5906 = vst.msk [vmem:[%s7189_s23 + $0x998] sm:$0xff] %vm5598_vm1, %v5421_v33  ;;  %v3026_v38 = vadd.f32 %v7881_v59, %v3025_v36  ;;  %v4236_v39 = vadd.f32 %v7881_v59, %v4235_v37  ;;  %v3027_v40 = vpop.f32.mrb[133].mxu0  ;;  %3289 = vmatmul.mubr.f32.gmra.mrb[238].mxu0 %v415_v30  ;;  %v4237_v41 = vpop.f32.mrb[133].mxu1  ;;  %4499 = vmatmul.mubr.f32.gmra.mrb[238].mxu1 %v899_v31  ;;  %v428_v31 = vld [vmem:[%s6779_s5 + $0x7d8] sm:$0xff] }
 0x214   : > { %6268 = vmatprep.mubr.msk.f32.mxu0 %vm1176_vm0, %v418_v34  ;;  %6510 = vmatprep.mubr.msk.f32.mxu1 %vm1176_vm0, %v902_v35  ;;  %v912_v32 = vld [vmem:[%s6779_s5 + $0x16f8] sm:$0xff]  ;;  %v911_v40 = vld [vmem:[%s6779_s5 + $0x16f0] sm:$0xff] }
 0x215   : > { %v5180_v44 = vmax.f32 %v3026_v38, 0.0  ;;  %v5422_v45 = vmax.f32 %v4236_v39, 0.0  ;;  %v427_v39 = vld [vmem:[%s6779_s5 + $0x7d0] sm:$0xff] }
 0x216   : > { %v3030_v48 = vpop.f32.mrb[134].mxu0  ;;  %v4240_v49 = vpop.f32.mrb[134].mxu1 }
 0x217   : > { %5665 = vst.msk [vmem:[%s7189_s23 + $0x210] sm:$0xff] %vm5598_vm1, %v5180_v44  ;;  %5907 = vst.msk [vmem:[%s7189_s23 + $0x9a0] sm:$0xff] %vm5598_vm1, %v5422_v45  ;;  %v3031_v50 = vadd.f32 %v7881_v59, %v3030_v48  ;;  %v4241_v51 = vadd.f32 %v7881_v59, %v4240_v49  ;;  %v3032_v52 = vpop.f32.mrb[135].mxu0  ;;  %3294 = vmatmul.mubr.f32.gmra.mrb[240].mxu0 %v417_v42  ;;  %v4242_v53 = vpop.f32.mrb[135].mxu1  ;;  %4504 = vmatmul.mubr.f32.gmra.mrb[240].mxu1 %v901_v43  ;;  %v430_v43 = vld [vmem:[%s6779_s5 + $0x7e8] sm:$0xff] }
 0x218   : > { %6269 = vmatprep.mubr.msk.f32.mxu0 %vm1176_vm0, %v420_v46  ;;  %6511 = vmatprep.mubr.msk.f32.mxu1 %vm1176_vm0, %v904_v47  ;;  %v914_v44 = vld [vmem:[%s6779_s5 + $0x1708] sm:$0xff]  ;;  %v913_v52 = vld [vmem:[%s6779_s5 + $0x1700] sm:$0xff] }
 0x219   : > { %v5181_v56 = vmax.f32 %v3031_v50, 0.0  ;;  %v5423_v57 = vmax.f32 %v4241_v51, 0.0  ;;  %v429_v51 = vld [vmem:[%s6779_s5 + $0x7e0] sm:$0xff] }
 0x21a   : > { %v3035_v61 = vpop.f32.mrb[136].mxu0  ;;  %v4245_v62 = vpop.f32.mrb[136].mxu1 }
 0x21b   : > { %5666 = vst.msk [vmem:[%s7189_s23 + $0x218] sm:$0xff] %vm5598_vm1, %v5181_v56  ;;  %5908 = vst.msk [vmem:[%s7189_s23 + $0x9a8] sm:$0xff] %vm5598_vm1, %v5423_v57  ;;  %v3036_v63 = vadd.f32 %v7881_v59, %v3035_v61  ;;  %v4246_v0 = vadd.f32 %v7881_v59, %v4245_v62  ;;  %v3037_v1 = vpop.f32.mrb[137].mxu0  ;;  %3299 = vmatmul.mubr.f32.gmra.mrb[242].mxu0 %v419_v54  ;;  %v4247_v2 = vpop.f32.mrb[137].mxu1  ;;  %4509 = vmatmul.mubr.f32.gmra.mrb[242].mxu1 %v903_v55  ;;  %v432_v55 = vld [vmem:[%s6779_s5 + $0x7f8] sm:$0xff] }
 0x21c   : > { %6270 = vmatprep.mubr.msk.f32.mxu0 %vm1176_vm0, %v422_v58  ;;  %6512 = vmatprep.mubr.msk.f32.mxu1 %vm1176_vm0, %v906_v60  ;;  %v916_v56 = vld [vmem:[%s6779_s5 + $0x1718] sm:$0xff]  ;;  %v915_v1 = vld [vmem:[%s6779_s5 + $0x1710] sm:$0xff] }
 0x21d   : > { %v5182_v5 = vmax.f32 %v3036_v63, 0.0  ;;  %v5424_v6 = vmax.f32 %v4246_v0, 0.0  ;;  %v431_v0 = vld [vmem:[%s6779_s5 + $0x7f0] sm:$0xff] }
 0x21e   : > { %v3040_v9 = vpop.f32.mrb[138].mxu0  ;;  %v4250_v10 = vpop.f32.mrb[138].mxu1 }
 0x21f   : > { %5667 = vst.msk [vmem:[%s7189_s23 + $0x220] sm:$0xff] %vm5598_vm1, %v5182_v5  ;;  %5909 = vst.msk [vmem:[%s7189_s23 + $0x9b0] sm:$0xff] %vm5598_vm1, %v5424_v6  ;;  %v3041_v11 = vadd.f32 %v7881_v59, %v3040_v9  ;;  %v4251_v12 = vadd.f32 %v7881_v59, %v4250_v10  ;;  %v3042_v13 = vpop.f32.mrb[139].mxu0  ;;  %3304 = vmatmul.mubr.f32.gmra.mrb[244].mxu0 %v421_v3  ;;  %v4252_v14 = vpop.f32.mrb[139].mxu1  ;;  %4514 = vmatmul.mubr.f32.gmra.mrb[244].mxu1 %v905_v4  ;;  %v434_v4 = vld [vmem:[%s6779_s5 + $0x808] sm:$0xff] }
 0x220   : > { %6271 = vmatprep.mubr.msk.f32.mxu0 %vm1176_vm0, %v424_v7  ;;  %6513 = vmatprep.mubr.msk.f32.mxu1 %vm1176_vm0, %v908_v8  ;;  %v918_v5 = vld [vmem:[%s6779_s5 + $0x1728] sm:$0xff]  ;;  %v917_v13 = vld [vmem:[%s6779_s5 + $0x1720] sm:$0xff] }
 0x221   : > { %v5183_v17 = vmax.f32 %v3041_v11, 0.0  ;;  %v5425_v18 = vmax.f32 %v4251_v12, 0.0  ;;  %v433_v12 = vld [vmem:[%s6779_s5 + $0x800] sm:$0xff] }
 0x222   : > { %v3045_v21 = vpop.f32.mrb[140].mxu0  ;;  %v4255_v22 = vpop.f32.mrb[140].mxu1 }
 0x223   : > { %5668 = vst.msk [vmem:[%s7189_s23 + $0x228] sm:$0xff] %vm5598_vm1, %v5183_v17  ;;  %5910 = vst.msk [vmem:[%s7189_s23 + $0x9b8] sm:$0xff] %vm5598_vm1, %v5425_v18  ;;  %v3046_v23 = vadd.f32 %v7881_v59, %v3045_v21  ;;  %v4256_v24 = vadd.f32 %v7881_v59, %v4255_v22  ;;  %v3047_v25 = vpop.f32.mrb[141].mxu0  ;;  %3309 = vmatmul.mubr.f32.gmra.mrb[246].mxu0 %v423_v15  ;;  %v4257_v26 = vpop.f32.mrb[141].mxu1  ;;  %4519 = vmatmul.mubr.f32.gmra.mrb[246].mxu1 %v907_v16  ;;  %v436_v16 = vld [vmem:[%s6779_s5 + $0x818] sm:$0xff] }
 0x224   : > { %6272 = vmatprep.mubr.msk.f32.mxu0 %vm1176_vm0, %v426_v19  ;;  %6514 = vmatprep.mubr.msk.f32.mxu1 %vm1176_vm0, %v910_v20  ;;  %v920_v17 = vld [vmem:[%s6779_s5 + $0x1738] sm:$0xff]  ;;  %v919_v25 = vld [vmem:[%s6779_s5 + $0x1730] sm:$0xff] }
 0x225   : > { %v5184_v29 = vmax.f32 %v3046_v23, 0.0  ;;  %v5426_v30 = vmax.f32 %v4256_v24, 0.0  ;;  %v435_v24 = vld [vmem:[%s6779_s5 + $0x810] sm:$0xff] }
 0x226   : > { %v3050_v33 = vpop.f32.mrb[142].mxu0  ;;  %v4260_v34 = vpop.f32.mrb[142].mxu1 }
 0x227   : > { %5669 = vst.msk [vmem:[%s7189_s23 + $0x230] sm:$0xff] %vm5598_vm1, %v5184_v29  ;;  %5911 = vst.msk [vmem:[%s7189_s23 + $0x9c0] sm:$0xff] %vm5598_vm1, %v5426_v30  ;;  %v3051_v35 = vadd.f32 %v7881_v59, %v3050_v33  ;;  %v4261_v36 = vadd.f32 %v7881_v59, %v4260_v34  ;;  %v3052_v37 = vpop.f32.mrb[143].mxu0  ;;  %3314 = vmatmul.mubr.f32.gmra.mrb[248].mxu0 %v425_v27  ;;  %v4262_v38 = vpop.f32.mrb[143].mxu1  ;;  %4524 = vmatmul.mubr.f32.gmra.mrb[248].mxu1 %v909_v28  ;;  %v438_v28 = vld [vmem:[%s6779_s5 + $0x828] sm:$0xff] }
 0x228   : > { %6273 = vmatprep.mubr.msk.f32.mxu0 %vm1176_vm0, %v428_v31  ;;  %6515 = vmatprep.mubr.msk.f32.mxu1 %vm1176_vm0, %v912_v32  ;;  %v922_v29 = vld [vmem:[%s6779_s5 + $0x1748] sm:$0xff]  ;;  %v921_v37 = vld [vmem:[%s6779_s5 + $0x1740] sm:$0xff] }
 0x229   : > { %v5185_v41 = vmax.f32 %v3051_v35, 0.0  ;;  %v5427_v42 = vmax.f32 %v4261_v36, 0.0  ;;  %v437_v36 = vld [vmem:[%s6779_s5 + $0x820] sm:$0xff] }
 0x22a   : > { %v3055_v45 = vpop.f32.mrb[144].mxu0  ;;  %v4265_v46 = vpop.f32.mrb[144].mxu1 }
 0x22b   : > { %5670 = vst.msk [vmem:[%s7189_s23 + $0x238] sm:$0xff] %vm5598_vm1, %v5185_v41  ;;  %5912 = vst.msk [vmem:[%s7189_s23 + $0x9c8] sm:$0xff] %vm5598_vm1, %v5427_v42  ;;  %v3056_v47 = vadd.f32 %v7881_v59, %v3055_v45  ;;  %v4266_v48 = vadd.f32 %v7881_v59, %v4265_v46  ;;  %v3057_v49 = vpop.f32.mrb[145].mxu0  ;;  %3319 = vmatmul.mubr.f32.gmra.mrb[250].mxu0 %v427_v39  ;;  %v4267_v50 = vpop.f32.mrb[145].mxu1  ;;  %4529 = vmatmul.mubr.f32.gmra.mrb[250].mxu1 %v911_v40  ;;  %v440_v40 = vld [vmem:[%s6779_s5 + $0x838] sm:$0xff] }
 0x22c   : > { %6274 = vmatprep.mubr.msk.f32.mxu0 %vm1176_vm0, %v430_v43  ;;  %6516 = vmatprep.mubr.msk.f32.mxu1 %vm1176_vm0, %v914_v44  ;;  %v924_v41 = vld [vmem:[%s6779_s5 + $0x1758] sm:$0xff]  ;;  %v923_v49 = vld [vmem:[%s6779_s5 + $0x1750] sm:$0xff] }
 0x22d   : > { %v5186_v53 = vmax.f32 %v3056_v47, 0.0  ;;  %v5428_v54 = vmax.f32 %v4266_v48, 0.0  ;;  %v439_v48 = vld [vmem:[%s6779_s5 + $0x830] sm:$0xff] }
 0x22e   : > { %v3060_v57 = vpop.f32.mrb[146].mxu0  ;;  %v4270_v58 = vpop.f32.mrb[146].mxu1 }
 0x22f   : > { %5671 = vst.msk [vmem:[%s7189_s23 + $0x240] sm:$0xff] %vm5598_vm1, %v5186_v53  ;;  %5913 = vst.msk [vmem:[%s7189_s23 + $0x9d0] sm:$0xff] %vm5598_vm1, %v5428_v54  ;;  %v3061_v60 = vadd.f32 %v7881_v59, %v3060_v57  ;;  %v4271_v61 = vadd.f32 %v7881_v59, %v4270_v58  ;;  %v3062_v62 = vpop.f32.mrb[147].mxu0  ;;  %3324 = vmatmul.mubr.f32.gmra.mrb[252].mxu0 %v429_v51  ;;  %v4272_v63 = vpop.f32.mrb[147].mxu1  ;;  %4534 = vmatmul.mubr.f32.gmra.mrb[252].mxu1 %v913_v52  ;;  %v442_v52 = vld [vmem:[%s6779_s5 + $0x848] sm:$0xff] }
 0x230   : > { %6275 = vmatprep.mubr.msk.f32.mxu0 %vm1176_vm0, %v432_v55  ;;  %6517 = vmatprep.mubr.msk.f32.mxu1 %vm1176_vm0, %v916_v56  ;;  %v926_v53 = vld [vmem:[%s6779_s5 + $0x1768] sm:$0xff]  ;;  %v925_v62 = vld [vmem:[%s6779_s5 + $0x1760] sm:$0xff] }
 0x231   : > { %v5187_v2 = vmax.f32 %v3061_v60, 0.0  ;;  %v5429_v3 = vmax.f32 %v4271_v61, 0.0  ;;  %v441_v61 = vld [vmem:[%s6779_s5 + $0x840] sm:$0xff] }
 0x232   : > { %v3065_v6 = vpop.f32.mrb[148].mxu0  ;;  %v4275_v7 = vpop.f32.mrb[148].mxu1 }
 0x233   : > { %5672 = vst.msk [vmem:[%s7189_s23 + $0x248] sm:$0xff] %vm5598_vm1, %v5187_v2  ;;  %5914 = vst.msk [vmem:[%s7189_s23 + $0x9d8] sm:$0xff] %vm5598_vm1, %v5429_v3  ;;  %v3066_v8 = vadd.f32 %v7881_v59, %v3065_v6  ;;  %v4276_v9 = vadd.f32 %v7881_v59, %v4275_v7  ;;  %v3067_v10 = vpop.f32.mrb[149].mxu0  ;;  %3329 = vmatmul.mubr.f32.gmra.mrb[254].mxu0 %v431_v0  ;;  %v4277_v11 = vpop.f32.mrb[149].mxu1  ;;  %4539 = vmatmul.mubr.f32.gmra.mrb[254].mxu1 %v915_v1  ;;  %v444_v1 = vld [vmem:[%s6779_s5 + $0x858] sm:$0xff] }
 0x234   : > { %6276 = vmatprep.mubr.msk.f32.mxu0 %vm1176_vm0, %v434_v4  ;;  %6518 = vmatprep.mubr.msk.f32.mxu1 %vm1176_vm0, %v918_v5  ;;  %v928_v2 = vld [vmem:[%s6779_s5 + $0x1778] sm:$0xff]  ;;  %v927_v10 = vld [vmem:[%s6779_s5 + $0x1770] sm:$0xff] }
 0x235   : > { %v5188_v14 = vmax.f32 %v3066_v8, 0.0  ;;  %v5430_v15 = vmax.f32 %v4276_v9, 0.0  ;;  %v443_v9 = vld [vmem:[%s6779_s5 + $0x850] sm:$0xff] }
 0x236   : > { %v3070_v18 = vpop.f32.mrb[150].mxu0  ;;  %v4280_v19 = vpop.f32.mrb[150].mxu1 }
 0x237   : > { %5673 = vst.msk [vmem:[%s7189_s23 + $0x250] sm:$0xff] %vm5598_vm1, %v5188_v14  ;;  %5915 = vst.msk [vmem:[%s7189_s23 + $0x9e0] sm:$0xff] %vm5598_vm1, %v5430_v15  ;;  %v3071_v20 = vadd.f32 %v7881_v59, %v3070_v18  ;;  %v4281_v21 = vadd.f32 %v7881_v59, %v4280_v19  ;;  %v3072_v22 = vpop.f32.mrb[151].mxu0  ;;  %3334 = vmatmul.mubr.f32.gmra.mrb[0].mxu0 %v433_v12  ;;  %v4282_v23 = vpop.f32.mrb[151].mxu1  ;;  %4544 = vmatmul.mubr.f32.gmra.mrb[0].mxu1 %v917_v13  ;;  %v446_v13 = vld [vmem:[%s6779_s5 + $0x868] sm:$0xff] }
 0x238   : > { %6277 = vmatprep.mubr.msk.f32.mxu0 %vm1176_vm0, %v436_v16  ;;  %6519 = vmatprep.mubr.msk.f32.mxu1 %vm1176_vm0, %v920_v17  ;;  %v930_v14 = vld [vmem:[%s6779_s5 + $0x1788] sm:$0xff]  ;;  %v929_v22 = vld [vmem:[%s6779_s5 + $0x1780] sm:$0xff] }
 0x239   : > { %v5189_v26 = vmax.f32 %v3071_v20, 0.0  ;;  %v5431_v27 = vmax.f32 %v4281_v21, 0.0  ;;  %v445_v21 = vld [vmem:[%s6779_s5 + $0x860] sm:$0xff] }
 0x23a   : > { %v3075_v30 = vpop.f32.mrb[152].mxu0  ;;  %v4285_v31 = vpop.f32.mrb[152].mxu1 }
 0x23b   : > { %5674 = vst.msk [vmem:[%s7189_s23 + $0x258] sm:$0xff] %vm5598_vm1, %v5189_v26  ;;  %5916 = vst.msk [vmem:[%s7189_s23 + $0x9e8] sm:$0xff] %vm5598_vm1, %v5431_v27  ;;  %v3076_v32 = vadd.f32 %v7881_v59, %v3075_v30  ;;  %v4286_v33 = vadd.f32 %v7881_v59, %v4285_v31  ;;  %v3077_v34 = vpop.f32.mrb[153].mxu0  ;;  %3339 = vmatmul.mubr.f32.gmra.mrb[2].mxu0 %v435_v24  ;;  %v4287_v35 = vpop.f32.mrb[153].mxu1  ;;  %4549 = vmatmul.mubr.f32.gmra.mrb[2].mxu1 %v919_v25  ;;  %v448_v25 = vld [vmem:[%s6779_s5 + $0x878] sm:$0xff] }
 0x23c   : > { %6278 = vmatprep.mubr.msk.f32.mxu0 %vm1176_vm0, %v438_v28  ;;  %6520 = vmatprep.mubr.msk.f32.mxu1 %vm1176_vm0, %v922_v29  ;;  %v932_v26 = vld [vmem:[%s6779_s5 + $0x1798] sm:$0xff]  ;;  %v931_v34 = vld [vmem:[%s6779_s5 + $0x1790] sm:$0xff] }
 0x23d   : > { %v5190_v38 = vmax.f32 %v3076_v32, 0.0  ;;  %v5432_v39 = vmax.f32 %v4286_v33, 0.0  ;;  %v447_v33 = vld [vmem:[%s6779_s5 + $0x870] sm:$0xff] }
 0x23e   : > { %v3080_v42 = vpop.f32.mrb[154].mxu0  ;;  %v4290_v43 = vpop.f32.mrb[154].mxu1 }
 0x23f   : > { %5675 = vst.msk [vmem:[%s7189_s23 + $0x260] sm:$0xff] %vm5598_vm1, %v5190_v38  ;;  %5917 = vst.msk [vmem:[%s7189_s23 + $0x9f0] sm:$0xff] %vm5598_vm1, %v5432_v39  ;;  %v3081_v44 = vadd.f32 %v7881_v59, %v3080_v42  ;;  %v4291_v45 = vadd.f32 %v7881_v59, %v4290_v43  ;;  %v3082_v46 = vpop.f32.mrb[155].mxu0  ;;  %3344 = vmatmul.mubr.f32.gmra.mrb[4].mxu0 %v437_v36  ;;  %v4292_v47 = vpop.f32.mrb[155].mxu1  ;;  %4554 = vmatmul.mubr.f32.gmra.mrb[4].mxu1 %v921_v37  ;;  %v450_v37 = vld [vmem:[%s6779_s5 + $0x888] sm:$0xff] }
 0x240   : > { %6279 = vmatprep.mubr.msk.f32.mxu0 %vm1176_vm0, %v440_v40  ;;  %6521 = vmatprep.mubr.msk.f32.mxu1 %vm1176_vm0, %v924_v41  ;;  %v934_v38 = vld [vmem:[%s6779_s5 + $0x17a8] sm:$0xff]  ;;  %v933_v46 = vld [vmem:[%s6779_s5 + $0x17a0] sm:$0xff] }
 0x241   : > { %v5191_v50 = vmax.f32 %v3081_v44, 0.0  ;;  %v5433_v51 = vmax.f32 %v4291_v45, 0.0  ;;  %v449_v45 = vld [vmem:[%s6779_s5 + $0x880] sm:$0xff] }
 0x242   : > { %v3085_v54 = vpop.f32.mrb[156].mxu0  ;;  %v4295_v55 = vpop.f32.mrb[156].mxu1 }
 0x243   : > { %5676 = vst.msk [vmem:[%s7189_s23 + $0x268] sm:$0xff] %vm5598_vm1, %v5191_v50  ;;  %5918 = vst.msk [vmem:[%s7189_s23 + $0x9f8] sm:$0xff] %vm5598_vm1, %v5433_v51  ;;  %v3086_v56 = vadd.f32 %v7881_v59, %v3085_v54  ;;  %v4296_v57 = vadd.f32 %v7881_v59, %v4295_v55  ;;  %v3087_v58 = vpop.f32.mrb[157].mxu0  ;;  %3349 = vmatmul.mubr.f32.gmra.mrb[6].mxu0 %v439_v48  ;;  %v4297_v60 = vpop.f32.mrb[157].mxu1  ;;  %4559 = vmatmul.mubr.f32.gmra.mrb[6].mxu1 %v923_v49  ;;  %v452_v49 = vld [vmem:[%s6779_s5 + $0x898] sm:$0xff] }
 0x244   : > { %6280 = vmatprep.mubr.msk.f32.mxu0 %vm1176_vm0, %v442_v52  ;;  %6522 = vmatprep.mubr.msk.f32.mxu1 %vm1176_vm0, %v926_v53  ;;  %v936_v50 = vld [vmem:[%s6779_s5 + $0x17b8] sm:$0xff]  ;;  %v935_v58 = vld [vmem:[%s6779_s5 + $0x17b0] sm:$0xff] }
 0x245   : > { %v5192_v63 = vmax.f32 %v3086_v56, 0.0  ;;  %v5434_v0 = vmax.f32 %v4296_v57, 0.0  ;;  %v451_v57 = vld [vmem:[%s6779_s5 + $0x890] sm:$0xff] }
 0x246   : > { %v3090_v3 = vpop.f32.mrb[158].mxu0  ;;  %v4300_v4 = vpop.f32.mrb[158].mxu1 }
 0x247   : > { %5677 = vst.msk [vmem:[%s7189_s23 + $0x270] sm:$0xff] %vm5598_vm1, %v5192_v63  ;;  %5919 = vst.msk [vmem:[%s7189_s23 + $0xa00] sm:$0xff] %vm5598_vm1, %v5434_v0  ;;  %v3091_v5 = vadd.f32 %v7881_v59, %v3090_v3  ;;  %v4301_v6 = vadd.f32 %v7881_v59, %v4300_v4  ;;  %v3092_v7 = vpop.f32.mrb[159].mxu0  ;;  %3354 = vmatmul.mubr.f32.gmra.mrb[8].mxu0 %v441_v61  ;;  %v4302_v8 = vpop.f32.mrb[159].mxu1  ;;  %4564 = vmatmul.mubr.f32.gmra.mrb[8].mxu1 %v925_v62  ;;  %v454_v62 = vld [vmem:[%s6779_s5 + $0x8a8] sm:$0xff] }
 0x248   : > { %6281 = vmatprep.mubr.msk.f32.mxu0 %vm1176_vm0, %v444_v1  ;;  %6523 = vmatprep.mubr.msk.f32.mxu1 %vm1176_vm0, %v928_v2  ;;  %v938_v63 = vld [vmem:[%s6779_s5 + $0x17c8] sm:$0xff]  ;;  %v937_v7 = vld [vmem:[%s6779_s5 + $0x17c0] sm:$0xff] }
 0x249   : > { %v5193_v11 = vmax.f32 %v3091_v5, 0.0  ;;  %v5435_v12 = vmax.f32 %v4301_v6, 0.0  ;;  %v453_v6 = vld [vmem:[%s6779_s5 + $0x8a0] sm:$0xff] }
 0x24a   : > { %v3095_v15 = vpop.f32.mrb[160].mxu0  ;;  %v4305_v16 = vpop.f32.mrb[160].mxu1 }
 0x24b   : > { %5678 = vst.msk [vmem:[%s7189_s23 + $0x278] sm:$0xff] %vm5598_vm1, %v5193_v11  ;;  %5920 = vst.msk [vmem:[%s7189_s23 + $0xa08] sm:$0xff] %vm5598_vm1, %v5435_v12  ;;  %v3096_v17 = vadd.f32 %v7881_v59, %v3095_v15  ;;  %v4306_v18 = vadd.f32 %v7881_v59, %v4305_v16  ;;  %v3097_v19 = vpop.f32.mrb[161].mxu0  ;;  %3359 = vmatmul.mubr.f32.gmra.mrb[10].mxu0 %v443_v9  ;;  %v4307_v20 = vpop.f32.mrb[161].mxu1  ;;  %4569 = vmatmul.mubr.f32.gmra.mrb[10].mxu1 %v927_v10  ;;  %v456_v10 = vld [vmem:[%s6779_s5 + $0x8b8] sm:$0xff] }
 0x24c   : > { %6282 = vmatprep.mubr.msk.f32.mxu0 %vm1176_vm0, %v446_v13  ;;  %6524 = vmatprep.mubr.msk.f32.mxu1 %vm1176_vm0, %v930_v14  ;;  %v940_v11 = vld [vmem:[%s6779_s5 + $0x17d8] sm:$0xff]  ;;  %v939_v19 = vld [vmem:[%s6779_s5 + $0x17d0] sm:$0xff] }
 0x24d   : > { %v5194_v23 = vmax.f32 %v3096_v17, 0.0  ;;  %v5436_v24 = vmax.f32 %v4306_v18, 0.0  ;;  %v455_v18 = vld [vmem:[%s6779_s5 + $0x8b0] sm:$0xff] }
 0x24e   : > { %v3100_v27 = vpop.f32.mrb[162].mxu0  ;;  %v4310_v28 = vpop.f32.mrb[162].mxu1 }
 0x24f   : > { %5679 = vst.msk [vmem:[%s7189_s23 + $0x280] sm:$0xff] %vm5598_vm1, %v5194_v23  ;;  %5921 = vst.msk [vmem:[%s7189_s23 + $0xa10] sm:$0xff] %vm5598_vm1, %v5436_v24  ;;  %v3101_v29 = vadd.f32 %v7881_v59, %v3100_v27  ;;  %v4311_v30 = vadd.f32 %v7881_v59, %v4310_v28  ;;  %v3102_v31 = vpop.f32.mrb[163].mxu0  ;;  %3364 = vmatmul.mubr.f32.gmra.mrb[12].mxu0 %v445_v21  ;;  %v4312_v32 = vpop.f32.mrb[163].mxu1  ;;  %4574 = vmatmul.mubr.f32.gmra.mrb[12].mxu1 %v929_v22  ;;  %v458_v22 = vld [vmem:[%s6779_s5 + $0x8c8] sm:$0xff] }
 0x250   : > { %6283 = vmatprep.mubr.msk.f32.mxu0 %vm1176_vm0, %v448_v25  ;;  %6525 = vmatprep.mubr.msk.f32.mxu1 %vm1176_vm0, %v932_v26  ;;  %v942_v23 = vld [vmem:[%s6779_s5 + $0x17e8] sm:$0xff]  ;;  %v941_v31 = vld [vmem:[%s6779_s5 + $0x17e0] sm:$0xff] }
 0x251   : > { %v5195_v35 = vmax.f32 %v3101_v29, 0.0  ;;  %v5437_v36 = vmax.f32 %v4311_v30, 0.0  ;;  %v457_v30 = vld [vmem:[%s6779_s5 + $0x8c0] sm:$0xff] }
 0x252   : > { %v3105_v39 = vpop.f32.mrb[164].mxu0  ;;  %v4315_v40 = vpop.f32.mrb[164].mxu1 }
 0x253   : > { %5680 = vst.msk [vmem:[%s7189_s23 + $0x288] sm:$0xff] %vm5598_vm1, %v5195_v35  ;;  %5922 = vst.msk [vmem:[%s7189_s23 + $0xa18] sm:$0xff] %vm5598_vm1, %v5437_v36  ;;  %v3106_v41 = vadd.f32 %v7881_v59, %v3105_v39  ;;  %v4316_v42 = vadd.f32 %v7881_v59, %v4315_v40  ;;  %v3107_v43 = vpop.f32.mrb[165].mxu0  ;;  %3369 = vmatmul.mubr.f32.gmra.mrb[14].mxu0 %v447_v33  ;;  %v4317_v44 = vpop.f32.mrb[165].mxu1  ;;  %4579 = vmatmul.mubr.f32.gmra.mrb[14].mxu1 %v931_v34  ;;  %v460_v34 = vld [vmem:[%s6779_s5 + $0x8d8] sm:$0xff] }
 0x254   : > { %6284 = vmatprep.mubr.msk.f32.mxu0 %vm1176_vm0, %v450_v37  ;;  %6526 = vmatprep.mubr.msk.f32.mxu1 %vm1176_vm0, %v934_v38  ;;  %v944_v35 = vld [vmem:[%s6779_s5 + $0x17f8] sm:$0xff]  ;;  %v943_v43 = vld [vmem:[%s6779_s5 + $0x17f0] sm:$0xff] }
 0x255   : > { %v5196_v47 = vmax.f32 %v3106_v41, 0.0  ;;  %v5438_v48 = vmax.f32 %v4316_v42, 0.0  ;;  %v459_v42 = vld [vmem:[%s6779_s5 + $0x8d0] sm:$0xff] }
 0x256   : > { %v3110_v51 = vpop.f32.mrb[166].mxu0  ;;  %v4320_v52 = vpop.f32.mrb[166].mxu1 }
 0x257   : > { %5681 = vst.msk [vmem:[%s7189_s23 + $0x290] sm:$0xff] %vm5598_vm1, %v5196_v47  ;;  %5923 = vst.msk [vmem:[%s7189_s23 + $0xa20] sm:$0xff] %vm5598_vm1, %v5438_v48  ;;  %v3111_v53 = vadd.f32 %v7881_v59, %v3110_v51  ;;  %v4321_v54 = vadd.f32 %v7881_v59, %v4320_v52  ;;  %v3112_v55 = vpop.f32.mrb[167].mxu0  ;;  %3374 = vmatmul.mubr.f32.gmra.mrb[16].mxu0 %v449_v45  ;;  %v4322_v56 = vpop.f32.mrb[167].mxu1  ;;  %4584 = vmatmul.mubr.f32.gmra.mrb[16].mxu1 %v933_v46  ;;  %v462_v46 = vld [vmem:[%s6779_s5 + $0x8e8] sm:$0xff] }
 0x258   : > { %6285 = vmatprep.mubr.msk.f32.mxu0 %vm1176_vm0, %v452_v49  ;;  %6527 = vmatprep.mubr.msk.f32.mxu1 %vm1176_vm0, %v936_v50  ;;  %v946_v47 = vld [vmem:[%s6779_s5 + $0x1808] sm:$0xff]  ;;  %v945_v55 = vld [vmem:[%s6779_s5 + $0x1800] sm:$0xff] }
 0x259   : > { %v5197_v60 = vmax.f32 %v3111_v53, 0.0  ;;  %v5439_v61 = vmax.f32 %v4321_v54, 0.0  ;;  %v461_v54 = vld [vmem:[%s6779_s5 + $0x8e0] sm:$0xff] }
 0x25a   : > { %v3115_v0 = vpop.f32.mrb[168].mxu0  ;;  %v4325_v1 = vpop.f32.mrb[168].mxu1 }
 0x25b   : > { %5682 = vst.msk [vmem:[%s7189_s23 + $0x298] sm:$0xff] %vm5598_vm1, %v5197_v60  ;;  %5924 = vst.msk [vmem:[%s7189_s23 + $0xa28] sm:$0xff] %vm5598_vm1, %v5439_v61  ;;  %v3116_v2 = vadd.f32 %v7881_v59, %v3115_v0  ;;  %v4326_v3 = vadd.f32 %v7881_v59, %v4325_v1  ;;  %v3117_v4 = vpop.f32.mrb[169].mxu0  ;;  %3379 = vmatmul.mubr.f32.gmra.mrb[18].mxu0 %v451_v57  ;;  %v4327_v5 = vpop.f32.mrb[169].mxu1  ;;  %4589 = vmatmul.mubr.f32.gmra.mrb[18].mxu1 %v935_v58  ;;  %v464_v58 = vld [vmem:[%s6779_s5 + $0x8f8] sm:$0xff] }
 0x25c   : > { %6286 = vmatprep.mubr.msk.f32.mxu0 %vm1176_vm0, %v454_v62  ;;  %6528 = vmatprep.mubr.msk.f32.mxu1 %vm1176_vm0, %v938_v63  ;;  %v948_v60 = vld [vmem:[%s6779_s5 + $0x1818] sm:$0xff]  ;;  %v947_v4 = vld [vmem:[%s6779_s5 + $0x1810] sm:$0xff] }
 0x25d   : > { %v5198_v8 = vmax.f32 %v3116_v2, 0.0  ;;  %v5440_v9 = vmax.f32 %v4326_v3, 0.0  ;;  %v463_v3 = vld [vmem:[%s6779_s5 + $0x8f0] sm:$0xff] }
 0x25e   : > { %v3120_v12 = vpop.f32.mrb[170].mxu0  ;;  %v4330_v13 = vpop.f32.mrb[170].mxu1 }
 0x25f   : > { %5683 = vst.msk [vmem:[%s7189_s23 + $0x2a0] sm:$0xff] %vm5598_vm1, %v5198_v8  ;;  %5925 = vst.msk [vmem:[%s7189_s23 + $0xa30] sm:$0xff] %vm5598_vm1, %v5440_v9  ;;  %v3121_v14 = vadd.f32 %v7881_v59, %v3120_v12  ;;  %v4331_v15 = vadd.f32 %v7881_v59, %v4330_v13  ;;  %v3122_v16 = vpop.f32.mrb[171].mxu0  ;;  %3384 = vmatmul.mubr.f32.gmra.mrb[20].mxu0 %v453_v6  ;;  %v4332_v17 = vpop.f32.mrb[171].mxu1  ;;  %4594 = vmatmul.mubr.f32.gmra.mrb[20].mxu1 %v937_v7  ;;  %v8234_v59 = vld [vmem:[%s9807_s2] ss:$0 sm:$0xff] }
 0x260   : > { %6287 = vmatprep.mubr.msk.f32.mxu0 %vm1176_vm0, %v456_v10  ;;  %6529 = vmatprep.mubr.msk.f32.mxu1 %vm1176_vm0, %v940_v11  ;;  %v466_v7 = vld [vmem:[%s6779_s5 + $0x908] sm:$0xff]  ;;  %v949_v16 = vld [vmem:[%s6779_s5 + $0x1820] sm:$0xff] }
 0x261   : > { %v5199_v20 = vmax.f32 %v3121_v14, 0.0  ;;  %v5441_v21 = vmax.f32 %v4331_v15, 0.0  ;;  %v950_v8 = vld [vmem:[%s6779_s5 + $0x1828] sm:$0xff]  ;;  %v465_v15 = vld [vmem:[%s6779_s5 + $0x900] sm:$0xff] }
 0x262   : > { %v3125_v24 = vpop.f32.mrb[172].mxu0  ;;  %v4335_v25 = vpop.f32.mrb[172].mxu1 }
 0x263   : > { %5684 = vst.msk [vmem:[%s7189_s23 + $0x2a8] sm:$0xff] %vm5598_vm1, %v5199_v20  ;;  %5926 = vst.msk [vmem:[%s7189_s23 + $0xa38] sm:$0xff] %vm5598_vm1, %v5441_v21  ;;  %v3126_v26 = vadd.f32 %v8234_v59, %v3125_v24  ;;  %v4336_v27 = vadd.f32 %v8234_v59, %v4335_v25  ;;  %v3127_v28 = vpop.f32.mrb[173].mxu0  ;;  %3389 = vmatmul.mubr.f32.gmra.mrb[22].mxu0 %v455_v18  ;;  %v4337_v29 = vpop.f32.mrb[173].mxu1  ;;  %4599 = vmatmul.mubr.f32.gmra.mrb[22].mxu1 %v939_v19  ;;  %v468_v19 = vld [vmem:[%s6779_s5 + $0x918] sm:$0xff] }
 0x264   : > { %6288 = vmatprep.mubr.msk.f32.mxu0 %vm1176_vm0, %v458_v22  ;;  %6530 = vmatprep.mubr.msk.f32.mxu1 %vm1176_vm0, %v942_v23  ;;  %v952_v20 = vld [vmem:[%s6779_s5 + $0x1838] sm:$0xff]  ;;  %v951_v28 = vld [vmem:[%s6779_s5 + $0x1830] sm:$0xff] }
 0x265   : > { %v5200_v32 = vmax.f32 %v3126_v26, 0.0  ;;  %v5442_v33 = vmax.f32 %v4336_v27, 0.0  ;;  %v467_v27 = vld [vmem:[%s6779_s5 + $0x910] sm:$0xff] }
 0x266   : > { %v3130_v36 = vpop.f32.mrb[174].mxu0  ;;  %v4340_v37 = vpop.f32.mrb[174].mxu1 }
 0x267   : > { %5685 = vst.msk [vmem:[%s7189_s23 + $0x2b0] sm:$0xff] %vm5598_vm1, %v5200_v32  ;;  %5927 = vst.msk [vmem:[%s7189_s23 + $0xa40] sm:$0xff] %vm5598_vm1, %v5442_v33  ;;  %v3131_v38 = vadd.f32 %v8234_v59, %v3130_v36  ;;  %v4341_v39 = vadd.f32 %v8234_v59, %v4340_v37  ;;  %v3132_v40 = vpop.f32.mrb[175].mxu0  ;;  %3394 = vmatmul.mubr.f32.gmra.mrb[24].mxu0 %v457_v30  ;;  %v4342_v41 = vpop.f32.mrb[175].mxu1  ;;  %4604 = vmatmul.mubr.f32.gmra.mrb[24].mxu1 %v941_v31  ;;  %v470_v31 = vld [vmem:[%s6779_s5 + $0x928] sm:$0xff] }
 0x268   : > { %6289 = vmatprep.mubr.msk.f32.mxu0 %vm1176_vm0, %v460_v34  ;;  %6531 = vmatprep.mubr.msk.f32.mxu1 %vm1176_vm0, %v944_v35  ;;  %v954_v32 = vld [vmem:[%s6779_s5 + $0x1848] sm:$0xff]  ;;  %v953_v40 = vld [vmem:[%s6779_s5 + $0x1840] sm:$0xff] }
 0x269   : > { %v5201_v44 = vmax.f32 %v3131_v38, 0.0  ;;  %v5443_v45 = vmax.f32 %v4341_v39, 0.0  ;;  %v469_v39 = vld [vmem:[%s6779_s5 + $0x920] sm:$0xff] }
 0x26a   : > { %v3135_v48 = vpop.f32.mrb[176].mxu0  ;;  %v4345_v49 = vpop.f32.mrb[176].mxu1 }
 0x26b   : > { %5686 = vst.msk [vmem:[%s7189_s23 + $0x2b8] sm:$0xff] %vm5598_vm1, %v5201_v44  ;;  %5928 = vst.msk [vmem:[%s7189_s23 + $0xa48] sm:$0xff] %vm5598_vm1, %v5443_v45  ;;  %v3136_v50 = vadd.f32 %v8234_v59, %v3135_v48  ;;  %v4346_v51 = vadd.f32 %v8234_v59, %v4345_v49  ;;  %v3137_v52 = vpop.f32.mrb[177].mxu0  ;;  %3399 = vmatmul.mubr.f32.gmra.mrb[26].mxu0 %v459_v42  ;;  %v4347_v53 = vpop.f32.mrb[177].mxu1  ;;  %4609 = vmatmul.mubr.f32.gmra.mrb[26].mxu1 %v943_v43  ;;  %v472_v43 = vld [vmem:[%s6779_s5 + $0x938] sm:$0xff] }
 0x26c   : > { %6290 = vmatprep.mubr.msk.f32.mxu0 %vm1176_vm0, %v462_v46  ;;  %6532 = vmatprep.mubr.msk.f32.mxu1 %vm1176_vm0, %v946_v47  ;;  %v956_v44 = vld [vmem:[%s6779_s5 + $0x1858] sm:$0xff]  ;;  %v955_v52 = vld [vmem:[%s6779_s5 + $0x1850] sm:$0xff] }
 0x26d   : > { %v5202_v56 = vmax.f32 %v3136_v50, 0.0  ;;  %v5444_v57 = vmax.f32 %v4346_v51, 0.0  ;;  %v471_v51 = vld [vmem:[%s6779_s5 + $0x930] sm:$0xff] }
 0x26e   : > { %v3140_v61 = vpop.f32.mrb[178].mxu0  ;;  %v4350_v62 = vpop.f32.mrb[178].mxu1 }
 0x26f   : > { %5687 = vst.msk [vmem:[%s7189_s23 + $0x2c0] sm:$0xff] %vm5598_vm1, %v5202_v56  ;;  %5929 = vst.msk [vmem:[%s7189_s23 + $0xa50] sm:$0xff] %vm5598_vm1, %v5444_v57  ;;  %v3141_v63 = vadd.f32 %v8234_v59, %v3140_v61  ;;  %v4351_v0 = vadd.f32 %v8234_v59, %v4350_v62  ;;  %v3142_v1 = vpop.f32.mrb[179].mxu0  ;;  %3404 = vmatmul.mubr.f32.gmra.mrb[28].mxu0 %v461_v54  ;;  %v4352_v2 = vpop.f32.mrb[179].mxu1  ;;  %4614 = vmatmul.mubr.f32.gmra.mrb[28].mxu1 %v945_v55  ;;  %v474_v55 = vld [vmem:[%s6779_s5 + $0x948] sm:$0xff] }
 0x270   : > { %6291 = vmatprep.mubr.msk.f32.mxu0 %vm1176_vm0, %v464_v58  ;;  %6533 = vmatprep.mubr.msk.f32.mxu1 %vm1176_vm0, %v948_v60  ;;  %v958_v56 = vld [vmem:[%s6779_s5 + $0x1868] sm:$0xff]  ;;  %v957_v1 = vld [vmem:[%s6779_s5 + $0x1860] sm:$0xff] }
 0x271   : > { %v5203_v5 = vmax.f32 %v3141_v63, 0.0  ;;  %v5445_v6 = vmax.f32 %v4351_v0, 0.0  ;;  %v473_v0 = vld [vmem:[%s6779_s5 + $0x940] sm:$0xff] }
 0x272   : > { %v3145_v9 = vpop.f32.mrb[180].mxu0  ;;  %v4355_v10 = vpop.f32.mrb[180].mxu1 }
 0x273   : > { %5688 = vst.msk [vmem:[%s7189_s23 + $0x2c8] sm:$0xff] %vm5598_vm1, %v5203_v5  ;;  %5930 = vst.msk [vmem:[%s7189_s23 + $0xa58] sm:$0xff] %vm5598_vm1, %v5445_v6  ;;  %v3146_v11 = vadd.f32 %v8234_v59, %v3145_v9  ;;  %v4356_v12 = vadd.f32 %v8234_v59, %v4355_v10  ;;  %v3147_v13 = vpop.f32.mrb[181].mxu0  ;;  %3409 = vmatmul.mubr.f32.gmra.mrb[30].mxu0 %v463_v3  ;;  %v4357_v14 = vpop.f32.mrb[181].mxu1  ;;  %4619 = vmatmul.mubr.f32.gmra.mrb[30].mxu1 %v947_v4  ;;  %v476_v4 = vld [vmem:[%s6779_s5 + $0x958] sm:$0xff] }
 0x274   : > { %6292 = vmatprep.mubr.msk.f32.mxu0 %vm1176_vm0, %v466_v7  ;;  %6534 = vmatprep.mubr.msk.f32.mxu1 %vm1176_vm0, %v950_v8  ;;  %v960_v5 = vld [vmem:[%s6779_s5 + $0x1878] sm:$0xff]  ;;  %v959_v13 = vld [vmem:[%s6779_s5 + $0x1870] sm:$0xff] }
 0x275   : > { %v5204_v17 = vmax.f32 %v3146_v11, 0.0  ;;  %v5446_v18 = vmax.f32 %v4356_v12, 0.0  ;;  %v475_v12 = vld [vmem:[%s6779_s5 + $0x950] sm:$0xff] }
 0x276   : > { %v3150_v21 = vpop.f32.mrb[182].mxu0  ;;  %v4360_v22 = vpop.f32.mrb[182].mxu1 }
 0x277   : > { %5689 = vst.msk [vmem:[%s7189_s23 + $0x2d0] sm:$0xff] %vm5598_vm1, %v5204_v17  ;;  %5931 = vst.msk [vmem:[%s7189_s23 + $0xa60] sm:$0xff] %vm5598_vm1, %v5446_v18  ;;  %v3151_v23 = vadd.f32 %v8234_v59, %v3150_v21  ;;  %v4361_v24 = vadd.f32 %v8234_v59, %v4360_v22  ;;  %v3152_v25 = vpop.f32.mrb[183].mxu0  ;;  %3414 = vmatmul.mubr.f32.gmra.mrb[32].mxu0 %v465_v15  ;;  %v4362_v26 = vpop.f32.mrb[183].mxu1  ;;  %4624 = vmatmul.mubr.f32.gmra.mrb[32].mxu1 %v949_v16  ;;  %v478_v16 = vld [vmem:[%s6779_s5 + $0x968] sm:$0xff] }
 0x278   : > { %6293 = vmatprep.mubr.msk.f32.mxu0 %vm1176_vm0, %v468_v19  ;;  %6535 = vmatprep.mubr.msk.f32.mxu1 %vm1176_vm0, %v952_v20  ;;  %v962_v17 = vld [vmem:[%s6779_s5 + $0x1888] sm:$0xff]  ;;  %v961_v25 = vld [vmem:[%s6779_s5 + $0x1880] sm:$0xff] }
 0x279   : > { %v5205_v29 = vmax.f32 %v3151_v23, 0.0  ;;  %v5447_v30 = vmax.f32 %v4361_v24, 0.0  ;;  %v477_v24 = vld [vmem:[%s6779_s5 + $0x960] sm:$0xff] }
 0x27a   : > { %v3155_v33 = vpop.f32.mrb[184].mxu0  ;;  %v4365_v34 = vpop.f32.mrb[184].mxu1 }
 0x27b   : > { %5690 = vst.msk [vmem:[%s7189_s23 + $0x2d8] sm:$0xff] %vm5598_vm1, %v5205_v29  ;;  %5932 = vst.msk [vmem:[%s7189_s23 + $0xa68] sm:$0xff] %vm5598_vm1, %v5447_v30  ;;  %v3156_v35 = vadd.f32 %v8234_v59, %v3155_v33  ;;  %v4366_v36 = vadd.f32 %v8234_v59, %v4365_v34  ;;  %v3157_v37 = vpop.f32.mrb[185].mxu0  ;;  %3419 = vmatmul.mubr.f32.gmra.mrb[34].mxu0 %v467_v27  ;;  %v4367_v38 = vpop.f32.mrb[185].mxu1  ;;  %4629 = vmatmul.mubr.f32.gmra.mrb[34].mxu1 %v951_v28  ;;  %v480_v28 = vld [vmem:[%s6779_s5 + $0x978] sm:$0xff] }
 0x27c   : > { %6294 = vmatprep.mubr.msk.f32.mxu0 %vm1176_vm0, %v470_v31  ;;  %6536 = vmatprep.mubr.msk.f32.mxu1 %vm1176_vm0, %v954_v32  ;;  %v964_v29 = vld [vmem:[%s6779_s5 + $0x1898] sm:$0xff]  ;;  %v963_v37 = vld [vmem:[%s6779_s5 + $0x1890] sm:$0xff] }
 0x27d   : > { %v5206_v41 = vmax.f32 %v3156_v35, 0.0  ;;  %v5448_v42 = vmax.f32 %v4366_v36, 0.0  ;;  %v479_v36 = vld [vmem:[%s6779_s5 + $0x970] sm:$0xff] }
 0x27e   : > { %v3160_v45 = vpop.f32.mrb[186].mxu0  ;;  %v4370_v46 = vpop.f32.mrb[186].mxu1 }
 0x27f   : > { %5691 = vst.msk [vmem:[%s7189_s23 + $0x2e0] sm:$0xff] %vm5598_vm1, %v5206_v41  ;;  %5933 = vst.msk [vmem:[%s7189_s23 + $0xa70] sm:$0xff] %vm5598_vm1, %v5448_v42  ;;  %v3161_v47 = vadd.f32 %v8234_v59, %v3160_v45  ;;  %v4371_v48 = vadd.f32 %v8234_v59, %v4370_v46  ;;  %v3162_v49 = vpop.f32.mrb[187].mxu0  ;;  %3424 = vmatmul.mubr.f32.gmra.mrb[36].mxu0 %v469_v39  ;;  %v4372_v50 = vpop.f32.mrb[187].mxu1  ;;  %4634 = vmatmul.mubr.f32.gmra.mrb[36].mxu1 %v953_v40  ;;  %v482_v40 = vld [vmem:[%s6779_s5 + $0x988] sm:$0xff] }
 0x280   : > { %6295 = vmatprep.mubr.msk.f32.mxu0 %vm1176_vm0, %v472_v43  ;;  %6537 = vmatprep.mubr.msk.f32.mxu1 %vm1176_vm0, %v956_v44  ;;  %v966_v41 = vld [vmem:[%s6779_s5 + $0x18a8] sm:$0xff]  ;;  %v965_v49 = vld [vmem:[%s6779_s5 + $0x18a0] sm:$0xff] }
 0x281   : > { %v5207_v53 = vmax.f32 %v3161_v47, 0.0  ;;  %v5449_v54 = vmax.f32 %v4371_v48, 0.0  ;;  %v481_v48 = vld [vmem:[%s6779_s5 + $0x980] sm:$0xff] }
 0x282   : > { %v3165_v57 = vpop.f32.mrb[188].mxu0  ;;  %v4375_v58 = vpop.f32.mrb[188].mxu1 }
 0x283   : > { %5692 = vst.msk [vmem:[%s7189_s23 + $0x2e8] sm:$0xff] %vm5598_vm1, %v5207_v53  ;;  %5934 = vst.msk [vmem:[%s7189_s23 + $0xa78] sm:$0xff] %vm5598_vm1, %v5449_v54  ;;  %v3166_v60 = vadd.f32 %v8234_v59, %v3165_v57  ;;  %v4376_v61 = vadd.f32 %v8234_v59, %v4375_v58  ;;  %v3167_v62 = vpop.f32.mrb[189].mxu0  ;;  %3429 = vmatmul.mubr.f32.gmra.mrb[38].mxu0 %v471_v51  ;;  %v4377_v63 = vpop.f32.mrb[189].mxu1  ;;  %4639 = vmatmul.mubr.f32.gmra.mrb[38].mxu1 %v955_v52  ;;  %v484_v52 = vld [vmem:[%s6779_s5 + $0x998] sm:$0xff] }
 0x284   : > { %6296 = vmatprep.mubr.msk.f32.mxu0 %vm1176_vm0, %v474_v55  ;;  %6538 = vmatprep.mubr.msk.f32.mxu1 %vm1176_vm0, %v958_v56  ;;  %v968_v53 = vld [vmem:[%s6779_s5 + $0x18b8] sm:$0xff]  ;;  %v967_v62 = vld [vmem:[%s6779_s5 + $0x18b0] sm:$0xff] }
 0x285   : > { %v5208_v2 = vmax.f32 %v3166_v60, 0.0  ;;  %v5450_v3 = vmax.f32 %v4376_v61, 0.0  ;;  %v483_v61 = vld [vmem:[%s6779_s5 + $0x990] sm:$0xff] }
 0x286   : > { %v3170_v6 = vpop.f32.mrb[190].mxu0  ;;  %v4380_v7 = vpop.f32.mrb[190].mxu1 }
 0x287   : > { %5693 = vst.msk [vmem:[%s7189_s23 + $0x2f0] sm:$0xff] %vm5598_vm1, %v5208_v2  ;;  %5935 = vst.msk [vmem:[%s7189_s23 + $0xa80] sm:$0xff] %vm5598_vm1, %v5450_v3  ;;  %v3171_v8 = vadd.f32 %v8234_v59, %v3170_v6  ;;  %v4381_v9 = vadd.f32 %v8234_v59, %v4380_v7  ;;  %v3172_v10 = vpop.f32.mrb[191].mxu0  ;;  %3434 = vmatmul.mubr.f32.gmra.mrb[40].mxu0 %v473_v0  ;;  %v4382_v11 = vpop.f32.mrb[191].mxu1  ;;  %4644 = vmatmul.mubr.f32.gmra.mrb[40].mxu1 %v957_v1  ;;  %v486_v1 = vld [vmem:[%s6779_s5 + $0x9a8] sm:$0xff] }
 0x288   : > { %6297 = vmatprep.mubr.msk.f32.mxu0 %vm1176_vm0, %v476_v4  ;;  %6539 = vmatprep.mubr.msk.f32.mxu1 %vm1176_vm0, %v960_v5  ;;  %v970_v2 = vld [vmem:[%s6779_s5 + $0x18c8] sm:$0xff]  ;;  %v969_v10 = vld [vmem:[%s6779_s5 + $0x18c0] sm:$0xff] }
 0x289   : > { %v5209_v14 = vmax.f32 %v3171_v8, 0.0  ;;  %v5451_v15 = vmax.f32 %v4381_v9, 0.0  ;;  %v485_v9 = vld [vmem:[%s6779_s5 + $0x9a0] sm:$0xff] }
 0x28a   : > { %v3175_v18 = vpop.f32.mrb[192].mxu0  ;;  %v4385_v19 = vpop.f32.mrb[192].mxu1 }
 0x28b   : > { %5694 = vst.msk [vmem:[%s7189_s23 + $0x2f8] sm:$0xff] %vm5598_vm1, %v5209_v14  ;;  %5936 = vst.msk [vmem:[%s7189_s23 + $0xa88] sm:$0xff] %vm5598_vm1, %v5451_v15  ;;  %v3176_v20 = vadd.f32 %v8234_v59, %v3175_v18  ;;  %v4386_v21 = vadd.f32 %v8234_v59, %v4385_v19  ;;  %v3177_v22 = vpop.f32.mrb[193].mxu0  ;;  %3439 = vmatmul.mubr.f32.gmra.mrb[42].mxu0 %v475_v12  ;;  %v4387_v23 = vpop.f32.mrb[193].mxu1  ;;  %4649 = vmatmul.mubr.f32.gmra.mrb[42].mxu1 %v959_v13  ;;  %v488_v13 = vld [vmem:[%s6779_s5 + $0x9b8] sm:$0xff] }
 0x28c   : > { %6298 = vmatprep.mubr.msk.f32.mxu0 %vm1176_vm0, %v478_v16  ;;  %6540 = vmatprep.mubr.msk.f32.mxu1 %vm1176_vm0, %v962_v17  ;;  %v972_v14 = vld [vmem:[%s6779_s5 + $0x18d8] sm:$0xff]  ;;  %v971_v22 = vld [vmem:[%s6779_s5 + $0x18d0] sm:$0xff] }
 0x28d   : > { %v5210_v26 = vmax.f32 %v3176_v20, 0.0  ;;  %v5452_v27 = vmax.f32 %v4386_v21, 0.0  ;;  %v487_v21 = vld [vmem:[%s6779_s5 + $0x9b0] sm:$0xff] }
 0x28e   : > { %v3180_v30 = vpop.f32.mrb[194].mxu0  ;;  %v4390_v31 = vpop.f32.mrb[194].mxu1 }
 0x28f   : > { %5695 = vst.msk [vmem:[%s7189_s23 + $0x300] sm:$0xff] %vm5598_vm1, %v5210_v26  ;;  %5937 = vst.msk [vmem:[%s7189_s23 + $0xa90] sm:$0xff] %vm5598_vm1, %v5452_v27  ;;  %v3181_v32 = vadd.f32 %v8234_v59, %v3180_v30  ;;  %v4391_v33 = vadd.f32 %v8234_v59, %v4390_v31  ;;  %v3182_v34 = vpop.f32.mrb[195].mxu0  ;;  %3444 = vmatmul.mubr.f32.gmra.mrb[44].mxu0 %v477_v24  ;;  %v4392_v35 = vpop.f32.mrb[195].mxu1  ;;  %4654 = vmatmul.mubr.f32.gmra.mrb[44].mxu1 %v961_v25  ;;  %v490_v25 = vld [vmem:[%s6779_s5 + $0x9c8] sm:$0xff] }
 0x290   : > { %6299 = vmatprep.mubr.msk.f32.mxu0 %vm1176_vm0, %v480_v28  ;;  %6541 = vmatprep.mubr.msk.f32.mxu1 %vm1176_vm0, %v964_v29  ;;  %v974_v26 = vld [vmem:[%s6779_s5 + $0x18e8] sm:$0xff]  ;;  %v973_v34 = vld [vmem:[%s6779_s5 + $0x18e0] sm:$0xff] }
 0x291   : > { %v5211_v38 = vmax.f32 %v3181_v32, 0.0  ;;  %v5453_v39 = vmax.f32 %v4391_v33, 0.0  ;;  %v489_v33 = vld [vmem:[%s6779_s5 + $0x9c0] sm:$0xff] }
 0x292   : > { %v3185_v42 = vpop.f32.mrb[196].mxu0  ;;  %v4395_v43 = vpop.f32.mrb[196].mxu1 }
 0x293   : > { %5696 = vst.msk [vmem:[%s7189_s23 + $0x308] sm:$0xff] %vm5598_vm1, %v5211_v38  ;;  %5938 = vst.msk [vmem:[%s7189_s23 + $0xa98] sm:$0xff] %vm5598_vm1, %v5453_v39  ;;  %v3186_v44 = vadd.f32 %v8234_v59, %v3185_v42  ;;  %v4396_v45 = vadd.f32 %v8234_v59, %v4395_v43  ;;  %v3187_v46 = vpop.f32.mrb[197].mxu0  ;;  %3449 = vmatmul.mubr.f32.gmra.mrb[46].mxu0 %v479_v36  ;;  %v4397_v47 = vpop.f32.mrb[197].mxu1  ;;  %4659 = vmatmul.mubr.f32.gmra.mrb[46].mxu1 %v963_v37  ;;  %v492_v37 = vld [vmem:[%s6779_s5 + $0x9d8] sm:$0xff] }
 0x294   : > { %6300 = vmatprep.mubr.msk.f32.mxu0 %vm1176_vm0, %v482_v40  ;;  %6542 = vmatprep.mubr.msk.f32.mxu1 %vm1176_vm0, %v966_v41  ;;  %v976_v38 = vld [vmem:[%s6779_s5 + $0x18f8] sm:$0xff]  ;;  %v975_v46 = vld [vmem:[%s6779_s5 + $0x18f0] sm:$0xff] }
 0x295   : > { %v5212_v50 = vmax.f32 %v3186_v44, 0.0  ;;  %v5454_v51 = vmax.f32 %v4396_v45, 0.0  ;;  %v491_v45 = vld [vmem:[%s6779_s5 + $0x9d0] sm:$0xff] }
 0x296   : > { %v3190_v54 = vpop.f32.mrb[198].mxu0  ;;  %v4400_v55 = vpop.f32.mrb[198].mxu1 }
 0x297   : > { %5697 = vst.msk [vmem:[%s7189_s23 + $0x310] sm:$0xff] %vm5598_vm1, %v5212_v50  ;;  %5939 = vst.msk [vmem:[%s7189_s23 + $0xaa0] sm:$0xff] %vm5598_vm1, %v5454_v51  ;;  %v3191_v56 = vadd.f32 %v8234_v59, %v3190_v54  ;;  %v4401_v57 = vadd.f32 %v8234_v59, %v4400_v55  ;;  %v3192_v58 = vpop.f32.mrb[199].mxu0  ;;  %3454 = vmatmul.mubr.f32.gmra.mrb[48].mxu0 %v481_v48  ;;  %v4402_v60 = vpop.f32.mrb[199].mxu1  ;;  %4664 = vmatmul.mubr.f32.gmra.mrb[48].mxu1 %v965_v49  ;;  %v494_v49 = vld [vmem:[%s6779_s5 + $0x9e8] sm:$0xff] }
 0x298   : > { %6301 = vmatprep.mubr.msk.f32.mxu0 %vm1176_vm0, %v484_v52  ;;  %6543 = vmatprep.mubr.msk.f32.mxu1 %vm1176_vm0, %v968_v53  ;;  %v978_v50 = vld [vmem:[%s6779_s5 + $0x1908] sm:$0xff]  ;;  %v977_v58 = vld [vmem:[%s6779_s5 + $0x1900] sm:$0xff] }
 0x299   : > { %v5213_v63 = vmax.f32 %v3191_v56, 0.0  ;;  %v5455_v0 = vmax.f32 %v4401_v57, 0.0  ;;  %v493_v57 = vld [vmem:[%s6779_s5 + $0x9e0] sm:$0xff] }
 0x29a   : > { %v3195_v3 = vpop.f32.mrb[200].mxu0  ;;  %v4405_v4 = vpop.f32.mrb[200].mxu1 }
 0x29b   : > { %5698 = vst.msk [vmem:[%s7189_s23 + $0x318] sm:$0xff] %vm5598_vm1, %v5213_v63  ;;  %5940 = vst.msk [vmem:[%s7189_s23 + $0xaa8] sm:$0xff] %vm5598_vm1, %v5455_v0  ;;  %v3196_v5 = vadd.f32 %v8234_v59, %v3195_v3  ;;  %v4406_v6 = vadd.f32 %v8234_v59, %v4405_v4  ;;  %v3197_v7 = vpop.f32.mrb[201].mxu0  ;;  %3459 = vmatmul.mubr.f32.gmra.mrb[50].mxu0 %v483_v61  ;;  %v4407_v8 = vpop.f32.mrb[201].mxu1  ;;  %4669 = vmatmul.mubr.f32.gmra.mrb[50].mxu1 %v967_v62  ;;  %v496_v62 = vld [vmem:[%s6779_s5 + $0x9f8] sm:$0xff] }
 0x29c   : > { %6302 = vmatprep.mubr.msk.f32.mxu0 %vm1176_vm0, %v486_v1  ;;  %6544 = vmatprep.mubr.msk.f32.mxu1 %vm1176_vm0, %v970_v2  ;;  %v980_v63 = vld [vmem:[%s6779_s5 + $0x1918] sm:$0xff]  ;;  %v979_v7 = vld [vmem:[%s6779_s5 + $0x1910] sm:$0xff] }
 0x29d   : > { %v5214_v11 = vmax.f32 %v3196_v5, 0.0  ;;  %v5456_v12 = vmax.f32 %v4406_v6, 0.0  ;;  %v495_v6 = vld [vmem:[%s6779_s5 + $0x9f0] sm:$0xff] }
 0x29e   : > { %v3200_v15 = vpop.f32.mrb[202].mxu0  ;;  %v4410_v16 = vpop.f32.mrb[202].mxu1 }
 0x29f   : > { %5699 = vst.msk [vmem:[%s7189_s23 + $0x320] sm:$0xff] %vm5598_vm1, %v5214_v11  ;;  %5941 = vst.msk [vmem:[%s7189_s23 + $0xab0] sm:$0xff] %vm5598_vm1, %v5456_v12  ;;  %v3201_v17 = vadd.f32 %v8234_v59, %v3200_v15  ;;  %v4411_v18 = vadd.f32 %v8234_v59, %v4410_v16  ;;  %v3202_v19 = vpop.f32.mrb[203].mxu0  ;;  %3464 = vmatmul.mubr.f32.gmra.mrb[52].mxu0 %v485_v9  ;;  %v4412_v20 = vpop.f32.mrb[203].mxu1  ;;  %4674 = vmatmul.mubr.f32.gmra.mrb[52].mxu1 %v969_v10  ;;  %v498_v10 = vld [vmem:[%s6779_s5 + $0xa08] sm:$0xff] }
 0x2a0   : > { %6303 = vmatprep.mubr.msk.f32.mxu0 %vm1176_vm0, %v488_v13  ;;  %6545 = vmatprep.mubr.msk.f32.mxu1 %vm1176_vm0, %v972_v14  ;;  %v982_v11 = vld [vmem:[%s6779_s5 + $0x1928] sm:$0xff]  ;;  %v981_v19 = vld [vmem:[%s6779_s5 + $0x1920] sm:$0xff] }
 0x2a1   : > { %v5215_v23 = vmax.f32 %v3201_v17, 0.0  ;;  %v5457_v24 = vmax.f32 %v4411_v18, 0.0  ;;  %v497_v18 = vld [vmem:[%s6779_s5 + $0xa00] sm:$0xff] }
 0x2a2   : > { %v3205_v27 = vpop.f32.mrb[204].mxu0  ;;  %v4415_v28 = vpop.f32.mrb[204].mxu1 }
 0x2a3   : > { %5700 = vst.msk [vmem:[%s7189_s23 + $0x328] sm:$0xff] %vm5598_vm1, %v5215_v23  ;;  %5942 = vst.msk [vmem:[%s7189_s23 + $0xab8] sm:$0xff] %vm5598_vm1, %v5457_v24  ;;  %v3206_v29 = vadd.f32 %v8234_v59, %v3205_v27  ;;  %v4416_v30 = vadd.f32 %v8234_v59, %v4415_v28  ;;  %v3207_v31 = vpop.f32.mrb[205].mxu0  ;;  %3469 = vmatmul.mubr.f32.gmra.mrb[54].mxu0 %v487_v21  ;;  %v4417_v32 = vpop.f32.mrb[205].mxu1  ;;  %4679 = vmatmul.mubr.f32.gmra.mrb[54].mxu1 %v971_v22  ;;  %v500_v22 = vld [vmem:[%s6779_s5 + $0xa18] sm:$0xff] }
 0x2a4   : > { %6304 = vmatprep.mubr.msk.f32.mxu0 %vm1176_vm0, %v490_v25  ;;  %6546 = vmatprep.mubr.msk.f32.mxu1 %vm1176_vm0, %v974_v26  ;;  %v984_v23 = vld [vmem:[%s6779_s5 + $0x1938] sm:$0xff]  ;;  %v983_v31 = vld [vmem:[%s6779_s5 + $0x1930] sm:$0xff] }
 0x2a5   : > { %v5216_v35 = vmax.f32 %v3206_v29, 0.0  ;;  %v5458_v36 = vmax.f32 %v4416_v30, 0.0  ;;  %v499_v30 = vld [vmem:[%s6779_s5 + $0xa10] sm:$0xff] }
 0x2a6   : > { %v3210_v39 = vpop.f32.mrb[206].mxu0  ;;  %v4420_v40 = vpop.f32.mrb[206].mxu1 }
 0x2a7   : > { %5701 = vst.msk [vmem:[%s7189_s23 + $0x330] sm:$0xff] %vm5598_vm1, %v5216_v35  ;;  %5943 = vst.msk [vmem:[%s7189_s23 + $0xac0] sm:$0xff] %vm5598_vm1, %v5458_v36  ;;  %v3211_v41 = vadd.f32 %v8234_v59, %v3210_v39  ;;  %v4421_v42 = vadd.f32 %v8234_v59, %v4420_v40  ;;  %v3212_v43 = vpop.f32.mrb[207].mxu0  ;;  %3474 = vmatmul.mubr.f32.gmra.mrb[56].mxu0 %v489_v33  ;;  %v4422_v44 = vpop.f32.mrb[207].mxu1  ;;  %4684 = vmatmul.mubr.f32.gmra.mrb[56].mxu1 %v973_v34  ;;  %v502_v34 = vld [vmem:[%s6779_s5 + $0xa28] sm:$0xff] }
 0x2a8   : > { %6305 = vmatprep.mubr.msk.f32.mxu0 %vm1176_vm0, %v492_v37  ;;  %6547 = vmatprep.mubr.msk.f32.mxu1 %vm1176_vm0, %v976_v38  ;;  %v986_v35 = vld [vmem:[%s6779_s5 + $0x1948] sm:$0xff]  ;;  %v985_v43 = vld [vmem:[%s6779_s5 + $0x1940] sm:$0xff] }
 0x2a9   : > { %v5217_v47 = vmax.f32 %v3211_v41, 0.0  ;;  %v5459_v48 = vmax.f32 %v4421_v42, 0.0  ;;  %v501_v42 = vld [vmem:[%s6779_s5 + $0xa20] sm:$0xff] }
 0x2aa   : > { %v3215_v51 = vpop.f32.mrb[208].mxu0  ;;  %v4425_v52 = vpop.f32.mrb[208].mxu1 }
 0x2ab   : > { %5702 = vst.msk [vmem:[%s7189_s23 + $0x338] sm:$0xff] %vm5598_vm1, %v5217_v47  ;;  %5944 = vst.msk [vmem:[%s7189_s23 + $0xac8] sm:$0xff] %vm5598_vm1, %v5459_v48  ;;  %v3216_v53 = vadd.f32 %v8234_v59, %v3215_v51  ;;  %v4426_v54 = vadd.f32 %v8234_v59, %v4425_v52  ;;  %v3217_v55 = vpop.f32.mrb[209].mxu0  ;;  %3479 = vmatmul.mubr.f32.gmra.mrb[58].mxu0 %v491_v45  ;;  %v4427_v56 = vpop.f32.mrb[209].mxu1  ;;  %4689 = vmatmul.mubr.f32.gmra.mrb[58].mxu1 %v975_v46  ;;  %v504_v46 = vld [vmem:[%s6779_s5 + $0xa38] sm:$0xff] }
 0x2ac   : > { %6306 = vmatprep.mubr.msk.f32.mxu0 %vm1176_vm0, %v494_v49  ;;  %6548 = vmatprep.mubr.msk.f32.mxu1 %vm1176_vm0, %v978_v50  ;;  %v988_v47 = vld [vmem:[%s6779_s5 + $0x1958] sm:$0xff]  ;;  %v987_v55 = vld [vmem:[%s6779_s5 + $0x1950] sm:$0xff] }
 0x2ad   : > { %v5218_v60 = vmax.f32 %v3216_v53, 0.0  ;;  %v5460_v61 = vmax.f32 %v4426_v54, 0.0  ;;  %v503_v54 = vld [vmem:[%s6779_s5 + $0xa30] sm:$0xff] }
 0x2ae   : > { %v3220_v0 = vpop.f32.mrb[210].mxu0  ;;  %v4430_v1 = vpop.f32.mrb[210].mxu1 }
 0x2af   : > { %5703 = vst.msk [vmem:[%s7189_s23 + $0x340] sm:$0xff] %vm5598_vm1, %v5218_v60  ;;  %5945 = vst.msk [vmem:[%s7189_s23 + $0xad0] sm:$0xff] %vm5598_vm1, %v5460_v61  ;;  %v3221_v2 = vadd.f32 %v8234_v59, %v3220_v0  ;;  %v4431_v3 = vadd.f32 %v8234_v59, %v4430_v1  ;;  %v3222_v4 = vpop.f32.mrb[211].mxu0  ;;  %3484 = vmatmul.mubr.f32.gmra.mrb[60].mxu0 %v493_v57  ;;  %v4432_v5 = vpop.f32.mrb[211].mxu1  ;;  %4694 = vmatmul.mubr.f32.gmra.mrb[60].mxu1 %v977_v58  ;;  %v506_v58 = vld [vmem:[%s6779_s5 + $0xa48] sm:$0xff] }
 0x2b0   : > { %6307 = vmatprep.mubr.msk.f32.mxu0 %vm1176_vm0, %v496_v62  ;;  %6549 = vmatprep.mubr.msk.f32.mxu1 %vm1176_vm0, %v980_v63  ;;  %v990_v60 = vld [vmem:[%s6779_s5 + $0x1968] sm:$0xff]  ;;  %v989_v4 = vld [vmem:[%s6779_s5 + $0x1960] sm:$0xff] }
 0x2b1   : > { %v5219_v8 = vmax.f32 %v3221_v2, 0.0  ;;  %v5461_v9 = vmax.f32 %v4431_v3, 0.0  ;;  %v505_v3 = vld [vmem:[%s6779_s5 + $0xa40] sm:$0xff] }
 0x2b2   : > { %v3225_v12 = vpop.f32.mrb[212].mxu0  ;;  %v4435_v13 = vpop.f32.mrb[212].mxu1 }
 0x2b3   : > { %5704 = vst.msk [vmem:[%s7189_s23 + $0x348] sm:$0xff] %vm5598_vm1, %v5219_v8  ;;  %5946 = vst.msk [vmem:[%s7189_s23 + $0xad8] sm:$0xff] %vm5598_vm1, %v5461_v9  ;;  %v3226_v14 = vadd.f32 %v8234_v59, %v3225_v12  ;;  %v4436_v15 = vadd.f32 %v8234_v59, %v4435_v13  ;;  %v3227_v16 = vpop.f32.mrb[213].mxu0  ;;  %3489 = vmatmul.mubr.f32.gmra.mrb[62].mxu0 %v495_v6  ;;  %v4437_v17 = vpop.f32.mrb[213].mxu1  ;;  %4699 = vmatmul.mubr.f32.gmra.mrb[62].mxu1 %v979_v7  ;;  %v508_v7 = vld [vmem:[%s6779_s5 + $0xa58] sm:$0xff] }
 0x2b4   : > { %6308 = vmatprep.mubr.msk.f32.mxu0 %vm1176_vm0, %v498_v10  ;;  %6550 = vmatprep.mubr.msk.f32.mxu1 %vm1176_vm0, %v982_v11  ;;  %v992_v8 = vld [vmem:[%s6779_s5 + $0x1978] sm:$0xff]  ;;  %v991_v16 = vld [vmem:[%s6779_s5 + $0x1970] sm:$0xff] }
 0x2b5   : > { %v5220_v20 = vmax.f32 %v3226_v14, 0.0  ;;  %v5462_v21 = vmax.f32 %v4436_v15, 0.0  ;;  %v507_v15 = vld [vmem:[%s6779_s5 + $0xa50] sm:$0xff] }
 0x2b6   : > { %v3230_v24 = vpop.f32.mrb[214].mxu0  ;;  %v4440_v25 = vpop.f32.mrb[214].mxu1 }
 0x2b7   : > { %5705 = vst.msk [vmem:[%s7189_s23 + $0x350] sm:$0xff] %vm5598_vm1, %v5220_v20  ;;  %5947 = vst.msk [vmem:[%s7189_s23 + $0xae0] sm:$0xff] %vm5598_vm1, %v5462_v21  ;;  %v3231_v26 = vadd.f32 %v8234_v59, %v3230_v24  ;;  %v4441_v27 = vadd.f32 %v8234_v59, %v4440_v25  ;;  %v3232_v28 = vpop.f32.mrb[215].mxu0  ;;  %3494 = vmatmul.mubr.f32.gmra.mrb[64].mxu0 %v497_v18  ;;  %v4442_v29 = vpop.f32.mrb[215].mxu1  ;;  %4704 = vmatmul.mubr.f32.gmra.mrb[64].mxu1 %v981_v19  ;;  %v510_v19 = vld [vmem:[%s6779_s5 + $0xa68] sm:$0xff] }
 0x2b8   : > { %6309 = vmatprep.mubr.msk.f32.mxu0 %vm1176_vm0, %v500_v22  ;;  %6551 = vmatprep.mubr.msk.f32.mxu1 %vm1176_vm0, %v984_v23  ;;  %v994_v20 = vld [vmem:[%s6779_s5 + $0x1988] sm:$0xff]  ;;  %v993_v28 = vld [vmem:[%s6779_s5 + $0x1980] sm:$0xff] }
 0x2b9   : > { %v5221_v32 = vmax.f32 %v3231_v26, 0.0  ;;  %v5463_v33 = vmax.f32 %v4441_v27, 0.0  ;;  %v509_v27 = vld [vmem:[%s6779_s5 + $0xa60] sm:$0xff] }
 0x2ba   : > { %v3235_v36 = vpop.f32.mrb[216].mxu0  ;;  %v4445_v37 = vpop.f32.mrb[216].mxu1 }
 0x2bb   : > { %5706 = vst.msk [vmem:[%s7189_s23 + $0x358] sm:$0xff] %vm5598_vm1, %v5221_v32  ;;  %5948 = vst.msk [vmem:[%s7189_s23 + $0xae8] sm:$0xff] %vm5598_vm1, %v5463_v33  ;;  %v3236_v38 = vadd.f32 %v8234_v59, %v3235_v36  ;;  %v4446_v39 = vadd.f32 %v8234_v59, %v4445_v37  ;;  %v3237_v40 = vpop.f32.mrb[217].mxu0  ;;  %3499 = vmatmul.mubr.f32.gmra.mrb[66].mxu0 %v499_v30  ;;  %v4447_v41 = vpop.f32.mrb[217].mxu1  ;;  %4709 = vmatmul.mubr.f32.gmra.mrb[66].mxu1 %v983_v31  ;;  %v512_v31 = vld [vmem:[%s6779_s5 + $0xa78] sm:$0xff] }
 0x2bc   : > { %6310 = vmatprep.mubr.msk.f32.mxu0 %vm1176_vm0, %v502_v34  ;;  %6552 = vmatprep.mubr.msk.f32.mxu1 %vm1176_vm0, %v986_v35  ;;  %v996_v32 = vld [vmem:[%s6779_s5 + $0x1998] sm:$0xff]  ;;  %v995_v40 = vld [vmem:[%s6779_s5 + $0x1990] sm:$0xff] }
 0x2bd   : > { %v5222_v44 = vmax.f32 %v3236_v38, 0.0  ;;  %v5464_v45 = vmax.f32 %v4446_v39, 0.0  ;;  %v511_v39 = vld [vmem:[%s6779_s5 + $0xa70] sm:$0xff] }
 0x2be   : > { %v3240_v48 = vpop.f32.mrb[218].mxu0  ;;  %v4450_v49 = vpop.f32.mrb[218].mxu1 }
 0x2bf   : > { %5707 = vst.msk [vmem:[%s7189_s23 + $0x360] sm:$0xff] %vm5598_vm1, %v5222_v44  ;;  %5949 = vst.msk [vmem:[%s7189_s23 + $0xaf0] sm:$0xff] %vm5598_vm1, %v5464_v45  ;;  %v3241_v50 = vadd.f32 %v8234_v59, %v3240_v48  ;;  %v4451_v51 = vadd.f32 %v8234_v59, %v4450_v49  ;;  %v3242_v52 = vpop.f32.mrb[219].mxu0  ;;  %3504 = vmatmul.mubr.f32.gmra.mrb[68].mxu0 %v501_v42  ;;  %v4452_v53 = vpop.f32.mrb[219].mxu1  ;;  %4714 = vmatmul.mubr.f32.gmra.mrb[68].mxu1 %v985_v43  ;;  %v514_v43 = vld [vmem:[%s6779_s5 + $0xa88] sm:$0xff] }
 0x2c0   : > { %6311 = vmatprep.mubr.msk.f32.mxu0 %vm1176_vm0, %v504_v46  ;;  %6553 = vmatprep.mubr.msk.f32.mxu1 %vm1176_vm0, %v988_v47  ;;  %v998_v44 = vld [vmem:[%s6779_s5 + $0x19a8] sm:$0xff]  ;;  %v997_v52 = vld [vmem:[%s6779_s5 + $0x19a0] sm:$0xff] }
 0x2c1   : > { %v5223_v56 = vmax.f32 %v3241_v50, 0.0  ;;  %v5465_v57 = vmax.f32 %v4451_v51, 0.0  ;;  %v513_v51 = vld [vmem:[%s6779_s5 + $0xa80] sm:$0xff] }
 0x2c2   : > { %v3245_v61 = vpop.f32.mrb[220].mxu0  ;;  %v4455_v62 = vpop.f32.mrb[220].mxu1 }
 0x2c3   : > { %5708 = vst.msk [vmem:[%s7189_s23 + $0x368] sm:$0xff] %vm5598_vm1, %v5223_v56  ;;  %5950 = vst.msk [vmem:[%s7189_s23 + $0xaf8] sm:$0xff] %vm5598_vm1, %v5465_v57  ;;  %v3246_v63 = vadd.f32 %v8234_v59, %v3245_v61  ;;  %v4456_v0 = vadd.f32 %v8234_v59, %v4455_v62  ;;  %v3247_v1 = vpop.f32.mrb[221].mxu0  ;;  %3509 = vmatmul.mubr.f32.gmra.mrb[70].mxu0 %v503_v54  ;;  %v4457_v2 = vpop.f32.mrb[221].mxu1  ;;  %4719 = vmatmul.mubr.f32.gmra.mrb[70].mxu1 %v987_v55  ;;  %v516_v55 = vld [vmem:[%s6779_s5 + $0xa98] sm:$0xff] }
 0x2c4   : > { %6312 = vmatprep.mubr.msk.f32.mxu0 %vm1176_vm0, %v506_v58  ;;  %6554 = vmatprep.mubr.msk.f32.mxu1 %vm1176_vm0, %v990_v60  ;;  %v1000_v56 = vld [vmem:[%s6779_s5 + $0x19b8] sm:$0xff]  ;;  %v999_v1 = vld [vmem:[%s6779_s5 + $0x19b0] sm:$0xff] }
 0x2c5   : > { %v5224_v5 = vmax.f32 %v3246_v63, 0.0  ;;  %v5466_v6 = vmax.f32 %v4456_v0, 0.0  ;;  %v515_v0 = vld [vmem:[%s6779_s5 + $0xa90] sm:$0xff] }
 0x2c6   : > { %v3250_v9 = vpop.f32.mrb[222].mxu0  ;;  %v4460_v10 = vpop.f32.mrb[222].mxu1 }
 0x2c7   : > { %5709 = vst.msk [vmem:[%s7189_s23 + $0x370] sm:$0xff] %vm5598_vm1, %v5224_v5  ;;  %5951 = vst.msk [vmem:[%s7189_s23 + $0xb00] sm:$0xff] %vm5598_vm1, %v5466_v6  ;;  %v3251_v11 = vadd.f32 %v8234_v59, %v3250_v9  ;;  %v4461_v12 = vadd.f32 %v8234_v59, %v4460_v10  ;;  %v3252_v13 = vpop.f32.mrb[223].mxu0  ;;  %3514 = vmatmul.mubr.f32.gmra.mrb[72].mxu0 %v505_v3  ;;  %v4462_v14 = vpop.f32.mrb[223].mxu1  ;;  %4724 = vmatmul.mubr.f32.gmra.mrb[72].mxu1 %v989_v4  ;;  %v518_v4 = vld [vmem:[%s6779_s5 + $0xaa8] sm:$0xff] }
 0x2c8   : > { %6313 = vmatprep.mubr.msk.f32.mxu0 %vm1176_vm0, %v508_v7  ;;  %6555 = vmatprep.mubr.msk.f32.mxu1 %vm1176_vm0, %v992_v8  ;;  %v1002_v5 = vld [vmem:[%s6779_s5 + $0x19c8] sm:$0xff]  ;;  %v1001_v13 = vld [vmem:[%s6779_s5 + $0x19c0] sm:$0xff] }
 0x2c9   : > { %v5225_v17 = vmax.f32 %v3251_v11, 0.0  ;;  %v5467_v18 = vmax.f32 %v4461_v12, 0.0  ;;  %v517_v12 = vld [vmem:[%s6779_s5 + $0xaa0] sm:$0xff] }
 0x2ca   : > { %v3255_v21 = vpop.f32.mrb[224].mxu0  ;;  %v4465_v22 = vpop.f32.mrb[224].mxu1 }
 0x2cb   : > { %5710 = vst.msk [vmem:[%s7189_s23 + $0x378] sm:$0xff] %vm5598_vm1, %v5225_v17  ;;  %5952 = vst.msk [vmem:[%s7189_s23 + $0xb08] sm:$0xff] %vm5598_vm1, %v5467_v18  ;;  %v3256_v23 = vadd.f32 %v8234_v59, %v3255_v21  ;;  %v4466_v24 = vadd.f32 %v8234_v59, %v4465_v22  ;;  %v3257_v25 = vpop.f32.mrb[225].mxu0  ;;  %3519 = vmatmul.mubr.f32.gmra.mrb[74].mxu0 %v507_v15  ;;  %v4467_v26 = vpop.f32.mrb[225].mxu1  ;;  %4729 = vmatmul.mubr.f32.gmra.mrb[74].mxu1 %v991_v16  ;;  %v520_v16 = vld [vmem:[%s6779_s5 + $0xab8] sm:$0xff] }
 0x2cc   : > { %6314 = vmatprep.mubr.msk.f32.mxu0 %vm1176_vm0, %v510_v19  ;;  %6556 = vmatprep.mubr.msk.f32.mxu1 %vm1176_vm0, %v994_v20  ;;  %v1004_v17 = vld [vmem:[%s6779_s5 + $0x19d8] sm:$0xff]  ;;  %v1003_v25 = vld [vmem:[%s6779_s5 + $0x19d0] sm:$0xff] }
 0x2cd   : > { %v5226_v29 = vmax.f32 %v3256_v23, 0.0  ;;  %v5468_v30 = vmax.f32 %v4466_v24, 0.0  ;;  %v519_v24 = vld [vmem:[%s6779_s5 + $0xab0] sm:$0xff] }
 0x2ce   : > { %v3260_v33 = vpop.f32.mrb[226].mxu0  ;;  %v4470_v34 = vpop.f32.mrb[226].mxu1 }
 0x2cf   : > { %5711 = vst.msk [vmem:[%s7189_s23 + $0x380] sm:$0xff] %vm5598_vm1, %v5226_v29  ;;  %5953 = vst.msk [vmem:[%s7189_s23 + $0xb10] sm:$0xff] %vm5598_vm1, %v5468_v30  ;;  %v3261_v35 = vadd.f32 %v8234_v59, %v3260_v33  ;;  %v4471_v36 = vadd.f32 %v8234_v59, %v4470_v34  ;;  %v3262_v37 = vpop.f32.mrb[227].mxu0  ;;  %3524 = vmatmul.mubr.f32.gmra.mrb[76].mxu0 %v509_v27  ;;  %v4472_v38 = vpop.f32.mrb[227].mxu1  ;;  %4734 = vmatmul.mubr.f32.gmra.mrb[76].mxu1 %v993_v28  ;;  %v522_v28 = vld [vmem:[%s6779_s5 + $0xac8] sm:$0xff] }
 0x2d0   : > { %6315 = vmatprep.mubr.msk.f32.mxu0 %vm1176_vm0, %v512_v31  ;;  %6557 = vmatprep.mubr.msk.f32.mxu1 %vm1176_vm0, %v996_v32  ;;  %v1006_v29 = vld [vmem:[%s6779_s5 + $0x19e8] sm:$0xff]  ;;  %v1005_v37 = vld [vmem:[%s6779_s5 + $0x19e0] sm:$0xff] }
 0x2d1   : > { %v5227_v41 = vmax.f32 %v3261_v35, 0.0  ;;  %v5469_v42 = vmax.f32 %v4471_v36, 0.0  ;;  %v521_v36 = vld [vmem:[%s6779_s5 + $0xac0] sm:$0xff] }
 0x2d2   : > { %v3265_v45 = vpop.f32.mrb[228].mxu0  ;;  %v4475_v46 = vpop.f32.mrb[228].mxu1 }
 0x2d3   : > { %5712 = vst.msk [vmem:[%s7189_s23 + $0x388] sm:$0xff] %vm5598_vm1, %v5227_v41  ;;  %5954 = vst.msk [vmem:[%s7189_s23 + $0xb18] sm:$0xff] %vm5598_vm1, %v5469_v42  ;;  %v3266_v47 = vadd.f32 %v8234_v59, %v3265_v45  ;;  %v4476_v48 = vadd.f32 %v8234_v59, %v4475_v46  ;;  %v3267_v49 = vpop.f32.mrb[229].mxu0  ;;  %3529 = vmatmul.mubr.f32.gmra.mrb[78].mxu0 %v511_v39  ;;  %v4477_v50 = vpop.f32.mrb[229].mxu1  ;;  %4739 = vmatmul.mubr.f32.gmra.mrb[78].mxu1 %v995_v40  ;;  %v8587_v59 = vld [vmem:[%s9807_s2] ss:$0 sm:$0xff] }
 0x2d4   : > { %6316 = vmatprep.mubr.msk.f32.mxu0 %vm1176_vm0, %v514_v43  ;;  %6558 = vmatprep.mubr.msk.f32.mxu1 %vm1176_vm0, %v998_v44  ;;  %v524_v40 = vld [vmem:[%s6779_s5 + $0xad8] sm:$0xff]  ;;  %v1007_v49 = vld [vmem:[%s6779_s5 + $0x19f0] sm:$0xff] }
 0x2d5   : > { %v5228_v53 = vmax.f32 %v3266_v47, 0.0  ;;  %v5470_v54 = vmax.f32 %v4476_v48, 0.0  ;;  %v1008_v41 = vld [vmem:[%s6779_s5 + $0x19f8] sm:$0xff]  ;;  %v523_v48 = vld [vmem:[%s6779_s5 + $0xad0] sm:$0xff] }
 0x2d6   : > { %v3270_v57 = vpop.f32.mrb[230].mxu0  ;;  %v4480_v58 = vpop.f32.mrb[230].mxu1 }
 0x2d7   : > { %5713 = vst.msk [vmem:[%s7189_s23 + $0x390] sm:$0xff] %vm5598_vm1, %v5228_v53  ;;  %5955 = vst.msk [vmem:[%s7189_s23 + $0xb20] sm:$0xff] %vm5598_vm1, %v5470_v54  ;;  %v3271_v60 = vadd.f32 %v8587_v59, %v3270_v57  ;;  %v4481_v61 = vadd.f32 %v8587_v59, %v4480_v58  ;;  %v3272_v62 = vpop.f32.mrb[231].mxu0  ;;  %3534 = vmatmul.mubr.f32.gmra.mrb[80].mxu0 %v513_v51  ;;  %v4482_v63 = vpop.f32.mrb[231].mxu1  ;;  %4744 = vmatmul.mubr.f32.gmra.mrb[80].mxu1 %v997_v52  ;;  %v526_v52 = vld [vmem:[%s6779_s5 + $0xae8] sm:$0xff] }
 0x2d8   : > { %6317 = vmatprep.mubr.msk.f32.mxu0 %vm1176_vm0, %v516_v55  ;;  %6559 = vmatprep.mubr.msk.f32.mxu1 %vm1176_vm0, %v1000_v56  ;;  %v1010_v53 = vld [vmem:[%s6779_s5 + $0x1a08] sm:$0xff]  ;;  %v1009_v62 = vld [vmem:[%s6779_s5 + $0x1a00] sm:$0xff] }
 0x2d9   : > { %v5229_v2 = vmax.f32 %v3271_v60, 0.0  ;;  %v5471_v3 = vmax.f32 %v4481_v61, 0.0  ;;  %v525_v61 = vld [vmem:[%s6779_s5 + $0xae0] sm:$0xff] }
 0x2da   : > { %v3275_v6 = vpop.f32.mrb[232].mxu0  ;;  %v4485_v7 = vpop.f32.mrb[232].mxu1 }
 0x2db   : > { %5714 = vst.msk [vmem:[%s7189_s23 + $0x398] sm:$0xff] %vm5598_vm1, %v5229_v2  ;;  %5956 = vst.msk [vmem:[%s7189_s23 + $0xb28] sm:$0xff] %vm5598_vm1, %v5471_v3  ;;  %v3276_v8 = vadd.f32 %v8587_v59, %v3275_v6  ;;  %v4486_v9 = vadd.f32 %v8587_v59, %v4485_v7  ;;  %v3277_v10 = vpop.f32.mrb[233].mxu0  ;;  %3539 = vmatmul.mubr.f32.gmra.mrb[82].mxu0 %v515_v0  ;;  %v4487_v11 = vpop.f32.mrb[233].mxu1  ;;  %4749 = vmatmul.mubr.f32.gmra.mrb[82].mxu1 %v999_v1  ;;  %v528_v1 = vld [vmem:[%s6779_s5 + $0xaf8] sm:$0xff] }
 0x2dc   : > { %6318 = vmatprep.mubr.msk.f32.mxu0 %vm1176_vm0, %v518_v4  ;;  %6560 = vmatprep.mubr.msk.f32.mxu1 %vm1176_vm0, %v1002_v5  ;;  %v1012_v2 = vld [vmem:[%s6779_s5 + $0x1a18] sm:$0xff]  ;;  %v1011_v10 = vld [vmem:[%s6779_s5 + $0x1a10] sm:$0xff] }
 0x2dd   : > { %v5230_v14 = vmax.f32 %v3276_v8, 0.0  ;;  %v5472_v15 = vmax.f32 %v4486_v9, 0.0  ;;  %v527_v9 = vld [vmem:[%s6779_s5 + $0xaf0] sm:$0xff] }
 0x2de   : > { %v3280_v18 = vpop.f32.mrb[234].mxu0  ;;  %v4490_v19 = vpop.f32.mrb[234].mxu1 }
 0x2df   : > { %5715 = vst.msk [vmem:[%s7189_s23 + $0x3a0] sm:$0xff] %vm5598_vm1, %v5230_v14  ;;  %5957 = vst.msk [vmem:[%s7189_s23 + $0xb30] sm:$0xff] %vm5598_vm1, %v5472_v15  ;;  %v3281_v20 = vadd.f32 %v8587_v59, %v3280_v18  ;;  %v4491_v21 = vadd.f32 %v8587_v59, %v4490_v19  ;;  %v3282_v22 = vpop.f32.mrb[235].mxu0  ;;  %3544 = vmatmul.mubr.f32.gmra.mrb[84].mxu0 %v517_v12  ;;  %v4492_v23 = vpop.f32.mrb[235].mxu1  ;;  %4754 = vmatmul.mubr.f32.gmra.mrb[84].mxu1 %v1001_v13  ;;  %v530_v13 = vld [vmem:[%s6779_s5 + $0xb08] sm:$0xff] }
 0x2e0   : > { %6319 = vmatprep.mubr.msk.f32.mxu0 %vm1176_vm0, %v520_v16  ;;  %6561 = vmatprep.mubr.msk.f32.mxu1 %vm1176_vm0, %v1004_v17  ;;  %v1014_v14 = vld [vmem:[%s6779_s5 + $0x1a28] sm:$0xff]  ;;  %v1013_v22 = vld [vmem:[%s6779_s5 + $0x1a20] sm:$0xff] }
 0x2e1   : > { %v5231_v26 = vmax.f32 %v3281_v20, 0.0  ;;  %v5473_v27 = vmax.f32 %v4491_v21, 0.0  ;;  %v529_v21 = vld [vmem:[%s6779_s5 + $0xb00] sm:$0xff] }
 0x2e2   : > { %v3285_v30 = vpop.f32.mrb[236].mxu0  ;;  %v4495_v31 = vpop.f32.mrb[236].mxu1 }
 0x2e3   : > { %5716 = vst.msk [vmem:[%s7189_s23 + $0x3a8] sm:$0xff] %vm5598_vm1, %v5231_v26  ;;  %5958 = vst.msk [vmem:[%s7189_s23 + $0xb38] sm:$0xff] %vm5598_vm1, %v5473_v27  ;;  %v3286_v32 = vadd.f32 %v8587_v59, %v3285_v30  ;;  %v4496_v33 = vadd.f32 %v8587_v59, %v4495_v31  ;;  %v3287_v34 = vpop.f32.mrb[237].mxu0  ;;  %3549 = vmatmul.mubr.f32.gmra.mrb[86].mxu0 %v519_v24  ;;  %v4497_v35 = vpop.f32.mrb[237].mxu1  ;;  %4759 = vmatmul.mubr.f32.gmra.mrb[86].mxu1 %v1003_v25  ;;  %v532_v25 = vld [vmem:[%s6779_s5 + $0xb18] sm:$0xff] }
 0x2e4   : > { %6320 = vmatprep.mubr.msk.f32.mxu0 %vm1176_vm0, %v522_v28  ;;  %6562 = vmatprep.mubr.msk.f32.mxu1 %vm1176_vm0, %v1006_v29  ;;  %v1016_v26 = vld [vmem:[%s6779_s5 + $0x1a38] sm:$0xff]  ;;  %v1015_v34 = vld [vmem:[%s6779_s5 + $0x1a30] sm:$0xff] }
 0x2e5   : > { %v5232_v38 = vmax.f32 %v3286_v32, 0.0  ;;  %v5474_v39 = vmax.f32 %v4496_v33, 0.0  ;;  %v531_v33 = vld [vmem:[%s6779_s5 + $0xb10] sm:$0xff] }
 0x2e6   : > { %v3290_v42 = vpop.f32.mrb[238].mxu0  ;;  %v4500_v43 = vpop.f32.mrb[238].mxu1 }
 0x2e7   : > { %5717 = vst.msk [vmem:[%s7189_s23 + $0x3b0] sm:$0xff] %vm5598_vm1, %v5232_v38  ;;  %5959 = vst.msk [vmem:[%s7189_s23 + $0xb40] sm:$0xff] %vm5598_vm1, %v5474_v39  ;;  %v3291_v44 = vadd.f32 %v8587_v59, %v3290_v42  ;;  %v4501_v45 = vadd.f32 %v8587_v59, %v4500_v43  ;;  %v3292_v46 = vpop.f32.mrb[239].mxu0  ;;  %3554 = vmatmul.mubr.f32.gmra.mrb[88].mxu0 %v521_v36  ;;  %v4502_v47 = vpop.f32.mrb[239].mxu1  ;;  %4764 = vmatmul.mubr.f32.gmra.mrb[88].mxu1 %v1005_v37  ;;  %v534_v37 = vld [vmem:[%s6779_s5 + $0xb28] sm:$0xff] }
 0x2e8   : > { %6321 = vmatprep.mubr.msk.f32.mxu0 %vm1176_vm0, %v524_v40  ;;  %6563 = vmatprep.mubr.msk.f32.mxu1 %vm1176_vm0, %v1008_v41  ;;  %v1018_v38 = vld [vmem:[%s6779_s5 + $0x1a48] sm:$0xff]  ;;  %v1017_v46 = vld [vmem:[%s6779_s5 + $0x1a40] sm:$0xff] }
 0x2e9   : > { %v5233_v50 = vmax.f32 %v3291_v44, 0.0  ;;  %v5475_v51 = vmax.f32 %v4501_v45, 0.0  ;;  %v533_v45 = vld [vmem:[%s6779_s5 + $0xb20] sm:$0xff] }
 0x2ea   : > { %v3295_v54 = vpop.f32.mrb[240].mxu0  ;;  %v4505_v55 = vpop.f32.mrb[240].mxu1 }
 0x2eb   : > { %5718 = vst.msk [vmem:[%s7189_s23 + $0x3b8] sm:$0xff] %vm5598_vm1, %v5233_v50  ;;  %5960 = vst.msk [vmem:[%s7189_s23 + $0xb48] sm:$0xff] %vm5598_vm1, %v5475_v51  ;;  %v3296_v56 = vadd.f32 %v8587_v59, %v3295_v54  ;;  %v4506_v57 = vadd.f32 %v8587_v59, %v4505_v55  ;;  %v3297_v58 = vpop.f32.mrb[241].mxu0  ;;  %3559 = vmatmul.mubr.f32.gmra.mrb[90].mxu0 %v523_v48  ;;  %v4507_v60 = vpop.f32.mrb[241].mxu1  ;;  %4769 = vmatmul.mubr.f32.gmra.mrb[90].mxu1 %v1007_v49  ;;  %v536_v49 = vld [vmem:[%s6779_s5 + $0xb38] sm:$0xff] }
 0x2ec   : > { %6322 = vmatprep.mubr.msk.f32.mxu0 %vm1176_vm0, %v526_v52  ;;  %6564 = vmatprep.mubr.msk.f32.mxu1 %vm1176_vm0, %v1010_v53  ;;  %v1020_v50 = vld [vmem:[%s6779_s5 + $0x1a58] sm:$0xff]  ;;  %v1019_v58 = vld [vmem:[%s6779_s5 + $0x1a50] sm:$0xff] }
 0x2ed   : > { %v5234_v63 = vmax.f32 %v3296_v56, 0.0  ;;  %v5476_v0 = vmax.f32 %v4506_v57, 0.0  ;;  %v535_v57 = vld [vmem:[%s6779_s5 + $0xb30] sm:$0xff] }
 0x2ee   : > { %v3300_v3 = vpop.f32.mrb[242].mxu0  ;;  %v4510_v4 = vpop.f32.mrb[242].mxu1 }
 0x2ef   : > { %5719 = vst.msk [vmem:[%s7189_s23 + $0x3c0] sm:$0xff] %vm5598_vm1, %v5234_v63  ;;  %5961 = vst.msk [vmem:[%s7189_s23 + $0xb50] sm:$0xff] %vm5598_vm1, %v5476_v0  ;;  %v3301_v5 = vadd.f32 %v8587_v59, %v3300_v3  ;;  %v4511_v6 = vadd.f32 %v8587_v59, %v4510_v4  ;;  %v3302_v7 = vpop.f32.mrb[243].mxu0  ;;  %3564 = vmatmul.mubr.f32.gmra.mrb[92].mxu0 %v525_v61  ;;  %v4512_v8 = vpop.f32.mrb[243].mxu1  ;;  %4774 = vmatmul.mubr.f32.gmra.mrb[92].mxu1 %v1009_v62  ;;  %v538_v62 = vld [vmem:[%s6779_s5 + $0xb48] sm:$0xff] }
 0x2f0   : > { %6323 = vmatprep.mubr.msk.f32.mxu0 %vm1176_vm0, %v528_v1  ;;  %6565 = vmatprep.mubr.msk.f32.mxu1 %vm1176_vm0, %v1012_v2  ;;  %v1022_v63 = vld [vmem:[%s6779_s5 + $0x1a68] sm:$0xff]  ;;  %v1021_v7 = vld [vmem:[%s6779_s5 + $0x1a60] sm:$0xff] }
 0x2f1   : > { %v5235_v11 = vmax.f32 %v3301_v5, 0.0  ;;  %v5477_v12 = vmax.f32 %v4511_v6, 0.0  ;;  %v537_v6 = vld [vmem:[%s6779_s5 + $0xb40] sm:$0xff] }
 0x2f2   : > { %v3305_v15 = vpop.f32.mrb[244].mxu0  ;;  %v4515_v16 = vpop.f32.mrb[244].mxu1 }
 0x2f3   : > { %5720 = vst.msk [vmem:[%s7189_s23 + $0x3c8] sm:$0xff] %vm5598_vm1, %v5235_v11  ;;  %5962 = vst.msk [vmem:[%s7189_s23 + $0xb58] sm:$0xff] %vm5598_vm1, %v5477_v12  ;;  %v3306_v17 = vadd.f32 %v8587_v59, %v3305_v15  ;;  %v4516_v18 = vadd.f32 %v8587_v59, %v4515_v16  ;;  %v3307_v19 = vpop.f32.mrb[245].mxu0  ;;  %3569 = vmatmul.mubr.f32.gmra.mrb[94].mxu0 %v527_v9  ;;  %v4517_v20 = vpop.f32.mrb[245].mxu1  ;;  %4779 = vmatmul.mubr.f32.gmra.mrb[94].mxu1 %v1011_v10  ;;  %v540_v10 = vld [vmem:[%s6779_s5 + $0xb58] sm:$0xff] }
 0x2f4   : > { %6324 = vmatprep.mubr.msk.f32.mxu0 %vm1176_vm0, %v530_v13  ;;  %6566 = vmatprep.mubr.msk.f32.mxu1 %vm1176_vm0, %v1014_v14  ;;  %v1024_v11 = vld [vmem:[%s6779_s5 + $0x1a78] sm:$0xff]  ;;  %v1023_v19 = vld [vmem:[%s6779_s5 + $0x1a70] sm:$0xff] }
 0x2f5   : > { %v5236_v23 = vmax.f32 %v3306_v17, 0.0  ;;  %v5478_v24 = vmax.f32 %v4516_v18, 0.0  ;;  %v539_v18 = vld [vmem:[%s6779_s5 + $0xb50] sm:$0xff] }
 0x2f6   : > { %v3310_v27 = vpop.f32.mrb[246].mxu0  ;;  %v4520_v28 = vpop.f32.mrb[246].mxu1 }
 0x2f7   : > { %5721 = vst.msk [vmem:[%s7189_s23 + $0x3d0] sm:$0xff] %vm5598_vm1, %v5236_v23  ;;  %5963 = vst.msk [vmem:[%s7189_s23 + $0xb60] sm:$0xff] %vm5598_vm1, %v5478_v24  ;;  %v3311_v29 = vadd.f32 %v8587_v59, %v3310_v27  ;;  %v4521_v30 = vadd.f32 %v8587_v59, %v4520_v28  ;;  %v3312_v31 = vpop.f32.mrb[247].mxu0  ;;  %3574 = vmatmul.mubr.f32.gmra.mrb[96].mxu0 %v529_v21  ;;  %v4522_v32 = vpop.f32.mrb[247].mxu1  ;;  %4784 = vmatmul.mubr.f32.gmra.mrb[96].mxu1 %v1013_v22  ;;  %v542_v22 = vld [vmem:[%s6779_s5 + $0xb68] sm:$0xff] }
 0x2f8   : > { %6325 = vmatprep.mubr.msk.f32.mxu0 %vm1176_vm0, %v532_v25  ;;  %6567 = vmatprep.mubr.msk.f32.mxu1 %vm1176_vm0, %v1016_v26  ;;  %v1026_v23 = vld [vmem:[%s6779_s5 + $0x1a88] sm:$0xff]  ;;  %v1025_v31 = vld [vmem:[%s6779_s5 + $0x1a80] sm:$0xff] }
 0x2f9   : > { %v5237_v35 = vmax.f32 %v3311_v29, 0.0  ;;  %v5479_v36 = vmax.f32 %v4521_v30, 0.0  ;;  %v541_v30 = vld [vmem:[%s6779_s5 + $0xb60] sm:$0xff] }
 0x2fa   : > { %v3315_v39 = vpop.f32.mrb[248].mxu0  ;;  %v4525_v40 = vpop.f32.mrb[248].mxu1 }
 0x2fb   : > { %5722 = vst.msk [vmem:[%s7189_s23 + $0x3d8] sm:$0xff] %vm5598_vm1, %v5237_v35  ;;  %5964 = vst.msk [vmem:[%s7189_s23 + $0xb68] sm:$0xff] %vm5598_vm1, %v5479_v36  ;;  %v3316_v41 = vadd.f32 %v8587_v59, %v3315_v39  ;;  %v4526_v42 = vadd.f32 %v8587_v59, %v4525_v40  ;;  %v3317_v43 = vpop.f32.mrb[249].mxu0  ;;  %3579 = vmatmul.mubr.f32.gmra.mrb[98].mxu0 %v531_v33  ;;  %v4527_v44 = vpop.f32.mrb[249].mxu1  ;;  %4789 = vmatmul.mubr.f32.gmra.mrb[98].mxu1 %v1015_v34  ;;  %v544_v34 = vld [vmem:[%s6779_s5 + $0xb78] sm:$0xff] }
 0x2fc   : > { %6326 = vmatprep.mubr.msk.f32.mxu0 %vm1176_vm0, %v534_v37  ;;  %6568 = vmatprep.mubr.msk.f32.mxu1 %vm1176_vm0, %v1018_v38  ;;  %v1028_v35 = vld [vmem:[%s6779_s5 + $0x1a98] sm:$0xff]  ;;  %v1027_v43 = vld [vmem:[%s6779_s5 + $0x1a90] sm:$0xff] }
 0x2fd   : > { %v5238_v47 = vmax.f32 %v3316_v41, 0.0  ;;  %v5480_v48 = vmax.f32 %v4526_v42, 0.0  ;;  %v543_v42 = vld [vmem:[%s6779_s5 + $0xb70] sm:$0xff] }
 0x2fe   : > { %v3320_v51 = vpop.f32.mrb[250].mxu0  ;;  %v4530_v52 = vpop.f32.mrb[250].mxu1 }
 0x2ff   : > { %5723 = vst.msk [vmem:[%s7189_s23 + $0x3e0] sm:$0xff] %vm5598_vm1, %v5238_v47  ;;  %5965 = vst.msk [vmem:[%s7189_s23 + $0xb70] sm:$0xff] %vm5598_vm1, %v5480_v48  ;;  %v3321_v53 = vadd.f32 %v8587_v59, %v3320_v51  ;;  %v4531_v54 = vadd.f32 %v8587_v59, %v4530_v52  ;;  %v3322_v55 = vpop.f32.mrb[251].mxu0  ;;  %3584 = vmatmul.mubr.f32.gmra.mrb[100].mxu0 %v533_v45  ;;  %v4532_v56 = vpop.f32.mrb[251].mxu1  ;;  %4794 = vmatmul.mubr.f32.gmra.mrb[100].mxu1 %v1017_v46  ;;  %v546_v46 = vld [vmem:[%s6779_s5 + $0xb88] sm:$0xff] }
 0x300   : > { %6327 = vmatprep.mubr.msk.f32.mxu0 %vm1176_vm0, %v536_v49  ;;  %6569 = vmatprep.mubr.msk.f32.mxu1 %vm1176_vm0, %v1020_v50  ;;  %v1030_v47 = vld [vmem:[%s6779_s5 + $0x1aa8] sm:$0xff]  ;;  %v1029_v55 = vld [vmem:[%s6779_s5 + $0x1aa0] sm:$0xff] }
 0x301   : > { %v5239_v60 = vmax.f32 %v3321_v53, 0.0  ;;  %v5481_v61 = vmax.f32 %v4531_v54, 0.0  ;;  %v545_v54 = vld [vmem:[%s6779_s5 + $0xb80] sm:$0xff] }
 0x302   : > { %v3325_v0 = vpop.f32.mrb[252].mxu0  ;;  %v4535_v1 = vpop.f32.mrb[252].mxu1 }
 0x303   : > { %5724 = vst.msk [vmem:[%s7189_s23 + $0x3e8] sm:$0xff] %vm5598_vm1, %v5239_v60  ;;  %5966 = vst.msk [vmem:[%s7189_s23 + $0xb78] sm:$0xff] %vm5598_vm1, %v5481_v61  ;;  %v3326_v2 = vadd.f32 %v8587_v59, %v3325_v0  ;;  %v4536_v3 = vadd.f32 %v8587_v59, %v4535_v1  ;;  %v3327_v4 = vpop.f32.mrb[253].mxu0  ;;  %3589 = vmatmul.mubr.f32.gmra.mrb[102].mxu0 %v535_v57  ;;  %v4537_v5 = vpop.f32.mrb[253].mxu1  ;;  %4799 = vmatmul.mubr.f32.gmra.mrb[102].mxu1 %v1019_v58  ;;  %v548_v58 = vld [vmem:[%s6779_s5 + $0xb98] sm:$0xff] }
 0x304   : > { %6328 = vmatprep.mubr.msk.f32.mxu0 %vm1176_vm0, %v538_v62  ;;  %6570 = vmatprep.mubr.msk.f32.mxu1 %vm1176_vm0, %v1022_v63  ;;  %v1032_v60 = vld [vmem:[%s6779_s5 + $0x1ab8] sm:$0xff]  ;;  %v1031_v4 = vld [vmem:[%s6779_s5 + $0x1ab0] sm:$0xff] }
 0x305   : > { %v5240_v8 = vmax.f32 %v3326_v2, 0.0  ;;  %v5482_v9 = vmax.f32 %v4536_v3, 0.0  ;;  %v547_v3 = vld [vmem:[%s6779_s5 + $0xb90] sm:$0xff] }
 0x306   : > { %v3330_v12 = vpop.f32.mrb[254].mxu0  ;;  %v4540_v13 = vpop.f32.mrb[254].mxu1 }
 0x307   : > { %5725 = vst.msk [vmem:[%s7189_s23 + $0x3f0] sm:$0xff] %vm5598_vm1, %v5240_v8  ;;  %5967 = vst.msk [vmem:[%s7189_s23 + $0xb80] sm:$0xff] %vm5598_vm1, %v5482_v9  ;;  %v3331_v14 = vadd.f32 %v8587_v59, %v3330_v12  ;;  %v4541_v15 = vadd.f32 %v8587_v59, %v4540_v13  ;;  %v3332_v16 = vpop.f32.mrb[255].mxu0  ;;  %3594 = vmatmul.mubr.f32.gmra.mrb[104].mxu0 %v537_v6  ;;  %v4542_v17 = vpop.f32.mrb[255].mxu1  ;;  %4804 = vmatmul.mubr.f32.gmra.mrb[104].mxu1 %v1021_v7  ;;  %v550_v7 = vld [vmem:[%s6779_s5 + $0xba8] sm:$0xff] }
 0x308   : > { %6329 = vmatprep.mubr.msk.f32.mxu0 %vm1176_vm0, %v540_v10  ;;  %6571 = vmatprep.mubr.msk.f32.mxu1 %vm1176_vm0, %v1024_v11  ;;  %v1034_v8 = vld [vmem:[%s6779_s5 + $0x1ac8] sm:$0xff]  ;;  %v1033_v16 = vld [vmem:[%s6779_s5 + $0x1ac0] sm:$0xff] }
 0x309   : > { %v5241_v20 = vmax.f32 %v3331_v14, 0.0  ;;  %v5483_v21 = vmax.f32 %v4541_v15, 0.0  ;;  %v549_v15 = vld [vmem:[%s6779_s5 + $0xba0] sm:$0xff] }
 0x30a   : > { %v3335_v24 = vpop.f32.mrb[0].mxu0  ;;  %v4545_v25 = vpop.f32.mrb[0].mxu1 }
 0x30b   : > { %5726 = vst.msk [vmem:[%s7189_s23 + $0x3f8] sm:$0xff] %vm5598_vm1, %v5241_v20  ;;  %5968 = vst.msk [vmem:[%s7189_s23 + $0xb88] sm:$0xff] %vm5598_vm1, %v5483_v21  ;;  %v3336_v26 = vadd.f32 %v8587_v59, %v3335_v24  ;;  %v4546_v27 = vadd.f32 %v8587_v59, %v4545_v25  ;;  %v3337_v28 = vpop.f32.mrb[1].mxu0  ;;  %3599 = vmatmul.mubr.f32.gmra.mrb[106].mxu0 %v539_v18  ;;  %v4547_v29 = vpop.f32.mrb[1].mxu1  ;;  %4809 = vmatmul.mubr.f32.gmra.mrb[106].mxu1 %v1023_v19  ;;  %v552_v19 = vld [vmem:[%s6779_s5 + $0xbb8] sm:$0xff] }
 0x30c   : > { %6330 = vmatprep.mubr.msk.f32.mxu0 %vm1176_vm0, %v542_v22  ;;  %6572 = vmatprep.mubr.msk.f32.mxu1 %vm1176_vm0, %v1026_v23  ;;  %v1036_v20 = vld [vmem:[%s6779_s5 + $0x1ad8] sm:$0xff]  ;;  %v1035_v28 = vld [vmem:[%s6779_s5 + $0x1ad0] sm:$0xff] }
 0x30d   : > { %v5242_v32 = vmax.f32 %v3336_v26, 0.0  ;;  %v5484_v33 = vmax.f32 %v4546_v27, 0.0  ;;  %v551_v27 = vld [vmem:[%s6779_s5 + $0xbb0] sm:$0xff] }
 0x30e   : > { %v3340_v36 = vpop.f32.mrb[2].mxu0  ;;  %v4550_v37 = vpop.f32.mrb[2].mxu1 }
 0x30f   : > { %5727 = vst.msk [vmem:[%s7189_s23 + $0x400] sm:$0xff] %vm5598_vm1, %v5242_v32  ;;  %5969 = vst.msk [vmem:[%s7189_s23 + $0xb90] sm:$0xff] %vm5598_vm1, %v5484_v33  ;;  %v3341_v38 = vadd.f32 %v8587_v59, %v3340_v36  ;;  %v4551_v39 = vadd.f32 %v8587_v59, %v4550_v37  ;;  %v3342_v40 = vpop.f32.mrb[3].mxu0  ;;  %3604 = vmatmul.mubr.f32.gmra.mrb[108].mxu0 %v541_v30  ;;  %v4552_v41 = vpop.f32.mrb[3].mxu1  ;;  %4814 = vmatmul.mubr.f32.gmra.mrb[108].mxu1 %v1025_v31  ;;  %v554_v31 = vld [vmem:[%s6779_s5 + $0xbc8] sm:$0xff] }
 0x310   : > { %6331 = vmatprep.mubr.msk.f32.mxu0 %vm1176_vm0, %v544_v34  ;;  %6573 = vmatprep.mubr.msk.f32.mxu1 %vm1176_vm0, %v1028_v35  ;;  %v1038_v32 = vld [vmem:[%s6779_s5 + $0x1ae8] sm:$0xff]  ;;  %v1037_v40 = vld [vmem:[%s6779_s5 + $0x1ae0] sm:$0xff] }
 0x311   : > { %v5243_v44 = vmax.f32 %v3341_v38, 0.0  ;;  %v5485_v45 = vmax.f32 %v4551_v39, 0.0  ;;  %v553_v39 = vld [vmem:[%s6779_s5 + $0xbc0] sm:$0xff] }
 0x312   : > { %v3345_v48 = vpop.f32.mrb[4].mxu0  ;;  %v4555_v49 = vpop.f32.mrb[4].mxu1 }
 0x313   : > { %5728 = vst.msk [vmem:[%s7189_s23 + $0x408] sm:$0xff] %vm5598_vm1, %v5243_v44  ;;  %5970 = vst.msk [vmem:[%s7189_s23 + $0xb98] sm:$0xff] %vm5598_vm1, %v5485_v45  ;;  %v3346_v50 = vadd.f32 %v8587_v59, %v3345_v48  ;;  %v4556_v51 = vadd.f32 %v8587_v59, %v4555_v49  ;;  %v3347_v52 = vpop.f32.mrb[5].mxu0  ;;  %3609 = vmatmul.mubr.f32.gmra.mrb[110].mxu0 %v543_v42  ;;  %v4557_v53 = vpop.f32.mrb[5].mxu1  ;;  %4819 = vmatmul.mubr.f32.gmra.mrb[110].mxu1 %v1027_v43  ;;  %v556_v43 = vld [vmem:[%s6779_s5 + $0xbd8] sm:$0xff] }
 0x314   : > { %6332 = vmatprep.mubr.msk.f32.mxu0 %vm1176_vm0, %v546_v46  ;;  %6574 = vmatprep.mubr.msk.f32.mxu1 %vm1176_vm0, %v1030_v47  ;;  %v1040_v44 = vld [vmem:[%s6779_s5 + $0x1af8] sm:$0xff]  ;;  %v1039_v52 = vld [vmem:[%s6779_s5 + $0x1af0] sm:$0xff] }
 0x315   : > { %v5244_v56 = vmax.f32 %v3346_v50, 0.0  ;;  %v5486_v57 = vmax.f32 %v4556_v51, 0.0  ;;  %v555_v51 = vld [vmem:[%s6779_s5 + $0xbd0] sm:$0xff] }
 0x316   : > { %v3350_v61 = vpop.f32.mrb[6].mxu0  ;;  %v4560_v62 = vpop.f32.mrb[6].mxu1 }
 0x317   : > { %5729 = vst.msk [vmem:[%s7189_s23 + $0x410] sm:$0xff] %vm5598_vm1, %v5244_v56  ;;  %5971 = vst.msk [vmem:[%s7189_s23 + $0xba0] sm:$0xff] %vm5598_vm1, %v5486_v57  ;;  %v3351_v63 = vadd.f32 %v8587_v59, %v3350_v61  ;;  %v4561_v0 = vadd.f32 %v8587_v59, %v4560_v62  ;;  %v3352_v1 = vpop.f32.mrb[7].mxu0  ;;  %3614 = vmatmul.mubr.f32.gmra.mrb[112].mxu0 %v545_v54  ;;  %v4562_v2 = vpop.f32.mrb[7].mxu1  ;;  %4824 = vmatmul.mubr.f32.gmra.mrb[112].mxu1 %v1029_v55  ;;  %v558_v55 = vld [vmem:[%s6779_s5 + $0xbe8] sm:$0xff] }
 0x318   : > { %6333 = vmatprep.mubr.msk.f32.mxu0 %vm1176_vm0, %v548_v58  ;;  %6575 = vmatprep.mubr.msk.f32.mxu1 %vm1176_vm0, %v1032_v60  ;;  %v1042_v56 = vld [vmem:[%s6779_s5 + $0x1b08] sm:$0xff]  ;;  %v1041_v1 = vld [vmem:[%s6779_s5 + $0x1b00] sm:$0xff] }
 0x319   : > { %v5245_v5 = vmax.f32 %v3351_v63, 0.0  ;;  %v5487_v6 = vmax.f32 %v4561_v0, 0.0  ;;  %v557_v0 = vld [vmem:[%s6779_s5 + $0xbe0] sm:$0xff] }
 0x31a   : > { %v3355_v9 = vpop.f32.mrb[8].mxu0  ;;  %v4565_v10 = vpop.f32.mrb[8].mxu1 }
 0x31b   : > { %5730 = vst.msk [vmem:[%s7189_s23 + $0x418] sm:$0xff] %vm5598_vm1, %v5245_v5  ;;  %5972 = vst.msk [vmem:[%s7189_s23 + $0xba8] sm:$0xff] %vm5598_vm1, %v5487_v6  ;;  %v3356_v11 = vadd.f32 %v8587_v59, %v3355_v9  ;;  %v4566_v12 = vadd.f32 %v8587_v59, %v4565_v10  ;;  %v3357_v13 = vpop.f32.mrb[9].mxu0  ;;  %3619 = vmatmul.mubr.f32.gmra.mrb[114].mxu0 %v547_v3  ;;  %v4567_v14 = vpop.f32.mrb[9].mxu1  ;;  %4829 = vmatmul.mubr.f32.gmra.mrb[114].mxu1 %v1031_v4  ;;  %v560_v4 = vld [vmem:[%s6779_s5 + $0xbf8] sm:$0xff] }
 0x31c   : > { %6334 = vmatprep.mubr.msk.f32.mxu0 %vm1176_vm0, %v550_v7  ;;  %6576 = vmatprep.mubr.msk.f32.mxu1 %vm1176_vm0, %v1034_v8  ;;  %v1044_v5 = vld [vmem:[%s6779_s5 + $0x1b18] sm:$0xff]  ;;  %v1043_v13 = vld [vmem:[%s6779_s5 + $0x1b10] sm:$0xff] }
 0x31d   : > { %v5246_v17 = vmax.f32 %v3356_v11, 0.0  ;;  %v5488_v18 = vmax.f32 %v4566_v12, 0.0  ;;  %v559_v12 = vld [vmem:[%s6779_s5 + $0xbf0] sm:$0xff] }
 0x31e   : > { %v3360_v21 = vpop.f32.mrb[10].mxu0  ;;  %v4570_v22 = vpop.f32.mrb[10].mxu1 }
 0x31f   : > { %5731 = vst.msk [vmem:[%s7189_s23 + $0x420] sm:$0xff] %vm5598_vm1, %v5246_v17  ;;  %5973 = vst.msk [vmem:[%s7189_s23 + $0xbb0] sm:$0xff] %vm5598_vm1, %v5488_v18  ;;  %v3361_v23 = vadd.f32 %v8587_v59, %v3360_v21  ;;  %v4571_v24 = vadd.f32 %v8587_v59, %v4570_v22  ;;  %v3362_v25 = vpop.f32.mrb[11].mxu0  ;;  %3624 = vmatmul.mubr.f32.gmra.mrb[116].mxu0 %v549_v15  ;;  %v4572_v26 = vpop.f32.mrb[11].mxu1  ;;  %4834 = vmatmul.mubr.f32.gmra.mrb[116].mxu1 %v1033_v16  ;;  %v562_v16 = vld [vmem:[%s6779_s5 + $0xc08] sm:$0xff] }
 0x320   : > { %6335 = vmatprep.mubr.msk.f32.mxu0 %vm1176_vm0, %v552_v19  ;;  %6577 = vmatprep.mubr.msk.f32.mxu1 %vm1176_vm0, %v1036_v20  ;;  %v1046_v17 = vld [vmem:[%s6779_s5 + $0x1b28] sm:$0xff]  ;;  %v1045_v25 = vld [vmem:[%s6779_s5 + $0x1b20] sm:$0xff] }
 0x321   : > { %v5247_v29 = vmax.f32 %v3361_v23, 0.0  ;;  %v5489_v30 = vmax.f32 %v4571_v24, 0.0  ;;  %v561_v24 = vld [vmem:[%s6779_s5 + $0xc00] sm:$0xff] }
 0x322   : > { %v3365_v33 = vpop.f32.mrb[12].mxu0  ;;  %v4575_v34 = vpop.f32.mrb[12].mxu1 }
 0x323   : > { %5732 = vst.msk [vmem:[%s7189_s23 + $0x428] sm:$0xff] %vm5598_vm1, %v5247_v29  ;;  %5974 = vst.msk [vmem:[%s7189_s23 + $0xbb8] sm:$0xff] %vm5598_vm1, %v5489_v30  ;;  %v3366_v35 = vadd.f32 %v8587_v59, %v3365_v33  ;;  %v4576_v36 = vadd.f32 %v8587_v59, %v4575_v34  ;;  %v3367_v37 = vpop.f32.mrb[13].mxu0  ;;  %3629 = vmatmul.mubr.f32.gmra.mrb[118].mxu0 %v551_v27  ;;  %v4577_v38 = vpop.f32.mrb[13].mxu1  ;;  %4839 = vmatmul.mubr.f32.gmra.mrb[118].mxu1 %v1035_v28  ;;  %v564_v28 = vld [vmem:[%s6779_s5 + $0xc18] sm:$0xff] }
 0x324   : > { %6336 = vmatprep.mubr.msk.f32.mxu0 %vm1176_vm0, %v554_v31  ;;  %6578 = vmatprep.mubr.msk.f32.mxu1 %vm1176_vm0, %v1038_v32  ;;  %v1048_v29 = vld [vmem:[%s6779_s5 + $0x1b38] sm:$0xff]  ;;  %v1047_v37 = vld [vmem:[%s6779_s5 + $0x1b30] sm:$0xff] }
 0x325   : > { %v5248_v41 = vmax.f32 %v3366_v35, 0.0  ;;  %v5490_v42 = vmax.f32 %v4576_v36, 0.0  ;;  %v563_v36 = vld [vmem:[%s6779_s5 + $0xc10] sm:$0xff] }
 0x326   : > { %v3370_v45 = vpop.f32.mrb[14].mxu0  ;;  %v4580_v46 = vpop.f32.mrb[14].mxu1 }
 0x327   : > { %5733 = vst.msk [vmem:[%s7189_s23 + $0x430] sm:$0xff] %vm5598_vm1, %v5248_v41  ;;  %5975 = vst.msk [vmem:[%s7189_s23 + $0xbc0] sm:$0xff] %vm5598_vm1, %v5490_v42  ;;  %v3371_v47 = vadd.f32 %v8587_v59, %v3370_v45  ;;  %v4581_v48 = vadd.f32 %v8587_v59, %v4580_v46  ;;  %v3372_v49 = vpop.f32.mrb[15].mxu0  ;;  %3634 = vmatmul.mubr.f32.gmra.mrb[120].mxu0 %v553_v39  ;;  %v4582_v50 = vpop.f32.mrb[15].mxu1  ;;  %4844 = vmatmul.mubr.f32.gmra.mrb[120].mxu1 %v1037_v40  ;;  %v566_v40 = vld [vmem:[%s6779_s5 + $0xc28] sm:$0xff] }
 0x328   : > { %6337 = vmatprep.mubr.msk.f32.mxu0 %vm1176_vm0, %v556_v43  ;;  %6579 = vmatprep.mubr.msk.f32.mxu1 %vm1176_vm0, %v1040_v44  ;;  %v1050_v41 = vld [vmem:[%s6779_s5 + $0x1b48] sm:$0xff]  ;;  %v1049_v49 = vld [vmem:[%s6779_s5 + $0x1b40] sm:$0xff] }
 0x329   : > { %v5249_v53 = vmax.f32 %v3371_v47, 0.0  ;;  %v5491_v54 = vmax.f32 %v4581_v48, 0.0  ;;  %v565_v48 = vld [vmem:[%s6779_s5 + $0xc20] sm:$0xff] }
 0x32a   : > { %v3375_v57 = vpop.f32.mrb[16].mxu0  ;;  %v4585_v58 = vpop.f32.mrb[16].mxu1 }
 0x32b   : > { %5734 = vst.msk [vmem:[%s7189_s23 + $0x438] sm:$0xff] %vm5598_vm1, %v5249_v53  ;;  %5976 = vst.msk [vmem:[%s7189_s23 + $0xbc8] sm:$0xff] %vm5598_vm1, %v5491_v54  ;;  %v3376_v60 = vadd.f32 %v8587_v59, %v3375_v57  ;;  %v4586_v61 = vadd.f32 %v8587_v59, %v4585_v58  ;;  %v3377_v62 = vpop.f32.mrb[17].mxu0  ;;  %3639 = vmatmul.mubr.f32.gmra.mrb[122].mxu0 %v555_v51  ;;  %v4587_v63 = vpop.f32.mrb[17].mxu1  ;;  %4849 = vmatmul.mubr.f32.gmra.mrb[122].mxu1 %v1039_v52  ;;  %v568_v52 = vld [vmem:[%s6779_s5 + $0xc38] sm:$0xff] }
 0x32c   : > { %6338 = vmatprep.mubr.msk.f32.mxu0 %vm1176_vm0, %v558_v55  ;;  %6580 = vmatprep.mubr.msk.f32.mxu1 %vm1176_vm0, %v1042_v56  ;;  %v1052_v53 = vld [vmem:[%s6779_s5 + $0x1b58] sm:$0xff]  ;;  %v1051_v62 = vld [vmem:[%s6779_s5 + $0x1b50] sm:$0xff] }
 0x32d   : > { %v5250_v2 = vmax.f32 %v3376_v60, 0.0  ;;  %v5492_v3 = vmax.f32 %v4586_v61, 0.0  ;;  %v567_v61 = vld [vmem:[%s6779_s5 + $0xc30] sm:$0xff] }
 0x32e   : > { %v3380_v6 = vpop.f32.mrb[18].mxu0  ;;  %v4590_v7 = vpop.f32.mrb[18].mxu1 }
 0x32f   : > { %5735 = vst.msk [vmem:[%s7189_s23 + $0x440] sm:$0xff] %vm5598_vm1, %v5250_v2  ;;  %5977 = vst.msk [vmem:[%s7189_s23 + $0xbd0] sm:$0xff] %vm5598_vm1, %v5492_v3  ;;  %v3381_v8 = vadd.f32 %v8587_v59, %v3380_v6  ;;  %v4591_v9 = vadd.f32 %v8587_v59, %v4590_v7  ;;  %v3382_v10 = vpop.f32.mrb[19].mxu0  ;;  %3644 = vmatmul.mubr.f32.gmra.mrb[124].mxu0 %v557_v0  ;;  %v4592_v11 = vpop.f32.mrb[19].mxu1  ;;  %4854 = vmatmul.mubr.f32.gmra.mrb[124].mxu1 %v1041_v1  ;;  %v570_v1 = vld [vmem:[%s6779_s5 + $0xc48] sm:$0xff] }
 0x330   : > { %6339 = vmatprep.mubr.msk.f32.mxu0 %vm1176_vm0, %v560_v4  ;;  %6581 = vmatprep.mubr.msk.f32.mxu1 %vm1176_vm0, %v1044_v5  ;;  %v1054_v2 = vld [vmem:[%s6779_s5 + $0x1b68] sm:$0xff]  ;;  %v1053_v10 = vld [vmem:[%s6779_s5 + $0x1b60] sm:$0xff] }
 0x331   : > { %v5251_v14 = vmax.f32 %v3381_v8, 0.0  ;;  %v5493_v15 = vmax.f32 %v4591_v9, 0.0  ;;  %v569_v9 = vld [vmem:[%s6779_s5 + $0xc40] sm:$0xff] }
 0x332   : > { %v3385_v18 = vpop.f32.mrb[20].mxu0  ;;  %v4595_v19 = vpop.f32.mrb[20].mxu1 }
 0x333   : > { %5736 = vst.msk [vmem:[%s7189_s23 + $0x448] sm:$0xff] %vm5598_vm1, %v5251_v14  ;;  %5978 = vst.msk [vmem:[%s7189_s23 + $0xbd8] sm:$0xff] %vm5598_vm1, %v5493_v15  ;;  %v3386_v20 = vadd.f32 %v8587_v59, %v3385_v18  ;;  %v4596_v21 = vadd.f32 %v8587_v59, %v4595_v19  ;;  %v3387_v22 = vpop.f32.mrb[21].mxu0  ;;  %3649 = vmatmul.mubr.f32.gmra.mrb[126].mxu0 %v559_v12  ;;  %v4597_v23 = vpop.f32.mrb[21].mxu1  ;;  %4859 = vmatmul.mubr.f32.gmra.mrb[126].mxu1 %v1043_v13  ;;  %v572_v13 = vld [vmem:[%s6779_s5 + $0xc58] sm:$0xff] }
 0x334   : > { %6340 = vmatprep.mubr.msk.f32.mxu0 %vm1176_vm0, %v562_v16  ;;  %6582 = vmatprep.mubr.msk.f32.mxu1 %vm1176_vm0, %v1046_v17  ;;  %v1056_v14 = vld [vmem:[%s6779_s5 + $0x1b78] sm:$0xff]  ;;  %v1055_v22 = vld [vmem:[%s6779_s5 + $0x1b70] sm:$0xff] }
 0x335   : > { %v5252_v26 = vmax.f32 %v3386_v20, 0.0  ;;  %v5494_v27 = vmax.f32 %v4596_v21, 0.0  ;;  %v571_v21 = vld [vmem:[%s6779_s5 + $0xc50] sm:$0xff] }
 0x336   : > { %v3390_v30 = vpop.f32.mrb[22].mxu0  ;;  %v4600_v31 = vpop.f32.mrb[22].mxu1 }
 0x337   : > { %5737 = vst.msk [vmem:[%s7189_s23 + $0x450] sm:$0xff] %vm5598_vm1, %v5252_v26  ;;  %5979 = vst.msk [vmem:[%s7189_s23 + $0xbe0] sm:$0xff] %vm5598_vm1, %v5494_v27  ;;  %v3391_v32 = vadd.f32 %v8587_v59, %v3390_v30  ;;  %v4601_v33 = vadd.f32 %v8587_v59, %v4600_v31  ;;  %v3392_v34 = vpop.f32.mrb[23].mxu0  ;;  %3654 = vmatmul.mubr.f32.gmra.mrb[128].mxu0 %v561_v24  ;;  %v4602_v35 = vpop.f32.mrb[23].mxu1  ;;  %4864 = vmatmul.mubr.f32.gmra.mrb[128].mxu1 %v1045_v25  ;;  %v574_v25 = vld [vmem:[%s6779_s5 + $0xc68] sm:$0xff] }
 0x338   : > { %6341 = vmatprep.mubr.msk.f32.mxu0 %vm1176_vm0, %v564_v28  ;;  %6583 = vmatprep.mubr.msk.f32.mxu1 %vm1176_vm0, %v1048_v29  ;;  %v1058_v26 = vld [vmem:[%s6779_s5 + $0x1b88] sm:$0xff]  ;;  %v1057_v34 = vld [vmem:[%s6779_s5 + $0x1b80] sm:$0xff] }
 0x339   : > { %v5253_v38 = vmax.f32 %v3391_v32, 0.0  ;;  %v5495_v39 = vmax.f32 %v4601_v33, 0.0  ;;  %v573_v33 = vld [vmem:[%s6779_s5 + $0xc60] sm:$0xff] }
 0x33a   : > { %v3395_v42 = vpop.f32.mrb[24].mxu0  ;;  %v4605_v43 = vpop.f32.mrb[24].mxu1 }
 0x33b   : > { %5738 = vst.msk [vmem:[%s7189_s23 + $0x458] sm:$0xff] %vm5598_vm1, %v5253_v38  ;;  %5980 = vst.msk [vmem:[%s7189_s23 + $0xbe8] sm:$0xff] %vm5598_vm1, %v5495_v39  ;;  %v3396_v44 = vadd.f32 %v8587_v59, %v3395_v42  ;;  %v4606_v45 = vadd.f32 %v8587_v59, %v4605_v43  ;;  %v3397_v46 = vpop.f32.mrb[25].mxu0  ;;  %3659 = vmatmul.mubr.f32.gmra.mrb[130].mxu0 %v563_v36  ;;  %v4607_v47 = vpop.f32.mrb[25].mxu1  ;;  %4869 = vmatmul.mubr.f32.gmra.mrb[130].mxu1 %v1047_v37  ;;  %v576_v37 = vld [vmem:[%s6779_s5 + $0xc78] sm:$0xff] }
 0x33c   : > { %6342 = vmatprep.mubr.msk.f32.mxu0 %vm1176_vm0, %v566_v40  ;;  %6584 = vmatprep.mubr.msk.f32.mxu1 %vm1176_vm0, %v1050_v41  ;;  %v1060_v38 = vld [vmem:[%s6779_s5 + $0x1b98] sm:$0xff]  ;;  %v1059_v46 = vld [vmem:[%s6779_s5 + $0x1b90] sm:$0xff] }
 0x33d   : > { %v5254_v50 = vmax.f32 %v3396_v44, 0.0  ;;  %v5496_v51 = vmax.f32 %v4606_v45, 0.0  ;;  %v575_v45 = vld [vmem:[%s6779_s5 + $0xc70] sm:$0xff] }
 0x33e   : > { %v3400_v54 = vpop.f32.mrb[26].mxu0  ;;  %v4610_v55 = vpop.f32.mrb[26].mxu1 }
 0x33f   : > { %5739 = vst.msk [vmem:[%s7189_s23 + $0x460] sm:$0xff] %vm5598_vm1, %v5254_v50  ;;  %5981 = vst.msk [vmem:[%s7189_s23 + $0xbf0] sm:$0xff] %vm5598_vm1, %v5496_v51  ;;  %v3401_v56 = vadd.f32 %v8587_v59, %v3400_v54  ;;  %v4611_v57 = vadd.f32 %v8587_v59, %v4610_v55  ;;  %v3402_v58 = vpop.f32.mrb[27].mxu0  ;;  %3664 = vmatmul.mubr.f32.gmra.mrb[132].mxu0 %v565_v48  ;;  %v4612_v60 = vpop.f32.mrb[27].mxu1  ;;  %4874 = vmatmul.mubr.f32.gmra.mrb[132].mxu1 %v1049_v49  ;;  %v578_v49 = vld [vmem:[%s6779_s5 + $0xc88] sm:$0xff] }
 0x340   : > { %6343 = vmatprep.mubr.msk.f32.mxu0 %vm1176_vm0, %v568_v52  ;;  %6585 = vmatprep.mubr.msk.f32.mxu1 %vm1176_vm0, %v1052_v53  ;;  %v1062_v50 = vld [vmem:[%s6779_s5 + $0x1ba8] sm:$0xff]  ;;  %v1061_v58 = vld [vmem:[%s6779_s5 + $0x1ba0] sm:$0xff] }
 0x341   : > { %v5255_v63 = vmax.f32 %v3401_v56, 0.0  ;;  %v5497_v0 = vmax.f32 %v4611_v57, 0.0  ;;  %v577_v57 = vld [vmem:[%s6779_s5 + $0xc80] sm:$0xff] }
 0x342   : > { %v3405_v3 = vpop.f32.mrb[28].mxu0  ;;  %v4615_v4 = vpop.f32.mrb[28].mxu1 }
 0x343   : > { %5740 = vst.msk [vmem:[%s7189_s23 + $0x468] sm:$0xff] %vm5598_vm1, %v5255_v63  ;;  %5982 = vst.msk [vmem:[%s7189_s23 + $0xbf8] sm:$0xff] %vm5598_vm1, %v5497_v0  ;;  %v3406_v5 = vadd.f32 %v8587_v59, %v3405_v3  ;;  %v4616_v6 = vadd.f32 %v8587_v59, %v4615_v4  ;;  %v3407_v7 = vpop.f32.mrb[29].mxu0  ;;  %3669 = vmatmul.mubr.f32.gmra.mrb[134].mxu0 %v567_v61  ;;  %v4617_v8 = vpop.f32.mrb[29].mxu1  ;;  %4879 = vmatmul.mubr.f32.gmra.mrb[134].mxu1 %v1051_v62  ;;  %v580_v62 = vld [vmem:[%s6779_s5 + $0xc98] sm:$0xff] }
 0x344   : > { %6344 = vmatprep.mubr.msk.f32.mxu0 %vm1176_vm0, %v570_v1  ;;  %6586 = vmatprep.mubr.msk.f32.mxu1 %vm1176_vm0, %v1054_v2  ;;  %v1064_v63 = vld [vmem:[%s6779_s5 + $0x1bb8] sm:$0xff]  ;;  %v1063_v7 = vld [vmem:[%s6779_s5 + $0x1bb0] sm:$0xff] }
 0x345   : > { %v5256_v11 = vmax.f32 %v3406_v5, 0.0  ;;  %v5498_v12 = vmax.f32 %v4616_v6, 0.0  ;;  %v579_v6 = vld [vmem:[%s6779_s5 + $0xc90] sm:$0xff] }
 0x346   : > { %v3410_v15 = vpop.f32.mrb[30].mxu0  ;;  %v4620_v16 = vpop.f32.mrb[30].mxu1 }
 0x347   : > { %5741 = vst.msk [vmem:[%s7189_s23 + $0x470] sm:$0xff] %vm5598_vm1, %v5256_v11  ;;  %5983 = vst.msk [vmem:[%s7189_s23 + $0xc00] sm:$0xff] %vm5598_vm1, %v5498_v12  ;;  %v3411_v17 = vadd.f32 %v8587_v59, %v3410_v15  ;;  %v4621_v18 = vadd.f32 %v8587_v59, %v4620_v16  ;;  %v3412_v19 = vpop.f32.mrb[31].mxu0  ;;  %3674 = vmatmul.mubr.f32.gmra.mrb[136].mxu0 %v569_v9  ;;  %v4622_v20 = vpop.f32.mrb[31].mxu1  ;;  %4884 = vmatmul.mubr.f32.gmra.mrb[136].mxu1 %v1053_v10  ;;  %v8940_v59 = vld [vmem:[%s9807_s2] ss:$0 sm:$0xff] }
 0x348   : > { %6345 = vmatprep.mubr.msk.f32.mxu0 %vm1176_vm0, %v572_v13  ;;  %6587 = vmatprep.mubr.msk.f32.mxu1 %vm1176_vm0, %v1056_v14  ;;  %v582_v10 = vld [vmem:[%s6779_s5 + $0xca8] sm:$0xff]  ;;  %v1065_v19 = vld [vmem:[%s6779_s5 + $0x1bc0] sm:$0xff] }
 0x349   : > { %v5257_v23 = vmax.f32 %v3411_v17, 0.0  ;;  %v5499_v24 = vmax.f32 %v4621_v18, 0.0  ;;  %v1066_v11 = vld [vmem:[%s6779_s5 + $0x1bc8] sm:$0xff]  ;;  %v581_v18 = vld [vmem:[%s6779_s5 + $0xca0] sm:$0xff] }
 0x34a   : > { %v3415_v27 = vpop.f32.mrb[32].mxu0  ;;  %v4625_v28 = vpop.f32.mrb[32].mxu1 }
 0x34b   : > { %5742 = vst.msk [vmem:[%s7189_s23 + $0x478] sm:$0xff] %vm5598_vm1, %v5257_v23  ;;  %5984 = vst.msk [vmem:[%s7189_s23 + $0xc08] sm:$0xff] %vm5598_vm1, %v5499_v24  ;;  %v3416_v29 = vadd.f32 %v8940_v59, %v3415_v27  ;;  %v4626_v30 = vadd.f32 %v8940_v59, %v4625_v28  ;;  %v3417_v31 = vpop.f32.mrb[33].mxu0  ;;  %3679 = vmatmul.mubr.f32.gmra.mrb[138].mxu0 %v571_v21  ;;  %v4627_v32 = vpop.f32.mrb[33].mxu1  ;;  %4889 = vmatmul.mubr.f32.gmra.mrb[138].mxu1 %v1055_v22  ;;  %v584_v22 = vld [vmem:[%s6779_s5 + $0xcb8] sm:$0xff] }
 0x34c   : > { %6346 = vmatprep.mubr.msk.f32.mxu0 %vm1176_vm0, %v574_v25  ;;  %6588 = vmatprep.mubr.msk.f32.mxu1 %vm1176_vm0, %v1058_v26  ;;  %v1068_v23 = vld [vmem:[%s6779_s5 + $0x1bd8] sm:$0xff]  ;;  %v1067_v31 = vld [vmem:[%s6779_s5 + $0x1bd0] sm:$0xff] }
 0x34d   : > { %v5258_v35 = vmax.f32 %v3416_v29, 0.0  ;;  %v5500_v36 = vmax.f32 %v4626_v30, 0.0  ;;  %v583_v30 = vld [vmem:[%s6779_s5 + $0xcb0] sm:$0xff] }
 0x34e   : > { %v3420_v39 = vpop.f32.mrb[34].mxu0  ;;  %v4630_v40 = vpop.f32.mrb[34].mxu1 }
 0x34f   : > { %5743 = vst.msk [vmem:[%s7189_s23 + $0x480] sm:$0xff] %vm5598_vm1, %v5258_v35  ;;  %5985 = vst.msk [vmem:[%s7189_s23 + $0xc10] sm:$0xff] %vm5598_vm1, %v5500_v36  ;;  %v3421_v41 = vadd.f32 %v8940_v59, %v3420_v39  ;;  %v4631_v42 = vadd.f32 %v8940_v59, %v4630_v40  ;;  %v3422_v43 = vpop.f32.mrb[35].mxu0  ;;  %3684 = vmatmul.mubr.f32.gmra.mrb[140].mxu0 %v573_v33  ;;  %v4632_v44 = vpop.f32.mrb[35].mxu1  ;;  %4894 = vmatmul.mubr.f32.gmra.mrb[140].mxu1 %v1057_v34  ;;  %v586_v34 = vld [vmem:[%s6779_s5 + $0xcc8] sm:$0xff] }
 0x350   : > { %6347 = vmatprep.mubr.msk.f32.mxu0 %vm1176_vm0, %v576_v37  ;;  %6589 = vmatprep.mubr.msk.f32.mxu1 %vm1176_vm0, %v1060_v38  ;;  %v1070_v35 = vld [vmem:[%s6779_s5 + $0x1be8] sm:$0xff]  ;;  %v1069_v43 = vld [vmem:[%s6779_s5 + $0x1be0] sm:$0xff] }
 0x351   : > { %v5259_v47 = vmax.f32 %v3421_v41, 0.0  ;;  %v5501_v48 = vmax.f32 %v4631_v42, 0.0  ;;  %v585_v42 = vld [vmem:[%s6779_s5 + $0xcc0] sm:$0xff] }
 0x352   : > { %v3425_v51 = vpop.f32.mrb[36].mxu0  ;;  %v4635_v52 = vpop.f32.mrb[36].mxu1 }
 0x353   : > { %5744 = vst.msk [vmem:[%s7189_s23 + $0x488] sm:$0xff] %vm5598_vm1, %v5259_v47  ;;  %5986 = vst.msk [vmem:[%s7189_s23 + $0xc18] sm:$0xff] %vm5598_vm1, %v5501_v48  ;;  %v3426_v53 = vadd.f32 %v8940_v59, %v3425_v51  ;;  %v4636_v54 = vadd.f32 %v8940_v59, %v4635_v52  ;;  %v3427_v55 = vpop.f32.mrb[37].mxu0  ;;  %3689 = vmatmul.mubr.f32.gmra.mrb[142].mxu0 %v575_v45  ;;  %v4637_v56 = vpop.f32.mrb[37].mxu1  ;;  %4899 = vmatmul.mubr.f32.gmra.mrb[142].mxu1 %v1059_v46  ;;  %v588_v46 = vld [vmem:[%s6779_s5 + $0xcd8] sm:$0xff] }
 0x354   : > { %6348 = vmatprep.mubr.msk.f32.mxu0 %vm1176_vm0, %v578_v49  ;;  %6590 = vmatprep.mubr.msk.f32.mxu1 %vm1176_vm0, %v1062_v50  ;;  %v1072_v47 = vld [vmem:[%s6779_s5 + $0x1bf8] sm:$0xff]  ;;  %v1071_v55 = vld [vmem:[%s6779_s5 + $0x1bf0] sm:$0xff] }
 0x355   : > { %v5260_v60 = vmax.f32 %v3426_v53, 0.0  ;;  %v5502_v61 = vmax.f32 %v4636_v54, 0.0  ;;  %v587_v54 = vld [vmem:[%s6779_s5 + $0xcd0] sm:$0xff] }
 0x356   : > { %v3430_v0 = vpop.f32.mrb[38].mxu0  ;;  %v4640_v1 = vpop.f32.mrb[38].mxu1 }
 0x357   : > { %5745 = vst.msk [vmem:[%s7189_s23 + $0x490] sm:$0xff] %vm5598_vm1, %v5260_v60  ;;  %5987 = vst.msk [vmem:[%s7189_s23 + $0xc20] sm:$0xff] %vm5598_vm1, %v5502_v61  ;;  %v3431_v2 = vadd.f32 %v8940_v59, %v3430_v0  ;;  %v4641_v3 = vadd.f32 %v8940_v59, %v4640_v1  ;;  %v3432_v4 = vpop.f32.mrb[39].mxu0  ;;  %3694 = vmatmul.mubr.f32.gmra.mrb[144].mxu0 %v577_v57  ;;  %v4642_v5 = vpop.f32.mrb[39].mxu1  ;;  %4904 = vmatmul.mubr.f32.gmra.mrb[144].mxu1 %v1061_v58  ;;  %v590_v58 = vld [vmem:[%s6779_s5 + $0xce8] sm:$0xff] }
 0x358   : > { %6349 = vmatprep.mubr.msk.f32.mxu0 %vm1176_vm0, %v580_v62  ;;  %6591 = vmatprep.mubr.msk.f32.mxu1 %vm1176_vm0, %v1064_v63  ;;  %v1074_v60 = vld [vmem:[%s6779_s5 + $0x1c08] sm:$0xff]  ;;  %v1073_v4 = vld [vmem:[%s6779_s5 + $0x1c00] sm:$0xff] }
 0x359   : > { %v5261_v8 = vmax.f32 %v3431_v2, 0.0  ;;  %v5503_v9 = vmax.f32 %v4641_v3, 0.0  ;;  %v589_v3 = vld [vmem:[%s6779_s5 + $0xce0] sm:$0xff] }
 0x35a   : > { %v3435_v12 = vpop.f32.mrb[40].mxu0  ;;  %v4645_v13 = vpop.f32.mrb[40].mxu1 }
 0x35b   : > { %5746 = vst.msk [vmem:[%s7189_s23 + $0x498] sm:$0xff] %vm5598_vm1, %v5261_v8  ;;  %5988 = vst.msk [vmem:[%s7189_s23 + $0xc28] sm:$0xff] %vm5598_vm1, %v5503_v9  ;;  %v3436_v14 = vadd.f32 %v8940_v59, %v3435_v12  ;;  %v4646_v15 = vadd.f32 %v8940_v59, %v4645_v13  ;;  %v3437_v16 = vpop.f32.mrb[41].mxu0  ;;  %3699 = vmatmul.mubr.f32.gmra.mrb[146].mxu0 %v579_v6  ;;  %v4647_v17 = vpop.f32.mrb[41].mxu1  ;;  %4909 = vmatmul.mubr.f32.gmra.mrb[146].mxu1 %v1063_v7  ;;  %v592_v7 = vld [vmem:[%s6779_s5 + $0xcf8] sm:$0xff] }
 0x35c   : > { %6350 = vmatprep.mubr.msk.f32.mxu0 %vm1176_vm0, %v582_v10  ;;  %6592 = vmatprep.mubr.msk.f32.mxu1 %vm1176_vm0, %v1066_v11  ;;  %v1076_v8 = vld [vmem:[%s6779_s5 + $0x1c18] sm:$0xff]  ;;  %v1075_v16 = vld [vmem:[%s6779_s5 + $0x1c10] sm:$0xff] }
 0x35d   : > { %v5262_v20 = vmax.f32 %v3436_v14, 0.0  ;;  %v5504_v21 = vmax.f32 %v4646_v15, 0.0  ;;  %v591_v15 = vld [vmem:[%s6779_s5 + $0xcf0] sm:$0xff] }
 0x35e   : > { %v3440_v24 = vpop.f32.mrb[42].mxu0  ;;  %v4650_v25 = vpop.f32.mrb[42].mxu1 }
 0x35f   : > { %5747 = vst.msk [vmem:[%s7189_s23 + $0x4a0] sm:$0xff] %vm5598_vm1, %v5262_v20  ;;  %5989 = vst.msk [vmem:[%s7189_s23 + $0xc30] sm:$0xff] %vm5598_vm1, %v5504_v21  ;;  %v3441_v26 = vadd.f32 %v8940_v59, %v3440_v24  ;;  %v4651_v27 = vadd.f32 %v8940_v59, %v4650_v25  ;;  %v3442_v28 = vpop.f32.mrb[43].mxu0  ;;  %3704 = vmatmul.mubr.f32.gmra.mrb[148].mxu0 %v581_v18  ;;  %v4652_v29 = vpop.f32.mrb[43].mxu1  ;;  %4914 = vmatmul.mubr.f32.gmra.mrb[148].mxu1 %v1065_v19  ;;  %v594_v19 = vld [vmem:[%s6779_s5 + $0xd08] sm:$0xff] }
 0x360   : > { %6351 = vmatprep.mubr.msk.f32.mxu0 %vm1176_vm0, %v584_v22  ;;  %6593 = vmatprep.mubr.msk.f32.mxu1 %vm1176_vm0, %v1068_v23  ;;  %v1078_v20 = vld [vmem:[%s6779_s5 + $0x1c28] sm:$0xff]  ;;  %v1077_v28 = vld [vmem:[%s6779_s5 + $0x1c20] sm:$0xff] }
 0x361   : > { %v5263_v32 = vmax.f32 %v3441_v26, 0.0  ;;  %v5505_v33 = vmax.f32 %v4651_v27, 0.0  ;;  %v593_v27 = vld [vmem:[%s6779_s5 + $0xd00] sm:$0xff] }
 0x362   : > { %v3445_v36 = vpop.f32.mrb[44].mxu0  ;;  %v4655_v37 = vpop.f32.mrb[44].mxu1 }
 0x363   : > { %5748 = vst.msk [vmem:[%s7189_s23 + $0x4a8] sm:$0xff] %vm5598_vm1, %v5263_v32  ;;  %5990 = vst.msk [vmem:[%s7189_s23 + $0xc38] sm:$0xff] %vm5598_vm1, %v5505_v33  ;;  %v3446_v38 = vadd.f32 %v8940_v59, %v3445_v36  ;;  %v4656_v39 = vadd.f32 %v8940_v59, %v4655_v37  ;;  %v3447_v40 = vpop.f32.mrb[45].mxu0  ;;  %3709 = vmatmul.mubr.f32.gmra.mrb[150].mxu0 %v583_v30  ;;  %v4657_v41 = vpop.f32.mrb[45].mxu1  ;;  %4919 = vmatmul.mubr.f32.gmra.mrb[150].mxu1 %v1067_v31  ;;  %v596_v31 = vld [vmem:[%s6779_s5 + $0xd18] sm:$0xff] }
 0x364   : > { %6352 = vmatprep.mubr.msk.f32.mxu0 %vm1176_vm0, %v586_v34  ;;  %6594 = vmatprep.mubr.msk.f32.mxu1 %vm1176_vm0, %v1070_v35  ;;  %v1080_v32 = vld [vmem:[%s6779_s5 + $0x1c38] sm:$0xff]  ;;  %v1079_v40 = vld [vmem:[%s6779_s5 + $0x1c30] sm:$0xff] }
 0x365   : > { %v5264_v44 = vmax.f32 %v3446_v38, 0.0  ;;  %v5506_v45 = vmax.f32 %v4656_v39, 0.0  ;;  %v595_v39 = vld [vmem:[%s6779_s5 + $0xd10] sm:$0xff] }
 0x366   : > { %v3450_v48 = vpop.f32.mrb[46].mxu0  ;;  %v4660_v49 = vpop.f32.mrb[46].mxu1 }
 0x367   : > { %5749 = vst.msk [vmem:[%s7189_s23 + $0x4b0] sm:$0xff] %vm5598_vm1, %v5264_v44  ;;  %5991 = vst.msk [vmem:[%s7189_s23 + $0xc40] sm:$0xff] %vm5598_vm1, %v5506_v45  ;;  %v3451_v50 = vadd.f32 %v8940_v59, %v3450_v48  ;;  %v4661_v51 = vadd.f32 %v8940_v59, %v4660_v49  ;;  %v3452_v52 = vpop.f32.mrb[47].mxu0  ;;  %3714 = vmatmul.mubr.f32.gmra.mrb[152].mxu0 %v585_v42  ;;  %v4662_v53 = vpop.f32.mrb[47].mxu1  ;;  %4924 = vmatmul.mubr.f32.gmra.mrb[152].mxu1 %v1069_v43  ;;  %v598_v43 = vld [vmem:[%s6779_s5 + $0xd28] sm:$0xff] }
 0x368   : > { %6353 = vmatprep.mubr.msk.f32.mxu0 %vm1176_vm0, %v588_v46  ;;  %6595 = vmatprep.mubr.msk.f32.mxu1 %vm1176_vm0, %v1072_v47  ;;  %v1082_v44 = vld [vmem:[%s6779_s5 + $0x1c48] sm:$0xff]  ;;  %v1081_v52 = vld [vmem:[%s6779_s5 + $0x1c40] sm:$0xff] }
 0x369   : > { %v5265_v56 = vmax.f32 %v3451_v50, 0.0  ;;  %v5507_v57 = vmax.f32 %v4661_v51, 0.0  ;;  %v597_v51 = vld [vmem:[%s6779_s5 + $0xd20] sm:$0xff] }
 0x36a   : > { %v3455_v61 = vpop.f32.mrb[48].mxu0  ;;  %v4665_v62 = vpop.f32.mrb[48].mxu1 }
 0x36b   : > { %5750 = vst.msk [vmem:[%s7189_s23 + $0x4b8] sm:$0xff] %vm5598_vm1, %v5265_v56  ;;  %5992 = vst.msk [vmem:[%s7189_s23 + $0xc48] sm:$0xff] %vm5598_vm1, %v5507_v57  ;;  %v3456_v63 = vadd.f32 %v8940_v59, %v3455_v61  ;;  %v4666_v0 = vadd.f32 %v8940_v59, %v4665_v62  ;;  %v3457_v1 = vpop.f32.mrb[49].mxu0  ;;  %3719 = vmatmul.mubr.f32.gmra.mrb[154].mxu0 %v587_v54  ;;  %v4667_v2 = vpop.f32.mrb[49].mxu1  ;;  %4929 = vmatmul.mubr.f32.gmra.mrb[154].mxu1 %v1071_v55  ;;  %v600_v55 = vld [vmem:[%s6779_s5 + $0xd38] sm:$0xff] }
 0x36c   : > { %6354 = vmatprep.mubr.msk.f32.mxu0 %vm1176_vm0, %v590_v58  ;;  %6596 = vmatprep.mubr.msk.f32.mxu1 %vm1176_vm0, %v1074_v60  ;;  %v1084_v56 = vld [vmem:[%s6779_s5 + $0x1c58] sm:$0xff]  ;;  %v1083_v1 = vld [vmem:[%s6779_s5 + $0x1c50] sm:$0xff] }
 0x36d   : > { %v5266_v5 = vmax.f32 %v3456_v63, 0.0  ;;  %v5508_v6 = vmax.f32 %v4666_v0, 0.0  ;;  %v599_v0 = vld [vmem:[%s6779_s5 + $0xd30] sm:$0xff] }
 0x36e   : > { %v3460_v9 = vpop.f32.mrb[50].mxu0  ;;  %v4670_v10 = vpop.f32.mrb[50].mxu1 }
 0x36f   : > { %5751 = vst.msk [vmem:[%s7189_s23 + $0x4c0] sm:$0xff] %vm5598_vm1, %v5266_v5  ;;  %5993 = vst.msk [vmem:[%s7189_s23 + $0xc50] sm:$0xff] %vm5598_vm1, %v5508_v6  ;;  %v3461_v11 = vadd.f32 %v8940_v59, %v3460_v9  ;;  %v4671_v12 = vadd.f32 %v8940_v59, %v4670_v10  ;;  %v3462_v13 = vpop.f32.mrb[51].mxu0  ;;  %3724 = vmatmul.mubr.f32.gmra.mrb[156].mxu0 %v589_v3  ;;  %v4672_v14 = vpop.f32.mrb[51].mxu1  ;;  %4934 = vmatmul.mubr.f32.gmra.mrb[156].mxu1 %v1073_v4  ;;  %v602_v4 = vld [vmem:[%s6779_s5 + $0xd48] sm:$0xff] }
 0x370   : > { %6355 = vmatprep.mubr.msk.f32.mxu0 %vm1176_vm0, %v592_v7  ;;  %6597 = vmatprep.mubr.msk.f32.mxu1 %vm1176_vm0, %v1076_v8  ;;  %v1086_v5 = vld [vmem:[%s6779_s5 + $0x1c68] sm:$0xff]  ;;  %v1085_v13 = vld [vmem:[%s6779_s5 + $0x1c60] sm:$0xff] }
 0x371   : > { %v5267_v17 = vmax.f32 %v3461_v11, 0.0  ;;  %v5509_v18 = vmax.f32 %v4671_v12, 0.0  ;;  %v601_v12 = vld [vmem:[%s6779_s5 + $0xd40] sm:$0xff] }
 0x372   : > { %v3465_v21 = vpop.f32.mrb[52].mxu0  ;;  %v4675_v22 = vpop.f32.mrb[52].mxu1 }
 0x373   : > { %5752 = vst.msk [vmem:[%s7189_s23 + $0x4c8] sm:$0xff] %vm5598_vm1, %v5267_v17  ;;  %5994 = vst.msk [vmem:[%s7189_s23 + $0xc58] sm:$0xff] %vm5598_vm1, %v5509_v18  ;;  %v3466_v23 = vadd.f32 %v8940_v59, %v3465_v21  ;;  %v4676_v24 = vadd.f32 %v8940_v59, %v4675_v22  ;;  %v3467_v25 = vpop.f32.mrb[53].mxu0  ;;  %3729 = vmatmul.mubr.f32.gmra.mrb[158].mxu0 %v591_v15  ;;  %v4677_v26 = vpop.f32.mrb[53].mxu1  ;;  %4939 = vmatmul.mubr.f32.gmra.mrb[158].mxu1 %v1075_v16  ;;  %v604_v16 = vld [vmem:[%s6779_s5 + $0xd58] sm:$0xff] }
 0x374   : > { %6356 = vmatprep.mubr.msk.f32.mxu0 %vm1176_vm0, %v594_v19  ;;  %6598 = vmatprep.mubr.msk.f32.mxu1 %vm1176_vm0, %v1078_v20  ;;  %v1088_v17 = vld [vmem:[%s6779_s5 + $0x1c78] sm:$0xff]  ;;  %v1087_v25 = vld [vmem:[%s6779_s5 + $0x1c70] sm:$0xff] }
 0x375   : > { %v5268_v29 = vmax.f32 %v3466_v23, 0.0  ;;  %v5510_v30 = vmax.f32 %v4676_v24, 0.0  ;;  %v603_v24 = vld [vmem:[%s6779_s5 + $0xd50] sm:$0xff] }
 0x376   : > { %v3470_v33 = vpop.f32.mrb[54].mxu0  ;;  %v4680_v34 = vpop.f32.mrb[54].mxu1 }
 0x377   : > { %5753 = vst.msk [vmem:[%s7189_s23 + $0x4d0] sm:$0xff] %vm5598_vm1, %v5268_v29  ;;  %5995 = vst.msk [vmem:[%s7189_s23 + $0xc60] sm:$0xff] %vm5598_vm1, %v5510_v30  ;;  %v3471_v35 = vadd.f32 %v8940_v59, %v3470_v33  ;;  %v4681_v36 = vadd.f32 %v8940_v59, %v4680_v34  ;;  %v3472_v37 = vpop.f32.mrb[55].mxu0  ;;  %3734 = vmatmul.mubr.f32.gmra.mrb[160].mxu0 %v593_v27  ;;  %v4682_v38 = vpop.f32.mrb[55].mxu1  ;;  %4944 = vmatmul.mubr.f32.gmra.mrb[160].mxu1 %v1077_v28  ;;  %v606_v28 = vld [vmem:[%s6779_s5 + $0xd68] sm:$0xff] }
 0x378   : > { %6357 = vmatprep.mubr.msk.f32.mxu0 %vm1176_vm0, %v596_v31  ;;  %6599 = vmatprep.mubr.msk.f32.mxu1 %vm1176_vm0, %v1080_v32  ;;  %v1090_v29 = vld [vmem:[%s6779_s5 + $0x1c88] sm:$0xff]  ;;  %v1089_v37 = vld [vmem:[%s6779_s5 + $0x1c80] sm:$0xff] }
 0x379   : > { %v5269_v41 = vmax.f32 %v3471_v35, 0.0  ;;  %v5511_v42 = vmax.f32 %v4681_v36, 0.0  ;;  %v605_v36 = vld [vmem:[%s6779_s5 + $0xd60] sm:$0xff] }
 0x37a   : > { %v3475_v45 = vpop.f32.mrb[56].mxu0  ;;  %v4685_v46 = vpop.f32.mrb[56].mxu1 }
 0x37b   : > { %5754 = vst.msk [vmem:[%s7189_s23 + $0x4d8] sm:$0xff] %vm5598_vm1, %v5269_v41  ;;  %5996 = vst.msk [vmem:[%s7189_s23 + $0xc68] sm:$0xff] %vm5598_vm1, %v5511_v42  ;;  %v3476_v47 = vadd.f32 %v8940_v59, %v3475_v45  ;;  %v4686_v48 = vadd.f32 %v8940_v59, %v4685_v46  ;;  %v3477_v49 = vpop.f32.mrb[57].mxu0  ;;  %3739 = vmatmul.mubr.f32.gmra.mrb[162].mxu0 %v595_v39  ;;  %v4687_v50 = vpop.f32.mrb[57].mxu1  ;;  %4949 = vmatmul.mubr.f32.gmra.mrb[162].mxu1 %v1079_v40  ;;  %v608_v40 = vld [vmem:[%s6779_s5 + $0xd78] sm:$0xff] }
 0x37c   : > { %6358 = vmatprep.mubr.msk.f32.mxu0 %vm1176_vm0, %v598_v43  ;;  %6600 = vmatprep.mubr.msk.f32.mxu1 %vm1176_vm0, %v1082_v44  ;;  %v1092_v41 = vld [vmem:[%s6779_s5 + $0x1c98] sm:$0xff]  ;;  %v1091_v49 = vld [vmem:[%s6779_s5 + $0x1c90] sm:$0xff] }
 0x37d   : > { %v5270_v53 = vmax.f32 %v3476_v47, 0.0  ;;  %v5512_v54 = vmax.f32 %v4686_v48, 0.0  ;;  %v607_v48 = vld [vmem:[%s6779_s5 + $0xd70] sm:$0xff] }
 0x37e   : > { %v3480_v57 = vpop.f32.mrb[58].mxu0  ;;  %v4690_v58 = vpop.f32.mrb[58].mxu1 }
 0x37f   : > { %5755 = vst.msk [vmem:[%s7189_s23 + $0x4e0] sm:$0xff] %vm5598_vm1, %v5270_v53  ;;  %5997 = vst.msk [vmem:[%s7189_s23 + $0xc70] sm:$0xff] %vm5598_vm1, %v5512_v54  ;;  %v3481_v60 = vadd.f32 %v8940_v59, %v3480_v57  ;;  %v4691_v61 = vadd.f32 %v8940_v59, %v4690_v58  ;;  %v3482_v62 = vpop.f32.mrb[59].mxu0  ;;  %3744 = vmatmul.mubr.f32.gmra.mrb[164].mxu0 %v597_v51  ;;  %v4692_v63 = vpop.f32.mrb[59].mxu1  ;;  %4954 = vmatmul.mubr.f32.gmra.mrb[164].mxu1 %v1081_v52  ;;  %v610_v52 = vld [vmem:[%s6779_s5 + $0xd88] sm:$0xff] }
 0x380   : > { %6359 = vmatprep.mubr.msk.f32.mxu0 %vm1176_vm0, %v600_v55  ;;  %6601 = vmatprep.mubr.msk.f32.mxu1 %vm1176_vm0, %v1084_v56  ;;  %v1094_v53 = vld [vmem:[%s6779_s5 + $0x1ca8] sm:$0xff]  ;;  %v1093_v62 = vld [vmem:[%s6779_s5 + $0x1ca0] sm:$0xff] }
 0x381   : > { %v5271_v2 = vmax.f32 %v3481_v60, 0.0  ;;  %v5513_v3 = vmax.f32 %v4691_v61, 0.0  ;;  %v609_v61 = vld [vmem:[%s6779_s5 + $0xd80] sm:$0xff] }
 0x382   : > { %v3485_v6 = vpop.f32.mrb[60].mxu0  ;;  %v4695_v7 = vpop.f32.mrb[60].mxu1 }
 0x383   : > { %5756 = vst.msk [vmem:[%s7189_s23 + $0x4e8] sm:$0xff] %vm5598_vm1, %v5271_v2  ;;  %5998 = vst.msk [vmem:[%s7189_s23 + $0xc78] sm:$0xff] %vm5598_vm1, %v5513_v3  ;;  %v3486_v8 = vadd.f32 %v8940_v59, %v3485_v6  ;;  %v4696_v9 = vadd.f32 %v8940_v59, %v4695_v7  ;;  %v3487_v10 = vpop.f32.mrb[61].mxu0  ;;  %3749 = vmatmul.mubr.f32.gmra.mrb[166].mxu0 %v599_v0  ;;  %v4697_v11 = vpop.f32.mrb[61].mxu1  ;;  %4959 = vmatmul.mubr.f32.gmra.mrb[166].mxu1 %v1083_v1  ;;  %v612_v1 = vld [vmem:[%s6779_s5 + $0xd98] sm:$0xff] }
 0x384   : > { %6360 = vmatprep.mubr.msk.f32.mxu0 %vm1176_vm0, %v602_v4  ;;  %6602 = vmatprep.mubr.msk.f32.mxu1 %vm1176_vm0, %v1086_v5  ;;  %v1096_v2 = vld [vmem:[%s6779_s5 + $0x1cb8] sm:$0xff]  ;;  %v1095_v10 = vld [vmem:[%s6779_s5 + $0x1cb0] sm:$0xff] }
 0x385   : > { %v5272_v14 = vmax.f32 %v3486_v8, 0.0  ;;  %v5514_v15 = vmax.f32 %v4696_v9, 0.0  ;;  %v611_v9 = vld [vmem:[%s6779_s5 + $0xd90] sm:$0xff] }
 0x386   : > { %v3490_v18 = vpop.f32.mrb[62].mxu0  ;;  %v4700_v19 = vpop.f32.mrb[62].mxu1 }
 0x387   : > { %5757 = vst.msk [vmem:[%s7189_s23 + $0x4f0] sm:$0xff] %vm5598_vm1, %v5272_v14  ;;  %5999 = vst.msk [vmem:[%s7189_s23 + $0xc80] sm:$0xff] %vm5598_vm1, %v5514_v15  ;;  %v3491_v20 = vadd.f32 %v8940_v59, %v3490_v18  ;;  %v4701_v21 = vadd.f32 %v8940_v59, %v4700_v19  ;;  %v3492_v22 = vpop.f32.mrb[63].mxu0  ;;  %3754 = vmatmul.mubr.f32.gmra.mrb[168].mxu0 %v601_v12  ;;  %v4702_v23 = vpop.f32.mrb[63].mxu1  ;;  %4964 = vmatmul.mubr.f32.gmra.mrb[168].mxu1 %v1085_v13  ;;  %v614_v13 = vld [vmem:[%s6779_s5 + $0xda8] sm:$0xff] }
 0x388   : > { %6361 = vmatprep.mubr.msk.f32.mxu0 %vm1176_vm0, %v604_v16  ;;  %6603 = vmatprep.mubr.msk.f32.mxu1 %vm1176_vm0, %v1088_v17  ;;  %v1098_v14 = vld [vmem:[%s6779_s5 + $0x1cc8] sm:$0xff]  ;;  %v1097_v22 = vld [vmem:[%s6779_s5 + $0x1cc0] sm:$0xff] }
 0x389   : > { %v5273_v26 = vmax.f32 %v3491_v20, 0.0  ;;  %v5515_v27 = vmax.f32 %v4701_v21, 0.0  ;;  %v613_v21 = vld [vmem:[%s6779_s5 + $0xda0] sm:$0xff] }
 0x38a   : > { %v3495_v30 = vpop.f32.mrb[64].mxu0  ;;  %v4705_v31 = vpop.f32.mrb[64].mxu1 }
 0x38b   : > { %5758 = vst.msk [vmem:[%s7189_s23 + $0x4f8] sm:$0xff] %vm5598_vm1, %v5273_v26  ;;  %6000 = vst.msk [vmem:[%s7189_s23 + $0xc88] sm:$0xff] %vm5598_vm1, %v5515_v27  ;;  %v3496_v32 = vadd.f32 %v8940_v59, %v3495_v30  ;;  %v4706_v33 = vadd.f32 %v8940_v59, %v4705_v31  ;;  %v3497_v34 = vpop.f32.mrb[65].mxu0  ;;  %3759 = vmatmul.mubr.f32.gmra.mrb[170].mxu0 %v603_v24  ;;  %v4707_v35 = vpop.f32.mrb[65].mxu1  ;;  %4969 = vmatmul.mubr.f32.gmra.mrb[170].mxu1 %v1087_v25  ;;  %v616_v25 = vld [vmem:[%s6779_s5 + $0xdb8] sm:$0xff] }
 0x38c   : > { %6362 = vmatprep.mubr.msk.f32.mxu0 %vm1176_vm0, %v606_v28  ;;  %6604 = vmatprep.mubr.msk.f32.mxu1 %vm1176_vm0, %v1090_v29  ;;  %v1100_v26 = vld [vmem:[%s6779_s5 + $0x1cd8] sm:$0xff]  ;;  %v1099_v34 = vld [vmem:[%s6779_s5 + $0x1cd0] sm:$0xff] }
 0x38d   : > { %v5274_v38 = vmax.f32 %v3496_v32, 0.0  ;;  %v5516_v39 = vmax.f32 %v4706_v33, 0.0  ;;  %v615_v33 = vld [vmem:[%s6779_s5 + $0xdb0] sm:$0xff] }
 0x38e   : > { %v3500_v42 = vpop.f32.mrb[66].mxu0  ;;  %v4710_v43 = vpop.f32.mrb[66].mxu1 }
 0x38f   : > { %5759 = vst.msk [vmem:[%s7189_s23 + $0x500] sm:$0xff] %vm5598_vm1, %v5274_v38  ;;  %6001 = vst.msk [vmem:[%s7189_s23 + $0xc90] sm:$0xff] %vm5598_vm1, %v5516_v39  ;;  %v3501_v44 = vadd.f32 %v8940_v59, %v3500_v42  ;;  %v4711_v45 = vadd.f32 %v8940_v59, %v4710_v43  ;;  %v3502_v46 = vpop.f32.mrb[67].mxu0  ;;  %3764 = vmatmul.mubr.f32.gmra.mrb[172].mxu0 %v605_v36  ;;  %v4712_v47 = vpop.f32.mrb[67].mxu1  ;;  %4974 = vmatmul.mubr.f32.gmra.mrb[172].mxu1 %v1089_v37  ;;  %v618_v37 = vld [vmem:[%s6779_s5 + $0xdc8] sm:$0xff] }
 0x390   : > { %6363 = vmatprep.mubr.msk.f32.mxu0 %vm1176_vm0, %v608_v40  ;;  %6605 = vmatprep.mubr.msk.f32.mxu1 %vm1176_vm0, %v1092_v41  ;;  %v1102_v38 = vld [vmem:[%s6779_s5 + $0x1ce8] sm:$0xff]  ;;  %v1101_v46 = vld [vmem:[%s6779_s5 + $0x1ce0] sm:$0xff] }
 0x391   : > { %v5275_v50 = vmax.f32 %v3501_v44, 0.0  ;;  %v5517_v51 = vmax.f32 %v4711_v45, 0.0  ;;  %v617_v45 = vld [vmem:[%s6779_s5 + $0xdc0] sm:$0xff] }
 0x392   : > { %v3505_v54 = vpop.f32.mrb[68].mxu0  ;;  %v4715_v55 = vpop.f32.mrb[68].mxu1 }
 0x393   : > { %5760 = vst.msk [vmem:[%s7189_s23 + $0x508] sm:$0xff] %vm5598_vm1, %v5275_v50  ;;  %6002 = vst.msk [vmem:[%s7189_s23 + $0xc98] sm:$0xff] %vm5598_vm1, %v5517_v51  ;;  %v3506_v56 = vadd.f32 %v8940_v59, %v3505_v54  ;;  %v4716_v57 = vadd.f32 %v8940_v59, %v4715_v55  ;;  %v3507_v58 = vpop.f32.mrb[69].mxu0  ;;  %3769 = vmatmul.mubr.f32.gmra.mrb[174].mxu0 %v607_v48  ;;  %v4717_v60 = vpop.f32.mrb[69].mxu1  ;;  %4979 = vmatmul.mubr.f32.gmra.mrb[174].mxu1 %v1091_v49  ;;  %v620_v49 = vld [vmem:[%s6779_s5 + $0xdd8] sm:$0xff] }
 0x394   : > { %6364 = vmatprep.mubr.msk.f32.mxu0 %vm1176_vm0, %v610_v52  ;;  %6606 = vmatprep.mubr.msk.f32.mxu1 %vm1176_vm0, %v1094_v53  ;;  %v1104_v50 = vld [vmem:[%s6779_s5 + $0x1cf8] sm:$0xff]  ;;  %v1103_v58 = vld [vmem:[%s6779_s5 + $0x1cf0] sm:$0xff] }
 0x395   : > { %v5276_v63 = vmax.f32 %v3506_v56, 0.0  ;;  %v5518_v0 = vmax.f32 %v4716_v57, 0.0  ;;  %v619_v57 = vld [vmem:[%s6779_s5 + $0xdd0] sm:$0xff] }
 0x396   : > { %v3510_v3 = vpop.f32.mrb[70].mxu0  ;;  %v4720_v4 = vpop.f32.mrb[70].mxu1 }
 0x397   : > { %5761 = vst.msk [vmem:[%s7189_s23 + $0x510] sm:$0xff] %vm5598_vm1, %v5276_v63  ;;  %6003 = vst.msk [vmem:[%s7189_s23 + $0xca0] sm:$0xff] %vm5598_vm1, %v5518_v0  ;;  %v3511_v5 = vadd.f32 %v8940_v59, %v3510_v3  ;;  %v4721_v6 = vadd.f32 %v8940_v59, %v4720_v4  ;;  %v3512_v7 = vpop.f32.mrb[71].mxu0  ;;  %3774 = vmatmul.mubr.f32.gmra.mrb[176].mxu0 %v609_v61  ;;  %v4722_v8 = vpop.f32.mrb[71].mxu1  ;;  %4984 = vmatmul.mubr.f32.gmra.mrb[176].mxu1 %v1093_v62  ;;  %v622_v62 = vld [vmem:[%s6779_s5 + $0xde8] sm:$0xff] }
 0x398   : > { %6365 = vmatprep.mubr.msk.f32.mxu0 %vm1176_vm0, %v612_v1  ;;  %6607 = vmatprep.mubr.msk.f32.mxu1 %vm1176_vm0, %v1096_v2  ;;  %v1106_v63 = vld [vmem:[%s6779_s5 + $0x1d08] sm:$0xff]  ;;  %v1105_v7 = vld [vmem:[%s6779_s5 + $0x1d00] sm:$0xff] }
 0x399   : > { %v5277_v11 = vmax.f32 %v3511_v5, 0.0  ;;  %v5519_v12 = vmax.f32 %v4721_v6, 0.0  ;;  %v621_v6 = vld [vmem:[%s6779_s5 + $0xde0] sm:$0xff] }
 0x39a   : > { %v3515_v15 = vpop.f32.mrb[72].mxu0  ;;  %v4725_v16 = vpop.f32.mrb[72].mxu1 }
 0x39b   : > { %5762 = vst.msk [vmem:[%s7189_s23 + $0x518] sm:$0xff] %vm5598_vm1, %v5277_v11  ;;  %6004 = vst.msk [vmem:[%s7189_s23 + $0xca8] sm:$0xff] %vm5598_vm1, %v5519_v12  ;;  %v3516_v17 = vadd.f32 %v8940_v59, %v3515_v15  ;;  %v4726_v18 = vadd.f32 %v8940_v59, %v4725_v16  ;;  %v3517_v19 = vpop.f32.mrb[73].mxu0  ;;  %3779 = vmatmul.mubr.f32.gmra.mrb[178].mxu0 %v611_v9  ;;  %v4727_v20 = vpop.f32.mrb[73].mxu1  ;;  %4989 = vmatmul.mubr.f32.gmra.mrb[178].mxu1 %v1095_v10  ;;  %v624_v10 = vld [vmem:[%s6779_s5 + $0xdf8] sm:$0xff] }
 0x39c   : > { %6366 = vmatprep.mubr.msk.f32.mxu0 %vm1176_vm0, %v614_v13  ;;  %6608 = vmatprep.mubr.msk.f32.mxu1 %vm1176_vm0, %v1098_v14  ;;  %v1108_v11 = vld [vmem:[%s6779_s5 + $0x1d18] sm:$0xff]  ;;  %v1107_v19 = vld [vmem:[%s6779_s5 + $0x1d10] sm:$0xff] }
 0x39d   : > { %v5278_v23 = vmax.f32 %v3516_v17, 0.0  ;;  %v5520_v24 = vmax.f32 %v4726_v18, 0.0  ;;  %v623_v18 = vld [vmem:[%s6779_s5 + $0xdf0] sm:$0xff] }
 0x39e   : > { %v3520_v27 = vpop.f32.mrb[74].mxu0  ;;  %v4730_v28 = vpop.f32.mrb[74].mxu1 }
 0x39f   : > { %5763 = vst.msk [vmem:[%s7189_s23 + $0x520] sm:$0xff] %vm5598_vm1, %v5278_v23  ;;  %6005 = vst.msk [vmem:[%s7189_s23 + $0xcb0] sm:$0xff] %vm5598_vm1, %v5520_v24  ;;  %v3521_v29 = vadd.f32 %v8940_v59, %v3520_v27  ;;  %v4731_v30 = vadd.f32 %v8940_v59, %v4730_v28  ;;  %v3522_v31 = vpop.f32.mrb[75].mxu0  ;;  %3784 = vmatmul.mubr.f32.gmra.mrb[180].mxu0 %v613_v21  ;;  %v4732_v32 = vpop.f32.mrb[75].mxu1  ;;  %4994 = vmatmul.mubr.f32.gmra.mrb[180].mxu1 %v1097_v22  ;;  %v626_v22 = vld [vmem:[%s6779_s5 + $0xe08] sm:$0xff] }
 0x3a0   : > { %6367 = vmatprep.mubr.msk.f32.mxu0 %vm1176_vm0, %v616_v25  ;;  %6609 = vmatprep.mubr.msk.f32.mxu1 %vm1176_vm0, %v1100_v26  ;;  %v1110_v23 = vld [vmem:[%s6779_s5 + $0x1d28] sm:$0xff]  ;;  %v1109_v31 = vld [vmem:[%s6779_s5 + $0x1d20] sm:$0xff] }
 0x3a1   : > { %v5279_v35 = vmax.f32 %v3521_v29, 0.0  ;;  %v5521_v36 = vmax.f32 %v4731_v30, 0.0  ;;  %v625_v30 = vld [vmem:[%s6779_s5 + $0xe00] sm:$0xff] }
 0x3a2   : > { %v3525_v39 = vpop.f32.mrb[76].mxu0  ;;  %v4735_v40 = vpop.f32.mrb[76].mxu1 }
 0x3a3   : > { %5764 = vst.msk [vmem:[%s7189_s23 + $0x528] sm:$0xff] %vm5598_vm1, %v5279_v35  ;;  %6006 = vst.msk [vmem:[%s7189_s23 + $0xcb8] sm:$0xff] %vm5598_vm1, %v5521_v36  ;;  %v3526_v41 = vadd.f32 %v8940_v59, %v3525_v39  ;;  %v4736_v42 = vadd.f32 %v8940_v59, %v4735_v40  ;;  %v3527_v43 = vpop.f32.mrb[77].mxu0  ;;  %3789 = vmatmul.mubr.f32.gmra.mrb[182].mxu0 %v615_v33  ;;  %v4737_v44 = vpop.f32.mrb[77].mxu1  ;;  %4999 = vmatmul.mubr.f32.gmra.mrb[182].mxu1 %v1099_v34  ;;  %v628_v34 = vld [vmem:[%s6779_s5 + $0xe18] sm:$0xff] }
 0x3a4   : > { %6368 = vmatprep.mubr.msk.f32.mxu0 %vm1176_vm0, %v618_v37  ;;  %6610 = vmatprep.mubr.msk.f32.mxu1 %vm1176_vm0, %v1102_v38  ;;  %v1112_v35 = vld [vmem:[%s6779_s5 + $0x1d38] sm:$0xff]  ;;  %v1111_v43 = vld [vmem:[%s6779_s5 + $0x1d30] sm:$0xff] }
 0x3a5   : > { %v5280_v47 = vmax.f32 %v3526_v41, 0.0  ;;  %v5522_v48 = vmax.f32 %v4736_v42, 0.0  ;;  %v627_v42 = vld [vmem:[%s6779_s5 + $0xe10] sm:$0xff] }
 0x3a6   : > { %v3530_v51 = vpop.f32.mrb[78].mxu0  ;;  %v4740_v52 = vpop.f32.mrb[78].mxu1 }
 0x3a7   : > { %5765 = vst.msk [vmem:[%s7189_s23 + $0x530] sm:$0xff] %vm5598_vm1, %v5280_v47  ;;  %6007 = vst.msk [vmem:[%s7189_s23 + $0xcc0] sm:$0xff] %vm5598_vm1, %v5522_v48  ;;  %v3531_v53 = vadd.f32 %v8940_v59, %v3530_v51  ;;  %v4741_v54 = vadd.f32 %v8940_v59, %v4740_v52  ;;  %v3532_v55 = vpop.f32.mrb[79].mxu0  ;;  %3794 = vmatmul.mubr.f32.gmra.mrb[184].mxu0 %v617_v45  ;;  %v4742_v56 = vpop.f32.mrb[79].mxu1  ;;  %5004 = vmatmul.mubr.f32.gmra.mrb[184].mxu1 %v1101_v46  ;;  %v630_v46 = vld [vmem:[%s6779_s5 + $0xe28] sm:$0xff] }
 0x3a8   : > { %6369 = vmatprep.mubr.msk.f32.mxu0 %vm1176_vm0, %v620_v49  ;;  %6611 = vmatprep.mubr.msk.f32.mxu1 %vm1176_vm0, %v1104_v50  ;;  %v1114_v47 = vld [vmem:[%s6779_s5 + $0x1d48] sm:$0xff]  ;;  %v1113_v55 = vld [vmem:[%s6779_s5 + $0x1d40] sm:$0xff] }
 0x3a9   : > { %v5281_v60 = vmax.f32 %v3531_v53, 0.0  ;;  %v5523_v61 = vmax.f32 %v4741_v54, 0.0  ;;  %v629_v54 = vld [vmem:[%s6779_s5 + $0xe20] sm:$0xff] }
 0x3aa   : > { %v3535_v0 = vpop.f32.mrb[80].mxu0  ;;  %v4745_v1 = vpop.f32.mrb[80].mxu1 }
 0x3ab   : > { %5766 = vst.msk [vmem:[%s7189_s23 + $0x538] sm:$0xff] %vm5598_vm1, %v5281_v60  ;;  %6008 = vst.msk [vmem:[%s7189_s23 + $0xcc8] sm:$0xff] %vm5598_vm1, %v5523_v61  ;;  %v3536_v2 = vadd.f32 %v8940_v59, %v3535_v0  ;;  %v4746_v3 = vadd.f32 %v8940_v59, %v4745_v1  ;;  %v3537_v4 = vpop.f32.mrb[81].mxu0  ;;  %3799 = vmatmul.mubr.f32.gmra.mrb[186].mxu0 %v619_v57  ;;  %v4747_v5 = vpop.f32.mrb[81].mxu1  ;;  %5009 = vmatmul.mubr.f32.gmra.mrb[186].mxu1 %v1103_v58  ;;  %v632_v58 = vld [vmem:[%s6779_s5 + $0xe38] sm:$0xff] }
 0x3ac   : > { %6370 = vmatprep.mubr.msk.f32.mxu0 %vm1176_vm0, %v622_v62  ;;  %6612 = vmatprep.mubr.msk.f32.mxu1 %vm1176_vm0, %v1106_v63  ;;  %v1116_v60 = vld [vmem:[%s6779_s5 + $0x1d58] sm:$0xff]  ;;  %v1115_v4 = vld [vmem:[%s6779_s5 + $0x1d50] sm:$0xff] }
 0x3ad   : > { %v5282_v8 = vmax.f32 %v3536_v2, 0.0  ;;  %v5524_v9 = vmax.f32 %v4746_v3, 0.0  ;;  %v631_v3 = vld [vmem:[%s6779_s5 + $0xe30] sm:$0xff] }
 0x3ae   : > { %v3540_v12 = vpop.f32.mrb[82].mxu0  ;;  %v4750_v13 = vpop.f32.mrb[82].mxu1 }
 0x3af   : > { %5767 = vst.msk [vmem:[%s7189_s23 + $0x540] sm:$0xff] %vm5598_vm1, %v5282_v8  ;;  %6009 = vst.msk [vmem:[%s7189_s23 + $0xcd0] sm:$0xff] %vm5598_vm1, %v5524_v9  ;;  %v3541_v14 = vadd.f32 %v8940_v59, %v3540_v12  ;;  %v4751_v15 = vadd.f32 %v8940_v59, %v4750_v13  ;;  %v3542_v16 = vpop.f32.mrb[83].mxu0  ;;  %3804 = vmatmul.mubr.f32.gmra.mrb[188].mxu0 %v621_v6  ;;  %v4752_v17 = vpop.f32.mrb[83].mxu1  ;;  %5014 = vmatmul.mubr.f32.gmra.mrb[188].mxu1 %v1105_v7  ;;  %v634_v7 = vld [vmem:[%s6779_s5 + $0xe48] sm:$0xff] }
 0x3b0   : > { %6371 = vmatprep.mubr.msk.f32.mxu0 %vm1176_vm0, %v624_v10  ;;  %6613 = vmatprep.mubr.msk.f32.mxu1 %vm1176_vm0, %v1108_v11  ;;  %v1118_v8 = vld [vmem:[%s6779_s5 + $0x1d68] sm:$0xff]  ;;  %v1117_v16 = vld [vmem:[%s6779_s5 + $0x1d60] sm:$0xff] }
 0x3b1   : > { %v5283_v20 = vmax.f32 %v3541_v14, 0.0  ;;  %v5525_v21 = vmax.f32 %v4751_v15, 0.0  ;;  %v633_v15 = vld [vmem:[%s6779_s5 + $0xe40] sm:$0xff] }
 0x3b2   : > { %v3545_v24 = vpop.f32.mrb[84].mxu0  ;;  %v4755_v25 = vpop.f32.mrb[84].mxu1 }
 0x3b3   : > { %5768 = vst.msk [vmem:[%s7189_s23 + $0x548] sm:$0xff] %vm5598_vm1, %v5283_v20  ;;  %6010 = vst.msk [vmem:[%s7189_s23 + $0xcd8] sm:$0xff] %vm5598_vm1, %v5525_v21  ;;  %v3546_v26 = vadd.f32 %v8940_v59, %v3545_v24  ;;  %v4756_v27 = vadd.f32 %v8940_v59, %v4755_v25  ;;  %v3547_v28 = vpop.f32.mrb[85].mxu0  ;;  %3809 = vmatmul.mubr.f32.gmra.mrb[190].mxu0 %v623_v18  ;;  %v4757_v29 = vpop.f32.mrb[85].mxu1  ;;  %5019 = vmatmul.mubr.f32.gmra.mrb[190].mxu1 %v1107_v19  ;;  %v636_v19 = vld [vmem:[%s6779_s5 + $0xe58] sm:$0xff] }
 0x3b4   : > { %6372 = vmatprep.mubr.msk.f32.mxu0 %vm1176_vm0, %v626_v22  ;;  %6614 = vmatprep.mubr.msk.f32.mxu1 %vm1176_vm0, %v1110_v23  ;;  %v1120_v20 = vld [vmem:[%s6779_s5 + $0x1d78] sm:$0xff]  ;;  %v1119_v28 = vld [vmem:[%s6779_s5 + $0x1d70] sm:$0xff] }
 0x3b5   : > { %v5284_v32 = vmax.f32 %v3546_v26, 0.0  ;;  %v5526_v33 = vmax.f32 %v4756_v27, 0.0  ;;  %v635_v27 = vld [vmem:[%s6779_s5 + $0xe50] sm:$0xff] }
 0x3b6   : > { %v3550_v36 = vpop.f32.mrb[86].mxu0  ;;  %v4760_v37 = vpop.f32.mrb[86].mxu1 }
 0x3b7   : > { %5769 = vst.msk [vmem:[%s7189_s23 + $0x550] sm:$0xff] %vm5598_vm1, %v5284_v32  ;;  %6011 = vst.msk [vmem:[%s7189_s23 + $0xce0] sm:$0xff] %vm5598_vm1, %v5526_v33  ;;  %v3551_v38 = vadd.f32 %v8940_v59, %v3550_v36  ;;  %v4761_v39 = vadd.f32 %v8940_v59, %v4760_v37  ;;  %v3552_v40 = vpop.f32.mrb[87].mxu0  ;;  %3814 = vmatmul.mubr.f32.gmra.mrb[192].mxu0 %v625_v30  ;;  %v4762_v41 = vpop.f32.mrb[87].mxu1  ;;  %5024 = vmatmul.mubr.f32.gmra.mrb[192].mxu1 %v1109_v31  ;;  %v638_v31 = vld [vmem:[%s6779_s5 + $0xe68] sm:$0xff] }
 0x3b8   : > { %6373 = vmatprep.mubr.msk.f32.mxu0 %vm1176_vm0, %v628_v34  ;;  %6615 = vmatprep.mubr.msk.f32.mxu1 %vm1176_vm0, %v1112_v35  ;;  %v1122_v32 = vld [vmem:[%s6779_s5 + $0x1d88] sm:$0xff]  ;;  %v1121_v40 = vld [vmem:[%s6779_s5 + $0x1d80] sm:$0xff] }
 0x3b9   : > { %v5285_v44 = vmax.f32 %v3551_v38, 0.0  ;;  %v5527_v45 = vmax.f32 %v4761_v39, 0.0  ;;  %v637_v39 = vld [vmem:[%s6779_s5 + $0xe60] sm:$0xff] }
 0x3ba   : > { %v3555_v48 = vpop.f32.mrb[88].mxu0  ;;  %v4765_v49 = vpop.f32.mrb[88].mxu1 }
 0x3bb   : > { %5770 = vst.msk [vmem:[%s7189_s23 + $0x558] sm:$0xff] %vm5598_vm1, %v5285_v44  ;;  %6012 = vst.msk [vmem:[%s7189_s23 + $0xce8] sm:$0xff] %vm5598_vm1, %v5527_v45  ;;  %v3556_v50 = vadd.f32 %v8940_v59, %v3555_v48  ;;  %v4766_v51 = vadd.f32 %v8940_v59, %v4765_v49  ;;  %v3557_v52 = vpop.f32.mrb[89].mxu0  ;;  %3819 = vmatmul.mubr.f32.gmra.mrb[194].mxu0 %v627_v42  ;;  %v4767_v53 = vpop.f32.mrb[89].mxu1  ;;  %5029 = vmatmul.mubr.f32.gmra.mrb[194].mxu1 %v1111_v43  ;;  %v9293_v59 = vld [vmem:[%s9807_s2] ss:$0 sm:$0xff] }
 0x3bc   : > { %6374 = vmatprep.mubr.msk.f32.mxu0 %vm1176_vm0, %v630_v46  ;;  %6616 = vmatprep.mubr.msk.f32.mxu1 %vm1176_vm0, %v1114_v47  ;;  %v640_v43 = vld [vmem:[%s6779_s5 + $0xe78] sm:$0xff]  ;;  %v1123_v52 = vld [vmem:[%s6779_s5 + $0x1d90] sm:$0xff] }
 0x3bd   : > { %v5286_v56 = vmax.f32 %v3556_v50, 0.0  ;;  %v5528_v57 = vmax.f32 %v4766_v51, 0.0  ;;  %v1124_v44 = vld [vmem:[%s6779_s5 + $0x1d98] sm:$0xff]  ;;  %v639_v51 = vld [vmem:[%s6779_s5 + $0xe70] sm:$0xff] }
 0x3be   : > { %v3560_v61 = vpop.f32.mrb[90].mxu0  ;;  %v4770_v62 = vpop.f32.mrb[90].mxu1 }
 0x3bf   : > { %5771 = vst.msk [vmem:[%s7189_s23 + $0x560] sm:$0xff] %vm5598_vm1, %v5286_v56  ;;  %6013 = vst.msk [vmem:[%s7189_s23 + $0xcf0] sm:$0xff] %vm5598_vm1, %v5528_v57  ;;  %v3561_v63 = vadd.f32 %v9293_v59, %v3560_v61  ;;  %v4771_v0 = vadd.f32 %v9293_v59, %v4770_v62  ;;  %v3562_v1 = vpop.f32.mrb[91].mxu0  ;;  %3824 = vmatmul.mubr.f32.gmra.mrb[196].mxu0 %v629_v54  ;;  %v4772_v2 = vpop.f32.mrb[91].mxu1  ;;  %5034 = vmatmul.mubr.f32.gmra.mrb[196].mxu1 %v1113_v55  ;;  %v642_v55 = vld [vmem:[%s6779_s5 + $0xe88] sm:$0xff] }
 0x3c0   : > { %6375 = vmatprep.mubr.msk.f32.mxu0 %vm1176_vm0, %v632_v58  ;;  %6617 = vmatprep.mubr.msk.f32.mxu1 %vm1176_vm0, %v1116_v60  ;;  %v1126_v56 = vld [vmem:[%s6779_s5 + $0x1da8] sm:$0xff]  ;;  %v1125_v1 = vld [vmem:[%s6779_s5 + $0x1da0] sm:$0xff] }
 0x3c1   : > { %v5287_v5 = vmax.f32 %v3561_v63, 0.0  ;;  %v5529_v6 = vmax.f32 %v4771_v0, 0.0  ;;  %v641_v0 = vld [vmem:[%s6779_s5 + $0xe80] sm:$0xff] }
 0x3c2   : > { %v3565_v9 = vpop.f32.mrb[92].mxu0  ;;  %v4775_v10 = vpop.f32.mrb[92].mxu1 }
 0x3c3   : > { %5772 = vst.msk [vmem:[%s7189_s23 + $0x568] sm:$0xff] %vm5598_vm1, %v5287_v5  ;;  %6014 = vst.msk [vmem:[%s7189_s23 + $0xcf8] sm:$0xff] %vm5598_vm1, %v5529_v6  ;;  %v3566_v11 = vadd.f32 %v9293_v59, %v3565_v9  ;;  %v4776_v12 = vadd.f32 %v9293_v59, %v4775_v10  ;;  %v3567_v13 = vpop.f32.mrb[93].mxu0  ;;  %3829 = vmatmul.mubr.f32.gmra.mrb[198].mxu0 %v631_v3  ;;  %v4777_v14 = vpop.f32.mrb[93].mxu1  ;;  %5039 = vmatmul.mubr.f32.gmra.mrb[198].mxu1 %v1115_v4  ;;  %v644_v4 = vld [vmem:[%s6779_s5 + $0xe98] sm:$0xff] }
 0x3c4   : > { %6376 = vmatprep.mubr.msk.f32.mxu0 %vm1176_vm0, %v634_v7  ;;  %6618 = vmatprep.mubr.msk.f32.mxu1 %vm1176_vm0, %v1118_v8  ;;  %v1128_v5 = vld [vmem:[%s6779_s5 + $0x1db8] sm:$0xff]  ;;  %v1127_v13 = vld [vmem:[%s6779_s5 + $0x1db0] sm:$0xff] }
 0x3c5   : > { %v5288_v17 = vmax.f32 %v3566_v11, 0.0  ;;  %v5530_v18 = vmax.f32 %v4776_v12, 0.0  ;;  %v643_v12 = vld [vmem:[%s6779_s5 + $0xe90] sm:$0xff] }
 0x3c6   : > { %v3570_v21 = vpop.f32.mrb[94].mxu0  ;;  %v4780_v22 = vpop.f32.mrb[94].mxu1 }
 0x3c7   : > { %5773 = vst.msk [vmem:[%s7189_s23 + $0x570] sm:$0xff] %vm5598_vm1, %v5288_v17  ;;  %6015 = vst.msk [vmem:[%s7189_s23 + $0xd00] sm:$0xff] %vm5598_vm1, %v5530_v18  ;;  %v3571_v23 = vadd.f32 %v9293_v59, %v3570_v21  ;;  %v4781_v24 = vadd.f32 %v9293_v59, %v4780_v22  ;;  %v3572_v25 = vpop.f32.mrb[95].mxu0  ;;  %3834 = vmatmul.mubr.f32.gmra.mrb[200].mxu0 %v633_v15  ;;  %v4782_v26 = vpop.f32.mrb[95].mxu1  ;;  %5044 = vmatmul.mubr.f32.gmra.mrb[200].mxu1 %v1117_v16  ;;  %v646_v16 = vld [vmem:[%s6779_s5 + $0xea8] sm:$0xff] }
 0x3c8   : > { %6377 = vmatprep.mubr.msk.f32.mxu0 %vm1176_vm0, %v636_v19  ;;  %6619 = vmatprep.mubr.msk.f32.mxu1 %vm1176_vm0, %v1120_v20  ;;  %v1130_v17 = vld [vmem:[%s6779_s5 + $0x1dc8] sm:$0xff]  ;;  %v1129_v25 = vld [vmem:[%s6779_s5 + $0x1dc0] sm:$0xff] }
 0x3c9   : > { %v5289_v29 = vmax.f32 %v3571_v23, 0.0  ;;  %v5531_v30 = vmax.f32 %v4781_v24, 0.0  ;;  %v645_v24 = vld [vmem:[%s6779_s5 + $0xea0] sm:$0xff] }
 0x3ca   : > { %v3575_v33 = vpop.f32.mrb[96].mxu0  ;;  %v4785_v34 = vpop.f32.mrb[96].mxu1 }
 0x3cb   : > { %5774 = vst.msk [vmem:[%s7189_s23 + $0x578] sm:$0xff] %vm5598_vm1, %v5289_v29  ;;  %6016 = vst.msk [vmem:[%s7189_s23 + $0xd08] sm:$0xff] %vm5598_vm1, %v5531_v30  ;;  %v3576_v35 = vadd.f32 %v9293_v59, %v3575_v33  ;;  %v4786_v36 = vadd.f32 %v9293_v59, %v4785_v34  ;;  %v3577_v37 = vpop.f32.mrb[97].mxu0  ;;  %3839 = vmatmul.mubr.f32.gmra.mrb[202].mxu0 %v635_v27  ;;  %v4787_v38 = vpop.f32.mrb[97].mxu1  ;;  %5049 = vmatmul.mubr.f32.gmra.mrb[202].mxu1 %v1119_v28  ;;  %v648_v28 = vld [vmem:[%s6779_s5 + $0xeb8] sm:$0xff] }
 0x3cc   : > { %6378 = vmatprep.mubr.msk.f32.mxu0 %vm1176_vm0, %v638_v31  ;;  %6620 = vmatprep.mubr.msk.f32.mxu1 %vm1176_vm0, %v1122_v32  ;;  %v1132_v29 = vld [vmem:[%s6779_s5 + $0x1dd8] sm:$0xff]  ;;  %v1131_v37 = vld [vmem:[%s6779_s5 + $0x1dd0] sm:$0xff] }
 0x3cd   : > { %v5290_v41 = vmax.f32 %v3576_v35, 0.0  ;;  %v5532_v42 = vmax.f32 %v4786_v36, 0.0  ;;  %v647_v36 = vld [vmem:[%s6779_s5 + $0xeb0] sm:$0xff] }
 0x3ce   : > { %v3580_v45 = vpop.f32.mrb[98].mxu0  ;;  %v4790_v46 = vpop.f32.mrb[98].mxu1 }
 0x3cf   : > { %5775 = vst.msk [vmem:[%s7189_s23 + $0x580] sm:$0xff] %vm5598_vm1, %v5290_v41  ;;  %6017 = vst.msk [vmem:[%s7189_s23 + $0xd10] sm:$0xff] %vm5598_vm1, %v5532_v42  ;;  %v3581_v47 = vadd.f32 %v9293_v59, %v3580_v45  ;;  %v4791_v48 = vadd.f32 %v9293_v59, %v4790_v46  ;;  %v3582_v49 = vpop.f32.mrb[99].mxu0  ;;  %3844 = vmatmul.mubr.f32.gmra.mrb[204].mxu0 %v637_v39  ;;  %v4792_v50 = vpop.f32.mrb[99].mxu1  ;;  %5054 = vmatmul.mubr.f32.gmra.mrb[204].mxu1 %v1121_v40  ;;  %v650_v40 = vld [vmem:[%s6779_s5 + $0xec8] sm:$0xff] }
 0x3d0   : > { %6379 = vmatprep.mubr.msk.f32.mxu0 %vm1176_vm0, %v640_v43  ;;  %6621 = vmatprep.mubr.msk.f32.mxu1 %vm1176_vm0, %v1124_v44  ;;  %v1134_v41 = vld [vmem:[%s6779_s5 + $0x1de8] sm:$0xff]  ;;  %v1133_v49 = vld [vmem:[%s6779_s5 + $0x1de0] sm:$0xff] }
 0x3d1   : > { %v5291_v53 = vmax.f32 %v3581_v47, 0.0  ;;  %v5533_v54 = vmax.f32 %v4791_v48, 0.0  ;;  %v649_v48 = vld [vmem:[%s6779_s5 + $0xec0] sm:$0xff] }
 0x3d2   : > { %v3585_v57 = vpop.f32.mrb[100].mxu0  ;;  %v4795_v58 = vpop.f32.mrb[100].mxu1 }
 0x3d3   : > { %5776 = vst.msk [vmem:[%s7189_s23 + $0x588] sm:$0xff] %vm5598_vm1, %v5291_v53  ;;  %6018 = vst.msk [vmem:[%s7189_s23 + $0xd18] sm:$0xff] %vm5598_vm1, %v5533_v54  ;;  %v3586_v60 = vadd.f32 %v9293_v59, %v3585_v57  ;;  %v4796_v61 = vadd.f32 %v9293_v59, %v4795_v58  ;;  %v3587_v62 = vpop.f32.mrb[101].mxu0  ;;  %3849 = vmatmul.mubr.f32.gmra.mrb[206].mxu0 %v639_v51  ;;  %v4797_v63 = vpop.f32.mrb[101].mxu1  ;;  %5059 = vmatmul.mubr.f32.gmra.mrb[206].mxu1 %v1123_v52  ;;  %v652_v52 = vld [vmem:[%s6779_s5 + $0xed8] sm:$0xff] }
 0x3d4   : > { %6380 = vmatprep.mubr.msk.f32.mxu0 %vm1176_vm0, %v642_v55  ;;  %6622 = vmatprep.mubr.msk.f32.mxu1 %vm1176_vm0, %v1126_v56  ;;  %v1136_v53 = vld [vmem:[%s6779_s5 + $0x1df8] sm:$0xff]  ;;  %v1135_v62 = vld [vmem:[%s6779_s5 + $0x1df0] sm:$0xff] }
 0x3d5   : > { %v5292_v2 = vmax.f32 %v3586_v60, 0.0  ;;  %v5534_v3 = vmax.f32 %v4796_v61, 0.0  ;;  %v651_v61 = vld [vmem:[%s6779_s5 + $0xed0] sm:$0xff] }
 0x3d6   : > { %v3590_v6 = vpop.f32.mrb[102].mxu0  ;;  %v4800_v7 = vpop.f32.mrb[102].mxu1 }
 0x3d7   : > { %5777 = vst.msk [vmem:[%s7189_s23 + $0x590] sm:$0xff] %vm5598_vm1, %v5292_v2  ;;  %6019 = vst.msk [vmem:[%s7189_s23 + $0xd20] sm:$0xff] %vm5598_vm1, %v5534_v3  ;;  %v3591_v8 = vadd.f32 %v9293_v59, %v3590_v6  ;;  %v4801_v9 = vadd.f32 %v9293_v59, %v4800_v7  ;;  %v3592_v10 = vpop.f32.mrb[103].mxu0  ;;  %3854 = vmatmul.mubr.f32.gmra.mrb[208].mxu0 %v641_v0  ;;  %v4802_v11 = vpop.f32.mrb[103].mxu1  ;;  %5064 = vmatmul.mubr.f32.gmra.mrb[208].mxu1 %v1125_v1  ;;  %v654_v1 = vld [vmem:[%s6779_s5 + $0xee8] sm:$0xff] }
 0x3d8   : > { %6381 = vmatprep.mubr.msk.f32.mxu0 %vm1176_vm0, %v644_v4  ;;  %6623 = vmatprep.mubr.msk.f32.mxu1 %vm1176_vm0, %v1128_v5  ;;  %v1138_v2 = vld [vmem:[%s6779_s5 + $0x1e08] sm:$0xff]  ;;  %v1137_v10 = vld [vmem:[%s6779_s5 + $0x1e00] sm:$0xff] }
 0x3d9   : > { %v5293_v14 = vmax.f32 %v3591_v8, 0.0  ;;  %v5535_v15 = vmax.f32 %v4801_v9, 0.0  ;;  %v653_v9 = vld [vmem:[%s6779_s5 + $0xee0] sm:$0xff] }
 0x3da   : > { %v3595_v18 = vpop.f32.mrb[104].mxu0  ;;  %v4805_v19 = vpop.f32.mrb[104].mxu1 }
 0x3db   : > { %5778 = vst.msk [vmem:[%s7189_s23 + $0x598] sm:$0xff] %vm5598_vm1, %v5293_v14  ;;  %6020 = vst.msk [vmem:[%s7189_s23 + $0xd28] sm:$0xff] %vm5598_vm1, %v5535_v15  ;;  %v3596_v20 = vadd.f32 %v9293_v59, %v3595_v18  ;;  %v4806_v21 = vadd.f32 %v9293_v59, %v4805_v19  ;;  %v3597_v22 = vpop.f32.mrb[105].mxu0  ;;  %3859 = vmatmul.mubr.f32.gmra.mrb[210].mxu0 %v643_v12  ;;  %v4807_v23 = vpop.f32.mrb[105].mxu1  ;;  %5069 = vmatmul.mubr.f32.gmra.mrb[210].mxu1 %v1127_v13  ;;  %v656_v13 = vld [vmem:[%s6779_s5 + $0xef8] sm:$0xff] }
 0x3dc   : > { %6382 = vmatprep.mubr.msk.f32.mxu0 %vm1176_vm0, %v646_v16  ;;  %6624 = vmatprep.mubr.msk.f32.mxu1 %vm1176_vm0, %v1130_v17  ;;  %v1140_v14 = vld [vmem:[%s6779_s5 + $0x1e18] sm:$0xff]  ;;  %v1139_v22 = vld [vmem:[%s6779_s5 + $0x1e10] sm:$0xff] }
 0x3dd   : > { %v5294_v26 = vmax.f32 %v3596_v20, 0.0  ;;  %v5536_v27 = vmax.f32 %v4806_v21, 0.0  ;;  %v655_v21 = vld [vmem:[%s6779_s5 + $0xef0] sm:$0xff] }
 0x3de   : > { %v3600_v30 = vpop.f32.mrb[106].mxu0  ;;  %v4810_v31 = vpop.f32.mrb[106].mxu1 }
 0x3df   : > { %5779 = vst.msk [vmem:[%s7189_s23 + $0x5a0] sm:$0xff] %vm5598_vm1, %v5294_v26  ;;  %6021 = vst.msk [vmem:[%s7189_s23 + $0xd30] sm:$0xff] %vm5598_vm1, %v5536_v27  ;;  %v3601_v32 = vadd.f32 %v9293_v59, %v3600_v30  ;;  %v4811_v33 = vadd.f32 %v9293_v59, %v4810_v31  ;;  %v3602_v34 = vpop.f32.mrb[107].mxu0  ;;  %3864 = vmatmul.mubr.f32.gmra.mrb[212].mxu0 %v645_v24  ;;  %v4812_v35 = vpop.f32.mrb[107].mxu1  ;;  %5074 = vmatmul.mubr.f32.gmra.mrb[212].mxu1 %v1129_v25  ;;  %v658_v25 = vld [vmem:[%s6779_s5 + $0xf08] sm:$0xff] }
 0x3e0   : > { %6383 = vmatprep.mubr.msk.f32.mxu0 %vm1176_vm0, %v648_v28  ;;  %6625 = vmatprep.mubr.msk.f32.mxu1 %vm1176_vm0, %v1132_v29  ;;  %v1142_v26 = vld [vmem:[%s6779_s5 + $0x1e28] sm:$0xff]  ;;  %v1141_v34 = vld [vmem:[%s6779_s5 + $0x1e20] sm:$0xff] }
 0x3e1   : > { %v5295_v38 = vmax.f32 %v3601_v32, 0.0  ;;  %v5537_v39 = vmax.f32 %v4811_v33, 0.0  ;;  %v657_v33 = vld [vmem:[%s6779_s5 + $0xf00] sm:$0xff] }
 0x3e2   : > { %v3605_v42 = vpop.f32.mrb[108].mxu0  ;;  %v4815_v43 = vpop.f32.mrb[108].mxu1 }
 0x3e3   : > { %5780 = vst.msk [vmem:[%s7189_s23 + $0x5a8] sm:$0xff] %vm5598_vm1, %v5295_v38  ;;  %6022 = vst.msk [vmem:[%s7189_s23 + $0xd38] sm:$0xff] %vm5598_vm1, %v5537_v39  ;;  %v3606_v44 = vadd.f32 %v9293_v59, %v3605_v42  ;;  %v4816_v45 = vadd.f32 %v9293_v59, %v4815_v43  ;;  %v3607_v46 = vpop.f32.mrb[109].mxu0  ;;  %3869 = vmatmul.mubr.f32.gmra.mrb[214].mxu0 %v647_v36  ;;  %v4817_v47 = vpop.f32.mrb[109].mxu1  ;;  %5079 = vmatmul.mubr.f32.gmra.mrb[214].mxu1 %v1131_v37  ;;  %v660_v37 = vld [vmem:[%s6779_s5 + $0xf18] sm:$0xff] }
 0x3e4   : > { %6384 = vmatprep.mubr.msk.f32.mxu0 %vm1176_vm0, %v650_v40  ;;  %6626 = vmatprep.mubr.msk.f32.mxu1 %vm1176_vm0, %v1134_v41  ;;  %v1144_v38 = vld [vmem:[%s6779_s5 + $0x1e38] sm:$0xff]  ;;  %v1143_v46 = vld [vmem:[%s6779_s5 + $0x1e30] sm:$0xff] }
 0x3e5   : > { %v5296_v50 = vmax.f32 %v3606_v44, 0.0  ;;  %v5538_v51 = vmax.f32 %v4816_v45, 0.0  ;;  %v659_v45 = vld [vmem:[%s6779_s5 + $0xf10] sm:$0xff] }
 0x3e6   : > { %v3610_v54 = vpop.f32.mrb[110].mxu0  ;;  %v4820_v55 = vpop.f32.mrb[110].mxu1 }
 0x3e7   : > { %5781 = vst.msk [vmem:[%s7189_s23 + $0x5b0] sm:$0xff] %vm5598_vm1, %v5296_v50  ;;  %6023 = vst.msk [vmem:[%s7189_s23 + $0xd40] sm:$0xff] %vm5598_vm1, %v5538_v51  ;;  %v3611_v56 = vadd.f32 %v9293_v59, %v3610_v54  ;;  %v4821_v57 = vadd.f32 %v9293_v59, %v4820_v55  ;;  %v3612_v58 = vpop.f32.mrb[111].mxu0  ;;  %3874 = vmatmul.mubr.f32.gmra.mrb[216].mxu0 %v649_v48  ;;  %v4822_v60 = vpop.f32.mrb[111].mxu1  ;;  %5084 = vmatmul.mubr.f32.gmra.mrb[216].mxu1 %v1133_v49 }
 0x3e8   : > { %6385 = vmatprep.mubr.msk.f32.mxu0 %vm1176_vm0, %v652_v52  ;;  %6627 = vmatprep.mubr.msk.f32.mxu1 %vm1176_vm0, %v1136_v53 }
 0x3e9   : > { %v5297_v63 = vmax.f32 %v3611_v56, 0.0  ;;  %v5539_v0 = vmax.f32 %v4821_v57, 0.0 }
 0x3ea   : > { %v3615_v3 = vpop.f32.mrb[112].mxu0  ;;  %v4825_v4 = vpop.f32.mrb[112].mxu1 }
 0x3eb   : > { %5782 = vst.msk [vmem:[%s7189_s23 + $0x5b8] sm:$0xff] %vm5598_vm1, %v5297_v63  ;;  %6024 = vst.msk [vmem:[%s7189_s23 + $0xd48] sm:$0xff] %vm5598_vm1, %v5539_v0  ;;  %v3616_v5 = vadd.f32 %v9293_v59, %v3615_v3  ;;  %v4826_v6 = vadd.f32 %v9293_v59, %v4825_v4  ;;  %v3617_v7 = vpop.f32.mrb[113].mxu0  ;;  %3879 = vmatmul.mubr.f32.gmra.mrb[218].mxu0 %v651_v61  ;;  %v4827_v8 = vpop.f32.mrb[113].mxu1  ;;  %5089 = vmatmul.mubr.f32.gmra.mrb[218].mxu1 %v1135_v62 }
 0x3ec   : > { %6386 = vmatprep.mubr.msk.f32.mxu0 %vm1176_vm0, %v654_v1  ;;  %6628 = vmatprep.mubr.msk.f32.mxu1 %vm1176_vm0, %v1138_v2 }
 0x3ed   : > { %v5298_v11 = vmax.f32 %v3616_v5, 0.0  ;;  %v5540_v12 = vmax.f32 %v4826_v6, 0.0 }
 0x3ee   : > { %v3620_v15 = vpop.f32.mrb[114].mxu0  ;;  %v4830_v16 = vpop.f32.mrb[114].mxu1 }
 0x3ef   : > { %5783 = vst.msk [vmem:[%s7189_s23 + $0x5c0] sm:$0xff] %vm5598_vm1, %v5298_v11  ;;  %6025 = vst.msk [vmem:[%s7189_s23 + $0xd50] sm:$0xff] %vm5598_vm1, %v5540_v12  ;;  %v3621_v17 = vadd.f32 %v9293_v59, %v3620_v15  ;;  %v4831_v18 = vadd.f32 %v9293_v59, %v4830_v16  ;;  %v3622_v19 = vpop.f32.mrb[115].mxu0  ;;  %3884 = vmatmul.mubr.f32.gmra.mrb[220].mxu0 %v653_v9  ;;  %v4832_v20 = vpop.f32.mrb[115].mxu1  ;;  %5094 = vmatmul.mubr.f32.gmra.mrb[220].mxu1 %v1137_v10 }
 0x3f0   : > { %6387 = vmatprep.mubr.msk.f32.mxu0 %vm1176_vm0, %v656_v13  ;;  %6629 = vmatprep.mubr.msk.f32.mxu1 %vm1176_vm0, %v1140_v14 }
 0x3f1   : > { %v5299_v23 = vmax.f32 %v3621_v17, 0.0  ;;  %v5541_v24 = vmax.f32 %v4831_v18, 0.0 }
 0x3f2   : > { %v3625_v27 = vpop.f32.mrb[116].mxu0  ;;  %v4835_v28 = vpop.f32.mrb[116].mxu1 }
 0x3f3   : > { %5784 = vst.msk [vmem:[%s7189_s23 + $0x5c8] sm:$0xff] %vm5598_vm1, %v5299_v23  ;;  %6026 = vst.msk [vmem:[%s7189_s23 + $0xd58] sm:$0xff] %vm5598_vm1, %v5541_v24  ;;  %v3626_v29 = vadd.f32 %v9293_v59, %v3625_v27  ;;  %v4836_v30 = vadd.f32 %v9293_v59, %v4835_v28  ;;  %v3627_v31 = vpop.f32.mrb[117].mxu0  ;;  %3889 = vmatmul.mubr.f32.gmra.mrb[222].mxu0 %v655_v21  ;;  %v4837_v32 = vpop.f32.mrb[117].mxu1  ;;  %5099 = vmatmul.mubr.f32.gmra.mrb[222].mxu1 %v1139_v22 }
 0x3f4   : > { %6388 = vmatprep.mubr.msk.f32.mxu0 %vm1176_vm0, %v658_v25  ;;  %6630 = vmatprep.mubr.msk.f32.mxu1 %vm1176_vm0, %v1142_v26 }
 0x3f5   : > { %v5300_v35 = vmax.f32 %v3626_v29, 0.0  ;;  %v5542_v36 = vmax.f32 %v4836_v30, 0.0 }
 0x3f6   : > { %v3630_v39 = vpop.f32.mrb[118].mxu0  ;;  %v4840_v40 = vpop.f32.mrb[118].mxu1 }
 0x3f7   : > { %5785 = vst.msk [vmem:[%s7189_s23 + $0x5d0] sm:$0xff] %vm5598_vm1, %v5300_v35  ;;  %6027 = vst.msk [vmem:[%s7189_s23 + $0xd60] sm:$0xff] %vm5598_vm1, %v5542_v36  ;;  %v3631_v41 = vadd.f32 %v9293_v59, %v3630_v39  ;;  %v4841_v42 = vadd.f32 %v9293_v59, %v4840_v40  ;;  %v3632_v43 = vpop.f32.mrb[119].mxu0  ;;  %3894 = vmatmul.mubr.f32.gmra.mrb[224].mxu0 %v657_v33  ;;  %v4842_v44 = vpop.f32.mrb[119].mxu1  ;;  %5104 = vmatmul.mubr.f32.gmra.mrb[224].mxu1 %v1141_v34 }
 0x3f8   : > { %6389 = vmatprep.mubr.msk.f32.mxu0 %vm1176_vm0, %v660_v37  ;;  %6631 = vmatprep.mubr.msk.f32.mxu1 %vm1176_vm0, %v1144_v38 }
 0x3f9   : > { %v5301_v47 = vmax.f32 %v3631_v41, 0.0  ;;  %v5543_v48 = vmax.f32 %v4841_v42, 0.0 }
 0x3fa   : > { %v3635_v49 = vpop.f32.mrb[120].mxu0  ;;  %v4845_v50 = vpop.f32.mrb[120].mxu1 }
 0x3fb   : > { %5786 = vst.msk [vmem:[%s7189_s23 + $0x5d8] sm:$0xff] %vm5598_vm1, %v5301_v47  ;;  %6028 = vst.msk [vmem:[%s7189_s23 + $0xd68] sm:$0xff] %vm5598_vm1, %v5543_v48  ;;  %v3636_v51 = vadd.f32 %v9293_v59, %v3635_v49  ;;  %v4846_v52 = vadd.f32 %v9293_v59, %v4845_v50  ;;  %v3637_v53 = vpop.f32.mrb[121].mxu0  ;;  %3899 = vmatmul.mubr.f32.gmra.mrb[226].mxu0 %v659_v45  ;;  %v4847_v54 = vpop.f32.mrb[121].mxu1  ;;  %5109 = vmatmul.mubr.f32.gmra.mrb[226].mxu1 %v1143_v46 }
 0x3fd   : > { %v5302_v55 = vmax.f32 %v3636_v51, 0.0  ;;  %v5544_v56 = vmax.f32 %v4846_v52, 0.0 }
 0x3fe   : > { %v3640_v57 = vpop.f32.mrb[122].mxu0  ;;  %v4850_v58 = vpop.f32.mrb[122].mxu1 }
 0x3ff   : > { %5787 = vst.msk [vmem:[%s7189_s23 + $0x5e0] sm:$0xff] %vm5598_vm1, %v5302_v55  ;;  %6029 = vst.msk [vmem:[%s7189_s23 + $0xd70] sm:$0xff] %vm5598_vm1, %v5544_v56  ;;  %v3641_v60 = vadd.f32 %v9293_v59, %v3640_v57  ;;  %v4851_v61 = vadd.f32 %v9293_v59, %v4850_v58  ;;  %v3642_v62 = vpop.f32.mrb[123].mxu0  ;;  %v4852_v63 = vpop.f32.mrb[123].mxu1 }
 0x401   : > { %v5303_v0 = vmax.f32 %v3641_v60, 0.0  ;;  %v5545_v1 = vmax.f32 %v4851_v61, 0.0 }
 0x402   : > { %v3645_v2 = vpop.f32.mrb[124].mxu0  ;;  %v4855_v3 = vpop.f32.mrb[124].mxu1 }
 0x403   : > { %5788 = vst.msk [vmem:[%s7189_s23 + $0x5e8] sm:$0xff] %vm5598_vm1, %v5303_v0  ;;  %6030 = vst.msk [vmem:[%s7189_s23 + $0xd78] sm:$0xff] %vm5598_vm1, %v5545_v1  ;;  %v3646_v4 = vadd.f32 %v9293_v59, %v3645_v2  ;;  %v4856_v5 = vadd.f32 %v9293_v59, %v4855_v3  ;;  %v3647_v6 = vpop.f32.mrb[125].mxu0  ;;  %v4857_v7 = vpop.f32.mrb[125].mxu1 }
 0x405   : > { %v5304_v8 = vmax.f32 %v3646_v4, 0.0  ;;  %v5546_v9 = vmax.f32 %v4856_v5, 0.0 }
 0x406   : > { %v3650_v10 = vpop.f32.mrb[126].mxu0  ;;  %v4860_v11 = vpop.f32.mrb[126].mxu1 }
 0x407   : > { %5789 = vst.msk [vmem:[%s7189_s23 + $0x5f0] sm:$0xff] %vm5598_vm1, %v5304_v8  ;;  %6031 = vst.msk [vmem:[%s7189_s23 + $0xd80] sm:$0xff] %vm5598_vm1, %v5546_v9  ;;  %v3651_v12 = vadd.f32 %v9293_v59, %v3650_v10  ;;  %v4861_v13 = vadd.f32 %v9293_v59, %v4860_v11  ;;  %v3652_v14 = vpop.f32.mrb[127].mxu0  ;;  %v4862_v15 = vpop.f32.mrb[127].mxu1 }
 0x409   : > { %v5305_v16 = vmax.f32 %v3651_v12, 0.0  ;;  %v5547_v17 = vmax.f32 %v4861_v13, 0.0 }
 0x40a   : > { %v3655_v18 = vpop.f32.mrb[128].mxu0  ;;  %v4865_v19 = vpop.f32.mrb[128].mxu1 }
 0x40b   : > { %5790 = vst.msk [vmem:[%s7189_s23 + $0x5f8] sm:$0xff] %vm5598_vm1, %v5305_v16  ;;  %6032 = vst.msk [vmem:[%s7189_s23 + $0xd88] sm:$0xff] %vm5598_vm1, %v5547_v17  ;;  %v3656_v20 = vadd.f32 %v9293_v59, %v3655_v18  ;;  %v4866_v21 = vadd.f32 %v9293_v59, %v4865_v19  ;;  %v3657_v22 = vpop.f32.mrb[129].mxu0  ;;  %v4867_v23 = vpop.f32.mrb[129].mxu1 }
 0x40d   : > { %v5306_v24 = vmax.f32 %v3656_v20, 0.0  ;;  %v5548_v25 = vmax.f32 %v4866_v21, 0.0 }
 0x40e   : > { %v3660_v26 = vpop.f32.mrb[130].mxu0  ;;  %v4870_v27 = vpop.f32.mrb[130].mxu1 }
 0x40f   : > { %5791 = vst.msk [vmem:[%s7189_s23 + $0x600] sm:$0xff] %vm5598_vm1, %v5306_v24  ;;  %6033 = vst.msk [vmem:[%s7189_s23 + $0xd90] sm:$0xff] %vm5598_vm1, %v5548_v25  ;;  %v3661_v28 = vadd.f32 %v9293_v59, %v3660_v26  ;;  %v4871_v29 = vadd.f32 %v9293_v59, %v4870_v27  ;;  %v3662_v30 = vpop.f32.mrb[131].mxu0  ;;  %v4872_v31 = vpop.f32.mrb[131].mxu1 }
 0x411   : > { %v5307_v32 = vmax.f32 %v3661_v28, 0.0  ;;  %v5549_v33 = vmax.f32 %v4871_v29, 0.0 }
 0x412   : > { %v3665_v34 = vpop.f32.mrb[132].mxu0  ;;  %v4875_v35 = vpop.f32.mrb[132].mxu1 }
 0x413   : > { %5792 = vst.msk [vmem:[%s7189_s23 + $0x608] sm:$0xff] %vm5598_vm1, %v5307_v32  ;;  %6034 = vst.msk [vmem:[%s7189_s23 + $0xd98] sm:$0xff] %vm5598_vm1, %v5549_v33  ;;  %v3666_v36 = vadd.f32 %v9293_v59, %v3665_v34  ;;  %v4876_v37 = vadd.f32 %v9293_v59, %v4875_v35  ;;  %v3667_v38 = vpop.f32.mrb[133].mxu0  ;;  %v4877_v39 = vpop.f32.mrb[133].mxu1 }
 0x415   : > { %v5308_v40 = vmax.f32 %v3666_v36, 0.0  ;;  %v5550_v41 = vmax.f32 %v4876_v37, 0.0 }
 0x416   : > { %v3670_v42 = vpop.f32.mrb[134].mxu0  ;;  %v4880_v43 = vpop.f32.mrb[134].mxu1 }
 0x417   : > { %5793 = vst.msk [vmem:[%s7189_s23 + $0x610] sm:$0xff] %vm5598_vm1, %v5308_v40  ;;  %6035 = vst.msk [vmem:[%s7189_s23 + $0xda0] sm:$0xff] %vm5598_vm1, %v5550_v41  ;;  %v3671_v44 = vadd.f32 %v9293_v59, %v3670_v42  ;;  %v4881_v45 = vadd.f32 %v9293_v59, %v4880_v43  ;;  %v3672_v46 = vpop.f32.mrb[135].mxu0  ;;  %v4882_v47 = vpop.f32.mrb[135].mxu1 }
 0x419   : > { %v5309_v48 = vmax.f32 %v3671_v44, 0.0  ;;  %v5551_v49 = vmax.f32 %v4881_v45, 0.0 }
 0x41a   : > { %v3675_v50 = vpop.f32.mrb[136].mxu0  ;;  %v4885_v51 = vpop.f32.mrb[136].mxu1 }
 0x41b   : > { %5794 = vst.msk [vmem:[%s7189_s23 + $0x618] sm:$0xff] %vm5598_vm1, %v5309_v48  ;;  %6036 = vst.msk [vmem:[%s7189_s23 + $0xda8] sm:$0xff] %vm5598_vm1, %v5551_v49  ;;  %v3676_v52 = vadd.f32 %v9293_v59, %v3675_v50  ;;  %v4886_v53 = vadd.f32 %v9293_v59, %v4885_v51  ;;  %v3677_v54 = vpop.f32.mrb[137].mxu0  ;;  %v4887_v55 = vpop.f32.mrb[137].mxu1 }
 0x41d   : > { %v5310_v56 = vmax.f32 %v3676_v52, 0.0  ;;  %v5552_v57 = vmax.f32 %v4886_v53, 0.0 }
 0x41e   : > { %v3680_v58 = vpop.f32.mrb[138].mxu0  ;;  %v4890_v60 = vpop.f32.mrb[138].mxu1 }
 0x41f   : > { %5795 = vst.msk [vmem:[%s7189_s23 + $0x620] sm:$0xff] %vm5598_vm1, %v5310_v56  ;;  %6037 = vst.msk [vmem:[%s7189_s23 + $0xdb0] sm:$0xff] %vm5598_vm1, %v5552_v57  ;;  %v3681_v61 = vadd.f32 %v9293_v59, %v3680_v58  ;;  %v4891_v62 = vadd.f32 %v9293_v59, %v4890_v60  ;;  %v3682_v63 = vpop.f32.mrb[139].mxu0  ;;  %v4892_v0 = vpop.f32.mrb[139].mxu1 }
 0x421   : > { %v5311_v1 = vmax.f32 %v3681_v61, 0.0  ;;  %v5553_v2 = vmax.f32 %v4891_v62, 0.0 }
 0x422   : > { %v3685_v3 = vpop.f32.mrb[140].mxu0  ;;  %v4895_v4 = vpop.f32.mrb[140].mxu1 }
 0x423   : > { %5796 = vst.msk [vmem:[%s7189_s23 + $0x628] sm:$0xff] %vm5598_vm1, %v5311_v1  ;;  %6038 = vst.msk [vmem:[%s7189_s23 + $0xdb8] sm:$0xff] %vm5598_vm1, %v5553_v2  ;;  %v3686_v5 = vadd.f32 %v9293_v59, %v3685_v3  ;;  %v4896_v6 = vadd.f32 %v9293_v59, %v4895_v4  ;;  %v3687_v7 = vpop.f32.mrb[141].mxu0  ;;  %v4897_v8 = vpop.f32.mrb[141].mxu1 }
 0x425   : > { %v5312_v9 = vmax.f32 %v3686_v5, 0.0  ;;  %v5554_v10 = vmax.f32 %v4896_v6, 0.0 }
 0x426   : > { %v3690_v11 = vpop.f32.mrb[142].mxu0  ;;  %v4900_v12 = vpop.f32.mrb[142].mxu1 }
 0x427   : > { %5797 = vst.msk [vmem:[%s7189_s23 + $0x630] sm:$0xff] %vm5598_vm1, %v5312_v9  ;;  %6039 = vst.msk [vmem:[%s7189_s23 + $0xdc0] sm:$0xff] %vm5598_vm1, %v5554_v10  ;;  %v3691_v13 = vadd.f32 %v9293_v59, %v3690_v11  ;;  %v4901_v14 = vadd.f32 %v9293_v59, %v4900_v12  ;;  %v3692_v15 = vpop.f32.mrb[143].mxu0  ;;  %v4902_v16 = vpop.f32.mrb[143].mxu1 }
 0x429   : > { %v5313_v17 = vmax.f32 %v3691_v13, 0.0  ;;  %v5555_v18 = vmax.f32 %v4901_v14, 0.0 }
 0x42a   : > { %v3695_v19 = vpop.f32.mrb[144].mxu0  ;;  %v4905_v20 = vpop.f32.mrb[144].mxu1 }
 0x42b   : > { %5798 = vst.msk [vmem:[%s7189_s23 + $0x638] sm:$0xff] %vm5598_vm1, %v5313_v17  ;;  %6040 = vst.msk [vmem:[%s7189_s23 + $0xdc8] sm:$0xff] %vm5598_vm1, %v5555_v18  ;;  %v3696_v21 = vadd.f32 %v9293_v59, %v3695_v19  ;;  %v4906_v22 = vadd.f32 %v9293_v59, %v4905_v20  ;;  %v3697_v23 = vpop.f32.mrb[145].mxu0  ;;  %v4907_v24 = vpop.f32.mrb[145].mxu1 }
 0x42d   : > { %v5314_v25 = vmax.f32 %v3696_v21, 0.0  ;;  %v5556_v26 = vmax.f32 %v4906_v22, 0.0 }
 0x42e   : > { %v3700_v27 = vpop.f32.mrb[146].mxu0  ;;  %v4910_v28 = vpop.f32.mrb[146].mxu1 }
 0x42f   : > { %5799 = vst.msk [vmem:[%s7189_s23 + $0x640] sm:$0xff] %vm5598_vm1, %v5314_v25  ;;  %6041 = vst.msk [vmem:[%s7189_s23 + $0xdd0] sm:$0xff] %vm5598_vm1, %v5556_v26  ;;  %v3701_v29 = vadd.f32 %v9293_v59, %v3700_v27  ;;  %v4911_v30 = vadd.f32 %v9293_v59, %v4910_v28  ;;  %v3702_v31 = vpop.f32.mrb[147].mxu0  ;;  %v4912_v32 = vpop.f32.mrb[147].mxu1 }
 0x431   : > { %v5315_v33 = vmax.f32 %v3701_v29, 0.0  ;;  %v5557_v34 = vmax.f32 %v4911_v30, 0.0 }
 0x432   : > { %v3705_v35 = vpop.f32.mrb[148].mxu0  ;;  %v4915_v36 = vpop.f32.mrb[148].mxu1 }
 0x433   : > { %5800 = vst.msk [vmem:[%s7189_s23 + $0x648] sm:$0xff] %vm5598_vm1, %v5315_v33  ;;  %6042 = vst.msk [vmem:[%s7189_s23 + $0xdd8] sm:$0xff] %vm5598_vm1, %v5557_v34  ;;  %v3706_v37 = vadd.f32 %v9293_v59, %v3705_v35  ;;  %v4916_v38 = vadd.f32 %v9293_v59, %v4915_v36  ;;  %v3707_v39 = vpop.f32.mrb[149].mxu0  ;;  %v4917_v40 = vpop.f32.mrb[149].mxu1 }
 0x435   : > { %v5316_v41 = vmax.f32 %v3706_v37, 0.0  ;;  %v5558_v42 = vmax.f32 %v4916_v38, 0.0 }
 0x436   : > { %v3710_v43 = vpop.f32.mrb[150].mxu0  ;;  %v4920_v44 = vpop.f32.mrb[150].mxu1 }
 0x437   : > { %5801 = vst.msk [vmem:[%s7189_s23 + $0x650] sm:$0xff] %vm5598_vm1, %v5316_v41  ;;  %6043 = vst.msk [vmem:[%s7189_s23 + $0xde0] sm:$0xff] %vm5598_vm1, %v5558_v42  ;;  %v3711_v45 = vadd.f32 %v9293_v59, %v3710_v43  ;;  %v4921_v46 = vadd.f32 %v9293_v59, %v4920_v44  ;;  %v3712_v47 = vpop.f32.mrb[151].mxu0  ;;  %v4922_v48 = vpop.f32.mrb[151].mxu1 }
 0x439   : > { %v5317_v49 = vmax.f32 %v3711_v45, 0.0  ;;  %v5559_v50 = vmax.f32 %v4921_v46, 0.0 }
 0x43a   : > { %v3715_v51 = vpop.f32.mrb[152].mxu0  ;;  %v4925_v52 = vpop.f32.mrb[152].mxu1 }
 0x43b   : > { %5802 = vst.msk [vmem:[%s7189_s23 + $0x658] sm:$0xff] %vm5598_vm1, %v5317_v49  ;;  %6044 = vst.msk [vmem:[%s7189_s23 + $0xde8] sm:$0xff] %vm5598_vm1, %v5559_v50  ;;  %v3716_v53 = vadd.f32 %v9293_v59, %v3715_v51  ;;  %v4926_v54 = vadd.f32 %v9293_v59, %v4925_v52  ;;  %v3717_v55 = vpop.f32.mrb[153].mxu0  ;;  %v4927_v56 = vpop.f32.mrb[153].mxu1 }
 0x43d   : > { %v5318_v57 = vmax.f32 %v3716_v53, 0.0  ;;  %v5560_v58 = vmax.f32 %v4926_v54, 0.0 }
 0x43e   : > { %v3720_v60 = vpop.f32.mrb[154].mxu0  ;;  %v4930_v61 = vpop.f32.mrb[154].mxu1 }
 0x43f   : > { %5803 = vst.msk [vmem:[%s7189_s23 + $0x660] sm:$0xff] %vm5598_vm1, %v5318_v57  ;;  %6045 = vst.msk [vmem:[%s7189_s23 + $0xdf0] sm:$0xff] %vm5598_vm1, %v5560_v58  ;;  %v3721_v62 = vadd.f32 %v9293_v59, %v3720_v60  ;;  %v4931_v63 = vadd.f32 %v9293_v59, %v4930_v61  ;;  %v3722_v0 = vpop.f32.mrb[155].mxu0  ;;  %v4932_v1 = vpop.f32.mrb[155].mxu1 }
 0x441   : > { %v5319_v2 = vmax.f32 %v3721_v62, 0.0  ;;  %v5561_v3 = vmax.f32 %v4931_v63, 0.0  ;;  %v9626_v63 = vld [vmem:[%s9807_s2] ss:$0 sm:$0xff] }
 0x442   : > { %v3725_v4 = vpop.f32.mrb[156].mxu0  ;;  %v4935_v5 = vpop.f32.mrb[156].mxu1 }
 0x443   : > { %5804 = vst.msk [vmem:[%s7189_s23 + $0x668] sm:$0xff] %vm5598_vm1, %v5319_v2  ;;  %6046 = vst.msk [vmem:[%s7189_s23 + $0xdf8] sm:$0xff] %vm5598_vm1, %v5561_v3  ;;  %v3726_v6 = vadd.f32 %v9293_v59, %v3725_v4  ;;  %v4936_v7 = vadd.f32 %v9293_v59, %v4935_v5  ;;  %v3727_v8 = vpop.f32.mrb[157].mxu0  ;;  %v4937_v9 = vpop.f32.mrb[157].mxu1 }
 0x445   : > { %v5320_v10 = vmax.f32 %v3726_v6, 0.0  ;;  %v5562_v11 = vmax.f32 %v4936_v7, 0.0 }
 0x446   : > { %v3730_v12 = vpop.f32.mrb[158].mxu0  ;;  %v4940_v13 = vpop.f32.mrb[158].mxu1 }
 0x447   : > { %5805 = vst.msk [vmem:[%s7189_s23 + $0x670] sm:$0xff] %vm5598_vm1, %v5320_v10  ;;  %6047 = vst.msk [vmem:[%s7189_s23 + $0xe00] sm:$0xff] %vm5598_vm1, %v5562_v11  ;;  %v3731_v14 = vadd.f32 %v9293_v59, %v3730_v12  ;;  %v4941_v15 = vadd.f32 %v9293_v59, %v4940_v13  ;;  %v3732_v16 = vpop.f32.mrb[159].mxu0  ;;  %v4942_v17 = vpop.f32.mrb[159].mxu1 }
 0x449   : > { %v5321_v18 = vmax.f32 %v3731_v14, 0.0  ;;  %v5563_v19 = vmax.f32 %v4941_v15, 0.0 }
 0x44a   : > { %v3735_v20 = vpop.f32.mrb[160].mxu0  ;;  %v4945_v21 = vpop.f32.mrb[160].mxu1 }
 0x44b   : > { %5806 = vst.msk [vmem:[%s7189_s23 + $0x678] sm:$0xff] %vm5598_vm1, %v5321_v18  ;;  %6048 = vst.msk [vmem:[%s7189_s23 + $0xe08] sm:$0xff] %vm5598_vm1, %v5563_v19  ;;  %v3736_v22 = vadd.f32 %v9293_v59, %v3735_v20  ;;  %v4946_v23 = vadd.f32 %v9293_v59, %v4945_v21  ;;  %v3737_v24 = vpop.f32.mrb[161].mxu0  ;;  %v4947_v25 = vpop.f32.mrb[161].mxu1 }
 0x44d   : > { %v5322_v26 = vmax.f32 %v3736_v22, 0.0  ;;  %v5564_v27 = vmax.f32 %v4946_v23, 0.0 }
 0x44e   : > { %v3740_v28 = vpop.f32.mrb[162].mxu0  ;;  %v4950_v29 = vpop.f32.mrb[162].mxu1 }
 0x44f   : > { %5807 = vst.msk [vmem:[%s7189_s23 + $0x680] sm:$0xff] %vm5598_vm1, %v5322_v26  ;;  %6049 = vst.msk [vmem:[%s7189_s23 + $0xe10] sm:$0xff] %vm5598_vm1, %v5564_v27  ;;  %v3741_v30 = vadd.f32 %v9293_v59, %v3740_v28  ;;  %v4951_v31 = vadd.f32 %v9293_v59, %v4950_v29  ;;  %v3742_v32 = vpop.f32.mrb[163].mxu0  ;;  %v4952_v33 = vpop.f32.mrb[163].mxu1 }
 0x451   : > { %v5323_v34 = vmax.f32 %v3741_v30, 0.0  ;;  %v5565_v35 = vmax.f32 %v4951_v31, 0.0 }
 0x452   : > { %v3745_v36 = vpop.f32.mrb[164].mxu0  ;;  %v4955_v37 = vpop.f32.mrb[164].mxu1 }
 0x453   : > { %5808 = vst.msk [vmem:[%s7189_s23 + $0x688] sm:$0xff] %vm5598_vm1, %v5323_v34  ;;  %6050 = vst.msk [vmem:[%s7189_s23 + $0xe18] sm:$0xff] %vm5598_vm1, %v5565_v35  ;;  %v3746_v38 = vadd.f32 %v9293_v59, %v3745_v36  ;;  %v4956_v39 = vadd.f32 %v9293_v59, %v4955_v37  ;;  %v3747_v40 = vpop.f32.mrb[165].mxu0  ;;  %v4957_v41 = vpop.f32.mrb[165].mxu1 }
 0x455   : > { %v5324_v42 = vmax.f32 %v3746_v38, 0.0  ;;  %v5566_v43 = vmax.f32 %v4956_v39, 0.0 }
 0x456   : > { %v3750_v44 = vpop.f32.mrb[166].mxu0  ;;  %v4960_v45 = vpop.f32.mrb[166].mxu1 }
 0x457   : > { %5809 = vst.msk [vmem:[%s7189_s23 + $0x690] sm:$0xff] %vm5598_vm1, %v5324_v42  ;;  %6051 = vst.msk [vmem:[%s7189_s23 + $0xe20] sm:$0xff] %vm5598_vm1, %v5566_v43  ;;  %v3751_v46 = vadd.f32 %v9293_v59, %v3750_v44  ;;  %v4961_v47 = vadd.f32 %v9293_v59, %v4960_v45  ;;  %v3752_v48 = vpop.f32.mrb[167].mxu0  ;;  %v4962_v49 = vpop.f32.mrb[167].mxu1 }
 0x459   : > { %v5325_v50 = vmax.f32 %v3751_v46, 0.0  ;;  %v5567_v51 = vmax.f32 %v4961_v47, 0.0 }
 0x45a   : > { %v3755_v52 = vpop.f32.mrb[168].mxu0  ;;  %v4965_v53 = vpop.f32.mrb[168].mxu1 }
 0x45b   : > { %5810 = vst.msk [vmem:[%s7189_s23 + $0x698] sm:$0xff] %vm5598_vm1, %v5325_v50  ;;  %6052 = vst.msk [vmem:[%s7189_s23 + $0xe28] sm:$0xff] %vm5598_vm1, %v5567_v51  ;;  %v3756_v54 = vadd.f32 %v9293_v59, %v3755_v52  ;;  %v4966_v55 = vadd.f32 %v9293_v59, %v4965_v53  ;;  %v3757_v56 = vpop.f32.mrb[169].mxu0  ;;  %v4967_v57 = vpop.f32.mrb[169].mxu1 }
 0x45d   : > { %v5326_v58 = vmax.f32 %v3756_v54, 0.0  ;;  %v5568_v60 = vmax.f32 %v4966_v55, 0.0 }
 0x45e   : > { %v3760_v61 = vpop.f32.mrb[170].mxu0  ;;  %v4970_v62 = vpop.f32.mrb[170].mxu1 }
 0x45f   : > { %5811 = vst.msk [vmem:[%s7189_s23 + $0x6a0] sm:$0xff] %vm5598_vm1, %v5326_v58  ;;  %6053 = vst.msk [vmem:[%s7189_s23 + $0xe30] sm:$0xff] %vm5598_vm1, %v5568_v60  ;;  %v3761_v0 = vadd.f32 %v9626_v63, %v3760_v61  ;;  %v4971_v59 = vadd.f32 %v9626_v63, %v4970_v62  ;;  %v3762_v1 = vpop.f32.mrb[171].mxu0  ;;  %v4972_v2 = vpop.f32.mrb[171].mxu1 }
 0x461   : > { %v5327_v3 = vmax.f32 %v3761_v0, 0.0  ;;  %v5569_v4 = vmax.f32 %v4971_v59, 0.0 }
 0x462   : > { %v3765_v5 = vpop.f32.mrb[172].mxu0  ;;  %v4975_v6 = vpop.f32.mrb[172].mxu1 }
 0x463   : > { %5812 = vst.msk [vmem:[%s7189_s23 + $0x6a8] sm:$0xff] %vm5598_vm1, %v5327_v3  ;;  %6054 = vst.msk [vmem:[%s7189_s23 + $0xe38] sm:$0xff] %vm5598_vm1, %v5569_v4  ;;  %v3766_v7 = vadd.f32 %v9626_v63, %v3765_v5  ;;  %v4976_v8 = vadd.f32 %v9626_v63, %v4975_v6  ;;  %v3767_v9 = vpop.f32.mrb[173].mxu0  ;;  %v4977_v10 = vpop.f32.mrb[173].mxu1 }
 0x465   : > { %v5328_v11 = vmax.f32 %v3766_v7, 0.0  ;;  %v5570_v12 = vmax.f32 %v4976_v8, 0.0 }
 0x466   : > { %v3770_v13 = vpop.f32.mrb[174].mxu0  ;;  %v4980_v14 = vpop.f32.mrb[174].mxu1 }
 0x467   : > { %5813 = vst.msk [vmem:[%s7189_s23 + $0x6b0] sm:$0xff] %vm5598_vm1, %v5328_v11  ;;  %6055 = vst.msk [vmem:[%s7189_s23 + $0xe40] sm:$0xff] %vm5598_vm1, %v5570_v12  ;;  %v3771_v15 = vadd.f32 %v9626_v63, %v3770_v13  ;;  %v4981_v16 = vadd.f32 %v9626_v63, %v4980_v14  ;;  %v3772_v17 = vpop.f32.mrb[175].mxu0  ;;  %v4982_v18 = vpop.f32.mrb[175].mxu1 }
 0x469   : > { %v5329_v19 = vmax.f32 %v3771_v15, 0.0  ;;  %v5571_v20 = vmax.f32 %v4981_v16, 0.0 }
 0x46a   : > { %v3775_v21 = vpop.f32.mrb[176].mxu0  ;;  %v4985_v22 = vpop.f32.mrb[176].mxu1 }
 0x46b   : > { %5814 = vst.msk [vmem:[%s7189_s23 + $0x6b8] sm:$0xff] %vm5598_vm1, %v5329_v19  ;;  %6056 = vst.msk [vmem:[%s7189_s23 + $0xe48] sm:$0xff] %vm5598_vm1, %v5571_v20  ;;  %v3776_v23 = vadd.f32 %v9626_v63, %v3775_v21  ;;  %v4986_v24 = vadd.f32 %v9626_v63, %v4985_v22  ;;  %v3777_v25 = vpop.f32.mrb[177].mxu0  ;;  %v4987_v26 = vpop.f32.mrb[177].mxu1 }
 0x46d   : > { %v5330_v27 = vmax.f32 %v3776_v23, 0.0  ;;  %v5572_v28 = vmax.f32 %v4986_v24, 0.0 }
 0x46e   : > { %v3780_v29 = vpop.f32.mrb[178].mxu0  ;;  %v4990_v30 = vpop.f32.mrb[178].mxu1 }
 0x46f   : > { %5815 = vst.msk [vmem:[%s7189_s23 + $0x6c0] sm:$0xff] %vm5598_vm1, %v5330_v27  ;;  %6057 = vst.msk [vmem:[%s7189_s23 + $0xe50] sm:$0xff] %vm5598_vm1, %v5572_v28  ;;  %v3781_v31 = vadd.f32 %v9626_v63, %v3780_v29  ;;  %v4991_v32 = vadd.f32 %v9626_v63, %v4990_v30  ;;  %v3782_v33 = vpop.f32.mrb[179].mxu0  ;;  %v4992_v34 = vpop.f32.mrb[179].mxu1 }
 0x471   : > { %v5331_v35 = vmax.f32 %v3781_v31, 0.0  ;;  %v5573_v36 = vmax.f32 %v4991_v32, 0.0 }
 0x472   : > { %v3785_v37 = vpop.f32.mrb[180].mxu0  ;;  %v4995_v38 = vpop.f32.mrb[180].mxu1 }
 0x473   : > { %5816 = vst.msk [vmem:[%s7189_s23 + $0x6c8] sm:$0xff] %vm5598_vm1, %v5331_v35  ;;  %6058 = vst.msk [vmem:[%s7189_s23 + $0xe58] sm:$0xff] %vm5598_vm1, %v5573_v36  ;;  %v3786_v39 = vadd.f32 %v9626_v63, %v3785_v37  ;;  %v4996_v40 = vadd.f32 %v9626_v63, %v4995_v38  ;;  %v3787_v41 = vpop.f32.mrb[181].mxu0  ;;  %v4997_v42 = vpop.f32.mrb[181].mxu1 }
 0x475   : > { %v5332_v43 = vmax.f32 %v3786_v39, 0.0  ;;  %v5574_v44 = vmax.f32 %v4996_v40, 0.0 }
 0x476   : > { %v3790_v45 = vpop.f32.mrb[182].mxu0  ;;  %v5000_v46 = vpop.f32.mrb[182].mxu1 }
 0x477   : > { %5817 = vst.msk [vmem:[%s7189_s23 + $0x6d0] sm:$0xff] %vm5598_vm1, %v5332_v43  ;;  %6059 = vst.msk [vmem:[%s7189_s23 + $0xe60] sm:$0xff] %vm5598_vm1, %v5574_v44  ;;  %v3791_v47 = vadd.f32 %v9626_v63, %v3790_v45  ;;  %v5001_v48 = vadd.f32 %v9626_v63, %v5000_v46  ;;  %v3792_v49 = vpop.f32.mrb[183].mxu0  ;;  %v5002_v50 = vpop.f32.mrb[183].mxu1 }
 0x479   : > { %v5333_v51 = vmax.f32 %v3791_v47, 0.0  ;;  %v5575_v52 = vmax.f32 %v5001_v48, 0.0 }
 0x47a   : > { %v3795_v53 = vpop.f32.mrb[184].mxu0  ;;  %v5005_v54 = vpop.f32.mrb[184].mxu1 }
 0x47b   : > { %5818 = vst.msk [vmem:[%s7189_s23 + $0x6d8] sm:$0xff] %vm5598_vm1, %v5333_v51  ;;  %6060 = vst.msk [vmem:[%s7189_s23 + $0xe68] sm:$0xff] %vm5598_vm1, %v5575_v52  ;;  %v3796_v55 = vadd.f32 %v9626_v63, %v3795_v53  ;;  %v5006_v56 = vadd.f32 %v9626_v63, %v5005_v54  ;;  %v3797_v57 = vpop.f32.mrb[185].mxu0  ;;  %v5007_v58 = vpop.f32.mrb[185].mxu1 }
 0x47d   : > { %v5334_v60 = vmax.f32 %v3796_v55, 0.0  ;;  %v5576_v61 = vmax.f32 %v5006_v56, 0.0 }
 0x47e   : > { %v3800_v62 = vpop.f32.mrb[186].mxu0  ;;  %v5010_v0 = vpop.f32.mrb[186].mxu1 }
 0x47f   : > { %5819 = vst.msk [vmem:[%s7189_s23 + $0x6e0] sm:$0xff] %vm5598_vm1, %v5334_v60  ;;  %6061 = vst.msk [vmem:[%s7189_s23 + $0xe70] sm:$0xff] %vm5598_vm1, %v5576_v61  ;;  %v3801_v59 = vadd.f32 %v9626_v63, %v3800_v62  ;;  %v5011_v1 = vadd.f32 %v9626_v63, %v5010_v0  ;;  %v3802_v2 = vpop.f32.mrb[187].mxu0  ;;  %v5012_v3 = vpop.f32.mrb[187].mxu1 }
 0x481   : > { %v5335_v4 = vmax.f32 %v3801_v59, 0.0  ;;  %v5577_v5 = vmax.f32 %v5011_v1, 0.0 }
 0x482   : > { %v3805_v6 = vpop.f32.mrb[188].mxu0  ;;  %v5015_v7 = vpop.f32.mrb[188].mxu1 }
 0x483   : > { %5820 = vst.msk [vmem:[%s7189_s23 + $0x6e8] sm:$0xff] %vm5598_vm1, %v5335_v4  ;;  %6062 = vst.msk [vmem:[%s7189_s23 + $0xe78] sm:$0xff] %vm5598_vm1, %v5577_v5  ;;  %v3806_v8 = vadd.f32 %v9626_v63, %v3805_v6  ;;  %v5016_v9 = vadd.f32 %v9626_v63, %v5015_v7  ;;  %v3807_v10 = vpop.f32.mrb[189].mxu0  ;;  %v5017_v11 = vpop.f32.mrb[189].mxu1 }
 0x485   : > { %v5336_v12 = vmax.f32 %v3806_v8, 0.0  ;;  %v5578_v13 = vmax.f32 %v5016_v9, 0.0 }
 0x486   : > { %v3810_v14 = vpop.f32.mrb[190].mxu0  ;;  %v5020_v15 = vpop.f32.mrb[190].mxu1 }
 0x487   : > { %5821 = vst.msk [vmem:[%s7189_s23 + $0x6f0] sm:$0xff] %vm5598_vm1, %v5336_v12  ;;  %6063 = vst.msk [vmem:[%s7189_s23 + $0xe80] sm:$0xff] %vm5598_vm1, %v5578_v13  ;;  %v3811_v16 = vadd.f32 %v9626_v63, %v3810_v14  ;;  %v5021_v17 = vadd.f32 %v9626_v63, %v5020_v15  ;;  %v3812_v18 = vpop.f32.mrb[191].mxu0  ;;  %v5022_v19 = vpop.f32.mrb[191].mxu1 }
 0x489   : > { %v5337_v20 = vmax.f32 %v3811_v16, 0.0  ;;  %v5579_v21 = vmax.f32 %v5021_v17, 0.0 }
 0x48a   : > { %v3815_v22 = vpop.f32.mrb[192].mxu0  ;;  %v5025_v23 = vpop.f32.mrb[192].mxu1 }
 0x48b   : > { %5822 = vst.msk [vmem:[%s7189_s23 + $0x6f8] sm:$0xff] %vm5598_vm1, %v5337_v20  ;;  %6064 = vst.msk [vmem:[%s7189_s23 + $0xe88] sm:$0xff] %vm5598_vm1, %v5579_v21  ;;  %v3816_v24 = vadd.f32 %v9626_v63, %v3815_v22  ;;  %v5026_v25 = vadd.f32 %v9626_v63, %v5025_v23  ;;  %v3817_v26 = vpop.f32.mrb[193].mxu0  ;;  %v5027_v27 = vpop.f32.mrb[193].mxu1 }
 0x48d   : > { %v5338_v28 = vmax.f32 %v3816_v24, 0.0  ;;  %v5580_v29 = vmax.f32 %v5026_v25, 0.0 }
 0x48e   : > { %v3820_v30 = vpop.f32.mrb[194].mxu0  ;;  %v5030_v31 = vpop.f32.mrb[194].mxu1 }
 0x48f   : > { %5823 = vst.msk [vmem:[%s7189_s23 + $0x700] sm:$0xff] %vm5598_vm1, %v5338_v28  ;;  %6065 = vst.msk [vmem:[%s7189_s23 + $0xe90] sm:$0xff] %vm5598_vm1, %v5580_v29  ;;  %v3821_v32 = vadd.f32 %v9626_v63, %v3820_v30  ;;  %v5031_v33 = vadd.f32 %v9626_v63, %v5030_v31  ;;  %v3822_v34 = vpop.f32.mrb[195].mxu0  ;;  %v5032_v35 = vpop.f32.mrb[195].mxu1 }
 0x491   : > { %v5339_v36 = vmax.f32 %v3821_v32, 0.0  ;;  %v5581_v37 = vmax.f32 %v5031_v33, 0.0 }
 0x492   : > { %v3825_v38 = vpop.f32.mrb[196].mxu0  ;;  %v5035_v39 = vpop.f32.mrb[196].mxu1 }
 0x493   : > { %5824 = vst.msk [vmem:[%s7189_s23 + $0x708] sm:$0xff] %vm5598_vm1, %v5339_v36  ;;  %6066 = vst.msk [vmem:[%s7189_s23 + $0xe98] sm:$0xff] %vm5598_vm1, %v5581_v37  ;;  %v3826_v40 = vadd.f32 %v9626_v63, %v3825_v38  ;;  %v5036_v41 = vadd.f32 %v9626_v63, %v5035_v39  ;;  %v3827_v42 = vpop.f32.mrb[197].mxu0  ;;  %v5037_v43 = vpop.f32.mrb[197].mxu1 }
 0x495   : > { %v5340_v44 = vmax.f32 %v3826_v40, 0.0  ;;  %v5582_v45 = vmax.f32 %v5036_v41, 0.0 }
 0x496   : > { %v3830_v46 = vpop.f32.mrb[198].mxu0  ;;  %v5040_v47 = vpop.f32.mrb[198].mxu1 }
 0x497   : > { %5825 = vst.msk [vmem:[%s7189_s23 + $0x710] sm:$0xff] %vm5598_vm1, %v5340_v44  ;;  %6067 = vst.msk [vmem:[%s7189_s23 + $0xea0] sm:$0xff] %vm5598_vm1, %v5582_v45  ;;  %v3831_v48 = vadd.f32 %v9626_v63, %v3830_v46  ;;  %v5041_v49 = vadd.f32 %v9626_v63, %v5040_v47  ;;  %v3832_v50 = vpop.f32.mrb[199].mxu0  ;;  %v5042_v51 = vpop.f32.mrb[199].mxu1 }
 0x499   : > { %v5341_v52 = vmax.f32 %v3831_v48, 0.0  ;;  %v5583_v53 = vmax.f32 %v5041_v49, 0.0 }
 0x49a   : > { %v3835_v54 = vpop.f32.mrb[200].mxu0  ;;  %v5045_v55 = vpop.f32.mrb[200].mxu1 }
 0x49b   : > { %5826 = vst.msk [vmem:[%s7189_s23 + $0x718] sm:$0xff] %vm5598_vm1, %v5341_v52  ;;  %6068 = vst.msk [vmem:[%s7189_s23 + $0xea8] sm:$0xff] %vm5598_vm1, %v5583_v53  ;;  %v3836_v56 = vadd.f32 %v9626_v63, %v3835_v54  ;;  %v5046_v57 = vadd.f32 %v9626_v63, %v5045_v55  ;;  %v3837_v58 = vpop.f32.mrb[201].mxu0  ;;  %v5047_v60 = vpop.f32.mrb[201].mxu1 }
 0x49d   : > { %v5342_v61 = vmax.f32 %v3836_v56, 0.0  ;;  %v5584_v62 = vmax.f32 %v5046_v57, 0.0 }
 0x49e   : > { %v3840_v0 = vpop.f32.mrb[202].mxu0  ;;  %v5050_v59 = vpop.f32.mrb[202].mxu1 }
 0x49f   : > { %5827 = vst.msk [vmem:[%s7189_s23 + $0x720] sm:$0xff] %vm5598_vm1, %v5342_v61  ;;  %6069 = vst.msk [vmem:[%s7189_s23 + $0xeb0] sm:$0xff] %vm5598_vm1, %v5584_v62  ;;  %v3841_v1 = vadd.f32 %v9626_v63, %v3840_v0  ;;  %v5051_v2 = vadd.f32 %v9626_v63, %v5050_v59  ;;  %v3842_v3 = vpop.f32.mrb[203].mxu0  ;;  %v5052_v4 = vpop.f32.mrb[203].mxu1 }
 0x4a1   : > { %v5343_v5 = vmax.f32 %v3841_v1, 0.0  ;;  %v5585_v6 = vmax.f32 %v5051_v2, 0.0 }
 0x4a2   : > { %v3845_v7 = vpop.f32.mrb[204].mxu0  ;;  %v5055_v8 = vpop.f32.mrb[204].mxu1 }
 0x4a3   : > { %5828 = vst.msk [vmem:[%s7189_s23 + $0x728] sm:$0xff] %vm5598_vm1, %v5343_v5  ;;  %6070 = vst.msk [vmem:[%s7189_s23 + $0xeb8] sm:$0xff] %vm5598_vm1, %v5585_v6  ;;  %v3846_v9 = vadd.f32 %v9626_v63, %v3845_v7  ;;  %v5056_v10 = vadd.f32 %v9626_v63, %v5055_v8  ;;  %v3847_v11 = vpop.f32.mrb[205].mxu0  ;;  %v5057_v12 = vpop.f32.mrb[205].mxu1 }
 0x4a5   : > { %v5344_v13 = vmax.f32 %v3846_v9, 0.0  ;;  %v5586_v14 = vmax.f32 %v5056_v10, 0.0 }
 0x4a6   : > { %v3850_v15 = vpop.f32.mrb[206].mxu0  ;;  %v5060_v16 = vpop.f32.mrb[206].mxu1 }
 0x4a7   : > { %5829 = vst.msk [vmem:[%s7189_s23 + $0x730] sm:$0xff] %vm5598_vm1, %v5344_v13  ;;  %6071 = vst.msk [vmem:[%s7189_s23 + $0xec0] sm:$0xff] %vm5598_vm1, %v5586_v14  ;;  %v3851_v17 = vadd.f32 %v9626_v63, %v3850_v15  ;;  %v5061_v18 = vadd.f32 %v9626_v63, %v5060_v16  ;;  %v3852_v19 = vpop.f32.mrb[207].mxu0  ;;  %v5062_v20 = vpop.f32.mrb[207].mxu1 }
 0x4a9   : > { %v5345_v21 = vmax.f32 %v3851_v17, 0.0  ;;  %v5587_v22 = vmax.f32 %v5061_v18, 0.0 }
 0x4aa   : > { %v3855_v23 = vpop.f32.mrb[208].mxu0  ;;  %v5065_v24 = vpop.f32.mrb[208].mxu1 }
 0x4ab   : > { %5830 = vst.msk [vmem:[%s7189_s23 + $0x738] sm:$0xff] %vm5598_vm1, %v5345_v21  ;;  %6072 = vst.msk [vmem:[%s7189_s23 + $0xec8] sm:$0xff] %vm5598_vm1, %v5587_v22  ;;  %v3856_v25 = vadd.f32 %v9626_v63, %v3855_v23  ;;  %v5066_v26 = vadd.f32 %v9626_v63, %v5065_v24  ;;  %v3857_v27 = vpop.f32.mrb[209].mxu0  ;;  %v5067_v28 = vpop.f32.mrb[209].mxu1 }
 0x4ad   : > { %v5346_v29 = vmax.f32 %v3856_v25, 0.0  ;;  %v5588_v30 = vmax.f32 %v5066_v26, 0.0 }
 0x4ae   : > { %v3860_v31 = vpop.f32.mrb[210].mxu0  ;;  %v5070_v32 = vpop.f32.mrb[210].mxu1 }
 0x4af   : > { %5831 = vst.msk [vmem:[%s7189_s23 + $0x740] sm:$0xff] %vm5598_vm1, %v5346_v29  ;;  %6073 = vst.msk [vmem:[%s7189_s23 + $0xed0] sm:$0xff] %vm5598_vm1, %v5588_v30  ;;  %v3861_v33 = vadd.f32 %v9626_v63, %v3860_v31  ;;  %v5071_v34 = vadd.f32 %v9626_v63, %v5070_v32  ;;  %v3862_v35 = vpop.f32.mrb[211].mxu0  ;;  %v5072_v36 = vpop.f32.mrb[211].mxu1 }
 0x4b1   : > { %v5347_v37 = vmax.f32 %v3861_v33, 0.0  ;;  %v5589_v38 = vmax.f32 %v5071_v34, 0.0 }
 0x4b2   : > { %v3865_v39 = vpop.f32.mrb[212].mxu0  ;;  %v5075_v40 = vpop.f32.mrb[212].mxu1 }
 0x4b3   : > { %5832 = vst.msk [vmem:[%s7189_s23 + $0x748] sm:$0xff] %vm5598_vm1, %v5347_v37  ;;  %6074 = vst.msk [vmem:[%s7189_s23 + $0xed8] sm:$0xff] %vm5598_vm1, %v5589_v38  ;;  %v3866_v41 = vadd.f32 %v9626_v63, %v3865_v39  ;;  %v5076_v42 = vadd.f32 %v9626_v63, %v5075_v40  ;;  %v3867_v43 = vpop.f32.mrb[213].mxu0  ;;  %v5077_v44 = vpop.f32.mrb[213].mxu1 }
 0x4b5   : > { %v5348_v45 = vmax.f32 %v3866_v41, 0.0  ;;  %v5590_v46 = vmax.f32 %v5076_v42, 0.0 }
 0x4b6   : > { %v3870_v47 = vpop.f32.mrb[214].mxu0  ;;  %v5080_v48 = vpop.f32.mrb[214].mxu1 }
 0x4b7   : > { %5833 = vst.msk [vmem:[%s7189_s23 + $0x750] sm:$0xff] %vm5598_vm1, %v5348_v45  ;;  %6075 = vst.msk [vmem:[%s7189_s23 + $0xee0] sm:$0xff] %vm5598_vm1, %v5590_v46  ;;  %v3871_v49 = vadd.f32 %v9626_v63, %v3870_v47  ;;  %v5081_v50 = vadd.f32 %v9626_v63, %v5080_v48  ;;  %v3872_v51 = vpop.f32.mrb[215].mxu0  ;;  %v5082_v52 = vpop.f32.mrb[215].mxu1 }
 0x4b9   : > { %v5349_v53 = vmax.f32 %v3871_v49, 0.0  ;;  %v5591_v54 = vmax.f32 %v5081_v50, 0.0 }
 0x4ba   : > { %v3875_v55 = vpop.f32.mrb[216].mxu0  ;;  %v5085_v56 = vpop.f32.mrb[216].mxu1 }
 0x4bb   : > { %5834 = vst.msk [vmem:[%s7189_s23 + $0x758] sm:$0xff] %vm5598_vm1, %v5349_v53  ;;  %6076 = vst.msk [vmem:[%s7189_s23 + $0xee8] sm:$0xff] %vm5598_vm1, %v5591_v54  ;;  %v3876_v57 = vadd.f32 %v9626_v63, %v3875_v55  ;;  %v5086_v58 = vadd.f32 %v9626_v63, %v5085_v56  ;;  %v3877_v60 = vpop.f32.mrb[217].mxu0  ;;  %v5087_v61 = vpop.f32.mrb[217].mxu1 }
 0x4bd   : > { %v5350_v62 = vmax.f32 %v3876_v57, 0.0  ;;  %v5592_v0 = vmax.f32 %v5086_v58, 0.0 }
 0x4be   : > { %v3880_v59 = vpop.f32.mrb[218].mxu0  ;;  %v5090_v1 = vpop.f32.mrb[218].mxu1 }
 0x4bf   : > { %5835 = vst.msk [vmem:[%s7189_s23 + $0x760] sm:$0xff] %vm5598_vm1, %v5350_v62  ;;  %6077 = vst.msk [vmem:[%s7189_s23 + $0xef0] sm:$0xff] %vm5598_vm1, %v5592_v0  ;;  %v3881_v2 = vadd.f32 %v9626_v63, %v3880_v59  ;;  %v5091_v3 = vadd.f32 %v9626_v63, %v5090_v1  ;;  %v3882_v4 = vpop.f32.mrb[219].mxu0  ;;  %v5092_v5 = vpop.f32.mrb[219].mxu1 }
 0x4c1   : > { %v5351_v6 = vmax.f32 %v3881_v2, 0.0  ;;  %v5593_v7 = vmax.f32 %v5091_v3, 0.0 }
 0x4c2   : > { %v3885_v8 = vpop.f32.mrb[220].mxu0  ;;  %v5095_v9 = vpop.f32.mrb[220].mxu1 }
 0x4c3   : > { %5836 = vst.msk [vmem:[%s7189_s23 + $0x768] sm:$0xff] %vm5598_vm1, %v5351_v6  ;;  %6078 = vst.msk [vmem:[%s7189_s23 + $0xef8] sm:$0xff] %vm5598_vm1, %v5593_v7  ;;  %v3886_v10 = vadd.f32 %v9626_v63, %v3885_v8  ;;  %v5096_v11 = vadd.f32 %v9626_v63, %v5095_v9  ;;  %v3887_v12 = vpop.f32.mrb[221].mxu0  ;;  %v5097_v13 = vpop.f32.mrb[221].mxu1 }
 0x4c5   : > { %v5352_v14 = vmax.f32 %v3886_v10, 0.0  ;;  %v5594_v15 = vmax.f32 %v5096_v11, 0.0 }
 0x4c6   : > { %v3890_v16 = vpop.f32.mrb[222].mxu0  ;;  %v5100_v17 = vpop.f32.mrb[222].mxu1 }
 0x4c7   : > { %5837 = vst.msk [vmem:[%s7189_s23 + $0x770] sm:$0xff] %vm5598_vm1, %v5352_v14  ;;  %6079 = vst.msk [vmem:[%s7189_s23 + $0xf00] sm:$0xff] %vm5598_vm1, %v5594_v15  ;;  %v3891_v18 = vadd.f32 %v9626_v63, %v3890_v16  ;;  %v5101_v19 = vadd.f32 %v9626_v63, %v5100_v17  ;;  %v3892_v20 = vpop.f32.mrb[223].mxu0  ;;  %v5102_v21 = vpop.f32.mrb[223].mxu1 }
 0x4c9   : > { %v5353_v22 = vmax.f32 %v3891_v18, 0.0  ;;  %v5595_v23 = vmax.f32 %v5101_v19, 0.0 }
 0x4ca   : > { %v3895_v24 = vpop.f32.mrb[224].mxu0  ;;  %v5105_v25 = vpop.f32.mrb[224].mxu1 }
 0x4cb   : > { %5838 = vst.msk [vmem:[%s7189_s23 + $0x778] sm:$0xff] %vm5598_vm1, %v5353_v22  ;;  %6080 = vst.msk [vmem:[%s7189_s23 + $0xf08] sm:$0xff] %vm5598_vm1, %v5595_v23  ;;  %v3896_v26 = vadd.f32 %v9626_v63, %v3895_v24  ;;  %v5106_v27 = vadd.f32 %v9626_v63, %v5105_v25  ;;  %v3897_v28 = vpop.f32.mrb[225].mxu0  ;;  %v5107_v29 = vpop.f32.mrb[225].mxu1 }
 0x4cd   : > { %v5354_v30 = vmax.f32 %v3896_v26, 0.0  ;;  %v5596_v31 = vmax.f32 %v5106_v27, 0.0 }
 0x4ce   : > { %v3900_v32 = vpop.f32.mrb[226].mxu0  ;;  %v5110_v33 = vpop.f32.mrb[226].mxu1 }
 0x4cf   : > { %5839 = vst.msk [vmem:[%s7189_s23 + $0x780] sm:$0xff] %vm5598_vm1, %v5354_v30  ;;  %6081 = vst.msk [vmem:[%s7189_s23 + $0xf10] sm:$0xff] %vm5598_vm1, %v5596_v31  ;;  %v3901_v34 = vadd.f32 %v9626_v63, %v3900_v32  ;;  %v5111_v35 = vadd.f32 %v9626_v63, %v5110_v33  ;;  %v3902_v36 = vpop.f32.mrb[227].mxu0  ;;  %v5112_v37 = vpop.f32.mrb[227].mxu1 }
 0x4d1   : > { %v5355_v38 = vmax.f32 %v3901_v34, 0.0  ;;  %v5597_v39 = vmax.f32 %v5111_v35, 0.0 }
 0x4d3   : > { %5840 = vst.msk [vmem:[%s7189_s23 + $0x788] sm:$0xff] %vm5598_vm1, %v5355_v38  ;;  %6082 = vst.msk [vmem:[%s7189_s23 + $0xf18] sm:$0xff] %vm5598_vm1, %v5597_v39 }
 0x4d4 PF: > { %s13_s12 = sadd.s32 1, %s6717_s12  }
 0x4d5   : > { %p10_p4 = scmp.ge.s32.totalorder %s13_s12, 4  }
 0x4d7   :  { %12 = sbr.rel (!%p10_p4) target bundleno = 1 (0x1), region = 62 }

</bundles_post_ra>
